<compile_context>
chip_gen: v6e
topology: v6e:2x2x1
jax: 0.10.0
libtpu: 0.0.40
codegen_flags: <defaults>
</compile_context>

<pallas_src>
import functools

import jax
import jax.numpy as jnp
from jax.experimental import pallas as pl
from jax.experimental.pallas import tpu as pltpu

BN_EPS = 1e-5
MXU_DTYPE = jnp.bfloat16          # MXU operand dtype for the per-point chains
VMEM_LIMIT = 32 * 1024 * 1024     # safe on v5e/v6e/v7x


# ------------------------------------------------------------------
# small helpers
# ------------------------------------------------------------------
def _round_up(x, m):
    return (x + m - 1) // m * m


def _point_tiling(n, target=512):
    """Pad the point axis to a multiple of 128 and pick the largest tile
    (multiple of 128, <= target) that divides the padded extent."""
    n_pad = _round_up(n, 128)
    for cand in (512, 384, 256, 128):
        if cand <= target and n_pad % cand == 0:
            return n_pad, cand
    return n_pad, 128


# ------------------------------------------------------------------
# Pallas kernels
# ------------------------------------------------------------------
def _tnet_fused_kernel(x_ref, w1, b1, w2, b2, w3, b3,
                       fw1, fb1, fw2, fb2, fw3, fb3,
                       o_ref, pool, *, n_valid, tn):
    """TransformationNet in one launch:
       conv1/2/3 (+bn+relu) -> masked running max over points (grid-carried)
       -> on the last point tile: fc1/fc2 (+bn+relu) -> fc3 (+eye folded in bias).
    """
    i = pl.program_id(1)

    @pl.when(i == 0)
    def _():
        pool[...] = jnp.full(pool.shape, -jnp.inf, pool.dtype)

    x = x_ref[0].astype(MXU_DTYPE)                                   # (tn, Cin)
    h = jnp.dot(x, w1[...], preferred_element_type=jnp.float32) + b1[...]
    h = jnp.maximum(h, 0.0)
    h = jnp.dot(h.astype(MXU_DTYPE), w2[...],
                preferred_element_type=jnp.float32) + b2[...]
    h = jnp.maximum(h, 0.0)
    h = jnp.dot(h.astype(MXU_DTYPE), w3[...],
                preferred_element_type=jnp.float32) + b3[...]
    h = jnp.maximum(h, 0.0)                                          # (tn, 256)

    # mask rows that belong to the point-axis padding before the max-pool
    row = i * tn + jax.lax.broadcasted_iota(jnp.int32, (tn, 1), 0)
    h = jnp.where(row < n_valid, h, -jnp.inf)
    pool[...] = jnp.maximum(pool[...], jnp.max(h, axis=0, keepdims=True))

    @pl.when(i == pl.num_programs(1) - 1)
    def _():
        g = pool[...]                                                # (1, 256) f32
        g = jnp.dot(g, fw1[...], preferred_element_type=jnp.float32) + fb1[...]
        g = jnp.maximum(g, 0.0)
        g = jnp.dot(g, fw2[...], preferred_element_type=jnp.float32) + fb2[...]
        g = jnp.maximum(g, 0.0)
        o_ref[0] = jnp.dot(g, fw3[...],
                           preferred_element_type=jnp.float32) + fb3[...]


def _backbone_stage1_kernel(x_ref, t_ref, w1, b1, w2, b2, h_ref):
    """bmm(x, input_transform) -> conv1+bn1+relu -> conv2+bn2+relu, h stored bf16."""
    xt = jnp.dot(x_ref[0], t_ref[0], preferred_element_type=jnp.float32)   # (tn, D)
    h = jnp.dot(xt.astype(MXU_DTYPE), w1[...],
                preferred_element_type=jnp.float32) + b1[...]
    h = jnp.maximum(h, 0.0)
    h = jnp.dot(h.astype(MXU_DTYPE), w2[...],
                preferred_element_type=jnp.float32) + b2[...]
    h = jnp.maximum(h, 0.0)
    h_ref[0] = h.astype(h_ref.dtype)


def _backbone_stage2_kernel(h_ref, tw3_ref, b3, w4, b4, w5, b5, o_ref):
    """conv3 with the feature transform pre-folded into its weight
       (h@T)@W3 == h@(T@W3), then conv4, conv5 (all +bn+relu).
       Output is stored transposed (C, tn) so the wrapper needs no extra pass."""
    h = jnp.dot(h_ref[0], tw3_ref[0],
                preferred_element_type=jnp.float32) + b3[...]        # (tn, 64)
    h = jnp.maximum(h, 0.0)
    h = jnp.dot(h.astype(MXU_DTYPE), w4[...],
                preferred_element_type=jnp.float32) + b4[...]
    h = jnp.maximum(h, 0.0)
    h = jnp.dot(h.astype(MXU_DTYPE), w5[...],
                preferred_element_type=jnp.float32) + b5[...]
    h = jnp.maximum(h, 0.0)                                          # (tn, 128)
    o_ref[0] = h.T                                                   # (128, tn)


# ------------------------------------------------------------------
# pallas_call wrappers
# ------------------------------------------------------------------
def tnet_fused(x, p, n_valid, tn):
    """x: (B, Npad, Cin) -> (B, Kpad): fused TransformationNet (flat, lane-padded)."""
    B, Np, Cin = x.shape
    pt, fc = p["point"], p["fc"]
    C1, C2, C3 = pt["w1"].shape[1], pt["w2"].shape[1], pt["w3"].shape[1]
    F1, F2, Kp = fc["w1"].shape[1], fc["w2"].shape[1], fc["w3"].shape[1]
    kernel = functools.partial(_tnet_fused_kernel, n_valid=n_valid, tn=tn)
    out = pl.pallas_call(
        kernel,
        out_shape=jax.ShapeDtypeStruct((B, 1, Kp), jnp.float32),
        grid_spec=pltpu.PrefetchScalarGridSpec(
            num_scalar_prefetch=0,
            grid=(B, Np // tn),
            in_specs=[
                pl.BlockSpec((1, tn, Cin), lambda b, i: (b, i, 0)),
                pl.BlockSpec((Cin, C1), lambda b, i: (0, 0)),
                pl.BlockSpec((1, C1), lambda b, i: (0, 0)),
                pl.BlockSpec((C1, C2), lambda b, i: (0, 0)),
                pl.BlockSpec((1, C2), lambda b, i: (0, 0)),
                pl.BlockSpec((C2, C3), lambda b, i: (0, 0)),
                pl.BlockSpec((1, C3), lambda b, i: (0, 0)),
                pl.BlockSpec((C3, F1), lambda b, i: (0, 0)),
                pl.BlockSpec((1, F1), lambda b, i: (0, 0)),
                pl.BlockSpec((F1, F2), lambda b, i: (0, 0)),
                pl.BlockSpec((1, F2), lambda b, i: (0, 0)),
                pl.BlockSpec((F2, Kp), lambda b, i: (0, 0)),
                pl.BlockSpec((1, Kp), lambda b, i: (0, 0)),
            ],
            out_specs=pl.BlockSpec((1, 1, Kp), lambda b, i: (b, 0, 0)),
            scratch_shapes=[pltpu.VMEM((1, C3), jnp.float32)],
        ),
        compiler_params=pltpu.CompilerParams(
            dimension_semantics=("parallel", "arbitrary"),
            vmem_limit_bytes=VMEM_LIMIT),
    )(x, pt["w1"], pt["t1"], pt["w2"], pt["t2"], pt["w3"], pt["t3"],
      fc["w1"], fc["t1"], fc["w2"], fc["t2"], fc["w3"], fc["t3"])
    return out.reshape(B, Kp)


def tnet_forward(p, x_pad, n_valid, tn, K):
    """x_pad: (B, Npad, Cin) -> (B, K, K) transform (identity already folded in)."""
    B = x_pad.shape[0]
    flat = tnet_fused(x_pad, p, n_valid, tn)
    return flat[:, : K * K].reshape(B, K, K)


def backbone_stage1(x, transform, p, tn):
    """Fused bmm(x, T) + conv1 + conv2; returns bf16 h2 of shape (B, Npad, 64)."""
    B, Np, D = x.shape
    C1, C2 = p["w1"].shape[1], p["w2"].shape[1]
    return pl.pallas_call(
        _backbone_stage1_kernel,
        out_shape=jax.ShapeDtypeStruct((B, Np, C2), MXU_DTYPE),
        grid_spec=pltpu.PrefetchScalarGridSpec(
            num_scalar_prefetch=0,
            grid=(B, Np // tn),
            in_specs=[
                pl.BlockSpec((1, tn, D), lambda b, i: (b, i, 0)),
                pl.BlockSpec((1, D, D), lambda b, i: (b, 0, 0)),
                pl.BlockSpec((D, C1), lambda b, i: (0, 0)),
                pl.BlockSpec((1, C1), lambda b, i: (0, 0)),
                pl.BlockSpec((C1, C2), lambda b, i: (0, 0)),
                pl.BlockSpec((1, C2), lambda b, i: (0, 0)),
            ],
            out_specs=pl.BlockSpec((1, tn, C2), lambda b, i: (b, i, 0)),
        ),
        compiler_params=pltpu.CompilerParams(
            dimension_semantics=("parallel", "parallel"),
            vmem_limit_bytes=VMEM_LIMIT),
    )(x, transform, p["w1"], p["t1"], p["w2"], p["t2"])


def backbone_stage2(h, tw3, p, tn):
    """Fused conv3(with folded transform) + conv4 + conv5; output (B, 128, Npad)."""
    B, Np, C = h.shape
    C3, C4, C5 = tw3.shape[2], p["w4"].shape[1], p["w5"].shape[1]
    return pl.pallas_call(
        _backbone_stage2_kernel,
        out_shape=jax.ShapeDtypeStruct((B, C5, Np), jnp.float32),
        grid_spec=pltpu.PrefetchScalarGridSpec(
            num_scalar_prefetch=0,
            grid=(B, Np // tn),
            in_specs=[
                pl.BlockSpec((1, tn, C), lambda b, i: (b, i, 0)),
                pl.BlockSpec((1, C, C3), lambda b, i: (b, 0, 0)),
                pl.BlockSpec((1, C3), lambda b, i: (0, 0)),
                pl.BlockSpec((C3, C4), lambda b, i: (0, 0)),
                pl.BlockSpec((1, C4), lambda b, i: (0, 0)),
                pl.BlockSpec((C4, C5), lambda b, i: (0, 0)),
                pl.BlockSpec((1, C5), lambda b, i: (0, 0)),
            ],
            out_specs=pl.BlockSpec((1, C5, tn), lambda b, i: (b, 0, i)),
        ),
        compiler_params=pltpu.CompilerParams(
            dimension_semantics=("parallel", "parallel"),
            vmem_limit_bytes=VMEM_LIMIT),
    )(h, tw3, p["t3"], p["w4"], p["t4"], p["w5"], p["t5"])


# ------------------------------------------------------------------
# Deterministic parameter construction (synthetic, no checkpoint load).
# BatchNorm is inference-mode: running stats folded into scale/shift, the scale
# folded into the weight columns, and the T-Net identity folded into fc3's bias.
# ------------------------------------------------------------------
def _fold_conv_bn(key, cin, cout, mxu_dtype):
    kw, kb, kg, kbe, km, kv = jax.random.split(key, 6)
    w = jax.random.normal(kw, (cin, cout), jnp.float32) / jnp.sqrt(cin)
    b = jax.random.normal(kb, (cout,), jnp.float32) * 0.05
    gamma = jax.random.uniform(kg, (cout,), jnp.float32, 0.5, 1.5)
    beta = jax.random.normal(kbe, (cout,), jnp.float32) * 0.05
    mean = jax.random.normal(km, (cout,), jnp.float32) * 0.05
    var = jax.random.uniform(kv, (cout,), jnp.float32, 0.5, 1.5)
    s = gamma / jnp.sqrt(var + BN_EPS)
    t = (b - mean) * s + beta
    return {"w": (w * s[None, :]).astype(mxu_dtype),
            "t": t.reshape(1, cout).astype(jnp.float32)}


def _fold_linear(key, cin, cout, pad_to=None):
    kw, kb = jax.random.split(key)
    w = jax.random.normal(kw, (cin, cout), jnp.float32) / jnp.sqrt(cin)
    b = jax.random.normal(kb, (cout,), jnp.float32) * 0.05
    if pad_to is not None and pad_to > cout:
        w = jnp.pad(w, ((0, 0), (0, pad_to - cout)))
        b = jnp.pad(b, (0, pad_to - cout))
    return {"w": w, "t": b.reshape(1, -1)}


def init_tnet(key, input_dim, output_dim):
    ks = jax.random.split(key, 6)
    c1 = _fold_conv_bn(ks[0], input_dim, 64, MXU_DTYPE)
    c2 = _fold_conv_bn(ks[1], 64, 128, MXU_DTYPE)
    c3 = _fold_conv_bn(ks[2], 128, 256, MXU_DTYPE)
    f1 = _fold_conv_bn(ks[3], 256, 256, jnp.float32)     # fc_1 + bn_4
    f2 = _fold_conv_bn(ks[4], 256, 128, jnp.float32)     # fc_2 + bn_5
    kk = output_dim * output_dim
    kpad = _round_up(kk, 128)
    f3 = _fold_linear(ks[5], 128, kk, pad_to=kpad)
    eye_flat = jnp.pad(jnp.eye(output_dim, dtype=jnp.float32).reshape(1, kk),
                       ((0, 0), (0, kpad - kk)))
    return {
        "point": {"w1": c1["w"], "t1": c1["t"], "w2": c2["w"], "t2": c2["t"],
                  "w3": c3["w"], "t3": c3["t"]},
        "fc": {"w1": f1["w"], "t1": f1["t"], "w2": f2["w"], "t2": f2["t"],
               "w3": f3["w"], "t3": f3["t"] + eye_flat},
    }


def init_base_pointnet(key, point_dimension):
    ks = jax.random.split(key, 7)
    c1 = _fold_conv_bn(ks[2], point_dimension, 64, MXU_DTYPE)
    c2 = _fold_conv_bn(ks[3], 64, 64, MXU_DTYPE)
    c3 = _fold_conv_bn(ks[4], 64, 64, MXU_DTYPE)
    c4 = _fold_conv_bn(ks[5], 64, 128, MXU_DTYPE)
    c5 = _fold_conv_bn(ks[6], 128, 128, MXU_DTYPE)
    return {
        "input_transform": init_tnet(ks[0], point_dimension, point_dimension),
        "feature_transform": init_tnet(ks[1], 64, 64),
        "stage1": {"w1": c1["w"], "t1": c1["t"], "w2": c2["w"], "t2": c2["t"]},
        "stage2": {"w3": c3["w"], "t3": c3["t"], "w4": c4["w"], "t4": c4["t"],
                   "w5": c5["w"], "t5": c5["t"]},
    }


# ------------------------------------------------------------------
# Forward pass
# ------------------------------------------------------------------
def base_pointnet_forward(p, x):
    """x: (B, N, D) points-as-rows (same convention as the PyTorch module)."""
    B, N, D = x.shape
    n_pad, tn = _point_tiling(N)
    x_pad = x if n_pad == N else jnp.pad(x, ((0, 0), (0, n_pad - N), (0, 0)))

    input_transform = tnet_forward(p["input_transform"], x_pad, N, tn, D)      # (B,D,D)
    # tnet_out = (x @ T)^T -- tiny (B*N*D) tensor, computed directly in (B,D,N)
    # layout by XLA instead of a lane-sparse Pallas store + transpose pass.
    tnet_out = jnp.einsum("bnd,bde->ben", x, input_transform)

    h2 = backbone_stage1(x_pad, input_transform, p["stage1"], tn)   # (B,Npad,64) bf16

    k_feat = p["stage1"]["w2"].shape[1]                             # 64
    feature_transform = tnet_forward(p["feature_transform"], h2, N, tn, k_feat)

    # fold the feature transform into conv3's (BN-scaled) weight: (h@T)@W3 == h@(T@W3)
    tw3 = jnp.einsum("bij,jk->bik", feature_transform,
                     p["stage2"]["w3"].astype(jnp.float32)).astype(MXU_DTYPE)

    out = backbone_stage2(h2, tw3, p["stage2"], tn)                 # (B,128,Npad)
    if n_pad != N:
        out = out[:, :, :N]
    return out, feature_transform, tnet_out


# ------------------------------------------------------------------
# Pure-JAX reference (same dtype / folding policy) for a correctness check
# ------------------------------------------------------------------
def reference_forward(p, x):
    def layer(h, w, t, relu=True):
        y = jnp.dot(h.astype(w.dtype), w, preferred_element_type=jnp.float32) + t
        return jnp.maximum(y, 0.0) if relu else y

    def tnet(tp, h, K):
        B = h.shape[0]
        pt, fc = tp["point"], tp["fc"]
        g = layer(layer(layer(h, pt["w1"], pt["t1"]), pt["w2"], pt["t2"]),
                  pt["w3"], pt["t3"])
        g = jnp.max(g, axis=1)
        g = layer(layer(g, fc["w1"], fc["t1"]), fc["w2"], fc["t2"])
        g = layer(g, fc["w3"], fc["t3"], relu=False)[:, : K * K]   # eye folded into t3
        return g.reshape(B, K, K)

    D = x.shape[2]
    t_in = tnet(p["input_transform"], x, D)
    xt = jnp.einsum("bnd,bde->bne", x, t_in)
    s1 = p["stage1"]
    h2 = layer(layer(xt, s1["w1"], s1["t1"]), s1["w2"], s1["t2"]).astype(MXU_DTYPE)
    t_feat = tnet(p["feature_transform"], h2, s1["w2"].shape[1])
    s2 = p["stage2"]
    tw3 = jnp.einsum("bij,jk->bik", t_feat,
                     s2["w3"].astype(jnp.float32)).astype(MXU_DTYPE)
    h = jnp.einsum("bnc,bck->bnk", h2, tw3,
                   preferred_element_type=jnp.float32) + s2["t3"]
    h = jnp.maximum(h, 0.0)
    out = layer(layer(h, s2["w4"], s2["t4"]), s2["w5"], s2["t5"])
    return (jnp.transpose(out, (0, 2, 1)), t_feat, jnp.transpose(xt, (0, 2, 1)))


if __name__ == "__main__":
    B, N, D = 2, 128, 3   # batch, num_points, point_dimension
    k_params, k_x = jax.random.split(jax.random.PRNGKey(0))
    params = init_base_pointnet(k_params, D)
    x = jax.random.normal(k_x, (B, N, D), jnp.float32)

    fwd = jax.jit(base_pointnet_forward)
    out, feat_t, tnet_out = fwd(params, x)
    jax.block_until_ready((out, feat_t, tnet_out))

    assert out.shape == (B, 128, N)
    assert feat_t.shape == (B, 64, 64)
    assert tnet_out.shape == (B, D, N)
    assert bool(jnp.all(jnp.isfinite(out)))

    ref_out, ref_ft, ref_tn = reference_forward(params, x)
    assert bool(jnp.allclose(out, ref_out, rtol=5e-2, atol=5e-2))
    assert bool(jnp.allclose(feat_t, ref_ft, rtol=5e-2, atol=5e-2))
    assert bool(jnp.allclose(tnet_out, ref_tn, rtol=5e-2, atol=5e-2))

    print("KERNEL_OK")
</pallas_src>

<mosaic_0001>
module attributes {stable_mosaic.version = 11 : i64} {
  func.func @_tnet_fused_kernel(%arg0: i32, %arg1: i32, %arg2: memref<1x128x3xf32, #tpu.memory_space<vmem>>, %arg3: memref<3x64xbf16, #tpu.memory_space<vmem>>, %arg4: memref<1x64xf32, #tpu.memory_space<vmem>>, %arg5: memref<64x128xbf16, #tpu.memory_space<vmem>>, %arg6: memref<1x128xf32, #tpu.memory_space<vmem>>, %arg7: memref<128x256xbf16, #tpu.memory_space<vmem>>, %arg8: memref<1x256xf32, #tpu.memory_space<vmem>>, %arg9: memref<256x256xf32, #tpu.memory_space<vmem>>, %arg10: memref<1x256xf32, #tpu.memory_space<vmem>>, %arg11: memref<256x128xf32, #tpu.memory_space<vmem>>, %arg12: memref<1x128xf32, #tpu.memory_space<vmem>>, %arg13: memref<128x128xf32, #tpu.memory_space<vmem>>, %arg14: memref<1x128xf32, #tpu.memory_space<vmem>>, %arg15: memref<1x1x128xf32, #tpu.memory_space<vmem>>, %arg16: memref<1x256xf32, #tpu.memory_space<vmem>>) attributes {dimension_semantics = [#tpu.dimension_semantics<parallel>, #tpu.dimension_semantics<arbitrary>], iteration_bounds = array<i64: 2, 1>, scalar_prefetch = 0 : i64, scratch_operands = 1 : i64, tpu.core_type = #tpu.core_type<tc>, window_params = [{transform_indices = @transform_0, window_bounds = array<i64: 1, 128, 3>}, {pipeline_mode = #tpu.pipeline_mode<synchronous>, transform_indices = @transform_1, window_bounds = array<i64: 3, 64>}, {pipeline_mode = #tpu.pipeline_mode<synchronous>, transform_indices = @transform_2, window_bounds = array<i64: 1, 64>}, {pipeline_mode = #tpu.pipeline_mode<synchronous>, transform_indices = @transform_3, window_bounds = array<i64: 64, 128>}, {pipeline_mode = #tpu.pipeline_mode<synchronous>, transform_indices = @transform_4, window_bounds = array<i64: 1, 128>}, {pipeline_mode = #tpu.pipeline_mode<synchronous>, transform_indices = @transform_5, window_bounds = array<i64: 128, 256>}, {pipeline_mode = #tpu.pipeline_mode<synchronous>, transform_indices = @transform_6, window_bounds = array<i64: 1, 256>}, {pipeline_mode = #tpu.pipeline_mode<synchronous>, transform_indices = @transform_7, window_bounds = array<i64: 256, 256>}, {pipeline_mode = #tpu.pipeline_mode<synchronous>, transform_indices = @transform_8, window_bounds = array<i64: 1, 256>}, {pipeline_mode = #tpu.pipeline_mode<synchronous>, transform_indices = @transform_9, window_bounds = array<i64: 256, 128>}, {pipeline_mode = #tpu.pipeline_mode<synchronous>, transform_indices = @transform_10, window_bounds = array<i64: 1, 128>}, {pipeline_mode = #tpu.pipeline_mode<synchronous>, transform_indices = @transform_11, window_bounds = array<i64: 128, 128>}, {pipeline_mode = #tpu.pipeline_mode<synchronous>, transform_indices = @transform_12, window_bounds = array<i64: 1, 128>}, {transform_indices = @transform_13, window_bounds = array<i64: 1, 1, 128>}]} {
    %c0_i32 = arith.constant 0 : i32
    %0 = arith.cmpi eq, %arg1, %c0_i32 : i32
    %1 = arith.extui %0 : i1 to i32
    %c0_i32_0 = arith.constant 0 : i32
    %2 = arith.cmpi ne, %1, %c0_i32_0 : i32
    scf.if %2 {
      %cst_29 = arith.constant 0xFF800000 : f32
      %47 = vector.broadcast %cst_29 : f32 to vector<1x256xf32>
      %c0_30 = arith.constant 0 : index
      %c0_31 = arith.constant 0 : index
      %48 = vector.load %arg16[%c0_30, %c0_31] : memref<1x256xf32, #tpu.memory_space<vmem>>, vector<1x256xf32>
      tpu.vector_store %arg16[%c0_30, %c0_31], %47 {strides = array<i32>} : memref<1x256xf32, #tpu.memory_space<vmem>>, vector<1x256xf32>,
    } else {
    }
    %c0 = arith.constant 0 : index
    %c0_1 = arith.constant 0 : index
    %c0_2 = arith.constant 0 : index
    %3 = vector.load %arg2[%c0, %c0_1, %c0_2] : memref<1x128x3xf32, #tpu.memory_space<vmem>>, vector<1x128x3xf32>
    %4 = vector.shape_cast %3 : vector<1x128x3xf32> to vector<128x3xf32>
    %5 = arith.truncf %4 : vector<128x3xf32> to vector<128x3xbf16>
    %c0_3 = arith.constant 0 : index
    %c0_4 = arith.constant 0 : index
    %6 = vector.load %arg3[%c0_3, %c0_4] : memref<3x64xbf16, #tpu.memory_space<vmem>>, vector<3x64xbf16>
    %cst = arith.constant dense<0.000000e+00> : vector<128x64xf32>
    %7 = tpu.matmul %5, %6, %cst {dimension_numbers = #tpu.dot_dimension_numbers<[1], [0], [0], [1], [0, 0, 1, 1], [], []>} : vector<128x3xbf16>, vector<3x64xbf16>, vector<128x64xf32> -> vector<128x64xf32>
    %c0_5 = arith.constant 0 : index
    %c0_6 = arith.constant 0 : index
    %8 = vector.load %arg4[%c0_5, %c0_6] : memref<1x64xf32, #tpu.memory_space<vmem>>, vector<1x64xf32>
    %9 = vector.broadcast %8 : vector<1x64xf32> to vector<128x64xf32>
    %10 = arith.addf %7, %9 : vector<128x64xf32>
    %cst_7 = arith.constant 0.000000e+00 : f32
    %11 = vector.broadcast %cst_7 : f32 to vector<128x64xf32>
    %12 = arith.maximumf %10, %11 : vector<128x64xf32>
    %13 = arith.truncf %12 : vector<128x64xf32> to vector<128x64xbf16>
    %c0_8 = arith.constant 0 : index
    %c0_9 = arith.constant 0 : index
    %14 = vector.load %arg5[%c0_8, %c0_9] : memref<64x128xbf16, #tpu.memory_space<vmem>>, vector<64x128xbf16>
    %cst_10 = arith.constant dense<0.000000e+00> : vector<128x128xf32>
    %15 = tpu.matmul %13, %14, %cst_10 {dimension_numbers = #tpu.dot_dimension_numbers<[1], [0], [0], [1], [0, 0, 1, 1], [], []>} : vector<128x64xbf16>, vector<64x128xbf16>, vector<128x128xf32> -> vector<128x128xf32>
    %c0_11 = arith.constant 0 : index
    %c0_12 = arith.constant 0 : index
    %16 = vector.load %arg6[%c0_11, %c0_12] : memref<1x128xf32, #tpu.memory_space<vmem>>, vector<1x128xf32>
    %17 = vector.broadcast %16 : vector<1x128xf32> to vector<128x128xf32>
    %18 = arith.addf %15, %17 : vector<128x128xf32>
    %cst_13 = arith.constant 0.000000e+00 : f32
    %19 = vector.broadcast %cst_13 : f32 to vector<128x128xf32>
    %20 = arith.maximumf %18, %19 : vector<128x128xf32>
    %21 = arith.truncf %20 : vector<128x128xf32> to vector<128x128xbf16>
    %c0_14 = arith.constant 0 : index
    %c0_15 = arith.constant 0 : index
    %22 = vector.load %arg7[%c0_14, %c0_15] : memref<128x256xbf16, #tpu.memory_space<vmem>>, vector<128x256xbf16>
    %cst_16 = arith.constant dense<0.000000e+00> : vector<128x256xf32>
    %23 = tpu.matmul %21, %22, %cst_16 {dimension_numbers = #tpu.dot_dimension_numbers<[1], [0], [0], [1], [0, 0, 1, 1], [], []>} : vector<128x128xbf16>, vector<128x256xbf16>, vector<128x256xf32> -> vector<128x256xf32>
    %c0_17 = arith.constant 0 : index
    %c0_18 = arith.constant 0 : index
    %24 = vector.load %arg8[%c0_17, %c0_18] : memref<1x256xf32, #tpu.memory_space<vmem>>, vector<1x256xf32>
    %25 = vector.broadcast %24 : vector<1x256xf32> to vector<128x256xf32>
    %26 = arith.addf %23, %25 : vector<128x256xf32>
    %cst_19 = arith.constant 0.000000e+00 : f32
    %27 = vector.broadcast %cst_19 : f32 to vector<128x256xf32>
    %28 = arith.maximumf %26, %27 : vector<128x256xf32>
    %c128_i32 = arith.constant 128 : i32
    %29 = arith.muli %arg1, %c128_i32 : i32
    %30 = tpu.iota {dimensions = array<i32: 0>} : vector<128x1xi32>
    %31 = vector.broadcast %29 : i32 to vector<128x1xi32>
    %32 = arith.addi %31, %30 : vector<128x1xi32>
    %c128_i32_20 = arith.constant 128 : i32
    %33 = vector.broadcast %c128_i32_20 : i32 to vector<128x1xi32>
    %34 = arith.cmpi slt, %32, %33 : vector<128x1xi32>
    %cst_21 = arith.constant 0xFF800000 : f32
    %35 = vector.shape_cast %34 : vector<128x1xi1> to vector<128x1xi1>
    %36 = vector.broadcast %35 : vector<128x1xi1> to vector<128x256xi1>
    %37 = vector.broadcast %cst_21 : f32 to vector<128x256xf32>
    %38 = arith.select %36, %28, %37 : vector<128x256xi1>, vector<128x256xf32>
    %c0_22 = arith.constant 0 : index
    %c0_23 = arith.constant 0 : index
    %39 = vector.load %arg16[%c0_22, %c0_23] : memref<1x256xf32, #tpu.memory_space<vmem>>, vector<1x256xf32>
    %cst_24 = arith.constant dense<0xFF800000> : vector<256xf32>
    %40 = vector.multi_reduction <maximumf>, %38, %cst_24 [0] : vector<128x256xf32> to vector<256xf32>
    %41 = vector.shape_cast %40 : vector<256xf32> to vector<1x256xf32>
    %42 = arith.maximumf %39, %41 : vector<1x256xf32>
    %c0_25 = arith.constant 0 : index
    %c0_26 = arith.constant 0 : index
    %43 = vector.load %arg16[%c0_25, %c0_26] : memref<1x256xf32, #tpu.memory_space<vmem>>, vector<1x256xf32>
    tpu.vector_store %arg16[%c0_25, %c0_26], %42 {strides = array<i32>} : memref<1x256xf32, #tpu.memory_space<vmem>>, vector<1x256xf32>,
    %c0_i32_27 = arith.constant 0 : i32
    %44 = arith.cmpi eq, %arg1, %c0_i32_27 : i32
    %45 = arith.extui %44 : i1 to i32
    %c0_i32_28 = arith.constant 0 : i32
    %46 = arith.cmpi ne, %45, %c0_i32_28 : i32
    scf.if %46 {
      %c0_29 = arith.constant 0 : index
      %c0_30 = arith.constant 0 : index
      %47 = vector.load %arg16[%c0_29, %c0_30] : memref<1x256xf32, #tpu.memory_space<vmem>>, vector<1x256xf32>
      %c0_31 = arith.constant 0 : index
      %c0_32 = arith.constant 0 : index
      %48 = vector.load %arg9[%c0_31, %c0_32] : memref<256x256xf32, #tpu.memory_space<vmem>>, vector<256x256xf32>
      %cst_33 = arith.constant dense<0.000000e+00> : vector<1x256xf32>
      %49 = tpu.matmul %47, %48, %cst_33 {dimension_numbers = #tpu.dot_dimension_numbers<[1], [0], [0], [1], [0, 0, 1, 1], [], []>} : vector<1x256xf32>, vector<256x256xf32>, vector<1x256xf32> -> vector<1x256xf32>
      %c0_34 = arith.constant 0 : index
      %c0_35 = arith.constant 0 : index
      %50 = vector.load %arg10[%c0_34, %c0_35] : memref<1x256xf32, #tpu.memory_space<vmem>>, vector<1x256xf32>
      %51 = arith.addf %49, %50 : vector<1x256xf32>
      %cst_36 = arith.constant 0.000000e+00 : f32
      %52 = vector.broadcast %cst_36 : f32 to vector<1x256xf32>
      %53 = arith.maximumf %51, %52 : vector<1x256xf32>
      %c0_37 = arith.constant 0 : index
      %c0_38 = arith.constant 0 : index
      %54 = vector.load %arg11[%c0_37, %c0_38] : memref<256x128xf32, #tpu.memory_space<vmem>>, vector<256x128xf32>
      %cst_39 = arith.constant dense<0.000000e+00> : vector<1x128xf32>
      %55 = tpu.matmul %53, %54, %cst_39 {dimension_numbers = #tpu.dot_dimension_numbers<[1], [0], [0], [1], [0, 0, 1, 1], [], []>} : vector<1x256xf32>, vector<256x128xf32>, vector<1x128xf32> -> vector<1x128xf32>
      %c0_40 = arith.constant 0 : index
      %c0_41 = arith.constant 0 : index
      %56 = vector.load %arg12[%c0_40, %c0_41] : memref<1x128xf32, #tpu.memory_space<vmem>>, vector<1x128xf32>
      %57 = arith.addf %55, %56 : vector<1x128xf32>
      %cst_42 = arith.constant 0.000000e+00 : f32
      %58 = vector.broadcast %cst_42 : f32 to vector<1x128xf32>
      %59 = arith.maximumf %57, %58 : vector<1x128xf32>
      %c0_43 = arith.constant 0 : index
      %c0_44 = arith.constant 0 : index
      %60 = vector.load %arg13[%c0_43, %c0_44] : memref<128x128xf32, #tpu.memory_space<vmem>>, vector<128x128xf32>
      %cst_45 = arith.constant dense<0.000000e+00> : vector<1x128xf32>
      %61 = tpu.matmul %59, %60, %cst_45 {dimension_numbers = #tpu.dot_dimension_numbers<[1], [0], [0], [1], [0, 0, 1, 1], [], []>} : vector<1x128xf32>, vector<128x128xf32>, vector<1x128xf32> -> vector<1x128xf32>
      %c0_46 = arith.constant 0 : index
      %c0_47 = arith.constant 0 : index
      %62 = vector.load %arg14[%c0_46, %c0_47] : memref<1x128xf32, #tpu.memory_space<vmem>>, vector<1x128xf32>
      %63 = arith.addf %61, %62 : vector<1x128xf32>
      %c0_48 = arith.constant 0 : index
      %c0_49 = arith.constant 0 : index
      %c0_50 = arith.constant 0 : index
      %64 = vector.load %arg15[%c0_48, %c0_49, %c0_50] : memref<1x1x128xf32, #tpu.memory_space<vmem>>, vector<1x1x128xf32>
      %65 = vector.shape_cast %64 : vector<1x1x128xf32> to vector<1x128xf32>
      %66 = vector.shape_cast %63 : vector<1x128xf32> to vector<1x1x128xf32>
      tpu.vector_store %arg15[%c0_48, %c0_49, %c0_50], %66 {strides = array<i32>} : memref<1x1x128xf32, #tpu.memory_space<vmem>>, vector<1x1x128xf32>,
    } else {
    }
    return
  }
  func.func @transform_0(%arg0: i32, %arg1: i32) -> (i32, i32, i32) {
    %c0_i32 = arith.constant 0 : i32
    %c0_i32_0 = arith.constant 0 : i32
    return %arg0, %arg1, %c0_i32 : i32, i32, i32
  }
  func.func @transform_1(%arg0: i32, %arg1: i32) -> (i32, i32) {
    %c0_i32 = arith.constant 0 : i32
    %c0_i32_0 = arith.constant 0 : i32
    %c0_i32_1 = arith.constant 0 : i32
    return %c0_i32, %c0_i32_0 : i32, i32
  }
  func.func @transform_2(%arg0: i32, %arg1: i32) -> (i32, i32) {
    %c0_i32 = arith.constant 0 : i32
    %c0_i32_0 = arith.constant 0 : i32
    %c0_i32_1 = arith.constant 0 : i32
    return %c0_i32, %c0_i32_0 : i32, i32
  }
  func.func @transform_3(%arg0: i32, %arg1: i32) -> (i32, i32) {
    %c0_i32 = arith.constant 0 : i32
    %c0_i32_0 = arith.constant 0 : i32
    %c0_i32_1 = arith.constant 0 : i32
    return %c0_i32, %c0_i32_0 : i32, i32
  }
  func.func @transform_4(%arg0: i32, %arg1: i32) -> (i32, i32) {
    %c0_i32 = arith.constant 0 : i32
    %c0_i32_0 = arith.constant 0 : i32
    %c0_i32_1 = arith.constant 0 : i32
    return %c0_i32, %c0_i32_0 : i32, i32
  }
  func.func @transform_5(%arg0: i32, %arg1: i32) -> (i32, i32) {
    %c0_i32 = arith.constant 0 : i32
    %c0_i32_0 = arith.constant 0 : i32
    %c0_i32_1 = arith.constant 0 : i32
    return %c0_i32, %c0_i32_0 : i32, i32
  }
  func.func @transform_6(%arg0: i32, %arg1: i32) -> (i32, i32) {
    %c0_i32 = arith.constant 0 : i32
    %c0_i32_0 = arith.constant 0 : i32
    %c0_i32_1 = arith.constant 0 : i32
    return %c0_i32, %c0_i32_0 : i32, i32
  }
  func.func @transform_7(%arg0: i32, %arg1: i32) -> (i32, i32) {
    %c0_i32 = arith.constant 0 : i32
    %c0_i32_0 = arith.constant 0 : i32
    %c0_i32_1 = arith.constant 0 : i32
    return %c0_i32, %c0_i32_0 : i32, i32
  }
  func.func @transform_8(%arg0: i32, %arg1: i32) -> (i32, i32) {
    %c0_i32 = arith.constant 0 : i32
    %c0_i32_0 = arith.constant 0 : i32
    %c0_i32_1 = arith.constant 0 : i32
    return %c0_i32, %c0_i32_0 : i32, i32
  }
  func.func @transform_9(%arg0: i32, %arg1: i32) -> (i32, i32) {
    %c0_i32 = arith.constant 0 : i32
    %c0_i32_0 = arith.constant 0 : i32
    %c0_i32_1 = arith.constant 0 : i32
    return %c0_i32, %c0_i32_0 : i32, i32
  }
  func.func @transform_10(%arg0: i32, %arg1: i32) -> (i32, i32) {
    %c0_i32 = arith.constant 0 : i32
    %c0_i32_0 = arith.constant 0 : i32
    %c0_i32_1 = arith.constant 0 : i32
    return %c0_i32, %c0_i32_0 : i32, i32
  }
  func.func @transform_11(%arg0: i32, %arg1: i32) -> (i32, i32) {
    %c0_i32 = arith.constant 0 : i32
    %c0_i32_0 = arith.constant 0 : i32
    %c0_i32_1 = arith.constant 0 : i32
    return %c0_i32, %c0_i32_0 : i32, i32
  }
  func.func @transform_12(%arg0: i32, %arg1: i32) -> (i32, i32) {
    %c0_i32 = arith.constant 0 : i32
    %c0_i32_0 = arith.constant 0 : i32
    %c0_i32_1 = arith.constant 0 : i32
    return %c0_i32, %c0_i32_0 : i32, i32
  }
  func.func @transform_13(%arg0: i32, %arg1: i32) -> (i32, i32, i32) {
    %c0_i32 = arith.constant 0 : i32
    %c0_i32_0 = arith.constant 0 : i32
    %c0_i32_1 = arith.constant 0 : i32
    return %arg0, %c0_i32, %c0_i32_0 : i32, i32, i32
  }
}

module attributes {stable_mosaic.version = 11 : i64} {
  func.func @_backbone_stage1_kernel(%arg0: i32, %arg1: i32, %arg2: memref<1x128x3xf32, #tpu.memory_space<vmem>>, %arg3: memref<1x3x3xf32, #tpu.memory_space<vmem>>, %arg4: memref<3x64xbf16, #tpu.memory_space<vmem>>, %arg5: memref<1x64xf32, #tpu.memory_space<vmem>>, %arg6: memref<64x64xbf16, #tpu.memory_space<vmem>>, %arg7: memref<1x64xf32, #tpu.memory_space<vmem>>, %arg8: memref<1x128x64xbf16, #tpu.memory_space<vmem>>) attributes {dimension_semantics = [#tpu.dimension_semantics<parallel>, #tpu.dimension_semantics<parallel>], iteration_bounds = array<i64: 2, 1>, scalar_prefetch = 0 : i64, scratch_operands = 0 : i64, tpu.core_type = #tpu.core_type<tc>, window_params = [{transform_indices = @transform_0, window_bounds = array<i64: 1, 128, 3>}, {transform_indices = @transform_1, window_bounds = array<i64: 1, 3, 3>}, {pipeline_mode = #tpu.pipeline_mode<synchronous>, transform_indices = @transform_2, window_bounds = array<i64: 3, 64>}, {pipeline_mode = #tpu.pipeline_mode<synchronous>, transform_indices = @transform_3, window_bounds = array<i64: 1, 64>}, {pipeline_mode = #tpu.pipeline_mode<synchronous>, transform_indices = @transform_4, window_bounds = array<i64: 64, 64>}, {pipeline_mode = #tpu.pipeline_mode<synchronous>, transform_indices = @transform_5, window_bounds = array<i64: 1, 64>}, {transform_indices = @transform_6, window_bounds = array<i64: 1, 128, 64>}]} {
    %c0 = arith.constant 0 : index
    %c0_0 = arith.constant 0 : index
    %c0_1 = arith.constant 0 : index
    %0 = vector.load %arg2[%c0, %c0_0, %c0_1] : memref<1x128x3xf32, #tpu.memory_space<vmem>>, vector<1x128x3xf32>
    %1 = vector.shape_cast %0 : vector<1x128x3xf32> to vector<128x3xf32>
    %c0_2 = arith.constant 0 : index
    %c0_3 = arith.constant 0 : index
    %c0_4 = arith.constant 0 : index
    %2 = vector.load %arg3[%c0_2, %c0_3, %c0_4] : memref<1x3x3xf32, #tpu.memory_space<vmem>>, vector<1x3x3xf32>
    %3 = vector.shape_cast %2 : vector<1x3x3xf32> to vector<3x3xf32>
    %cst = arith.constant dense<0.000000e+00> : vector<128x3xf32>
    %4 = tpu.matmul %1, %3, %cst {dimension_numbers = #tpu.dot_dimension_numbers<[1], [0], [0], [1], [0, 0, 1, 1], [], []>} : vector<128x3xf32>, vector<3x3xf32>, vector<128x3xf32> -> vector<128x3xf32>
    %5 = arith.truncf %4 : vector<128x3xf32> to vector<128x3xbf16>
    %c0_5 = arith.constant 0 : index
    %c0_6 = arith.constant 0 : index
    %6 = vector.load %arg4[%c0_5, %c0_6] : memref<3x64xbf16, #tpu.memory_space<vmem>>, vector<3x64xbf16>
    %cst_7 = arith.constant dense<0.000000e+00> : vector<128x64xf32>
    %7 = tpu.matmul %5, %6, %cst_7 {dimension_numbers = #tpu.dot_dimension_numbers<[1], [0], [0], [1], [0, 0, 1, 1], [], []>} : vector<128x3xbf16>, vector<3x64xbf16>, vector<128x64xf32> -> vector<128x64xf32>
    %c0_8 = arith.constant 0 : index
    %c0_9 = arith.constant 0 : index
    %8 = vector.load %arg5[%c0_8, %c0_9] : memref<1x64xf32, #tpu.memory_space<vmem>>, vector<1x64xf32>
    %9 = vector.broadcast %8 : vector<1x64xf32> to vector<128x64xf32>
    %10 = arith.addf %7, %9 : vector<128x64xf32>
    %cst_10 = arith.constant 0.000000e+00 : f32
    %11 = vector.broadcast %cst_10 : f32 to vector<128x64xf32>
    %12 = arith.maximumf %10, %11 : vector<128x64xf32>
    %13 = arith.truncf %12 : vector<128x64xf32> to vector<128x64xbf16>
    %c0_11 = arith.constant 0 : index
    %c0_12 = arith.constant 0 : index
    %14 = vector.load %arg6[%c0_11, %c0_12] : memref<64x64xbf16, #tpu.memory_space<vmem>>, vector<64x64xbf16>
    %cst_13 = arith.constant dense<0.000000e+00> : vector<128x64xf32>
    %15 = tpu.matmul %13, %14, %cst_13 {dimension_numbers = #tpu.dot_dimension_numbers<[1], [0], [0], [1], [0, 0, 1, 1], [], []>} : vector<128x64xbf16>, vector<64x64xbf16>, vector<128x64xf32> -> vector<128x64xf32>
    %c0_14 = arith.constant 0 : index
    %c0_15 = arith.constant 0 : index
    %16 = vector.load %arg7[%c0_14, %c0_15] : memref<1x64xf32, #tpu.memory_space<vmem>>, vector<1x64xf32>
    %17 = vector.broadcast %16 : vector<1x64xf32> to vector<128x64xf32>
    %18 = arith.addf %15, %17 : vector<128x64xf32>
    %cst_16 = arith.constant 0.000000e+00 : f32
    %19 = vector.broadcast %cst_16 : f32 to vector<128x64xf32>
    %20 = arith.maximumf %18, %19 : vector<128x64xf32>
    %21 = arith.truncf %20 : vector<128x64xf32> to vector<128x64xbf16>
    %c0_17 = arith.constant 0 : index
    %c0_18 = arith.constant 0 : index
    %c0_19 = arith.constant 0 : index
    %22 = vector.load %arg8[%c0_17, %c0_18, %c0_19] : memref<1x128x64xbf16, #tpu.memory_space<vmem>>, vector<1x128x64xbf16>
    %23 = vector.shape_cast %22 : vector<1x128x64xbf16> to vector<128x64xbf16>
    %24 = vector.shape_cast %21 : vector<128x64xbf16> to vector<1x128x64xbf16>
    tpu.vector_store %arg8[%c0_17, %c0_18, %c0_19], %24 {strides = array<i32>} : memref<1x128x64xbf16, #tpu.memory_space<vmem>>, vector<1x128x64xbf16>,
    return
  }
  func.func @transform_0(%arg0: i32, %arg1: i32) -> (i32, i32, i32) {
    %c0_i32 = arith.constant 0 : i32
    %c0_i32_0 = arith.constant 0 : i32
    return %arg0, %arg1, %c0_i32 : i32, i32, i32
  }
  func.func @transform_1(%arg0: i32, %arg1: i32) -> (i32, i32, i32) {
    %c0_i32 = arith.constant 0 : i32
    %c0_i32_0 = arith.constant 0 : i32
    %c0_i32_1 = arith.constant 0 : i32
    return %arg0, %c0_i32, %c0_i32_0 : i32, i32, i32
  }
  func.func @transform_2(%arg0: i32, %arg1: i32) -> (i32, i32) {
    %c0_i32 = arith.constant 0 : i32
    %c0_i32_0 = arith.constant 0 : i32
    %c0_i32_1 = arith.constant 0 : i32
    return %c0_i32, %c0_i32_0 : i32, i32
  }
  func.func @transform_3(%arg0: i32, %arg1: i32) -> (i32, i32) {
    %c0_i32 = arith.constant 0 : i32
    %c0_i32_0 = arith.constant 0 : i32
    %c0_i32_1 = arith.constant 0 : i32
    return %c0_i32, %c0_i32_0 : i32, i32
  }
  func.func @transform_4(%arg0: i32, %arg1: i32) -> (i32, i32) {
    %c0_i32 = arith.constant 0 : i32
    %c0_i32_0 = arith.constant 0 : i32
    %c0_i32_1 = arith.constant 0 : i32
    return %c0_i32, %c0_i32_0 : i32, i32
  }
  func.func @transform_5(%arg0: i32, %arg1: i32) -> (i32, i32) {
    %c0_i32 = arith.constant 0 : i32
    %c0_i32_0 = arith.constant 0 : i32
    %c0_i32_1 = arith.constant 0 : i32
    return %c0_i32, %c0_i32_0 : i32, i32
  }
  func.func @transform_6(%arg0: i32, %arg1: i32) -> (i32, i32, i32) {
    %c0_i32 = arith.constant 0 : i32
    %c0_i32_0 = arith.constant 0 : i32
    return %arg0, %arg1, %c0_i32 : i32, i32, i32
  }
}

module attributes {stable_mosaic.version = 11 : i64} {
  func.func @_tnet_fused_kernel(%arg0: i32, %arg1: i32, %arg2: memref<1x128x64xbf16, #tpu.memory_space<vmem>>, %arg3: memref<64x64xbf16, #tpu.memory_space<vmem>>, %arg4: memref<1x64xf32, #tpu.memory_space<vmem>>, %arg5: memref<64x128xbf16, #tpu.memory_space<vmem>>, %arg6: memref<1x128xf32, #tpu.memory_space<vmem>>, %arg7: memref<128x256xbf16, #tpu.memory_space<vmem>>, %arg8: memref<1x256xf32, #tpu.memory_space<vmem>>, %arg9: memref<256x256xf32, #tpu.memory_space<vmem>>, %arg10: memref<1x256xf32, #tpu.memory_space<vmem>>, %arg11: memref<256x128xf32, #tpu.memory_space<vmem>>, %arg12: memref<1x128xf32, #tpu.memory_space<vmem>>, %arg13: memref<128x4096xf32, #tpu.memory_space<vmem>>, %arg14: memref<1x4096xf32, #tpu.memory_space<vmem>>, %arg15: memref<1x1x4096xf32, #tpu.memory_space<vmem>>, %arg16: memref<1x256xf32, #tpu.memory_space<vmem>>) attributes {dimension_semantics = [#tpu.dimension_semantics<parallel>, #tpu.dimension_semantics<arbitrary>], iteration_bounds = array<i64: 2, 1>, scalar_prefetch = 0 : i64, scratch_operands = 1 : i64, tpu.core_type = #tpu.core_type<tc>, window_params = [{transform_indices = @transform_0, window_bounds = array<i64: 1, 128, 64>}, {pipeline_mode = #tpu.pipeline_mode<synchronous>, transform_indices = @transform_1, window_bounds = array<i64: 64, 64>}, {pipeline_mode = #tpu.pipeline_mode<synchronous>, transform_indices = @transform_2, window_bounds = array<i64: 1, 64>}, {pipeline_mode = #tpu.pipeline_mode<synchronous>, transform_indices = @transform_3, window_bounds = array<i64: 64, 128>}, {pipeline_mode = #tpu.pipeline_mode<synchronous>, transform_indices = @transform_4, window_bounds = array<i64: 1, 128>}, {pipeline_mode = #tpu.pipeline_mode<synchronous>, transform_indices = @transform_5, window_bounds = array<i64: 128, 256>}, {pipeline_mode = #tpu.pipeline_mode<synchronous>, transform_indices = @transform_6, window_bounds = array<i64: 1, 256>}, {pipeline_mode = #tpu.pipeline_mode<synchronous>, transform_indices = @transform_7, window_bounds = array<i64: 256, 256>}, {pipeline_mode = #tpu.pipeline_mode<synchronous>, transform_indices = @transform_8, window_bounds = array<i64: 1, 256>}, {pipeline_mode = #tpu.pipeline_mode<synchronous>, transform_indices = @transform_9, window_bounds = array<i64: 256, 128>}, {pipeline_mode = #tpu.pipeline_mode<synchronous>, transform_indices = @transform_10, window_bounds = array<i64: 1, 128>}, {pipeline_mode = #tpu.pipeline_mode<synchronous>, transform_indices = @transform_11, window_bounds = array<i64: 128, 4096>}, {pipeline_mode = #tpu.pipeline_mode<synchronous>, transform_indices = @transform_12, window_bounds = array<i64: 1, 4096>}, {transform_indices = @transform_13, window_bounds = array<i64: 1, 1, 4096>}]} {
    %c0_i32 = arith.constant 0 : i32
    %0 = arith.cmpi eq, %arg1, %c0_i32 : i32
    %1 = arith.extui %0 : i1 to i32
    %c0_i32_0 = arith.constant 0 : i32
    %2 = arith.cmpi ne, %1, %c0_i32_0 : i32
    scf.if %2 {
      %cst_29 = arith.constant 0xFF800000 : f32
      %46 = vector.broadcast %cst_29 : f32 to vector<1x256xf32>
      %c0_30 = arith.constant 0 : index
      %c0_31 = arith.constant 0 : index
      %47 = vector.load %arg16[%c0_30, %c0_31] : memref<1x256xf32, #tpu.memory_space<vmem>>, vector<1x256xf32>
      tpu.vector_store %arg16[%c0_30, %c0_31], %46 {strides = array<i32>} : memref<1x256xf32, #tpu.memory_space<vmem>>, vector<1x256xf32>,
    } else {
    }
    %c0 = arith.constant 0 : index
    %c0_1 = arith.constant 0 : index
    %c0_2 = arith.constant 0 : index
    %3 = vector.load %arg2[%c0, %c0_1, %c0_2] : memref<1x128x64xbf16, #tpu.memory_space<vmem>>, vector<1x128x64xbf16>
    %4 = vector.shape_cast %3 : vector<1x128x64xbf16> to vector<128x64xbf16>
    %c0_3 = arith.constant 0 : index
    %c0_4 = arith.constant 0 : index
    %5 = vector.load %arg3[%c0_3, %c0_4] : memref<64x64xbf16, #tpu.memory_space<vmem>>, vector<64x64xbf16>
    %cst = arith.constant dense<0.000000e+00> : vector<128x64xf32>
    %6 = tpu.matmul %4, %5, %cst {dimension_numbers = #tpu.dot_dimension_numbers<[1], [0], [0], [1], [0, 0, 1, 1], [], []>} : vector<128x64xbf16>, vector<64x64xbf16>, vector<128x64xf32> -> vector<128x64xf32>
    %c0_5 = arith.constant 0 : index
    %c0_6 = arith.constant 0 : index
    %7 = vector.load %arg4[%c0_5, %c0_6] : memref<1x64xf32, #tpu.memory_space<vmem>>, vector<1x64xf32>
    %8 = vector.broadcast %7 : vector<1x64xf32> to vector<128x64xf32>
    %9 = arith.addf %6, %8 : vector<128x64xf32>
    %cst_7 = arith.constant 0.000000e+00 : f32
    %10 = vector.broadcast %cst_7 : f32 to vector<128x64xf32>
    %11 = arith.maximumf %9, %10 : vector<128x64xf32>
    %12 = arith.truncf %11 : vector<128x64xf32> to vector<128x64xbf16>
    %c0_8 = arith.constant 0 : index
    %c0_9 = arith.constant 0 : index
    %13 = vector.load %arg5[%c0_8, %c0_9] : memref<64x128xbf16, #tpu.memory_space<vmem>>, vector<64x128xbf16>
    %cst_10 = arith.constant dense<0.000000e+00> : vector<128x128xf32>
    %14 = tpu.matmul %12, %13, %cst_10 {dimension_numbers = #tpu.dot_dimension_numbers<[1], [0], [0], [1], [0, 0, 1, 1], [], []>} : vector<128x64xbf16>, vector<64x128xbf16>, vector<128x128xf32> -> vector<128x128xf32>
    %c0_11 = arith.constant 0 : index
    %c0_12 = arith.constant 0 : index
    %15 = vector.load %arg6[%c0_11, %c0_12] : memref<1x128xf32, #tpu.memory_space<vmem>>, vector<1x128xf32>
    %16 = vector.broadcast %15 : vector<1x128xf32> to vector<128x128xf32>
    %17 = arith.addf %14, %16 : vector<128x128xf32>
    %cst_13 = arith.constant 0.000000e+00 : f32
    %18 = vector.broadcast %cst_13 : f32 to vector<128x128xf32>
    %19 = arith.maximumf %17, %18 : vector<128x128xf32>
    %20 = arith.truncf %19 : vector<128x128xf32> to vector<128x128xbf16>
    %c0_14 = arith.constant 0 : index
    %c0_15 = arith.constant 0 : index
    %21 = vector.load %arg7[%c0_14, %c0_15] : memref<128x256xbf16, #tpu.memory_space<vmem>>, vector<128x256xbf16>
    %cst_16 = arith.constant dense<0.000000e+00> : vector<128x256xf32>
    %22 = tpu.matmul %20, %21, %cst_16 {dimension_numbers = #tpu.dot_dimension_numbers<[1], [0], [0], [1], [0, 0, 1, 1], [], []>} : vector<128x128xbf16>, vector<128x256xbf16>, vector<128x256xf32> -> vector<128x256xf32>
    %c0_17 = arith.constant 0 : index
    %c0_18 = arith.constant 0 : index
    %23 = vector.load %arg8[%c0_17, %c0_18] : memref<1x256xf32, #tpu.memory_space<vmem>>, vector<1x256xf32>
    %24 = vector.broadcast %23 : vector<1x256xf32> to vector<128x256xf32>
    %25 = arith.addf %22, %24 : vector<128x256xf32>
    %cst_19 = arith.constant 0.000000e+00 : f32
    %26 = vector.broadcast %cst_19 : f32 to vector<128x256xf32>
    %27 = arith.maximumf %25, %26 : vector<128x256xf32>
    %c128_i32 = arith.constant 128 : i32
    %28 = arith.muli %arg1, %c128_i32 : i32
    %29 = tpu.iota {dimensions = array<i32: 0>} : vector<128x1xi32>
    %30 = vector.broadcast %28 : i32 to vector<128x1xi32>
    %31 = arith.addi %30, %29 : vector<128x1xi32>
    %c128_i32_20 = arith.constant 128 : i32
    %32 = vector.broadcast %c128_i32_20 : i32 to vector<128x1xi32>
    %33 = arith.cmpi slt, %31, %32 : vector<128x1xi32>
    %cst_21 = arith.constant 0xFF800000 : f32
    %34 = vector.shape_cast %33 : vector<128x1xi1> to vector<128x1xi1>
    %35 = vector.broadcast %34 : vector<128x1xi1> to vector<128x256xi1>
    %36 = vector.broadcast %cst_21 : f32 to vector<128x256xf32>
    %37 = arith.select %35, %27, %36 : vector<128x256xi1>, vector<128x256xf32>
    %c0_22 = arith.constant 0 : index
    %c0_23 = arith.constant 0 : index
    %38 = vector.load %arg16[%c0_22, %c0_23] : memref<1x256xf32, #tpu.memory_space<vmem>>, vector<1x256xf32>
    %cst_24 = arith.constant dense<0xFF800000> : vector<256xf32>
    %39 = vector.multi_reduction <maximumf>, %37, %cst_24 [0] : vector<128x256xf32> to vector<256xf32>
    %40 = vector.shape_cast %39 : vector<256xf32> to vector<1x256xf32>
    %41 = arith.maximumf %38, %40 : vector<1x256xf32>
    %c0_25 = arith.constant 0 : index
    %c0_26 = arith.constant 0 : index
    %42 = vector.load %arg16[%c0_25, %c0_26] : memref<1x256xf32, #tpu.memory_space<vmem>>, vector<1x256xf32>
    tpu.vector_store %arg16[%c0_25, %c0_26], %41 {strides = array<i32>} : memref<1x256xf32, #tpu.memory_space<vmem>>, vector<1x256xf32>,
    %c0_i32_27 = arith.constant 0 : i32
    %43 = arith.cmpi eq, %arg1, %c0_i32_27 : i32
    %44 = arith.extui %43 : i1 to i32
    %c0_i32_28 = arith.constant 0 : i32
    %45 = arith.cmpi ne, %44, %c0_i32_28 : i32
    scf.if %45 {
      %c0_29 = arith.constant 0 : index
      %c0_30 = arith.constant 0 : index
      %46 = vector.load %arg16[%c0_29, %c0_30] : memref<1x256xf32, #tpu.memory_space<vmem>>, vector<1x256xf32>
      %c0_31 = arith.constant 0 : index
      %c0_32 = arith.constant 0 : index
      %47 = vector.load %arg9[%c0_31, %c0_32] : memref<256x256xf32, #tpu.memory_space<vmem>>, vector<256x256xf32>
      %cst_33 = arith.constant dense<0.000000e+00> : vector<1x256xf32>
      %48 = tpu.matmul %46, %47, %cst_33 {dimension_numbers = #tpu.dot_dimension_numbers<[1], [0], [0], [1], [0, 0, 1, 1], [], []>} : vector<1x256xf32>, vector<256x256xf32>, vector<1x256xf32> -> vector<1x256xf32>
      %c0_34 = arith.constant 0 : index
      %c0_35 = arith.constant 0 : index
      %49 = vector.load %arg10[%c0_34, %c0_35] : memref<1x256xf32, #tpu.memory_space<vmem>>, vector<1x256xf32>
      %50 = arith.addf %48, %49 : vector<1x256xf32>
      %cst_36 = arith.constant 0.000000e+00 : f32
      %51 = vector.broadcast %cst_36 : f32 to vector<1x256xf32>
      %52 = arith.maximumf %50, %51 : vector<1x256xf32>
      %c0_37 = arith.constant 0 : index
      %c0_38 = arith.constant 0 : index
      %53 = vector.load %arg11[%c0_37, %c0_38] : memref<256x128xf32, #tpu.memory_space<vmem>>, vector<256x128xf32>
      %cst_39 = arith.constant dense<0.000000e+00> : vector<1x128xf32>
      %54 = tpu.matmul %52, %53, %cst_39 {dimension_numbers = #tpu.dot_dimension_numbers<[1], [0], [0], [1], [0, 0, 1, 1], [], []>} : vector<1x256xf32>, vector<256x128xf32>, vector<1x128xf32> -> vector<1x128xf32>
      %c0_40 = arith.constant 0 : index
      %c0_41 = arith.constant 0 : index
      %55 = vector.load %arg12[%c0_40, %c0_41] : memref<1x128xf32, #tpu.memory_space<vmem>>, vector<1x128xf32>
      %56 = arith.addf %54, %55 : vector<1x128xf32>
      %cst_42 = arith.constant 0.000000e+00 : f32
      %57 = vector.broadcast %cst_42 : f32 to vector<1x128xf32>
      %58 = arith.maximumf %56, %57 : vector<1x128xf32>
      %c0_43 = arith.constant 0 : index
      %c0_44 = arith.constant 0 : index
      %59 = vector.load %arg13[%c0_43, %c0_44] : memref<128x4096xf32, #tpu.memory_space<vmem>>, vector<128x4096xf32>
      %cst_45 = arith.constant dense<0.000000e+00> : vector<1x4096xf32>
      %60 = tpu.matmul %58, %59, %cst_45 {dimension_numbers = #tpu.dot_dimension_numbers<[1], [0], [0], [1], [0, 0, 1, 1], [], []>} : vector<1x128xf32>, vector<128x4096xf32>, vector<1x4096xf32> -> vector<1x4096xf32>
      %c0_46 = arith.constant 0 : index
      %c0_47 = arith.constant 0 : index
      %61 = vector.load %arg14[%c0_46, %c0_47] : memref<1x4096xf32, #tpu.memory_space<vmem>>, vector<1x4096xf32>
      %62 = arith.addf %60, %61 : vector<1x4096xf32>
      %c0_48 = arith.constant 0 : index
      %c0_49 = arith.constant 0 : index
      %c0_50 = arith.constant 0 : index
      %63 = vector.load %arg15[%c0_48, %c0_49, %c0_50] : memref<1x1x4096xf32, #tpu.memory_space<vmem>>, vector<1x1x4096xf32>
      %64 = vector.shape_cast %63 : vector<1x1x4096xf32> to vector<1x4096xf32>
      %65 = vector.shape_cast %62 : vector<1x4096xf32> to vector<1x1x4096xf32>
      tpu.vector_store %arg15[%c0_48, %c0_49, %c0_50], %65 {strides = array<i32>} : memref<1x1x4096xf32, #tpu.memory_space<vmem>>, vector<1x1x4096xf32>,
    } else {
    }
    return
  }
  func.func @transform_0(%arg0: i32, %arg1: i32) -> (i32, i32, i32) {
    %c0_i32 = arith.constant 0 : i32
    %c0_i32_0 = arith.constant 0 : i32
    return %arg0, %arg1, %c0_i32 : i32, i32, i32
  }
  func.func @transform_1(%arg0: i32, %arg1: i32) -> (i32, i32) {
    %c0_i32 = arith.constant 0 : i32
    %c0_i32_0 = arith.constant 0 : i32
    %c0_i32_1 = arith.constant 0 : i32
    return %c0_i32, %c0_i32_0 : i32, i32
  }
  func.func @transform_2(%arg0: i32, %arg1: i32) -> (i32, i32) {
    %c0_i32 = arith.constant 0 : i32
    %c0_i32_0 = arith.constant 0 : i32
    %c0_i32_1 = arith.constant 0 : i32
    return %c0_i32, %c0_i32_0 : i32, i32
  }
  func.func @transform_3(%arg0: i32, %arg1: i32) -> (i32, i32) {
    %c0_i32 = arith.constant 0 : i32
    %c0_i32_0 = arith.constant 0 : i32
    %c0_i32_1 = arith.constant 0 : i32
    return %c0_i32, %c0_i32_0 : i32, i32
  }
  func.func @transform_4(%arg0: i32, %arg1: i32) -> (i32, i32) {
    %c0_i32 = arith.constant 0 : i32
    %c0_i32_0 = arith.constant 0 : i32
    %c0_i32_1 = arith.constant 0 : i32
    return %c0_i32, %c0_i32_0 : i32, i32
  }
  func.func @transform_5(%arg0: i32, %arg1: i32) -> (i32, i32) {
    %c0_i32 = arith.constant 0 : i32
    %c0_i32_0 = arith.constant 0 : i32
    %c0_i32_1 = arith.constant 0 : i32
    return %c0_i32, %c0_i32_0 : i32, i32
  }
  func.func @transform_6(%arg0: i32, %arg1: i32) -> (i32, i32) {
    %c0_i32 = arith.constant 0 : i32
    %c0_i32_0 = arith.constant 0 : i32
    %c0_i32_1 = arith.constant 0 : i32
    return %c0_i32, %c0_i32_0 : i32, i32
  }
  func.func @transform_7(%arg0: i32, %arg1: i32) -> (i32, i32) {
    %c0_i32 = arith.constant 0 : i32
    %c0_i32_0 = arith.constant 0 : i32
    %c0_i32_1 = arith.constant 0 : i32
    return %c0_i32, %c0_i32_0 : i32, i32
  }
  func.func @transform_8(%arg0: i32, %arg1: i32) -> (i32, i32) {
    %c0_i32 = arith.constant 0 : i32
    %c0_i32_0 = arith.constant 0 : i32
    %c0_i32_1 = arith.constant 0 : i32
    return %c0_i32, %c0_i32_0 : i32, i32
  }
  func.func @transform_9(%arg0: i32, %arg1: i32) -> (i32, i32) {
    %c0_i32 = arith.constant 0 : i32
    %c0_i32_0 = arith.constant 0 : i32
    %c0_i32_1 = arith.constant 0 : i32
    return %c0_i32, %c0_i32_0 : i32, i32
  }
  func.func @transform_10(%arg0: i32, %arg1: i32) -> (i32, i32) {
    %c0_i32 = arith.constant 0 : i32
    %c0_i32_0 = arith.constant 0 : i32
    %c0_i32_1 = arith.constant 0 : i32
    return %c0_i32, %c0_i32_0 : i32, i32
  }
  func.func @transform_11(%arg0: i32, %arg1: i32) -> (i32, i32) {
    %c0_i32 = arith.constant 0 : i32
    %c0_i32_0 = arith.constant 0 : i32
    %c0_i32_1 = arith.constant 0 : i32
    return %c0_i32, %c0_i32_0 : i32, i32
  }
  func.func @transform_12(%arg0: i32, %arg1: i32) -> (i32, i32) {
    %c0_i32 = arith.constant 0 : i32
    %c0_i32_0 = arith.constant 0 : i32
    %c0_i32_1 = arith.constant 0 : i32
    return %c0_i32, %c0_i32_0 : i32, i32
  }
  func.func @transform_13(%arg0: i32, %arg1: i32) -> (i32, i32, i32) {
    %c0_i32 = arith.constant 0 : i32
    %c0_i32_0 = arith.constant 0 : i32
    %c0_i32_1 = arith.constant 0 : i32
    return %arg0, %c0_i32, %c0_i32_0 : i32, i32, i32
  }
}

module attributes {stable_mosaic.version = 11 : i64} {
  func.func @_backbone_stage2_kernel(%arg0: i32, %arg1: i32, %arg2: memref<1x128x64xbf16, #tpu.memory_space<vmem>>, %arg3: memref<1x64x64xbf16, #tpu.memory_space<vmem>>, %arg4: memref<1x64xf32, #tpu.memory_space<vmem>>, %arg5: memref<64x128xbf16, #tpu.memory_space<vmem>>, %arg6: memref<1x128xf32, #tpu.memory_space<vmem>>, %arg7: memref<128x128xbf16, #tpu.memory_space<vmem>>, %arg8: memref<1x128xf32, #tpu.memory_space<vmem>>, %arg9: memref<1x128x128xf32, #tpu.memory_space<vmem>>) attributes {dimension_semantics = [#tpu.dimension_semantics<parallel>, #tpu.dimension_semantics<parallel>], iteration_bounds = array<i64: 2, 1>, scalar_prefetch = 0 : i64, scratch_operands = 0 : i64, tpu.core_type = #tpu.core_type<tc>, window_params = [{transform_indices = @transform_0, window_bounds = array<i64: 1, 128, 64>}, {transform_indices = @transform_1, window_bounds = array<i64: 1, 64, 64>}, {pipeline_mode = #tpu.pipeline_mode<synchronous>, transform_indices = @transform_2, window_bounds = array<i64: 1, 64>}, {pipeline_mode = #tpu.pipeline_mode<synchronous>, transform_indices = @transform_3, window_bounds = array<i64: 64, 128>}, {pipeline_mode = #tpu.pipeline_mode<synchronous>, transform_indices = @transform_4, window_bounds = array<i64: 1, 128>}, {pipeline_mode = #tpu.pipeline_mode<synchronous>, transform_indices = @transform_5, window_bounds = array<i64: 128, 128>}, {pipeline_mode = #tpu.pipeline_mode<synchronous>, transform_indices = @transform_6, window_bounds = array<i64: 1, 128>}, {transform_indices = @transform_7, window_bounds = array<i64: 1, 128, 128>}]} {
    %c0 = arith.constant 0 : index
    %c0_0 = arith.constant 0 : index
    %c0_1 = arith.constant 0 : index
    %0 = vector.load %arg2[%c0, %c0_0, %c0_1] : memref<1x128x64xbf16, #tpu.memory_space<vmem>>, vector<1x128x64xbf16>
    %1 = vector.shape_cast %0 : vector<1x128x64xbf16> to vector<128x64xbf16>
    %c0_2 = arith.constant 0 : index
    %c0_3 = arith.constant 0 : index
    %c0_4 = arith.constant 0 : index
    %2 = vector.load %arg3[%c0_2, %c0_3, %c0_4] : memref<1x64x64xbf16, #tpu.memory_space<vmem>>, vector<1x64x64xbf16>
    %3 = vector.shape_cast %2 : vector<1x64x64xbf16> to vector<64x64xbf16>
    %cst = arith.constant dense<0.000000e+00> : vector<128x64xf32>
    %4 = tpu.matmul %1, %3, %cst {dimension_numbers = #tpu.dot_dimension_numbers<[1], [0], [0], [1], [0, 0, 1, 1], [], []>} : vector<128x64xbf16>, vector<64x64xbf16>, vector<128x64xf32> -> vector<128x64xf32>
    %c0_5 = arith.constant 0 : index
    %c0_6 = arith.constant 0 : index
    %5 = vector.load %arg4[%c0_5, %c0_6] : memref<1x64xf32, #tpu.memory_space<vmem>>, vector<1x64xf32>
    %6 = vector.broadcast %5 : vector<1x64xf32> to vector<128x64xf32>
    %7 = arith.addf %4, %6 : vector<128x64xf32>
    %cst_7 = arith.constant 0.000000e+00 : f32
    %8 = vector.broadcast %cst_7 : f32 to vector<128x64xf32>
    %9 = arith.maximumf %7, %8 : vector<128x64xf32>
    %10 = arith.truncf %9 : vector<128x64xf32> to vector<128x64xbf16>
    %c0_8 = arith.constant 0 : index
    %c0_9 = arith.constant 0 : index
    %11 = vector.load %arg5[%c0_8, %c0_9] : memref<64x128xbf16, #tpu.memory_space<vmem>>, vector<64x128xbf16>
    %cst_10 = arith.constant dense<0.000000e+00> : vector<128x128xf32>
    %12 = tpu.matmul %10, %11, %cst_10 {dimension_numbers = #tpu.dot_dimension_numbers<[1], [0], [0], [1], [0, 0, 1, 1], [], []>} : vector<128x64xbf16>, vector<64x128xbf16>, vector<128x128xf32> -> vector<128x128xf32>
    %c0_11 = arith.constant 0 : index
    %c0_12 = arith.constant 0 : index
    %13 = vector.load %arg6[%c0_11, %c0_12] : memref<1x128xf32, #tpu.memory_space<vmem>>, vector<1x128xf32>
    %14 = vector.broadcast %13 : vector<1x128xf32> to vector<128x128xf32>
    %15 = arith.addf %12, %14 : vector<128x128xf32>
    %cst_13 = arith.constant 0.000000e+00 : f32
    %16 = vector.broadcast %cst_13 : f32 to vector<128x128xf32>
    %17 = arith.maximumf %15, %16 : vector<128x128xf32>
    %18 = arith.truncf %17 : vector<128x128xf32> to vector<128x128xbf16>
    %c0_14 = arith.constant 0 : index
    %c0_15 = arith.constant 0 : index
    %19 = vector.load %arg7[%c0_14, %c0_15] : memref<128x128xbf16, #tpu.memory_space<vmem>>, vector<128x128xbf16>
    %cst_16 = arith.constant dense<0.000000e+00> : vector<128x128xf32>
    %20 = tpu.matmul %18, %19, %cst_16 {dimension_numbers = #tpu.dot_dimension_numbers<[1], [0], [0], [1], [0, 0, 1, 1], [], []>} : vector<128x128xbf16>, vector<128x128xbf16>, vector<128x128xf32> -> vector<128x128xf32>
    %c0_17 = arith.constant 0 : index
    %c0_18 = arith.constant 0 : index
    %21 = vector.load %arg8[%c0_17, %c0_18] : memref<1x128xf32, #tpu.memory_space<vmem>>, vector<1x128xf32>
    %22 = vector.broadcast %21 : vector<1x128xf32> to vector<128x128xf32>
    %23 = arith.addf %20, %22 : vector<128x128xf32>
    %cst_19 = arith.constant 0.000000e+00 : f32
    %24 = vector.broadcast %cst_19 : f32 to vector<128x128xf32>
    %25 = arith.maximumf %23, %24 : vector<128x128xf32>
    %26 = tpu.transpose %25, [1, 0] : vector<128x128xf32> -> vector<128x128xf32>
    %c0_20 = arith.constant 0 : index
    %c0_21 = arith.constant 0 : index
    %c0_22 = arith.constant 0 : index
    %27 = vector.load %arg9[%c0_20, %c0_21, %c0_22] : memref<1x128x128xf32, #tpu.memory_space<vmem>>, vector<1x128x128xf32>
    %28 = vector.shape_cast %27 : vector<1x128x128xf32> to vector<128x128xf32>
    %29 = vector.shape_cast %26 : vector<128x128xf32> to vector<1x128x128xf32>
    tpu.vector_store %arg9[%c0_20, %c0_21, %c0_22], %29 {strides = array<i32>} : memref<1x128x128xf32, #tpu.memory_space<vmem>>, vector<1x128x128xf32>,
    return
  }
  func.func @transform_0(%arg0: i32, %arg1: i32) -> (i32, i32, i32) {
    %c0_i32 = arith.constant 0 : i32
    %c0_i32_0 = arith.constant 0 : i32
    return %arg0, %arg1, %c0_i32 : i32, i32, i32
  }
  func.func @transform_1(%arg0: i32, %arg1: i32) -> (i32, i32, i32) {
    %c0_i32 = arith.constant 0 : i32
    %c0_i32_0 = arith.constant 0 : i32
    %c0_i32_1 = arith.constant 0 : i32
    return %arg0, %c0_i32, %c0_i32_0 : i32, i32, i32
  }
  func.func @transform_2(%arg0: i32, %arg1: i32) -> (i32, i32) {
    %c0_i32 = arith.constant 0 : i32
    %c0_i32_0 = arith.constant 0 : i32
    %c0_i32_1 = arith.constant 0 : i32
    return %c0_i32, %c0_i32_0 : i32, i32
  }
  func.func @transform_3(%arg0: i32, %arg1: i32) -> (i32, i32) {
    %c0_i32 = arith.constant 0 : i32
    %c0_i32_0 = arith.constant 0 : i32
    %c0_i32_1 = arith.constant 0 : i32
    return %c0_i32, %c0_i32_0 : i32, i32
  }
  func.func @transform_4(%arg0: i32, %arg1: i32) -> (i32, i32) {
    %c0_i32 = arith.constant 0 : i32
    %c0_i32_0 = arith.constant 0 : i32
    %c0_i32_1 = arith.constant 0 : i32
    return %c0_i32, %c0_i32_0 : i32, i32
  }
  func.func @transform_5(%arg0: i32, %arg1: i32) -> (i32, i32) {
    %c0_i32 = arith.constant 0 : i32
    %c0_i32_0 = arith.constant 0 : i32
    %c0_i32_1 = arith.constant 0 : i32
    return %c0_i32, %c0_i32_0 : i32, i32
  }
  func.func @transform_6(%arg0: i32, %arg1: i32) -> (i32, i32) {
    %c0_i32 = arith.constant 0 : i32
    %c0_i32_0 = arith.constant 0 : i32
    %c0_i32_1 = arith.constant 0 : i32
    return %c0_i32, %c0_i32_0 : i32, i32
  }
  func.func @transform_7(%arg0: i32, %arg1: i32) -> (i32, i32, i32) {
    %c0_i32 = arith.constant 0 : i32
    %c0_i32_0 = arith.constant 0 : i32
    return %arg0, %c0_i32, %arg1 : i32, i32, i32
  }
}

</mosaic_0001>

<bundles_post_ra>
// kernel: base_pointnet_forward.5
= control target key start
LH: loop header
LB: loop body
LE: loop exit
PB: predicated region body
PF: predicated region fallthrough
CT: control target
= control target key end

     0   :  { %11 = vsyncpa [#allocation3], 0  ;;  %s1816_s0 = inlined_call_operand.vmem [shape: f32[2,128,3], index: 0, kind: input, shape index: {}]   ;;  %s1817_s1 = inlined_call_operand.vmem [shape: f32[2,3,3], index: 1, kind: input, shape index: {}]   ;;  %s1818_s2 = inlined_call_operand.hbm [shape: bf16[3,64], index: 2, kind: input, shape index: {}]   ;;  %s1819_s3 = inlined_call_operand.hbm [shape: f32[1,64], index: 3, kind: input, shape index: {}]   ;;  %s1820_s4 = inlined_call_operand.hbm [shape: bf16[64,64], index: 4, kind: input, shape index: {}]   ;;  %s1821_s5 = inlined_call_operand.hbm [shape: f32[1,64], index: 5, kind: input, shape index: {}]   ;;  %s1822_s6 = inlined_call_operand.vmem [shape: bf16[2,128,64], index: 6, kind: output, shape index: {}]  }
   0x1   :  { %12 = vsyncpa [#allocation5], 0 }
   0x2   :  { %13 = vsyncpa [#allocation8], 0  ;;  %s1598_s21 = smov 0   ;;  %s1600_s22 = smov 0  }
   0x3   :  { %s1602_s23 = smov 0  }
   0x4 LB: > { %s1556_s24 = smov [#allocation4]   ;;  %s1143_s26 = sadd.s32 4294967295, %s1554_s23   ;;  %s1554_s23 = sphi %s1602_s23, %s19_s23   ;;  %s1550_s22 = sphi %s1600_s22, %s1828_s22   ;;  %s1546_s21 = sphi %s1598_s21, %s1827_s21  }
   0x5   : > { %s226_s25 = sshll.u32 %s1556_s24, 4  ;;  %p1145_p0 = scmp.ge.s32.totalorder %s1554_s23, 1  ;;  %s227_s25 = int_to_ptr.vmem [resolvable:$true] %s226_s25 }
   0x6   : > { %p202_p1 = scmp.lt.s32.totalorder %s1554_s23, 3  ;;  %p1616_p2 = scmp.eq.s32.totalorder %s1143_s26, 0 }
   0x7   : > { %s31_s29 = sadd.s32 1, %s1550_s22  ;;  %s1557_s8 = smov [#allocation2]  }
   0x8   : > { %p1620_p3 = pnand %p1145_p0, %p202_p1  ;;  %p1633_p6 = scmp.ge.s32.totalorder %s31_s29, 2 }
   0x9   : > { %s215_s9 = sshll.u32 %s1557_s8, 4  ;;  %s1427_s10 = scalar_lea.vmem %s227_s25, 16  ;;  %s216_s9 = int_to_ptr.vmem [resolvable:$true] %s215_s9 }
   0xa   : > { %p1360_p4 = pneg %p1620_p3  ;;  %p1428_p8 = scmp.ne.s32.totalorder %s227_s25, %s1427_s10 }
   0xb   : > { %s1434_s11 = scalar_lea.vmem %s227_s25, 32  ;;  %p1435_p11 = scmp.lt.s32.totalorder %s227_s25, %s227_s25 }
   0xc   : > { %p1629_p5 = pnand %p1616_p2, %p1360_p4  ;;  %p1436_p12 = scmp.lt.s32.totalorder %s1434_s11, %s1427_s10 }
   0xe   : > { %p1418_p7 = pneg %p1629_p5  ;;  %p1437_p13 = por %p1436_p12, %p1435_p11 }
  0x10   : > { %p1430_p9 = pnand %p1428_p8, %p1418_p7 }
  0x12   : > { %p1431_p10 = pneg %p1430_p9 }
  0x14   : > { %p1438_p0 = pnand %p1437_p13, %p1431_p10 }
  0x16   : > { %1441 = shalt.err (!%p1438_p0)
}
  0x17   : > { %1366 = dma.hbm_to_vmem [thread:$0]  (!%p1629_p5), %s1819_s3, 16, %s227_s25, [#allocation5]  }
  0x18   : > { %s1830_s29 = smov (%p1633_p6, %s31_s29), 0  ;;  %s1453_s14 = scalar_lea.vmem %s216_s9, 32 }
  0x19   : > { %p1454_p1 = scmp.ne.s32.totalorder %s216_s9, %s1453_s14  ;;  %p1461_p9 = scmp.lt.s32.totalorder %s216_s9, %s216_s9 }
  0x1a   : > { %p1462_p10 = scmp.lt.s32.totalorder %s1453_s14, %s1453_s14 }
  0x1b   : > { %p1456_p4 = pnand %p1454_p1, %p1418_p7 }
  0x1c   : > { %p1463_p11 = por %p1462_p10, %p1461_p9 }
  0x1d   : > { %p1457_p8 = pneg %p1456_p4 }
  0x1f   : > { %p1464_p12 = pnand %p1463_p11, %p1457_p8 }
  0x21   : > { %1467 = shalt.err (!%p1464_p12)
}
  0x22   : > { %1363 = dma.hbm_to_vmem [thread:$0]  (!%p1629_p5), %s1818_s2, 32, %s216_s9, [#allocation3]  }
  0x23   : > { %s1558_s17 = smov [#allocation6]  }
  0x24   : > { %s236_s18 = sshll.u32 %s1558_s17, 4  ;;  %s237_s18 = int_to_ptr.vmem [resolvable:$true] %s236_s18 }
  0x25   : > { %s1479_s19 = scalar_lea.vmem %s237_s18, 512  ;;  %p1487_p1 = scmp.lt.s32.totalorder %s237_s18, %s237_s18 }
  0x26   : > { %p1480_p6 = scmp.ne.s32.totalorder %s237_s18, %s1479_s19  ;;  %p1488_p4 = scmp.lt.s32.totalorder %s1479_s19, %s1479_s19 }
  0x28   : > { %p1482_p13 = pnand %p1480_p6, %p1418_p7  ;;  %p1489_p8 = por %p1488_p4, %p1487_p1 }
  0x2a   : > { %p1483_p0 = pneg %p1482_p13 }
  0x2c   : > { %p1490_p9 = pnand %p1489_p8, %p1483_p0 }
  0x2e   : > { %1493 = shalt.err (!%p1490_p9)
}
  0x2f   : > { %s1559_s20 = smov 64   ;;  %s1560_s24 = smov 4  }
  0x30   : > { %1369 = dma.hbm_to_vmem [thread:$0]  (!%p1629_p5), %s1820_s4, 512, %s237_s18, [#allocation5], %s1559_s20, %s1559_s20, %s1560_s24  }
  0x31   : > { %s1561_s7 = smov [#allocation7]  }
  0x32   : > { %s250_s8 = sshll.u32 %s1561_s7, 4  ;;  %s251_s8 = int_to_ptr.vmem [resolvable:$true] %s250_s8 }
  0x33   : > { %s1505_s9 = scalar_lea.vmem %s251_s8, 16  ;;  %s1512_s10 = scalar_lea.vmem %s251_s8, 32 }
  0x34   : > { %p1506_p10 = scmp.ne.s32.totalorder %s251_s8, %s1505_s9  ;;  %p1513_p6 = scmp.lt.s32.totalorder %s251_s8, %s251_s8 }
  0x35   : > { %p1514_p13 = scmp.lt.s32.totalorder %s1512_s10, %s1505_s9 }
  0x36   : > { %p1508_p11 = pnand %p1506_p10, %p1418_p7 }
  0x37   : > { %p1515_p0 = por %p1514_p13, %p1513_p6 }
  0x38   : > { %p1509_p12 = pneg %p1508_p11 }
  0x3a   : > { %p1516_p1 = pnand %p1515_p0, %p1509_p12 }
  0x3c   : > { %1519 = shalt.err (!%p1516_p1)
}
  0x3d   : > { %1372 = dma.hbm_to_vmem [thread:$0]  (!%p1629_p5), %s1821_s5, 16, %s251_s8, [#allocation8]  }
  0x3e   : > { %283 = sbr.rel (%p1620_p3) target bundleno = 717 (0x2cd), region = 44 }
  0x43   : > { %1533 = dma.done.wait (%p1616_p2), [#allocation3], 32  }
  0x44   : > { %1535 = vsyncadd (%p1616_p2), [#allocation3], 4294967264 }
  0x45   : > { %1537 = dma.done.wait (%p1616_p2), [#allocation5], 528  }
  0x46   : > { %1539 = vsyncadd (%p1616_p2), [#allocation5], 4294966768 }
  0x47   : > { %1541 = dma.done.wait (%p1616_p2), [#allocation8], 16  }
  0x48   : > { %1543 = vsyncadd (%p1616_p2), [#allocation8], 4294967280  ;;  %p338_p3 = scmp.lt.s32.totalorder %s1546_s21, 1  ;;  %vm617_vm0 = vcmask 1040384   ;;  %vm428_vm1 = vcmask 1042432   ;;  %vm379_vm2 = vcmask 23552  }
  0x49   : > { %vm618_vm3 = vcmask 1041408   ;;  %v1562_v3 = vmov 65535   ;;  %v585_v14 = vld [vmem:[#allocation2] sm:$0x3]  ;;  %v1413_v47 = vld [vmem:[#allocation6 + $0x10] sm:$0xff]   ;;  %v1414_v48 = vld [vmem:[#allocation6 + $0x8] sm:$0xff]  }
  0x4a   : > { %s1832_s21 = smov (!%p338_p3, %s1546_s21), 1  ;;  %v619_v4 = vsel %vm617_vm0, 4294967295, %v1562_v3  ;;  %v1412_v22 = vld [vmem:[#allocation6 + $0x18] sm:$0xff]   ;;  %v1415_v49 = vld [vmem:[#allocation6] sm:$0xff]   ;;  %vm784_vm4 = vcmask 523264   ;;  %vm986_vm5 = vcmask 519168  }
  0x4b   : > { %s1218_s28 = sshll.u32 %s1832_s21, 7  ;;  %s1158_s30 = sshll.u32 %s1832_s21, 2  ;;  %v620_v9 = vsel %vm618_vm3, %v619_v4, 0  ;;  %v1178_v52 = vld [vmem:[#allocation4] ss:$0 sm:$0xff] }
  0x4c   : > { %s1698_s15 = scalar_lea.vmem %s1816_s0, %s1218_s28  ;;  %s350_s27 = scalar_lea.vmem %s1817_s1, %s1158_s30  ;;  %v622_v15 = vand.u32 %v620_v9, %v585_v14 }
  0x4d   : > { %v378_v0 = vld [vmem:[%s350_s27] sm:$0x7]  ;;  %v363_v2 = vld [vmem:[%s1698_s15 + $0x8] sm:$0xff]  ;;  %v364_v5 = vld [vmem:[%s1698_s15 + $0x10] sm:$0xff]  ;;  %s1219_s18 = sshll.u32 %s1832_s21, 6 }
  0x4e   : > { %v362_v1 = vld [vmem:[%s1698_s15] sm:$0xff]  ;;  %1274 = vmatprep.subr.msk.mxu0 %vm428_vm1, %v378_v0  ;;  %1342 = vmatprep.subr.msk.mxu1 %vm428_vm1, %v378_v0  ;;  %v371_v7 = vld [vmem:[%s1698_s15 + $0x48] sm:$0xff]  ;;  %v372_v8 = vld [vmem:[%s1698_s15 + $0x50] sm:$0xff]  ;;  %s1759_s24 = scalar_lea.vmem %s1822_s6, %s1219_s18 }
  0x4f   : > { %1276 = vmatprep.mubr.msk.f32.mxu0 %vm379_vm2, %v362_v1  ;;  %1275 = vmatpush3.msk.msra.mxu0 %vm428_vm1, %v378_v0  ;;  %v370_v6 = vld [vmem:[%s1698_s15 + $0x40] sm:$0xff]  ;;  %v365_v10 = vld [vmem:[%s1698_s15 + $0x18] sm:$0xff]  ;;  %v367_v16 = vld [vmem:[%s1698_s15 + $0x28] sm:$0xff] }
  0x50   : > { %1277 = vmatmul.mubr.msk.f32.vlgmr.msra.gmra.mxu0 %vm379_vm2, %v363_v2  ;;  %1343 = vmatpush3.msk.msra.mxu1 %vm428_vm1, %v378_v0  ;;  %v366_v11 = vld [vmem:[%s1698_s15 + $0x20] sm:$0xff]  ;;  %v373_v12 = vld [vmem:[%s1698_s15 + $0x58] sm:$0xff]  ;;  %v368_v17 = vld [vmem:[%s1698_s15 + $0x30] sm:$0xff] }
  0x51   : > { %1279 = vmatprep.mubr.msk.f32.mxu0 %vm379_vm2, %v364_v5  ;;  %1288 = vmatprep.mubr.msk.f32.mxu1 %vm379_vm2, %v370_v6  ;;  %v374_v13 = vld [vmem:[%s1698_s15 + $0x60] sm:$0xff]  ;;  %v375_v18 = vld [vmem:[%s1698_s15 + $0x68] sm:$0xff]  ;;  %v376_v19 = vld [vmem:[%s1698_s15 + $0x70] sm:$0xff] }
  0x52   : > { %1289 = vmatmul.mubr.msk.f32.vlgmr.msra.gmra.mxu1 %vm379_vm2, %v371_v7  ;;  %1300 = vmatprep.subr.bf16.mxu1 %v622_v15  ;;  %v369_v20 = vld [vmem:[%s1698_s15 + $0x38] sm:$0xff] }
  0x53   : > { %1291 = vmatprep.mubr.msk.f32.mxu1 %vm379_vm2, %v372_v8  ;;  %1301 = vmatpush3.bf16.msra.mxu1 %v622_v15  ;;  %v377_v21 = vld [vmem:[%s1698_s15 + $0x78] sm:$0xff] }
  0x54   : > { %1280 = vmatmul.mubr.msk.f32.gmra.mxu0 %vm379_vm2, %v365_v10  ;;  %1318 = vmatprep.subr.bf16.mxu0 %v1412_v22 }
  0x55   : > { %1282 = vmatprep.mubr.msk.f32.mxu0 %vm379_vm2, %v366_v11  ;;  %1319 = vmatpush3.bf16.msra.mxu0 %v1412_v22 }
  0x56   : > { %1292 = vmatmul.mubr.msk.f32.gmra.mxu1 %vm379_vm2, %v373_v12  ;;  %1320 = vmatprep.subr.bf16.mxu0 %v1413_v47 }
  0x57   : > { %1294 = vmatprep.mubr.msk.f32.mxu1 %vm379_vm2, %v374_v13 }
  0x58   : > { %1283 = vmatmul.mubr.msk.f32.gmra.mxu0 %vm379_vm2, %v367_v16 }
  0x59   : > { %1285 = vmatprep.mubr.msk.f32.mxu0 %vm379_vm2, %v368_v17  ;;  %1321 = vmatpush3.bf16.msra.mxu0 %v1413_v47 }
  0x5a   : > { %1295 = vmatmul.mubr.msk.f32.gmra.mxu1 %vm379_vm2, %v375_v18  ;;  %1322 = vmatprep.subr.bf16.mxu0 %v1414_v48 }
  0x5b   : > { %1297 = vmatprep.mubr.msk.f32.mxu1 %vm379_vm2, %v376_v19 }
  0x5c   : > { %1286 = vmatmul.mubr.msk.f32.gmra.mxu0 %vm379_vm2, %v369_v20 }
  0x5d   : > { %1323 = vmatpush3.bf16.msra.mxu0 %v1414_v48 }
  0x5e   : > { %1298 = vmatmul.mubr.msk.f32.gmra.mxu1 %vm379_vm2, %v377_v21  ;;  %1324 = vmatprep.subr.bf16.mxu0 %v1415_v49 }
  0x61   : > { %1325 = vmatpush3.bf16.msra.mxu0 %v1415_v49 }
 0x110   : > { %v1278_v23 = vpop.f32.mrf.mxu0 }
 0x112   : > { %v498_v24 = vpop.f32.mrf.mxu0  ;;  %v1290_v25 = vpop.f32.mrf.mxu1 }
 0x113   : > { %v577_v26 = vpack.c.bf16 %v1278_v23, %v498_v24 }
 0x114   : > { %v1281_v27 = vpop.f32.mrf.mxu0  ;;  %v538_v28 = vpop.f32.mrf.mxu1 }
 0x115   : > { %1302 = vmatprep.mubr.msk.bf16.mxu1 %vm379_vm2, %v577_v26  ;;  %v581_v38 = vpack.c.bf16 %v1290_v25, %v538_v28 }
 0x116   : > { %v508_v29 = vpop.f32.mrf.mxu0  ;;  %v1293_v31 = vpop.f32.mrf.mxu1 }
 0x117   : > { %v578_v30 = vpack.c.bf16 %v1281_v27, %v508_v29 }
 0x118   : > { %v1284_v32 = vpop.f32.mrf.mxu0  ;;  %v548_v35 = vpop.f32.mrf.mxu1 }
 0x119   : > { %1303 = vmatmul.mubr.msk.bf16.vlgmr.msra.gmra.mxu1 %vm379_vm2, %v578_v30  ;;  %v582_v43 = vpack.c.bf16 %v1293_v31, %v548_v35 }
 0x11a   : > { %v518_v33 = vpop.f32.mrf.mxu0  ;;  %v1296_v40 = vpop.f32.mrf.mxu1 }
 0x11b   : > { %v579_v34 = vpack.c.bf16 %v1284_v32, %v518_v33 }
 0x11c   : > { %v1287_v36 = vpop.f32.mrf.mxu0  ;;  %v558_v41 = vpop.f32.mrf.mxu1 }
 0x11d   : > { %1306 = vmatprep.mubr.msk.bf16.mxu1 %vm379_vm2, %v579_v34  ;;  %v583_v42 = vpack.c.bf16 %v1296_v40, %v558_v41 }
 0x11e   : > { %v528_v37 = vpop.f32.mrf.mxu0  ;;  %v1299_v44 = vpop.f32.mrf.mxu1 }
 0x11f   : > { %v580_v39 = vpack.c.bf16 %v1287_v36, %v528_v37 }
 0x120   : > { %v568_v45 = vpop.f32.mrf.mxu1 }
 0x121   : > { %1307 = vmatmul.mubr.msk.bf16.gmra.mxu1 %vm379_vm2, %v580_v39  ;;  %v584_v46 = vpack.c.bf16 %v1299_v44, %v568_v45 }
 0x122   : > { %1310 = vmatprep.mubr.msk.bf16.mxu1 %vm379_vm2, %v581_v38 }
 0x129   : > { %1311 = vmatmul.mubr.msk.bf16.gmra.mxu1 %vm379_vm2, %v582_v43  ;;  %v1751_v43 = vld [vmem:[#allocation7] ss:$0 sm:$0xff] }
 0x12a   : > { %1314 = vmatprep.mubr.msk.bf16.mxu1 %vm379_vm2, %v583_v42 }
 0x131   : > { %1315 = vmatmul.mubr.msk.bf16.gmra.mxu1 %vm379_vm2, %v584_v46 }
 0x1d9   : > { %v1304_v50 = vpop.f32.mrf.mxu1 }
 0x1da   : > { %v667_v56 = vadd.f32 %v1304_v50, %v1178_v52 }
 0x1db   : > { %v658_v51 = vpop.f32.mrf.mxu1 }
 0x1dc   : > { %v659_v54 = vadd.f32 %v1178_v52, %v658_v51  ;;  %v723_v63 = vmax.f32 %v667_v56, 0.0 }
 0x1dd   : > { %v1305_v53 = vpop.f32.mrf.mxu1 }
 0x1de   : > { %v670_v55 = vadd.f32 %v1305_v53, %v1178_v52  ;;  %v721_v61 = vmax.f32 %v659_v54, 0.0 }
 0x1df   : > { %v661_v57 = vpop.f32.mrf.mxu1 }
 0x1e0   : > { %v662_v58 = vadd.f32 %v1178_v52, %v661_v57  ;;  %v724_v59 = vmax.f32 %v670_v55, 0.0 }
 0x1e1   : > { %v1308_v60 = vpop.f32.mrf.mxu1 }
 0x1e2   : > { %v722_v62 = vmax.f32 %v662_v58, 0.0  ;;  %v738_v2 = vpack.c.bf16 %v724_v59, %v723_v63  ;;  %v683_v6 = vadd.f32 %v1308_v60, %v1178_v52 }
 0x1e3   : > { %v674_v0 = vpop.f32.mrf.mxu1 }
 0x1e4   : > { %v737_v1 = vpack.c.bf16 %v722_v62, %v721_v61  ;;  %v675_v4 = vadd.f32 %v1178_v52, %v674_v0  ;;  %v727_v13 = vmax.f32 %v683_v6, 0.0 }
 0x1e5   : > { %v1309_v3 = vpop.f32.mrf.mxu1 }
 0x1e6   : > { %v686_v5 = vadd.f32 %v1309_v3, %v1178_v52  ;;  %1326 = vmatprep.mubr.msk.bf16.mxu0 %vm784_vm4, %v737_v1  ;;  %v725_v11 = vmax.f32 %v675_v4, 0.0 }
 0x1e7   : > { %v677_v7 = vpop.f32.mrf.mxu1  ;;  %1327 = vmatmul.mubr.msk.bf16.vlgmr.msra.gmra.mxu0 %vm784_vm4, %v738_v2 }
 0x1e8   : > { %v678_v8 = vadd.f32 %v1178_v52, %v677_v7  ;;  %v728_v9 = vmax.f32 %v686_v5, 0.0 }
 0x1e9   : > { %v1312_v10 = vpop.f32.mrf.mxu1 }
 0x1ea   : > { %v726_v12 = vmax.f32 %v678_v8, 0.0  ;;  %v740_v16 = vpack.c.bf16 %v728_v9, %v727_v13  ;;  %v699_v20 = vadd.f32 %v1312_v10, %v1178_v52 }
 0x1eb   : > { %v690_v14 = vpop.f32.mrf.mxu1 }
 0x1ec   : > { %v739_v15 = vpack.c.bf16 %v726_v12, %v725_v11  ;;  %v691_v18 = vadd.f32 %v1178_v52, %v690_v14  ;;  %v731_v27 = vmax.f32 %v699_v20, 0.0 }
 0x1ed   : > { %v1313_v17 = vpop.f32.mrf.mxu1 }
 0x1ee   : > { %v702_v19 = vadd.f32 %v1313_v17, %v1178_v52  ;;  %1330 = vmatprep.mubr.msk.bf16.mxu0 %vm784_vm4, %v739_v15  ;;  %v729_v25 = vmax.f32 %v691_v18, 0.0 }
 0x1ef   : > { %v693_v21 = vpop.f32.mrf.mxu1  ;;  %1331 = vmatmul.mubr.msk.bf16.gmra.mxu0 %vm784_vm4, %v740_v16 }
 0x1f0   : > { %v694_v22 = vadd.f32 %v1178_v52, %v693_v21  ;;  %v732_v23 = vmax.f32 %v702_v19, 0.0 }
 0x1f1   : > { %v1316_v24 = vpop.f32.mrf.mxu1 }
 0x1f2   : > { %v730_v26 = vmax.f32 %v694_v22, 0.0  ;;  %v742_v30 = vpack.c.bf16 %v732_v23, %v731_v27  ;;  %v715_v34 = vadd.f32 %v1316_v24, %v1178_v52 }
 0x1f3   : > { %v706_v28 = vpop.f32.mrf.mxu1 }
 0x1f4   : > { %v741_v29 = vpack.c.bf16 %v730_v26, %v729_v25  ;;  %v707_v32 = vadd.f32 %v1178_v52, %v706_v28  ;;  %v735_v40 = vmax.f32 %v715_v34, 0.0 }
 0x1f5   : > { %v1317_v31 = vpop.f32.mrf.mxu1 }
 0x1f6   : > { %v718_v33 = vadd.f32 %v1317_v31, %v1178_v52  ;;  %1334 = vmatprep.mubr.msk.bf16.mxu0 %vm784_vm4, %v741_v29  ;;  %v733_v38 = vmax.f32 %v707_v32, 0.0 }
 0x1f7   : > { %v709_v35 = vpop.f32.mrf.mxu1  ;;  %1335 = vmatmul.mubr.msk.bf16.gmra.mxu0 %vm784_vm4, %v742_v30 }
 0x1f8   : > { %v710_v36 = vadd.f32 %v1178_v52, %v709_v35  ;;  %v736_v37 = vmax.f32 %v718_v33, 0.0 }
 0x1fa   : > { %v734_v39 = vmax.f32 %v710_v36, 0.0  ;;  %v744_v42 = vpack.c.bf16 %v736_v37, %v735_v40 }
 0x1fc   : > { %v743_v41 = vpack.c.bf16 %v734_v39, %v733_v38 }
 0x1fe   : > { %1338 = vmatprep.mubr.msk.bf16.mxu0 %vm784_vm4, %v743_v41 }
 0x1ff   : > { %1339 = vmatmul.mubr.msk.bf16.gmra.mxu0 %vm784_vm4, %v744_v42 }
 0x2a7   : > { %v1328_v44 = vpop.f32.mrf.mxu0 }
 0x2a8   : > { %v852_v45 = vadd.f32 %v1328_v44, %v1751_v43 }
 0x2a9   : > { %v843_v46 = vpop.f32.mrf.mxu0 }
 0x2aa   : > { %v908_v47 = vmax.f32 %v852_v45, 0.0  ;;  %v844_v48 = vadd.f32 %v1751_v43, %v843_v46 }
 0x2ab   : > { %v1329_v49 = vpop.f32.mrf.mxu0 }
 0x2ac   : > { %v1222_v50 = vpack.c.bf16 %v908_v47, %v908_v47  ;;  %v906_v51 = vmax.f32 %v844_v48, 0.0  ;;  %v855_v52 = vadd.f32 %v1329_v49, %v1751_v43 }
 0x2ad   : > { %v846_v53 = vpop.f32.mrf.mxu0 }
 0x2ae   : > { %989 = vst.msk [vmem:[%s1759_s24 + $0x8] sm:$0xf] %vm986_vm5, %v1222_v50  ;;  %v1220_v54 = vpack.c.bf16 %v906_v51, %v906_v51  ;;  %v909_v55 = vmax.f32 %v855_v52, 0.0  ;;  %v847_v56 = vadd.f32 %v1751_v43, %v846_v53 }
 0x2af   : > { %v1332_v57 = vpop.f32.mrf.mxu0 }
 0x2b0   : > { %987 = vst.msk [vmem:[%s1759_s24] sm:$0xf] %vm986_vm5, %v1220_v54  ;;  %v1223_v58 = vpack.c.bf16 %v909_v55, %v909_v55  ;;  %v907_v59 = vmax.f32 %v847_v56, 0.0  ;;  %v868_v60 = vadd.f32 %v1332_v57, %v1751_v43 }
 0x2b1   : > { %v859_v61 = vpop.f32.mrf.mxu0 }
 0x2b2   : > { %990 = vst.msk [vmem:[%s1759_s24 + $0xc] sm:$0xf] %vm986_vm5, %v1223_v58  ;;  %v1221_v62 = vpack.c.bf16 %v907_v59, %v907_v59  ;;  %v912_v63 = vmax.f32 %v868_v60, 0.0  ;;  %v860_v0 = vadd.f32 %v1751_v43, %v859_v61 }
 0x2b3   : > { %v1333_v1 = vpop.f32.mrf.mxu0 }
 0x2b4   : > { %988 = vst.msk [vmem:[%s1759_s24 + $0x4] sm:$0xf] %vm986_vm5, %v1221_v62  ;;  %v1226_v2 = vpack.c.bf16 %v912_v63, %v912_v63  ;;  %v910_v3 = vmax.f32 %v860_v0, 0.0  ;;  %v871_v4 = vadd.f32 %v1333_v1, %v1751_v43 }
 0x2b5   : > { %v862_v5 = vpop.f32.mrf.mxu0 }
 0x2b6   : > { %993 = vst.msk [vmem:[%s1759_s24 + $0x18] sm:$0xf] %vm986_vm5, %v1226_v2  ;;  %v1224_v6 = vpack.c.bf16 %v910_v3, %v910_v3  ;;  %v913_v7 = vmax.f32 %v871_v4, 0.0  ;;  %v863_v8 = vadd.f32 %v1751_v43, %v862_v5 }
 0x2b7   : > { %v1336_v9 = vpop.f32.mrf.mxu0 }
 0x2b8   : > { %991 = vst.msk [vmem:[%s1759_s24 + $0x10] sm:$0xf] %vm986_vm5, %v1224_v6  ;;  %v1227_v10 = vpack.c.bf16 %v913_v7, %v913_v7  ;;  %v911_v11 = vmax.f32 %v863_v8, 0.0  ;;  %v884_v12 = vadd.f32 %v1336_v9, %v1751_v43 }
 0x2b9   : > { %v875_v13 = vpop.f32.mrf.mxu0 }
 0x2ba   : > { %994 = vst.msk [vmem:[%s1759_s24 + $0x1c] sm:$0xf] %vm986_vm5, %v1227_v10  ;;  %v1225_v14 = vpack.c.bf16 %v911_v11, %v911_v11  ;;  %v916_v15 = vmax.f32 %v884_v12, 0.0  ;;  %v876_v16 = vadd.f32 %v1751_v43, %v875_v13 }
 0x2bb   : > { %v1337_v17 = vpop.f32.mrf.mxu0 }
 0x2bc   : > { %992 = vst.msk [vmem:[%s1759_s24 + $0x14] sm:$0xf] %vm986_vm5, %v1225_v14  ;;  %v1230_v18 = vpack.c.bf16 %v916_v15, %v916_v15  ;;  %v914_v19 = vmax.f32 %v876_v16, 0.0  ;;  %v887_v20 = vadd.f32 %v1337_v17, %v1751_v43 }
 0x2bd   : > { %v878_v21 = vpop.f32.mrf.mxu0 }
 0x2be   : > { %997 = vst.msk [vmem:[%s1759_s24 + $0x28] sm:$0xf] %vm986_vm5, %v1230_v18  ;;  %v1228_v22 = vpack.c.bf16 %v914_v19, %v914_v19  ;;  %v917_v23 = vmax.f32 %v887_v20, 0.0  ;;  %v879_v24 = vadd.f32 %v1751_v43, %v878_v21 }
 0x2bf   : > { %v1340_v25 = vpop.f32.mrf.mxu0 }
 0x2c0   : > { %995 = vst.msk [vmem:[%s1759_s24 + $0x20] sm:$0xf] %vm986_vm5, %v1228_v22  ;;  %v1231_v26 = vpack.c.bf16 %v917_v23, %v917_v23  ;;  %v915_v27 = vmax.f32 %v879_v24, 0.0  ;;  %v900_v28 = vadd.f32 %v1340_v25, %v1751_v43 }
 0x2c1   : > { %v891_v29 = vpop.f32.mrf.mxu0 }
 0x2c2   : > { %998 = vst.msk [vmem:[%s1759_s24 + $0x2c] sm:$0xf] %vm986_vm5, %v1231_v26  ;;  %v1229_v30 = vpack.c.bf16 %v915_v27, %v915_v27  ;;  %v920_v31 = vmax.f32 %v900_v28, 0.0  ;;  %v892_v32 = vadd.f32 %v1751_v43, %v891_v29 }
 0x2c3   : > { %v1341_v33 = vpop.f32.mrf.mxu0 }
 0x2c4   : > { %996 = vst.msk [vmem:[%s1759_s24 + $0x24] sm:$0xf] %vm986_vm5, %v1229_v30  ;;  %v1234_v34 = vpack.c.bf16 %v920_v31, %v920_v31  ;;  %v918_v35 = vmax.f32 %v892_v32, 0.0  ;;  %v903_v36 = vadd.f32 %v1341_v33, %v1751_v43 }
 0x2c5   : > { %v894_v37 = vpop.f32.mrf.mxu0 }
 0x2c6   : > { %1001 = vst.msk [vmem:[%s1759_s24 + $0x38] sm:$0xf] %vm986_vm5, %v1234_v34  ;;  %v1232_v38 = vpack.c.bf16 %v918_v35, %v918_v35  ;;  %v921_v39 = vmax.f32 %v903_v36, 0.0  ;;  %v895_v40 = vadd.f32 %v1751_v43, %v894_v37 }
 0x2c8   : > { %999 = vst.msk [vmem:[%s1759_s24 + $0x30] sm:$0xf] %vm986_vm5, %v1232_v38  ;;  %v1235_v41 = vpack.c.bf16 %v921_v39, %v921_v39  ;;  %v919_v42 = vmax.f32 %v895_v40, 0.0 }
 0x2ca   : > { %1002 = vst.msk [vmem:[%s1759_s24 + $0x3c] sm:$0xf] %vm986_vm5, %v1235_v41  ;;  %v1233_v44 = vpack.c.bf16 %v919_v42, %v919_v42 }
 0x2cc   : > { %1000 = vst.msk [vmem:[%s1759_s24 + $0x34] sm:$0xf] %vm986_vm5, %v1233_v44 }
 0x2cd PF: > { %s19_s23 = sadd.s32 1, %s1554_s23   ;;  %s1827_s21 = smov %s1550_s22 }
 0x2ce   : > { %p16_p2 = scmp.ge.s32.totalorder %s19_s23, 4   ;;  %s1828_s22 = smov %s1830_s29 }
 0x2d0   :  { %18 = sbr.rel (!%p16_p2) target bundleno = 4 (0x4), region = 94 }
 0x2d5   :  { %1033 = vsyncpa [#allocation3], 1 }
 0x2d6   :  { %1035 = vsyncpa [#allocation3 + $0x1], 1 }
 0x2d7   :  { %1036 = vsyncpa [#allocation5], 1 }
 0x2d8   :  { %1037 = vsyncpa [#allocation8], 1 }

// kernel: base_pointnet_forward.4
= control target key start
LH: loop header
LB: loop body
LE: loop exit
PB: predicated region body
PF: predicated region fallthrough
CT: control target
= control target key end

     0   :  { %s3153_s0 = inlined_call_operand.vmem [shape: f32[2,128,3], index: 0, kind: input, shape index: {}]   ;;  %s3154_s1 = inlined_call_operand.hbm [shape: bf16[3,64], index: 1, kind: input, shape index: {}]   ;;  %s3155_s2 = inlined_call_operand.hbm [shape: f32[1,64], index: 2, kind: input, shape index: {}]   ;;  %s3156_s3 = inlined_call_operand.hbm [shape: bf16[64,128], index: 3, kind: input, shape index: {}]   ;;  %s3157_s4 = inlined_call_operand.hbm [shape: f32[1,128], index: 4, kind: input, shape index: {}]   ;;  %s3158_s5 = inlined_call_operand.hbm [shape: bf16[128,256], index: 5, kind: input, shape index: {}]   ;;  %s3159_s6 = inlined_call_operand.hbm [shape: f32[1,256], index: 6, kind: input, shape index: {}]   ;;  %s3160_s7 = inlined_call_operand.hbm [shape: f32[256,256], index: 7, kind: input, shape index: {}]   ;;  %s3161_s8 = inlined_call_operand.hbm [shape: f32[1,256], index: 8, kind: input, shape index: {}]   ;;  %s3162_s9 = inlined_call_operand.hbm [shape: f32[256,128], index: 9, kind: input, shape index: {}]   ;;  %s3163_s10 = inlined_call_operand.hbm [shape: f32[1,128], index: 10, kind: input, shape index: {}]   ;;  %s3164_s11 = inlined_call_operand.hbm [shape: f32[128,128], index: 11, kind: input, shape index: {}]   ;;  %s3165_s12 = inlined_call_operand.hbm [shape: f32[1,128], index: 12, kind: input, shape index: {}]   ;;  %s3166_s13 = inlined_call_operand.vmem [shape: f32[2,1,128], index: 13, kind: output, shape index: {}]  }
   0x1   :  { %3171 = sst [smem:[#allocation29_spill]] %s3154_s1 }
   0x2   :  { %3172 = sst [smem:[#allocation30_spill]] %s3155_s2 }
   0x3   :  { %18 = vsyncpa [#allocation4], 0 }
   0x4   :  { %19 = vsyncpa [#allocation6], 0 }
   0x5   :  { %20 = vsyncpa [#allocation9], 0 }
   0x6   :  { %21 = vsyncpa [#allocation12], 0 }
   0x7   :  { %22 = vsyncpa [#allocation15], 0 }
   0x8   :  { %23 = vsyncpa [#allocation18], 0 }
   0x9   :  { %24 = vsyncpa [#allocation21], 0  ;;  %s2841_s25 = smov 0   ;;  %s2843_s26 = smov 0  }
   0xa   :  { %s2845_s27 = smov 0  }
   0xb LB: > { %s2747_s28 = smov [#allocation5]   ;;  %s1976_s30 = sadd.s32 4294967295, %s2745_s27   ;;  %s2745_s27 = sphi %s2845_s27, %s30_s27   ;;  %s2741_s26 = sphi %s2843_s26, %s3184_s26   ;;  %s2737_s25 = sphi %s2841_s25, %s3183_s25  }
   0xc   : > { %s377_s29 = sshll.u32 %s2747_s28, 4  ;;  %p1978_p0 = scmp.ge.s32.totalorder %s2745_s27, 1  ;;  %s378_s29 = int_to_ptr.vmem [resolvable:$true] %s377_s29 }
   0xd   : > { %p353_p1 = scmp.lt.s32.totalorder %s2745_s27, 3  ;;  %p2859_p2 = scmp.eq.s32.totalorder %s1976_s30, 0 }
   0xe   : > { %s2748_s16 = smov [#allocation8]   ;;  %s2749_s18 = smov [#allocation11]  }
   0xf   : > { %p2863_p3 = pnand %p1978_p0, %p353_p1  ;;  %s401_s17 = sshll.u32 %s2748_s16, 4  ;;  %s2869_s17 = int_to_ptr.vmem [resolvable:$true] %s401_s17 }
  0x10   : > { %s425_s19 = sshll.u32 %s2749_s18, 4  ;;  %s2750_s21 = smov [#allocation14]   ;;  %s2877_s19 = int_to_ptr.vmem [resolvable:$true] %s425_s19 }
  0x11   : > { %p2246_p4 = pneg %p2863_p3  ;;  %s449_s22 = sshll.u32 %s2750_s21, 4  ;;  %s2879_s22 = int_to_ptr.vmem [resolvable:$true] %s449_s22 }
  0x12   : > { %s2394_s24 = scalar_lea.vmem %s378_s29, 16  ;;  %s2401_s28 = scalar_lea.vmem %s378_s29, 32 }
  0x13   : > { %p2873_p5 = pnand %p2859_p2, %p2246_p4  ;;  %p2395_p7 = scmp.ne.s32.totalorder %s378_s29, %s2394_s24 }
  0x14   : > { %p2402_p10 = scmp.lt.s32.totalorder %s378_s29, %s378_s29  ;;  %p2403_p11 = scmp.lt.s32.totalorder %s2401_s28, %s2394_s24 }
  0x15   : > { %p2883_p6 = pneg %p2873_p5 }
  0x16   : > { %p2404_p12 = por %p2403_p11, %p2402_p10 }
  0x17   : > { %p2397_p8 = pnand %p2395_p7, %p2883_p6 }
  0x19   : > { %p2398_p9 = pneg %p2397_p8 }
  0x1b   : > { %p2405_p13 = pnand %p2404_p12, %p2398_p9 }
  0x1d   : > { %2408 = shalt.err (!%p2405_p13)
}
  0x1e   : > { %s3177_s2 = sld [smem:[#allocation30_spill]]  ;;  %s2420_s18 = scalar_lea.vmem %s2869_s17, 16 }
  0x1f   : > { %p2421_p0 = scmp.ne.s32.totalorder %s2869_s17, %s2420_s18  ;;  %s2427_s21 = scalar_lea.vmem %s2869_s17, 32 }
  0x20   : > { %p2428_p7 = scmp.lt.s32.totalorder %s2869_s17, %s2869_s17  ;;  %p2429_p8 = scmp.lt.s32.totalorder %s2427_s21, %s2420_s18 }
  0x21   : > { %p2423_p1 = pnand %p2421_p0, %p2883_p6 }
  0x22   : > { %p2430_p9 = por %p2429_p8, %p2428_p7 }
  0x23   : > { %p2424_p4 = pneg %p2423_p1 }
  0x24   : > { %2252 = dma.hbm_to_vmem [thread:$0]  (!%p2873_p5), %s3177_s2, 16, %s378_s29, [#allocation6]  }
  0x25   : > { %p2431_p10 = pnand %p2430_p9, %p2424_p4 }
  0x27   : > { %2434 = shalt.err (!%p2431_p10)
}
  0x28   : > { %2258 = dma.hbm_to_vmem [thread:$0]  (!%p2873_p5), %s3157_s4, 16, %s2869_s17, [#allocation9]  }
  0x29   : > { %s2446_s29 = scalar_lea.vmem %s2877_s19, 32  ;;  %p2454_p0 = scmp.lt.s32.totalorder %s2877_s19, %s2877_s19 }
  0x2a   : > { %p2447_p11 = scmp.ne.s32.totalorder %s2877_s19, %s2446_s29  ;;  %p2455_p1 = scmp.lt.s32.totalorder %s2446_s29, %s2446_s29 }
  0x2c   : > { %p2449_p12 = pnand %p2447_p11, %p2883_p6  ;;  %p2456_p4 = por %p2455_p1, %p2454_p0 }
  0x2e   : > { %p2450_p13 = pneg %p2449_p12 }
  0x30   : > { %p2457_p7 = pnand %p2456_p4, %p2450_p13 }
  0x32   : > { %2460 = shalt.err (!%p2457_p7)
}
  0x33   : > { %2264 = dma.hbm_to_vmem [thread:$0]  (!%p2873_p5), %s3159_s6, 32, %s2877_s19, [#allocation12]  }
  0x34   : > { %s2472_s17 = scalar_lea.vmem %s2879_s22, 32  ;;  %p2480_p11 = scmp.lt.s32.totalorder %s2879_s22, %s2879_s22 }
  0x35   : > { %p2473_p8 = scmp.ne.s32.totalorder %s2879_s22, %s2472_s17  ;;  %p2481_p12 = scmp.lt.s32.totalorder %s2472_s17, %s2472_s17 }
  0x37   : > { %p2475_p9 = pnand %p2473_p8, %p2883_p6  ;;  %p2482_p13 = por %p2481_p12, %p2480_p11 }
  0x39   : > { %p2476_p10 = pneg %p2475_p9 }
  0x3b   : > { %p2483_p0 = pnand %p2482_p13, %p2476_p10 }
  0x3d   : > { %2486 = shalt.err (!%p2483_p0)
}
  0x3e   : > { %2270 = dma.hbm_to_vmem [thread:$0]  (!%p2873_p5), %s3161_s8, 32, %s2879_s22, [#allocation15]  }
  0x3f   : > { %s2751_s19 = smov [#allocation17]  }
  0x40   : > { %s473_s24 = sshll.u32 %s2751_s19, 4  ;;  %s474_s24 = int_to_ptr.vmem [resolvable:$true] %s473_s24 }
  0x41   : > { %s2498_s28 = scalar_lea.vmem %s474_s24, 16  ;;  %s2505_s29 = scalar_lea.vmem %s474_s24, 32 }
  0x42   : > { %p2499_p1 = scmp.ne.s32.totalorder %s474_s24, %s2498_s28  ;;  %p2506_p8 = scmp.lt.s32.totalorder %s474_s24, %s474_s24 }
  0x43   : > { %p2507_p9 = scmp.lt.s32.totalorder %s2505_s29, %s2498_s28 }
  0x44   : > { %p2501_p4 = pnand %p2499_p1, %p2883_p6 }
  0x45   : > { %p2508_p10 = por %p2507_p9, %p2506_p8 }
  0x46   : > { %p2502_p7 = pneg %p2501_p4 }
  0x48   : > { %p2509_p11 = pnand %p2508_p10, %p2502_p7 }
  0x4a   : > { %2512 = shalt.err (!%p2509_p11)
}
  0x4b   : > { %2276 = dma.hbm_to_vmem [thread:$0]  (!%p2873_p5), %s3163_s10, 16, %s474_s24, [#allocation18]  }
  0x4c   : > { %s42_s22 = sadd.s32 1, %s2741_s26  ;;  %s2752_s17 = smov [#allocation3]  }
  0x4d   : > { %p44_p12 = scmp.ge.s32.totalorder %s42_s22, 2  ;;  %s366_s18 = sshll.u32 %s2752_s17, 4  ;;  %s367_s18 = int_to_ptr.vmem [resolvable:$true] %s366_s18 }
  0x4e   : > { %s2524_s21 = scalar_lea.vmem %s367_s18, 32  ;;  %p2532_p4 = scmp.lt.s32.totalorder %s367_s18, %s367_s18 }
  0x4f   : > { %s3186_s22 = smov (%p44_p12, %s42_s22), 0  ;;  %p2525_p13 = scmp.ne.s32.totalorder %s367_s18, %s2524_s21 }
  0x50   : > { %p2533_p7 = scmp.lt.s32.totalorder %s2524_s21, %s2524_s21 }
  0x51   : > { %p2527_p0 = pnand %p2525_p13, %p2883_p6 }
  0x52   : > { %p2534_p8 = por %p2533_p7, %p2532_p4 }
  0x53   : > { %p2528_p1 = pneg %p2527_p0 }
  0x55   : > { %p2535_p9 = pnand %p2534_p8, %p2528_p1 }
  0x57   : > { %2538 = shalt.err (!%p2535_p9)
}
  0x58   : > { %s3178_s1 = sld [smem:[#allocation29_spill]]  ;;  %s2753_s28 = smov [#allocation7]  }
  0x59   : > { %s387_s29 = sshll.u32 %s2753_s28, 4  ;;  %s388_s29 = int_to_ptr.vmem [resolvable:$true] %s387_s29 }
  0x5a   : > { %s2550_s30 = scalar_lea.vmem %s388_s29, 512  ;;  %p2558_p13 = scmp.lt.s32.totalorder %s388_s29, %s388_s29 }
  0x5b   : > { %p2551_p10 = scmp.ne.s32.totalorder %s388_s29, %s2550_s30  ;;  %p2559_p0 = scmp.lt.s32.totalorder %s2550_s30, %s2550_s30 }
  0x5d   : > { %p2553_p11 = pnand %p2551_p10, %p2883_p6  ;;  %p2560_p4 = por %p2559_p0, %p2558_p13 }
  0x5e   : > { %2249 = dma.hbm_to_vmem [thread:$0]  (!%p2873_p5), %s3178_s1, 32, %s367_s18, [#allocation4]  }
  0x5f   : > { %p2554_p12 = pneg %p2553_p11 }
  0x61   : > { %p2561_p1 = pnand %p2560_p4, %p2554_p12 }
  0x63   : > { %2564 = shalt.err (!%p2561_p1)
}
  0x64   : > { %s2754_s16 = smov 64   ;;  %s2755_s17 = smov 4  }
  0x65   : > { %2255 = dma.hbm_to_vmem [thread:$0]  (!%p2873_p5), %s3156_s3, 512, %s388_s29, [#allocation6], %s2754_s16, %s2754_s16, %s2755_s17  }
  0x66   : > { %s2756_s19 = smov [#allocation10]  }
  0x67   : > { %s411_s24 = sshll.u32 %s2756_s19, 4  ;;  %s412_s24 = int_to_ptr.vmem [resolvable:$true] %s411_s24 }
  0x68   : > { %s2576_s28 = scalar_lea.vmem %s412_s24, 2048  ;;  %p2584_p10 = scmp.lt.s32.totalorder %s412_s24, %s412_s24 }
  0x69   : > { %p2577_p7 = scmp.ne.s32.totalorder %s412_s24, %s2576_s28  ;;  %p2585_p11 = scmp.lt.s32.totalorder %s2576_s28, %s2576_s28 }
  0x6b   : > { %p2579_p8 = pnand %p2577_p7, %p2883_p6  ;;  %p2586_p12 = por %p2585_p11, %p2584_p10 }
  0x6d   : > { %p2580_p9 = pneg %p2579_p8 }
  0x6f   : > { %p2587_p13 = pnand %p2586_p12, %p2580_p9 }
  0x71   : > { %2590 = shalt.err (!%p2587_p13)
}
  0x72   : > { %s3167_s30 = smov 128   ;;  %s3169_s1 = smov 8  }
  0x73   : > { %2261 = dma.hbm_to_vmem [thread:$0]  (!%p2873_p5), %s3158_s5, 2048, %s412_s24, [#allocation9], %s3167_s30, %s3167_s30, %s3169_s1  }
  0x74   : > { %s2759_s17 = smov [#allocation13]  }
  0x75   : > { %s435_s21 = sshll.u32 %s2759_s17, 4  ;;  %s436_s21 = int_to_ptr.vmem [resolvable:$true] %s435_s21 }
  0x76   : > { %s2602_s18 = scalar_lea.vmem %s436_s21, 8192  ;;  %p2610_p7 = scmp.lt.s32.totalorder %s436_s21, %s436_s21 }
  0x77   : > { %p2603_p0 = scmp.ne.s32.totalorder %s436_s21, %s2602_s18  ;;  %p2611_p8 = scmp.lt.s32.totalorder %s2602_s18, %s2602_s18 }
  0x79   : > { %p2605_p4 = pnand %p2603_p0, %p2883_p6  ;;  %p2612_p9 = por %p2611_p8, %p2610_p7 }
  0x7b   : > { %p2606_p1 = pneg %p2605_p4 }
  0x7d   : > { %p2613_p10 = pnand %p2612_p9, %p2606_p1 }
  0x7f   : > { %2616 = shalt.err (!%p2613_p10)
}
  0x80   : > { %s2760_s19 = smov 256   ;;  %s2761_s28 = smov 16  }
  0x81   : > { %2267 = dma.hbm_to_vmem [thread:$0]  (!%p2873_p5), %s3160_s7, 8192, %s436_s21, [#allocation12], %s2760_s19, %s2760_s19, %s2761_s28  }
  0x82   : > { %s2762_s16 = smov [#allocation16]   ;;  %s2763_s30 = smov [#allocation19]  }
  0x83   : > { %s459_s17 = sshll.u32 %s2762_s16, 4  ;;  %s483_s1 = sshll.u32 %s2763_s30, 4  ;;  %s460_s17 = int_to_ptr.vmem [resolvable:$true] %s459_s17  ;;  %s484_s1 = int_to_ptr.vmem [resolvable:$true] %s483_s1 }
  0x84   : > { %s2628_s2 = scalar_lea.vmem %s460_s17, 4096  ;;  %p2636_p0 = scmp.lt.s32.totalorder %s460_s17, %s460_s17 }
  0x85   : > { %p2629_p11 = scmp.ne.s32.totalorder %s460_s17, %s2628_s2  ;;  %p2637_p4 = scmp.lt.s32.totalorder %s2628_s2, %s2628_s2 }
  0x87   : > { %p2631_p12 = pnand %p2629_p11, %p2883_p6  ;;  %p2638_p1 = por %p2637_p4, %p2636_p0 }
  0x89   : > { %p2632_p13 = pneg %p2631_p12 }
  0x8b   : > { %p2639_p7 = pnand %p2638_p1, %p2632_p13 }
  0x8d   : > { %2642 = shalt.err (!%p2639_p7)
}
  0x8e   : > { %s3179_s18 = smov 8   ;;  %s3180_s21 = smov 128  }
  0x8f   : > { %2273 = dma.hbm_to_vmem [thread:$0]  (!%p2873_p5), %s3162_s9, 4096, %s460_s17, [#allocation15], %s3180_s21, %s3180_s21, %s3179_s18  }
  0x90   : > { %s2654_s30 = scalar_lea.vmem %s484_s1, 2048  ;;  %p2662_p11 = scmp.lt.s32.totalorder %s484_s1, %s484_s1 }
  0x91   : > { %p2655_p8 = scmp.ne.s32.totalorder %s484_s1, %s2654_s30  ;;  %p2663_p12 = scmp.lt.s32.totalorder %s2654_s30, %s2654_s30 }
  0x93   : > { %p2657_p9 = pnand %p2655_p8, %p2883_p6  ;;  %p2664_p0 = por %p2663_p12, %p2662_p11 }
  0x95   : > { %p2658_p10 = pneg %p2657_p9 }
  0x97   : > { %p2665_p13 = pnand %p2664_p0, %p2658_p10 }
  0x99   : > { %2668 = shalt.err (!%p2665_p13)
}
  0x9a   : > { %2279 = dma.hbm_to_vmem [thread:$0]  (!%p2873_p5), %s3164_s11, 2048, %s484_s1, [#allocation18], %s3180_s21, %s3180_s21, %s3179_s18  }
  0x9b   : > { %s2764_s24 = smov [#allocation20]  }
  0x9c   : > { %s497_s16 = sshll.u32 %s2764_s24, 4  ;;  %s498_s16 = int_to_ptr.vmem [resolvable:$true] %s497_s16 }
  0x9d   : > { %s2680_s17 = scalar_lea.vmem %s498_s16, 16  ;;  %s2687_s19 = scalar_lea.vmem %s498_s16, 32 }
  0x9e   : > { %p2681_p4 = scmp.ne.s32.totalorder %s498_s16, %s2680_s17  ;;  %p2688_p8 = scmp.lt.s32.totalorder %s498_s16, %s498_s16 }
  0x9f   : > { %p2689_p9 = scmp.lt.s32.totalorder %s2687_s19, %s2680_s17 }
  0xa0   : > { %p2683_p1 = pnand %p2681_p4, %p2883_p6 }
  0xa1   : > { %p2690_p10 = por %p2689_p9, %p2688_p8 }
  0xa2   : > { %p2684_p7 = pneg %p2683_p1 }
  0xa4   : > { %p2691_p11 = pnand %p2690_p10, %p2684_p7 }
  0xa6   : > { %2694 = shalt.err (!%p2691_p11)
}
  0xa7   : > { %2282 = dma.hbm_to_vmem [thread:$0]  (!%p2873_p5), %s3165_s12, 16, %s498_s16, [#allocation21]  }
  0xa8   : > { %523 = sbr.rel (%p2863_p3) target bundleno = 1497 (0x5d9), region = 72 }
  0xad   : > { %2708 = dma.done.wait (%p2859_p2), [#allocation4], 32  }
  0xae   : > { %2710 = vsyncadd (%p2859_p2), [#allocation4], 4294967264 }
  0xaf   : > { %2712 = dma.done.wait (%p2859_p2), [#allocation6], 528  }
  0xb0   : > { %2714 = vsyncadd (%p2859_p2), [#allocation6], 4294966768 }
  0xb1   : > { %2716 = dma.done.wait (%p2859_p2), [#allocation9], 2064  }
  0xb2   : > { %2718 = vsyncadd (%p2859_p2), [#allocation9], 4294965232 }
  0xb3   : > { %2720 = dma.done.wait (%p2859_p2), [#allocation12], 8224  }
  0xb4   : > { %2722 = vsyncadd (%p2859_p2), [#allocation12], 4294959072 }
  0xb5   : > { %2724 = dma.done.wait (%p2859_p2), [#allocation15], 4128  }
  0xb6   : > { %2726 = vsyncadd (%p2859_p2), [#allocation15], 4294963168 }
  0xb7   : > { %2728 = dma.done.wait (%p2859_p2), [#allocation18], 2064  }
  0xb8   : > { %2730 = vsyncadd (%p2859_p2), [#allocation18], 4294965232 }
  0xb9   : > { %2732 = dma.done.wait (%p2859_p2), [#allocation21], 16  }
  0xba   : > { %2734 = vsyncadd (%p2859_p2), [#allocation21], 4294967280  ;;  %vm693_vm0 = vcmask 1040384   ;;  %p614_p3 = scmp.lt.s32.totalorder %s2737_s25, 1  ;;  %vm694_vm1 = vcmask 1041408   ;;  %v2765_v0 = vmov 65535  }
  0xbb   : > { %v695_v1 = vsel %vm693_vm0, 4294967295, %v2765_v0  ;;  %v660_v3 = vld [vmem:[#allocation3] sm:$0x3]  ;;  %vm668_vm2 = vcmask 23552   ;;  %v2356_v30 = vld [vmem:[#allocation7 + $0x10] sm:$0xff]   ;;  %v2357_v31 = vld [vmem:[#allocation7 + $0x8] sm:$0xff]  }
  0xbc   : > { %s3188_s25 = smov (!%p614_p3, %s2737_s25), 1  ;;  %v696_v2 = vsel %vm694_vm1, %v695_v1, 0  ;;  %v2355_v16 = vld [vmem:[#allocation7 + $0x18] sm:$0xff]   ;;  %v2358_v32 = vld [vmem:[#allocation7] sm:$0xff]   ;;  %vm860_vm3 = vcmask 523264   ;;  %vm2770_vm5 = vmmov 0  }
  0xbd   : > { %s2047_s1 = sshll.u32 %s3188_s25, 7  ;;  %v698_v6 = vand.u32 %v696_v2, %v660_v3  ;;  %2139 = vmatprep.subr.bf16.mxu1 %v2355_v16  ;;  %v2359_v33 = vld [vmem:[#allocation10 + $0x70] ss:$8 sps:$4 sm:$0xff]   ;;  %v2361_v34 = vld [vmem:[#allocation10 + $0x74] ss:$8 sps:$4 sm:$0xff]   ;;  %s625_s21 = scalar_lea.vmem %s3166_s13, %s3188_s25 }
  0xbe   : > { %s3037_s23 = scalar_lea.vmem %s3153_s0, %s2047_s1  ;;  %2140 = vmatpush3.bf16.msra.mxu1 %v2355_v16  ;;  %v2364_v35 = vld [vmem:[#allocation10 + $0x64] ss:$8 sps:$4 sm:$0xff]   ;;  %v2362_v36 = vld [vmem:[#allocation10 + $0x60] ss:$8 sps:$4 sm:$0xff]   ;;  %v2367_v37 = vld [vmem:[#allocation10 + $0x54] ss:$8 sps:$4 sm:$0xff]  }
  0xbf   : > { %v636_v4 = vld [vmem:[%s3037_s23] sm:$0xff]  ;;  %v637_v5 = vld [vmem:[%s3037_s23 + $0x8] sm:$0xff]  ;;  %v638_v8 = vld [vmem:[%s3037_s23 + $0x10] sm:$0xff]  ;;  %2121 = vmatprep.subr.bf16.mxu0 %v698_v6  ;;  %2141 = vmatprep.subr.bf16.mxu1 %v2356_v30 }
  0xc0   : > { %v652_v7 = vpack.c.bf16 %v637_v5, %v636_v4  ;;  %v639_v9 = vld [vmem:[%s3037_s23 + $0x18] sm:$0xff]  ;;  %v640_v10 = vld [vmem:[%s3037_s23 + $0x20] sm:$0xff]  ;;  %v641_v11 = vld [vmem:[%s3037_s23 + $0x28] sm:$0xff]  ;;  %2122 = vmatpush3.bf16.msra.mxu0 %v698_v6 }
  0xc1   : > { %v653_v12 = vpack.c.bf16 %v639_v9, %v638_v8  ;;  %v654_v13 = vpack.c.bf16 %v641_v11, %v640_v10  ;;  %v642_v14 = vld [vmem:[%s3037_s23 + $0x30] sm:$0xff]  ;;  %v643_v15 = vld [vmem:[%s3037_s23 + $0x38] sm:$0xff]  ;;  %v644_v17 = vld [vmem:[%s3037_s23 + $0x40] sm:$0xff]  ;;  %1114 = vmatprep.subr.bf16.mxu0 %v2361_v34 }
  0xc2   : > { %2123 = vmatprep.mubr.msk.bf16.mxu0 %vm668_vm2, %v652_v7  ;;  %v645_v18 = vld [vmem:[%s3037_s23 + $0x48] sm:$0xff]  ;;  %v655_v19 = vpack.c.bf16 %v643_v15, %v642_v14  ;;  %v646_v21 = vld [vmem:[%s3037_s23 + $0x50] sm:$0xff]  ;;  %v647_v22 = vld [vmem:[%s3037_s23 + $0x58] sm:$0xff]  ;;  %2142 = vmatpush3.bf16.msra.mxu1 %v2356_v30 }
  0xc3   : > { %2124 = vmatmul.mubr.msk.bf16.vlgmr.msra.gmra.mxu0 %vm668_vm2, %v653_v12  ;;  %v656_v20 = vpack.c.bf16 %v645_v18, %v644_v17  ;;  %v648_v23 = vld [vmem:[%s3037_s23 + $0x60] sm:$0xff]  ;;  %v649_v24 = vld [vmem:[%s3037_s23 + $0x68] sm:$0xff]  ;;  %v657_v25 = vpack.c.bf16 %v647_v22, %v646_v21  ;;  %v650_v27 = vld [vmem:[%s3037_s23 + $0x70] sm:$0xff]  ;;  %2143 = vmatprep.subr.bf16.mxu1 %v2357_v31 }
  0xc4   : > { %2127 = vmatprep.mubr.msk.bf16.mxu0 %vm668_vm2, %v654_v13  ;;  %v658_v26 = vpack.c.bf16 %v649_v24, %v648_v23  ;;  %v651_v28 = vld [vmem:[%s3037_s23 + $0x78] sm:$0xff]  ;;  %1115 = vmatpush1.bf16.msra.mxu0 %v2359_v33  ;;  %v2370_v39 = vld [vmem:[#allocation10 + $0x44] ss:$8 sps:$4 sm:$0xff]   ;;  %v2368_v40 = vld [vmem:[#allocation10 + $0x40] ss:$8 sps:$4 sm:$0xff]  }
  0xc5   : > { %v659_v29 = vpack.c.bf16 %v651_v28, %v650_v27  ;;  %1116 = vmatprep.subr.bf16.mxu0 %v2364_v35  ;;  %v2365_v38 = vld [vmem:[#allocation10 + $0x50] ss:$8 sps:$4 sm:$0xff]   ;;  %v2373_v41 = vld [vmem:[#allocation10 + $0x34] ss:$8 sps:$4 sm:$0xff]  }
  0xc6   : > { %2144 = vmatpush3.bf16.msra.mxu1 %v2357_v31  ;;  %v2371_v42 = vld [vmem:[#allocation10 + $0x30] ss:$8 sps:$4 sm:$0xff]   ;;  %v2007_v45 = vld [vmem:[#allocation5] ss:$0 sm:$0xff] }
  0xc7   : > { %2145 = vmatprep.subr.bf16.mxu1 %v2358_v32 }
  0xc8   : > { %1117 = vmatpush1.bf16.msra.mxu0 %v2362_v36  ;;  %v2376_v36 = vld [vmem:[#allocation10 + $0x24] ss:$8 sps:$4 sm:$0xff]  }
  0xc9   : > { %1118 = vmatprep.subr.bf16.mxu0 %v2367_v37  ;;  %v2374_v37 = vld [vmem:[#allocation10 + $0x20] ss:$8 sps:$4 sm:$0xff]  }
  0xca   : > { %2146 = vmatpush3.bf16.msra.mxu1 %v2358_v32 }
  0xcb   : > { %2128 = vmatmul.mubr.msk.bf16.gmra.mxu0 %vm668_vm2, %v655_v19 }
  0xcc   : > { %2131 = vmatprep.mubr.msk.bf16.mxu0 %vm668_vm2, %v656_v20  ;;  %1119 = vmatpush1.bf16.msra.mxu0 %v2365_v38  ;;  %v2379_v38 = vld [vmem:[#allocation10 + $0x14] ss:$8 sps:$4 sm:$0xff]  }
  0xcd   : > { %1120 = vmatprep.subr.bf16.mxu0 %v2370_v39  ;;  %v2377_v39 = vld [vmem:[#allocation10 + $0x10] ss:$8 sps:$4 sm:$0xff]  }
  0xd0   : > { %1121 = vmatpush1.bf16.msra.mxu0 %v2368_v40  ;;  %v2382_v40 = vld [vmem:[#allocation10 + $0x4] ss:$8 sps:$4 sm:$0xff]  }
  0xd1   : > { %1122 = vmatprep.subr.bf16.mxu0 %v2373_v41  ;;  %v2380_v41 = vld [vmem:[#allocation10] ss:$8 sps:$4 sm:$0xff]  }
  0xd3   : > { %2132 = vmatmul.mubr.msk.bf16.gmra.mxu0 %vm668_vm2, %v657_v25 }
  0xd4   : > { %2135 = vmatprep.mubr.msk.bf16.mxu0 %vm668_vm2, %v658_v26  ;;  %1123 = vmatpush1.bf16.msra.mxu0 %v2371_v42  ;;  %v2766_v42 = vmov 0  }
  0xd5   : > { %1124 = vmatprep.subr.bf16.mxu0 %v2376_v36  ;;  %v1476_v36 = vld [vmem:[#allocation13 + $0xf8] sm:$0xff] }
  0xd6   : > { %1532 = vmatprep.subr.mxu1 %v1476_v36  ;;  %v1479_v36 = vld [vmem:[#allocation13 + $0x110] sm:$0xff] }
  0xd8   : > { %1125 = vmatpush1.bf16.msra.mxu0 %v2374_v37  ;;  %v1475_v37 = vld [vmem:[#allocation13 + $0xf0] sm:$0xff] }
  0xd9   : > { %1126 = vmatprep.subr.bf16.mxu0 %v2379_v38  ;;  %v1474_v38 = vld [vmem:[#allocation13 + $0xe8] sm:$0xff] }
  0xdb   : > { %2136 = vmatmul.mubr.msk.bf16.gmra.mxu0 %vm668_vm2, %v659_v29 }
  0xdc   : > { %1127 = vmatpush1.bf16.msra.mxu0 %v2377_v39  ;;  %1146 = vmatprep.mubr.bf16.mxu0 %v2766_v42  ;;  %v1473_v39 = vld [vmem:[#allocation13 + $0xe0] sm:$0xff] }
  0xdd   : > { %1128 = vmatprep.subr.bf16.mxu0 %v2382_v40  ;;  %v1472_v40 = vld [vmem:[#allocation13 + $0xd8] sm:$0xff] }
  0xe0   : > { %1129 = vmatpush1.bf16.msra.mxu0 %v2380_v41  ;;  %v1471_v41 = vld [vmem:[#allocation13 + $0xd0] sm:$0xff] }
 0x183   : > { %v2125_v43 = vpop.f32.mrf.mxu0 }
 0x184   : > { %v743_v49 = vadd.f32 %v2125_v43, %v2007_v45 }
 0x185   : > { %v734_v44 = vpop.f32.mrf.mxu0 }
 0x186   : > { %v735_v47 = vadd.f32 %v2007_v45, %v734_v44  ;;  %v799_v56 = vmax.f32 %v743_v49, 0.0 }
 0x187   : > { %v2126_v46 = vpop.f32.mrf.mxu0 }
 0x188   : > { %v746_v48 = vadd.f32 %v2126_v46, %v2007_v45  ;;  %v797_v54 = vmax.f32 %v735_v47, 0.0 }
 0x189   : > { %v737_v50 = vpop.f32.mrf.mxu0 }
 0x18a   : > { %v738_v51 = vadd.f32 %v2007_v45, %v737_v50  ;;  %v800_v52 = vmax.f32 %v746_v48, 0.0 }
 0x18b   : > { %v2129_v53 = vpop.f32.mrf.mxu0 }
 0x18c   : > { %v798_v55 = vmax.f32 %v738_v51, 0.0  ;;  %v759_v57 = vadd.f32 %v2129_v53, %v2007_v45  ;;  %v814_v61 = vpack.c.bf16 %v800_v52, %v799_v56 }
 0x18d   : > { %v750_v58 = vpop.f32.mrf.mxu0 }
 0x18e   : > { %v751_v59 = vadd.f32 %v2007_v45, %v750_v58  ;;  %v813_v60 = vpack.c.bf16 %v798_v55, %v797_v54  ;;  %v803_v0 = vmax.f32 %v759_v57, 0.0 }
 0x18f   : > { %v2130_v62 = vpop.f32.mrf.mxu0 }
 0x190   : > { %v762_v63 = vadd.f32 %v2130_v62, %v2007_v45  ;;  %2147 = vmatprep.mubr.msk.bf16.mxu1 %vm860_vm3, %v813_v60  ;;  %v801_v2 = vmax.f32 %v751_v59, 0.0 }
 0x191   : > { %v753_v1 = vpop.f32.mrf.mxu0  ;;  %2148 = vmatmul.mubr.msk.bf16.vlgmr.msra.gmra.mxu1 %vm860_vm3, %v814_v61 }
 0x192   : > { %v804_v3 = vmax.f32 %v762_v63, 0.0  ;;  %v754_v4 = vadd.f32 %v2007_v45, %v753_v1  ;;  %1533 = vmatpush1.msra.mxu1 %v1475_v37  ;;  %v1478_v37 = vld [vmem:[#allocation13 + $0x108] sm:$0xff] }
 0x193   : > { %v2133_v5 = vpop.f32.mrf.mxu0  ;;  %1534 = vmatprep.subr.mxu1 %v1474_v38  ;;  %v1477_v38 = vld [vmem:[#allocation13 + $0x100] sm:$0xff] }
 0x194   : > { %v802_v6 = vmax.f32 %v754_v4, 0.0  ;;  %v816_v7 = vpack.c.bf16 %v804_v3, %v803_v0  ;;  %v775_v8 = vadd.f32 %v2133_v5, %v2007_v45  ;;  %1535 = vmatpush1.msra.mxu1 %v1473_v39  ;;  %v1636_v39 = vld [vmem:[#allocation16 + $0xf8] sm:$0xff] }
 0x195   : > { %v766_v9 = vpop.f32.mrf.mxu0  ;;  %1536 = vmatprep.subr.mxu1 %v1472_v40  ;;  %v1620_v40 = vld [vmem:[#allocation16 + $0x78] sm:$0xff]  ;;  %2069 = vmatprep.subr.mxu0 %v1636_v39 }
 0x196   : > { %v815_v10 = vpack.c.bf16 %v802_v6, %v801_v2  ;;  %v767_v11 = vadd.f32 %v2007_v45, %v766_v9  ;;  %v807_v14 = vmax.f32 %v775_v8, 0.0  ;;  %1537 = vmatpush1.msra.mxu1 %v1471_v41  ;;  %v1635_v41 = vld [vmem:[#allocation16 + $0xf0] sm:$0xff] }
 0x197   : > { %v2134_v12 = vpop.f32.mrf.mxu0 }
 0x198   : > { %2151 = vmatprep.mubr.msk.bf16.mxu1 %vm860_vm3, %v815_v10  ;;  %v778_v13 = vadd.f32 %v2134_v12, %v2007_v45  ;;  %v805_v16 = vmax.f32 %v767_v11, 0.0 }
 0x199   : > { %2152 = vmatmul.mubr.msk.bf16.gmra.mxu1 %vm860_vm3, %v816_v7  ;;  %v769_v15 = vpop.f32.mrf.mxu0 }
 0x19a   : > { %v808_v17 = vmax.f32 %v778_v13, 0.0  ;;  %v770_v18 = vadd.f32 %v2007_v45, %v769_v15 }
 0x19b   : > { %v2137_v19 = vpop.f32.mrf.mxu0 }
 0x19c   : > { %v806_v20 = vmax.f32 %v770_v18, 0.0  ;;  %v818_v21 = vpack.c.bf16 %v808_v17, %v807_v14  ;;  %v791_v22 = vadd.f32 %v2137_v19, %v2007_v45 }
 0x19d   : > { %v782_v23 = vpop.f32.mrf.mxu0 }
 0x19e   : > { %v817_v24 = vpack.c.bf16 %v806_v20, %v805_v16  ;;  %v783_v25 = vadd.f32 %v2007_v45, %v782_v23  ;;  %v811_v28 = vmax.f32 %v791_v22, 0.0 }
 0x19f   : > { %v2138_v26 = vpop.f32.mrf.mxu0 }
 0x1a0   : > { %2155 = vmatprep.mubr.msk.bf16.mxu1 %vm860_vm3, %v817_v24  ;;  %v794_v27 = vadd.f32 %v2138_v26, %v2007_v45  ;;  %v809_v30 = vmax.f32 %v783_v25, 0.0 }
 0x1a1   : > { %2156 = vmatmul.mubr.msk.bf16.gmra.mxu1 %vm860_vm3, %v818_v21  ;;  %v785_v29 = vpop.f32.mrf.mxu0 }
 0x1a2   : > { %v812_v31 = vmax.f32 %v794_v27, 0.0  ;;  %v786_v32 = vadd.f32 %v2007_v45, %v785_v29  ;;  %v2016_v45 = vld [vmem:[#allocation8] ss:$0 sm:$0xff] }
 0x1a4   : > { %v810_v33 = vmax.f32 %v786_v32, 0.0  ;;  %v820_v34 = vpack.c.bf16 %v812_v31, %v811_v28 }
 0x1a6   : > { %v819_v35 = vpack.c.bf16 %v810_v33, %v809_v30 }
 0x1a8   : > { %2159 = vmatprep.mubr.msk.bf16.mxu1 %vm860_vm3, %v819_v35 }
 0x1a9   : > { %2160 = vmatmul.mubr.msk.bf16.gmra.mxu1 %vm860_vm3, %v820_v34 }
 0x251   : > { %v2149_v43 = vpop.f32.mrf.mxu1 }
 0x252   : > { %v928_v57 = vadd.f32 %v2149_v43, %v2016_v45  ;;  %v1470_v43 = vld [vmem:[#allocation13 + $0xc8] sm:$0xff] }
 0x253   : > { %v919_v44 = vpop.f32.mrf.mxu1  ;;  %1538 = vmatprep.subr.mxu1 %v1470_v43  ;;  %v1619_v43 = vld [vmem:[#allocation16 + $0x70] sm:$0xff] }
 0x254   : > { %v920_v47 = vadd.f32 %v2016_v45, %v919_v44  ;;  %v984_v60 = vmax.f32 %v928_v57, 0.0  ;;  %v1469_v44 = vld [vmem:[#allocation13 + $0xc0] sm:$0xff]  ;;  %v1455_v57 = vld [vmem:[#allocation13 + $0x50] sm:$0xff] }
 0x255   : > { %v2150_v46 = vpop.f32.mrf.mxu1  ;;  %1539 = vmatpush1.msra.mxu1 %v1469_v44  ;;  %v1634_v44 = vld [vmem:[#allocation16 + $0xe8] sm:$0xff] }
 0x256   : > { %v982_v51 = vmax.f32 %v920_v47, 0.0  ;;  %v931_v54 = vadd.f32 %v2150_v46, %v2016_v45  ;;  %v1466_v46 = vld [vmem:[#allocation13 + $0xa8] sm:$0xff]  ;;  %v1465_v47 = vld [vmem:[#allocation13 + $0xa0] sm:$0xff] }
 0x257   : > { %v922_v48 = vpop.f32.mrf.mxu1 }
 0x258   : > { %v923_v49 = vadd.f32 %v2016_v45, %v922_v48  ;;  %v985_v58 = vmax.f32 %v931_v54, 0.0  ;;  %v1464_v48 = vld [vmem:[#allocation13 + $0x98] sm:$0xff]  ;;  %v1458_v54 = vld [vmem:[#allocation13 + $0x68] sm:$0xff] }
 0x259   : > { %v2153_v50 = vpop.f32.mrf.mxu1 }
 0x25a   : > { %v983_v52 = vmax.f32 %v923_v49, 0.0  ;;  %v999_v61 = vpack.c.bf16 %v985_v58, %v984_v60  ;;  %v944_v7 = vadd.f32 %v2153_v50, %v2016_v45  ;;  %v1463_v49 = vld [vmem:[#allocation13 + $0x90] sm:$0xff]  ;;  %v1462_v50 = vld [vmem:[#allocation13 + $0x88] sm:$0xff]  ;;  %v1452_v60 = vld [vmem:[#allocation13 + $0x38] sm:$0xff] }
 0x25b   : > { %v935_v53 = vpop.f32.mrf.mxu1  ;;  %v1454_v58 = vld [vmem:[#allocation13 + $0x48] sm:$0xff] }
 0x25c   : > { %v998_v55 = vpack.c.bf16 %v983_v52, %v982_v51  ;;  %v936_v0 = vadd.f32 %v2016_v45, %v935_v53  ;;  %v988_v10 = vmax.f32 %v944_v7, 0.0  ;;  %v1461_v51 = vld [vmem:[#allocation13 + $0x80] sm:$0xff]  ;;  %v1460_v52 = vld [vmem:[#allocation13 + $0x78] sm:$0xff]  ;;  %v1459_v53 = vld [vmem:[#allocation13 + $0x70] sm:$0xff] }
 0x25d   : > { %v2154_v56 = vpop.f32.mrf.mxu1  ;;  %v1505_v7 = vld [vmem:[#allocation13 + $0x1e0] sm:$0xff] }
 0x25e   : > { %1147 = vmatmul.mubr.bf16.vlgmr.msra.gmra.mxu0 %v998_v55  ;;  %v986_v3 = vmax.f32 %v936_v0, 0.0  ;;  %v947_v4 = vadd.f32 %v2154_v56, %v2016_v45  ;;  %v1457_v55 = vld [vmem:[#allocation13 + $0x60] sm:$0xff]  ;;  %v1456_v56 = vld [vmem:[#allocation13 + $0x58] sm:$0xff] }
 0x25f   : > { %1156 = vmatprep.mubr.bf16.mxu0 %v2766_v42  ;;  %v938_v59 = vpop.f32.mrf.mxu1  ;;  %v1448_v0 = vld [vmem:[#allocation13 + $0x18] sm:$0xff]  ;;  %2070 = vmatpush3.msra.mxu0 %v1620_v40 }
 0x260   : > { %v939_v62 = vadd.f32 %v2016_v45, %v938_v59  ;;  %v989_v8 = vmax.f32 %v947_v4, 0.0  ;;  %v1453_v59 = vld [vmem:[#allocation13 + $0x40] sm:$0xff]  ;;  %v1508_v4 = vld [vmem:[#allocation13 + $0x1f8] sm:$0xff]  ;;  %2071 = vmatprep.subr.mxu0 %v1635_v41 }
 0x261   : > { %v2157_v63 = vpop.f32.mrf.mxu1  ;;  %2072 = vmatpush3.msra.mxu0 %v1619_v43 }
 0x262   : > { %v987_v1 = vmax.f32 %v939_v62, 0.0  ;;  %v1001_v11 = vpack.c.bf16 %v989_v8, %v988_v10  ;;  %v960_v18 = vadd.f32 %v2157_v63, %v2016_v45  ;;  %v1450_v62 = vld [vmem:[#allocation13 + $0x28] sm:$0xff]  ;;  %v1449_v63 = vld [vmem:[#allocation13 + $0x20] sm:$0xff]  ;;  %v1504_v8 = vld [vmem:[#allocation13 + $0x1d8] sm:$0xff]  ;;  %2073 = vmatprep.subr.mxu0 %v1634_v44 }
 0x263   : > { %v951_v2 = vpop.f32.mrf.mxu1  ;;  %v1502_v10 = vld [vmem:[#allocation13 + $0x1c8] sm:$0xff] }
 0x264   : > { %v1000_v5 = vpack.c.bf16 %v987_v1, %v986_v3  ;;  %v952_v12 = vadd.f32 %v2016_v45, %v951_v2  ;;  %v992_v22 = vmax.f32 %v960_v18, 0.0  ;;  %v1447_v1 = vld [vmem:[#allocation13 + $0x10] sm:$0xff]  ;;  %v1446_v2 = vld [vmem:[#allocation13 + $0x8] sm:$0xff]  ;;  %v1445_v3 = vld [vmem:[#allocation13] sm:$0xff] }
 0x265   : > { %v2158_v6 = vpop.f32.mrf.mxu1  ;;  %v1497_v18 = vld [vmem:[#allocation13 + $0x1a0] sm:$0xff] }
 0x266   : > { %1157 = vmatmul.mubr.bf16.gmra.mxu0 %v999_v61  ;;  %v990_v15 = vmax.f32 %v952_v12, 0.0  ;;  %v963_v19 = vadd.f32 %v2158_v6, %v2016_v45  ;;  %v1451_v61 = vld [vmem:[#allocation13 + $0x30] sm:$0xff]  ;;  %v1506_v6 = vld [vmem:[#allocation13 + $0x1e8] sm:$0xff]  ;;  %v631_v12 = vlaneseq }
 0x267   : > { %1166 = vmatprep.mubr.bf16.mxu0 %v2766_v42  ;;  %v954_v9 = vpop.f32.mrf.mxu1 }
 0x268   : > { %v955_v13 = vadd.f32 %v2016_v45, %v954_v9  ;;  %v993_v23 = vmax.f32 %v963_v19, 0.0  ;;  %v1503_v9 = vld [vmem:[#allocation13 + $0x1d0] sm:$0xff]  ;;  %vm3080_vm4 = vcmp.lt.s32.totalorder %v631_v12, 256  ;;  %v1496_v19 = vld [vmem:[#allocation13 + $0x198] sm:$0xff] }
 0x269   : > { %v2161_v14 = vpop.f32.mrf.mxu1 }
 0x26a   : > { %v991_v16 = vmax.f32 %v955_v13, 0.0  ;;  %v1003_v25 = vpack.c.bf16 %v993_v23, %v992_v22  ;;  %v976_v30 = vadd.f32 %v2161_v14, %v2016_v45  ;;  %v1500_v13 = vld [vmem:[#allocation13 + $0x1b8] sm:$0xff]  ;;  %v1499_v14 = vld [vmem:[#allocation13 + $0x1b0] sm:$0xff]  ;;  %v1493_v22 = vld [vmem:[#allocation13 + $0x180] sm:$0xff] }
 0x26b   : > { %v967_v17 = vpop.f32.mrf.mxu1  ;;  %v1492_v23 = vld [vmem:[#allocation13 + $0x178] sm:$0xff] }
 0x26c   : > { %v1002_v20 = vpack.c.bf16 %v991_v16, %v990_v15  ;;  %v968_v26 = vadd.f32 %v2016_v45, %v967_v17  ;;  %v996_v33 = vmax.f32 %v976_v30, 0.0  ;;  %v1498_v16 = vld [vmem:[#allocation13 + $0x1a8] sm:$0xff]  ;;  %v2767_v17 = vmov -inf   ;;  %v1485_v30 = vld [vmem:[#allocation13 + $0x140] sm:$0xff] }
 0x26d   : > { %v2162_v21 = vpop.f32.mrf.mxu1  ;;  %635 = vst.msk [vmem:[#allocation2] sm:$0x3] %vm3080_vm4, %v2767_v17  ;;  %v1722_v15 = vld [vmem:[#allocation19 + $0x68] sm:$0xff] }
 0x26e   : > { %1167 = vmatmul.mubr.bf16.gmra.mxu0 %v1000_v5  ;;  %v994_v28 = vmax.f32 %v968_v26, 0.0  ;;  %v979_v31 = vadd.f32 %v2162_v21, %v2016_v45  ;;  %v1507_v5 = vld [vmem:[#allocation13 + $0x1f0] sm:$0xff]  ;;  %v1494_v21 = vld [vmem:[#allocation13 + $0x188] sm:$0xff]  ;;  %v1489_v26 = vld [vmem:[#allocation13 + $0x160] sm:$0xff] }
 0x26f   : > { %1176 = vmatprep.mubr.bf16.mxu0 %v2766_v42  ;;  %v970_v24 = vpop.f32.mrf.mxu1 }
 0x270   : > { %v971_v27 = vadd.f32 %v2016_v45, %v970_v24  ;;  %v997_v34 = vmax.f32 %v979_v31, 0.0  ;;  %v1467_v45 = vld [vmem:[#allocation13 + $0xb0] sm:$0xff]  ;;  %v1484_v31 = vld [vmem:[#allocation13 + $0x138] sm:$0xff] }
 0x271   : > { %v1491_v24 = vld [vmem:[#allocation13 + $0x170] sm:$0xff] }
 0x272   : > { %v995_v29 = vmax.f32 %v971_v27, 0.0  ;;  %v1005_v35 = vpack.c.bf16 %v997_v34, %v996_v33  ;;  %v1488_v27 = vld [vmem:[#allocation13 + $0x158] sm:$0xff]  ;;  %v1482_v33 = vld [vmem:[#allocation13 + $0x128] sm:$0xff]  ;;  %v1481_v34 = vld [vmem:[#allocation13 + $0x120] sm:$0xff] }
 0x274   : > { %v1004_v32 = vpack.c.bf16 %v995_v29, %v994_v28  ;;  %v1487_v28 = vld [vmem:[#allocation13 + $0x150] sm:$0xff]  ;;  %v1486_v29 = vld [vmem:[#allocation13 + $0x148] sm:$0xff] }
 0x276   : > { %1177 = vmatmul.mubr.bf16.gmra.mxu0 %v1001_v11  ;;  %v1501_v11 = vld [vmem:[#allocation13 + $0x1c0] sm:$0xff] }
 0x277   : > { %1186 = vmatprep.mubr.bf16.mxu0 %v2766_v42 }
 0x27e   : > { %1187 = vmatmul.mubr.bf16.gmra.mxu0 %v1002_v20  ;;  %v1495_v20 = vld [vmem:[#allocation13 + $0x190] sm:$0xff] }
 0x27f   : > { %1196 = vmatprep.mubr.bf16.mxu0 %v2766_v42 }
 0x286   : > { %1197 = vmatmul.mubr.bf16.gmra.mxu0 %v1003_v25  ;;  %v1490_v25 = vld [vmem:[#allocation13 + $0x168] sm:$0xff] }
 0x287   : > { %1206 = vmatprep.mubr.bf16.mxu0 %v2766_v42 }
 0x28e   : > { %1207 = vmatmul.mubr.bf16.gmra.mxu0 %v1004_v32  ;;  %v1483_v32 = vld [vmem:[#allocation13 + $0x130] sm:$0xff] }
 0x28f   : > { %1216 = vmatprep.mubr.bf16.mxu0 %v2766_v42  ;;  %v1468_v42 = vld [vmem:[#allocation13 + $0xb8] sm:$0xff] }
 0x290   : > { %1540 = vmatprep.subr.mxu1 %v1468_v42  ;;  %v1618_v42 = vld [vmem:[#allocation16 + $0x68] sm:$0xff] }
 0x291   : > { %1541 = vmatpush1.msra.mxu1 %v1467_v45  ;;  %v1633_v45 = vld [vmem:[#allocation16 + $0xe0] sm:$0xff]  ;;  %2074 = vmatpush3.msra.mxu0 %v1618_v42 }
 0x292   : > { %1542 = vmatprep.subr.mxu1 %v1466_v46  ;;  %v1617_v46 = vld [vmem:[#allocation16 + $0x60] sm:$0xff]  ;;  %2075 = vmatprep.subr.mxu0 %v1633_v45 }
 0x293   : > { %1543 = vmatpush1.msra.mxu1 %v1465_v47  ;;  %v1632_v47 = vld [vmem:[#allocation16 + $0xd8] sm:$0xff]  ;;  %2076 = vmatpush3.msra.mxu0 %v1617_v46 }
 0x294   : > { %1544 = vmatprep.subr.mxu1 %v1464_v48  ;;  %v1616_v48 = vld [vmem:[#allocation16 + $0x58] sm:$0xff]  ;;  %2077 = vmatprep.subr.mxu0 %v1632_v47 }
 0x295   : > { %1545 = vmatpush1.msra.mxu1 %v1463_v49  ;;  %v1631_v49 = vld [vmem:[#allocation16 + $0xd0] sm:$0xff]  ;;  %2078 = vmatpush3.msra.mxu0 %v1616_v48 }
 0x296   : > { %1217 = vmatmul.mubr.bf16.gmra.mxu0 %v1005_v35  ;;  %1546 = vmatprep.subr.mxu1 %v1462_v50  ;;  %v1480_v35 = vld [vmem:[#allocation13 + $0x118] sm:$0xff] }
 0x297   : > { %1547 = vmatpush1.msra.mxu1 %v1461_v51  ;;  %v1615_v50 = vld [vmem:[#allocation16 + $0x50] sm:$0xff]  ;;  %v1630_v51 = vld [vmem:[#allocation16 + $0xc8] sm:$0xff]  ;;  %2079 = vmatprep.subr.mxu0 %v1631_v49 }
 0x298   : > { %1548 = vmatprep.subr.mxu1 %v1460_v52  ;;  %v1614_v52 = vld [vmem:[#allocation16 + $0x48] sm:$0xff]  ;;  %2080 = vmatpush3.msra.mxu0 %v1615_v50 }
 0x299   : > { %1549 = vmatpush1.msra.mxu1 %v1459_v53  ;;  %v1629_v53 = vld [vmem:[#allocation16 + $0xc0] sm:$0xff]  ;;  %2081 = vmatprep.subr.mxu0 %v1630_v51 }
 0x29a   : > { %1550 = vmatprep.subr.mxu1 %v1458_v54  ;;  %v1613_v54 = vld [vmem:[#allocation16 + $0x40] sm:$0xff]  ;;  %2082 = vmatpush3.msra.mxu0 %v1614_v52 }
 0x29b   : > { %1551 = vmatpush1.msra.mxu1 %v1457_v55  ;;  %v1628_v55 = vld [vmem:[#allocation16 + $0xb8] sm:$0xff]  ;;  %2083 = vmatprep.subr.mxu0 %v1629_v53 }
 0x29c   : > { %1552 = vmatprep.subr.mxu1 %v1456_v56  ;;  %v1612_v56 = vld [vmem:[#allocation16 + $0x38] sm:$0xff]  ;;  %2084 = vmatpush3.msra.mxu0 %v1613_v54 }
 0x29d   : > { %1553 = vmatpush1.msra.mxu1 %v1455_v57  ;;  %v1627_v57 = vld [vmem:[#allocation16 + $0xb0] sm:$0xff]  ;;  %2085 = vmatprep.subr.mxu0 %v1628_v55 }
 0x29e   : > { %1554 = vmatprep.subr.mxu1 %v1454_v58  ;;  %v1611_v58 = vld [vmem:[#allocation16 + $0x30] sm:$0xff]  ;;  %2086 = vmatpush3.msra.mxu0 %v1612_v56 }
 0x29f   : > { %1555 = vmatpush1.msra.mxu1 %v1453_v59  ;;  %v1626_v59 = vld [vmem:[#allocation16 + $0xa8] sm:$0xff]  ;;  %2087 = vmatprep.subr.mxu0 %v1627_v57 }
 0x2a0   : > { %1556 = vmatprep.subr.mxu1 %v1452_v60  ;;  %v1610_v60 = vld [vmem:[#allocation16 + $0x28] sm:$0xff]  ;;  %2088 = vmatpush3.msra.mxu0 %v1611_v58 }
 0x2a1   : > { %1557 = vmatpush1.msra.mxu1 %v1451_v61  ;;  %v1625_v61 = vld [vmem:[#allocation16 + $0xa0] sm:$0xff]  ;;  %2089 = vmatprep.subr.mxu0 %v1626_v59 }
 0x2a2   : > { %1558 = vmatprep.subr.mxu1 %v1450_v62  ;;  %v1609_v62 = vld [vmem:[#allocation16 + $0x20] sm:$0xff]  ;;  %2090 = vmatpush3.msra.mxu0 %v1610_v60 }
 0x2a3   : > { %1559 = vmatpush1.msra.mxu1 %v1449_v63  ;;  %v1624_v63 = vld [vmem:[#allocation16 + $0x98] sm:$0xff]  ;;  %2091 = vmatprep.subr.mxu0 %v1625_v61 }
 0x2a4   : > { %1560 = vmatprep.subr.mxu1 %v1448_v0  ;;  %v1608_v0 = vld [vmem:[#allocation16 + $0x18] sm:$0xff]  ;;  %2092 = vmatpush3.msra.mxu0 %v1609_v62 }
 0x2a5   : > { %1561 = vmatpush1.msra.mxu1 %v1447_v1  ;;  %v1623_v1 = vld [vmem:[#allocation16 + $0x90] sm:$0xff]  ;;  %2093 = vmatprep.subr.mxu0 %v1624_v63 }
 0x2a6   : > { %1562 = vmatprep.subr.mxu1 %v1446_v2  ;;  %v1607_v2 = vld [vmem:[#allocation16 + $0x10] sm:$0xff]  ;;  %2094 = vmatpush3.msra.mxu0 %v1608_v0 }
 0x2a7   : > { %1563 = vmatpush1.msra.mxu1 %v1445_v3  ;;  %2095 = vmatprep.subr.mxu0 %v1623_v1 }
 0x2a8   : > { %1564 = vmatprep.subr.mxu1 %v1508_v4  ;;  %v1622_v4 = vld [vmem:[#allocation16 + $0x88] sm:$0xff]  ;;  %2096 = vmatpush3.msra.mxu0 %v1607_v2 }
 0x2a9   : > { %1565 = vmatpush2.msra.mxu1 %v1507_v5  ;;  %2097 = vmatprep.subr.mxu0 %v1622_v4 }
 0x2aa   : > { %1566 = vmatprep.subr.mxu1 %v1506_v6 }
 0x2ab   : > { %1567 = vmatpush2.msra.mxu1 %v1505_v7 }
 0x2ac   : > { %1568 = vmatprep.subr.mxu1 %v1504_v8 }
 0x2ad   : > { %1569 = vmatpush2.msra.mxu1 %v1503_v9 }
 0x2ae   : > { %1570 = vmatprep.subr.mxu1 %v1502_v10 }
 0x2af   : > { %1571 = vmatpush2.msra.mxu1 %v1501_v11 }
 0x2b0   : > { %1572 = vmatprep.subr.mxu1 %v1500_v13 }
 0x2b1   : > { %1573 = vmatpush2.msra.mxu1 %v1499_v14 }
 0x2b2   : > { %1574 = vmatprep.subr.mxu1 %v1498_v16 }
 0x2b3   : > { %1575 = vmatpush2.msra.mxu1 %v1497_v18 }
 0x2b4   : > { %1576 = vmatprep.subr.mxu1 %v1496_v19 }
 0x2b5   : > { %1577 = vmatpush2.msra.mxu1 %v1495_v20 }
 0x2b6   : > { %1578 = vmatprep.subr.mxu1 %v1494_v21  ;;  %v3087_v21 = vshrl.u32 %v631_v12, 7 }
 0x2b7   : > { %1579 = vmatpush2.msra.mxu1 %v1493_v22 }
 0x2b8   : > { %1580 = vmatprep.subr.mxu1 %v1492_v23 }
 0x2b9   : > { %1581 = vmatpush2.msra.mxu1 %v1491_v24  ;;  %v3090_v24 = vsub.s32 0, %v3087_v21 }
 0x2ba   : > { %1582 = vmatprep.subr.mxu1 %v1490_v25 }
 0x2bb   : > { %1583 = vmatpush2.msra.mxu1 %v1489_v26  ;;  %v1022_v26 = vld [vmem:[#allocation11] sm:$0x3] }
 0x2bc   : > { %1584 = vmatprep.subr.mxu1 %v1488_v27  ;;  %v3093_v27 = vsub.s32 1, %v3087_v21 }
 0x2bd   : > { %1585 = vmatpush2.msra.mxu1 %v1487_v28 }
 0x2be   : > { %1586 = vmatprep.subr.mxu1 %v1486_v29  ;;  %v3096_v29 = vrot.slane %v1022_v26, %v3090_v24 }
 0x2bf   : > { %1587 = vmatpush2.msra.mxu1 %v1485_v30 }
 0x2c0   : > { %1588 = vmatprep.subr.mxu1 %v1484_v31  ;;  %v3099_v31 = vrot.slane %v1022_v26, %v3093_v27 }
 0x2c1   : > { %1589 = vmatpush2.msra.mxu1 %v1483_v32 }
 0x2c2   : > { %1590 = vmatprep.subr.mxu1 %v1482_v33 }
 0x2c3   : > { %1591 = vmatpush2.msra.mxu1 %v1481_v34 }
 0x2c4   : > { %1592 = vmatprep.subr.mxu1 %v1480_v35 }
 0x2c5   : > { %1593 = vmatpush2.msra.mxu1 %v1479_v36 }
 0x2c6   : > { %1594 = vmatprep.subr.mxu1 %v1478_v37 }
 0x2c7   : > { %1595 = vmatpush2.msra.mxu1 %v1477_v38 }
 0x31e   : > { %v1148_v3 = vpop.f32.mrf.mxu0 }
 0x31f   : > { %v1149_v34 = vadd.f32 %v1148_v3, %v3096_v29 }
 0x320   : > { %v1150_v5 = vpop.f32.mrf.mxu0 }
 0x321   : > { %v1151_v39 = vadd.f32 %v1150_v5, %v3099_v31  ;;  %v1227_v49 = vmax.f32 %v1149_v34, 0.0 }
 0x322   : > { %v1152_v6 = vpop.f32.mrf.mxu0 }
 0x323   : > { %v1153_v41 = vadd.f32 %v1152_v6, %v3096_v29  ;;  %v1228_v54 = vmax.f32 %v1151_v39, 0.0 }
 0x324   : > { %v1154_v7 = vpop.f32.mrf.mxu0 }
 0x325   : > { %v1155_v43 = vadd.f32 %v1154_v7, %v3099_v31  ;;  %v1229_v58 = vmax.f32 %v1153_v41, 0.0 }
 0x326   : > { %v1158_v8 = vpop.f32.mrf.mxu0 }
 0x327   : > { %v1159_v12 = vadd.f32 %v1158_v8, %v3096_v29  ;;  %v1230_v59 = vmax.f32 %v1155_v43, 0.0 }
 0x328   : > { %v1160_v9 = vpop.f32.mrf.mxu0 }
 0x329   : > { %v1161_v33 = vadd.f32 %v1160_v9, %v3099_v31  ;;  %v1231_v44 = vmax.f32 %v1159_v12, 0.0 }
 0x32a   : > { %v1162_v10 = vpop.f32.mrf.mxu0 }
 0x32b   : > { %v1163_v35 = vadd.f32 %v1162_v10, %v3096_v29  ;;  %v1232_v46 = vmax.f32 %v1161_v33, 0.0  ;;  %v1375_v60 = vmax.f32 %v1227_v49, %v1231_v44 }
 0x32c   : > { %v1164_v11 = vpop.f32.mrf.mxu0 }
 0x32d   : > { %v1165_v36 = vadd.f32 %v1164_v11, %v3099_v31  ;;  %v1233_v50 = vmax.f32 %v1163_v35, 0.0  ;;  %v1396_v63 = vmax.f32 %v1228_v54, %v1232_v46 }
 0x32e   : > { %v1168_v13 = vpop.f32.mrf.mxu0 }
 0x32f   : > { %v1169_v37 = vadd.f32 %v1168_v13, %v3096_v29  ;;  %v1234_v51 = vmax.f32 %v1165_v36, 0.0  ;;  %v1376_v3 = vmax.f32 %v1229_v58, %v1233_v50 }
 0x330   : > { %v1170_v14 = vpop.f32.mrf.mxu0 }
 0x331   : > { %v1171_v40 = vadd.f32 %v1170_v14, %v3099_v31  ;;  %v1235_v52 = vmax.f32 %v1169_v37, 0.0  ;;  %v1397_v4 = vmax.f32 %v1230_v59, %v1234_v51 }
 0x332   : > { %v1172_v16 = vpop.f32.mrf.mxu0 }
 0x333   : > { %v1173_v42 = vadd.f32 %v1172_v16, %v3096_v29  ;;  %v1236_v55 = vmax.f32 %v1171_v40, 0.0  ;;  %v1377_v5 = vmax.f32 %v1375_v60, %v1235_v52 }
 0x334   : > { %v1174_v17 = vpop.f32.mrf.mxu0 }
 0x335   : > { %v1175_v47 = vadd.f32 %v1174_v17, %v3099_v31  ;;  %v1237_v61 = vmax.f32 %v1173_v42, 0.0  ;;  %v1398_v8 = vmax.f32 %v1396_v63, %v1236_v55 }
 0x336   : > { %v1178_v18 = vpop.f32.mrf.mxu0 }
 0x337   : > { %v1179_v48 = vadd.f32 %v1178_v18, %v3096_v29  ;;  %v1238_v0 = vmax.f32 %v1175_v47, 0.0  ;;  %v1378_v13 = vmax.f32 %v1376_v3, %v1237_v61 }
 0x338   : > { %v1180_v19 = vpop.f32.mrf.mxu0 }
 0x339   : > { %v1181_v56 = vadd.f32 %v1180_v19, %v3099_v31  ;;  %v1239_v1 = vmax.f32 %v1179_v48, 0.0  ;;  %v1399_v19 = vmax.f32 %v1397_v4, %v1238_v0 }
 0x33a   : > { %v1182_v20 = vpop.f32.mrf.mxu0 }
 0x33b   : > { %v1183_v57 = vadd.f32 %v1182_v20, %v3096_v29  ;;  %v1240_v9 = vmax.f32 %v1181_v56, 0.0  ;;  %v1379_v20 = vmax.f32 %v1377_v5, %v1239_v1 }
 0x33c   : > { %v1184_v22 = vpop.f32.mrf.mxu0 }
 0x33d   : > { %v1185_v2 = vadd.f32 %v1184_v22, %v3099_v31  ;;  %v1241_v10 = vmax.f32 %v1183_v57, 0.0  ;;  %v1400_v35 = vmax.f32 %v1398_v8, %v1240_v9 }
 0x33e   : > { %v1188_v23 = vpop.f32.mrf.mxu0 }
 0x33f   : > { %v1189_v6 = vadd.f32 %v1188_v23, %v3096_v29  ;;  %v1242_v22 = vmax.f32 %v1185_v2, 0.0 }
 0x340   : > { %v1190_v25 = vpop.f32.mrf.mxu0 }
 0x341   : > { %v1191_v14 = vadd.f32 %v1190_v25, %v3099_v31  ;;  %v1243_v23 = vmax.f32 %v1189_v6, 0.0  ;;  %v1380_v25 = vmax.f32 %v1378_v13, %v1241_v10  ;;  %v1401_v43 = vmax.f32 %v1399_v19, %v1242_v22 }
 0x342   : > { %v1192_v28 = vpop.f32.mrf.mxu0  ;;  %v2768_v22 = vmov 1966171168  }
 0x343   : > { %v1193_v11 = vadd.f32 %v1192_v28, %v3096_v29 }
 0x344   : > { %v1194_v30 = vpop.f32.mrf.mxu0 }
 0x345   : > { %v1195_v16 = vadd.f32 %v1194_v30, %v3099_v31  ;;  %v1245_v36 = vmax.f32 %v1193_v11, 0.0 }
 0x346   : > { %v1198_v32 = vpop.f32.mrf.mxu0 }
 0x347   : > { %v1199_v17 = vadd.f32 %v1198_v32, %v3096_v29  ;;  %v1244_v32 = vmax.f32 %v1191_v14, 0.0  ;;  %v1246_v37 = vmax.f32 %v1195_v16, 0.0  ;;  %v1382_v50 = vmax.f32 %v1380_v25, %v1245_v36 }
 0x348   : > { %v1200_v38 = vpop.f32.mrf.mxu0 }
 0x349   : > { %v1201_v12 = vadd.f32 %v1200_v38, %v3099_v31  ;;  %v1247_v39 = vmax.f32 %v1199_v17, 0.0  ;;  %v1403_v54 = vmax.f32 %v1401_v43, %v1246_v37  ;;  %v1374_v37 = vld [vmem:[#allocation2] sm:$0x3] }
 0x34a   : > { %v1202_v45 = vpop.f32.mrf.mxu0 }
 0x34b   : > { %v1203_v26 = vadd.f32 %v1202_v45, %v3096_v29  ;;  %v1381_v45 = vmax.f32 %v1379_v20, %v1243_v23  ;;  %v1248_v46 = vmax.f32 %v1201_v12, 0.0 }
 0x34c   : > { %v1204_v53 = vpop.f32.mrf.mxu0 }
 0x34d   : > { %v1205_v33 = vadd.f32 %v1204_v53, %v3099_v31  ;;  %v1249_v44 = vmax.f32 %v1203_v26, 0.0  ;;  %v1402_v53 = vmax.f32 %v1400_v35, %v1244_v32  ;;  %v1383_v55 = vmax.f32 %v1381_v45, %v1247_v39  ;;  %v1605_v45 = vld [vmem:[#allocation16] sm:$0xff] }
 0x34e   : > { %v1208_v62 = vpop.f32.mrf.mxu0  ;;  %v1421_v26 = vunpack.c.l.s4 %v2768_v22 }
 0x34f   : > { %v1209_v28 = vadd.f32 %v1208_v62, %v3096_v29  ;;  %v1250_v47 = vmax.f32 %v1205_v33, 0.0  ;;  %v1384_v58 = vmax.f32 %v1382_v50, %v1249_v44  ;;  %v1404_v62 = vmax.f32 %v1402_v53, %v1248_v46  ;;  %v1719_v50 = vld [vmem:[#allocation19 + $0x50] sm:$0xff]  ;;  %v1716_v53 = vld [vmem:[#allocation19 + $0x38] sm:$0xff] }
 0x350   : > { %v1210_v7 = vpop.f32.mrf.mxu0  ;;  %v2769_v46 = vmov 0.0  }
 0x351   : > { %v1211_v40 = vadd.f32 %v1210_v7, %v3099_v31  ;;  %v1251_v48 = vmax.f32 %v1209_v28, 0.0  ;;  %v1405_v63 = vmax.f32 %v1403_v54, %v1250_v47  ;;  %v1422_v28 = vunpack.c.0.s8 %v1421_v26  ;;  %2163 = vmatprep.subr.mxu1 %v2769_v46  ;;  %v1723_v47 = vld [vmem:[#allocation19 + $0x70] sm:$0xff] }
 0x352   : > { %v1212_v18 = vpop.f32.mrf.mxu0  ;;  %v1715_v54 = vld [vmem:[#allocation19 + $0x30] sm:$0xff] }
 0x353   : > { %v1213_v30 = vadd.f32 %v1212_v18, %v3096_v29  ;;  %v1252_v56 = vmax.f32 %v1211_v40, 0.0  ;;  %v1385_v0 = vmax.f32 %v1383_v55, %v1251_v48  ;;  %v1425_v36 = vsub.s32 %v1422_v28, %v3087_v21  ;;  %v1724_v21 = vld [vmem:[#allocation19 + $0x78] sm:$0xff]  ;;  %v1721_v48 = vld [vmem:[#allocation19 + $0x60] sm:$0xff]  ;;  %v1714_v55 = vld [vmem:[#allocation19 + $0x28] sm:$0xff] }
 0x354   : > { %v1214_v34 = vpop.f32.mrf.mxu0 }
 0x355   : > { %v1215_v38 = vadd.f32 %v1214_v34, %v3099_v31  ;;  %v1253_v51 = vmax.f32 %v1213_v30, 0.0  ;;  %v1406_v6 = vmax.f32 %v1404_v62, %v1252_v56  ;;  %v1509_v56 = vld [vmem:[#allocation14] sm:$0x3] }
 0x356   : > { %v1218_v41 = vpop.f32.mrf.mxu0 }
 0x357   : > { %v1219_v42 = vadd.f32 %v1218_v41, %v3096_v29  ;;  %v1254_v59 = vmax.f32 %v1215_v38, 0.0  ;;  %v1386_v2 = vmax.f32 %v1384_v58, %v1253_v51  ;;  %v1606_v38 = vld [vmem:[#allocation16 + $0x8] sm:$0xff]  ;;  %v1529_v58 = vrot.slane %v1509_v56, %v3093_v27 }
 0x358   : > { %v1220_v49 = vpop.f32.mrf.mxu0  ;;  %2098 = vmatpush3.msra.mxu0 %v1606_v38  ;;  %v1718_v51 = vld [vmem:[#allocation19 + $0x48] sm:$0xff] }
 0x359   : > { %v1221_v52 = vadd.f32 %v1220_v49, %v3099_v31  ;;  %v1255_v60 = vmax.f32 %v1219_v42, 0.0  ;;  %v1407_v7 = vmax.f32 %v1405_v63, %v1254_v59  ;;  %v1621_v42 = vld [vmem:[#allocation16 + $0x80] sm:$0xff] }
 0x35a   : > { %v1222_v57 = vpop.f32.mrf.mxu0  ;;  %2099 = vmatprep.subr.mxu0 %v1621_v42  ;;  %v1720_v49 = vld [vmem:[#allocation19 + $0x58] sm:$0xff] }
 0x35b   : > { %v1223_v61 = vadd.f32 %v1222_v57, %v3096_v29  ;;  %v1256_v3 = vmax.f32 %v1221_v52, 0.0  ;;  %v1387_v8 = vmax.f32 %v1385_v0, %v1255_v60  ;;  %2100 = vmatpush3.msra.mxu0 %v1605_v45  ;;  %v1717_v52 = vld [vmem:[#allocation19 + $0x40] sm:$0xff]  ;;  %v1525_v57 = vrot.slane %v1509_v56, %v3090_v24 }
 0x35c   : > { %v1224_v1 = vpop.f32.mrf.mxu0 }
 0x35d   : > { %v1257_v4 = vmax.f32 %v1223_v61, 0.0  ;;  %v1225_v5 = vadd.f32 %v1224_v1, %v3099_v31  ;;  %v1408_v11 = vmax.f32 %v1406_v6, %v1256_v3  ;;  %v1713_v1 = vld [vmem:[#allocation19 + $0x20] sm:$0xff]  ;;  %v1711_v3 = vld [vmem:[#allocation19 + $0x10] sm:$0xff] }
 0x35f   : > { %v1388_v9 = vmax.f32 %v1386_v2, %v1257_v4  ;;  %v1258_v10 = vmax.f32 %v1225_v5, 0.0  ;;  %v1712_v2 = vld [vmem:[#allocation19 + $0x18] sm:$0xff] }
 0x360   : > { %v1637_v5 = vld [vmem:[#allocation17] sm:$0x1] }
 0x361   : > { %v1389_v13 = vmax.f32 %v1387_v8, %v1388_v9  ;;  %v1409_v14 = vmax.f32 %v1407_v7, %v1258_v10  ;;  %v1725_v10 = vld [vmem:[#allocation20] sm:$0x1] }
 0x363   : > { %v1390_v16 = vrot.slane %v1389_v13, 4  ;;  %v1410_v17 = vmax.f32 %v1408_v11, %v1409_v14 }
 0x365   : > { %v1391_v29 = vmax.f32 %v1389_v13, %v1390_v16  ;;  %v1411_v18 = vrot.slane %v1410_v17, 4 }
 0x367   : > { %v1392_v19 = vrot.slane %v1391_v29, 2  ;;  %v1412_v20 = vmax.f32 %v1410_v17, %v1411_v18 }
 0x369   : > { %v1393_v23 = vmax.f32 %v1391_v29, %v1392_v19  ;;  %v1413_v12 = vrot.slane %v1412_v20, 2 }
 0x36b   : > { %v1394_v33 = vrot.slane %v1393_v23, 1  ;;  %v1414_v31 = vmax.f32 %v1412_v20, %v1413_v12 }
 0x36d   : > { %v1415_v34 = vrot.slane %v1414_v31, 1  ;;  %v1395_v35 = vmax.f32 %v1393_v23, %v1394_v33 }
 0x36f   : > { %v1416_v25 = vmax.f32 %v1414_v31, %v1415_v34 }
 0x371   : > { %v1419_v30 = vcombine.low %v1395_v35, %v1416_v25 }
 0x373   : > { %v1426_v32 = vrot.slane %v1419_v30, %v1425_v36 }
 0x375   : > { %v1433_v39 = vrot.slane %v1426_v32, %v1425_v36 }
 0x377   : > { %v1435_v40 = vmax.f32 %v1374_v37, %v1433_v39 }
 0x379   : > { %1440 = vst.msk [vmem:[#allocation2] sm:$0x3] %vm3080_vm4, %v1435_v40 }
 0x380   : > { %v1444_v41 = vld [vmem:[#allocation2] sm:$0x3] }
 0x381   : > { %v1514_v43 = vrot.slane %v1444_v41, %v3090_v24  ;;  %v1518_v44 = vrot.slane %v1444_v41, %v3093_v27  ;;  %v1710_v24 = vld [vmem:[#allocation19 + $0x8] sm:$0xff]  ;;  %v1709_v27 = vld [vmem:[#allocation19] sm:$0xff] }
 0x383   : > { %1596 = vmatprep.mubr.f32.mxu1 %v1518_v44 }
 0x384   : > { %1597 = vmatmul.mubr.f32.vlgmr.msra.gmra.mxu1 %v1514_v43 }
 0x385   : > { %2164 = vmatpush3.msra.mxu1 %v1724_v21  ;;  %2195 = vmatprep.mubr.msk.f32.mxu1 %vm2770_vm5, %v2769_v46 }
 0x386   : > { %2165 = vmatprep.subr.mxu1 %v2769_v46 }
 0x387   : > { %2166 = vmatpush3.msra.mxu1 %v1723_v47 }
 0x388   : > { %2167 = vmatprep.subr.mxu1 %v2769_v46 }
 0x389   : > { %2168 = vmatpush3.msra.mxu1 %v1722_v15 }
 0x38a   : > { %2169 = vmatprep.subr.mxu1 %v2769_v46 }
 0x38b   : > { %2170 = vmatpush3.msra.mxu1 %v1721_v48 }
 0x38c   : > { %2171 = vmatprep.subr.mxu1 %v2769_v46 }
 0x38d   : > { %2172 = vmatpush3.msra.mxu1 %v1720_v49 }
 0x38e   : > { %2173 = vmatprep.subr.mxu1 %v2769_v46 }
 0x38f   : > { %2174 = vmatpush3.msra.mxu1 %v1719_v50 }
 0x390   : > { %2175 = vmatprep.subr.mxu1 %v2769_v46 }
 0x391   : > { %2176 = vmatpush3.msra.mxu1 %v1718_v51 }
 0x392   : > { %2177 = vmatprep.subr.mxu1 %v2769_v46 }
 0x393   : > { %2178 = vmatpush3.msra.mxu1 %v1717_v52 }
 0x394   : > { %2179 = vmatprep.subr.mxu1 %v2769_v46 }
 0x395   : > { %2180 = vmatpush3.msra.mxu1 %v1716_v53 }
 0x396   : > { %2181 = vmatprep.subr.mxu1 %v2769_v46 }
 0x397   : > { %2182 = vmatpush3.msra.mxu1 %v1715_v54 }
 0x398   : > { %2183 = vmatprep.subr.mxu1 %v2769_v46 }
 0x399   : > { %2184 = vmatpush3.msra.mxu1 %v1714_v55 }
 0x39a   : > { %2185 = vmatprep.subr.mxu1 %v2769_v46 }
 0x39b   : > { %2186 = vmatpush3.msra.mxu1 %v1713_v1 }
 0x39c   : > { %2187 = vmatprep.subr.mxu1 %v2769_v46 }
 0x39d   : > { %2188 = vmatpush3.msra.mxu1 %v1712_v2 }
 0x39e   : > { %2189 = vmatprep.subr.mxu1 %v2769_v46 }
 0x39f   : > { %2190 = vmatpush3.msra.mxu1 %v1711_v3 }
 0x3a0   : > { %2191 = vmatprep.subr.mxu1 %v2769_v46 }
 0x3a1   : > { %2192 = vmatpush3.msra.mxu1 %v1710_v24 }
 0x3a2   : > { %2193 = vmatprep.subr.mxu1 %v2769_v46 }
 0x3a3   : > { %2194 = vmatpush3.msra.mxu1 %v1709_v27 }
 0x444   : > { %v1598_v59 = vpop.f32.mrf.mxu1 }
 0x445   : > { %v1599_v60 = vadd.f32 %v1598_v59, %v1525_v57 }
 0x446   : > { %v1600_v61 = vpop.f32.mrf.mxu1 }
 0x447   : > { %v1601_v62 = vadd.f32 %v1600_v61, %v1529_v58  ;;  %v1603_v0 = vmax.f32 %v1599_v60, 0.0 }
 0x449   : > { %v1604_v63 = vmax.f32 %v1601_v62, 0.0 }
 0x44b   : > { %1702 = vmatprep.mubr.f32.mxu0 %v1604_v63 }
 0x44c   : > { %1703 = vmatmul.mubr.f32.vlgmr.msra.gmra.mxu0 %v1603_v0 }
 0x50c   : > { %v2101_v4 = vpop.f32.mrf.mxu0 }
 0x50e   : > { %v2102_v6 = vpop.f32.mrf.mxu0 }
 0x50f   : > { %v2103_v7 = vadd.f32 %v2102_v6, %v2101_v4 }
 0x511   : > { %v1705_v8 = vadd.f32 %v2103_v7, %v1637_v5 }
 0x513   : > { %v1708_v9 = vmax.f32 %v1705_v8, 0.0 }
 0x515   : > { %2196 = vmatmul.mubr.f32.vlgmr.msra.gmra.mxu1 %v1708_v9 }
 0x5d5   : > { %v1792_v11 = vpop.f32.mrf.mxu1 }
 0x5d6   : > { %v1793_v13 = vadd.f32 %v1792_v11, %v1725_v10 }
 0x5d7   : > { %v2197_v14 = vpop.f32.mrf.mxu1 }
 0x5d8   : > { %1796 = vst [vmem:[%s625_s21] sm:$0x1] %v1793_v13 }
 0x5d9 PF: > { %s30_s27 = sadd.s32 1, %s2745_s27   ;;  %s3183_s25 = smov %s2741_s26 }
 0x5da   : > { %p27_p2 = scmp.ge.s32.totalorder %s30_s27, 4   ;;  %s3184_s26 = smov %s3186_s22 }
 0x5dc   :  { %29 = sbr.rel (!%p27_p2) target bundleno = 11 (0xb), region = 159 }
 0x5e1   :  { %1814 = vsyncpa [#allocation4], 1 }
 0x5e2   :  { %1816 = vsyncpa [#allocation4 + $0x1], 1 }
 0x5e3   :  { %1817 = vsyncpa [#allocation6], 1 }
 0x5e4   :  { %1818 = vsyncpa [#allocation9], 1 }
 0x5e5   :  { %1819 = vsyncpa [#allocation12], 1 }
 0x5e6   :  { %1820 = vsyncpa [#allocation15], 1 }
 0x5e7   :  { %1821 = vsyncpa [#allocation18], 1 }
 0x5e8   :  { %1822 = vsyncpa [#allocation21], 1 }

// kernel: base_pointnet_forward.7
= control target key start
LH: loop header
LB: loop body
LE: loop exit
PB: predicated region body
PF: predicated region fallthrough
CT: control target
= control target key end

     0   :  { %12 = vsyncpa [#allocation3], 0  ;;  %s1720_s0 = inlined_call_operand.vmem [shape: bf16[2,128,64], index: 0, kind: input, shape index: {}]   ;;  %s1721_s1 = inlined_call_operand.vmem [shape: bf16[2,64,64], index: 1, kind: input, shape index: {}]   ;;  %s1722_s2 = inlined_call_operand.vmem [shape: f32[1,64], index: 2, kind: input, shape index: {}]   ;;  %s1723_s3 = inlined_call_operand.vmem [shape: bf16[64,128], index: 3, kind: input, shape index: {}]   ;;  %s1724_s4 = inlined_call_operand.vmem [shape: f32[1,128], index: 4, kind: input, shape index: {}]   ;;  %s1725_s5 = inlined_call_operand.vmem [shape: bf16[128,128], index: 5, kind: input, shape index: {}]   ;;  %s1726_s6 = inlined_call_operand.vmem [shape: f32[1,128], index: 6, kind: input, shape index: {}]   ;;  %s1727_s7 = inlined_call_operand.hbm [shape: f32[2,128,128], index: 7, kind: output, shape index: {}]  }
   0x1   :  { %14 = vsyncpa [#allocation3 + $0x1], 0  ;;  %s1489_s24 = smov 0   ;;  %s1491_s25 = smov 0  }
   0x2   :  { %s1493_s26 = smov 0   ;;  %s1495_s27 = smov 0  }
   0x3   :  { %s1497_s28 = smov 0   ;;  %s1499_s29 = smov 0  }
   0x4 LB: > { %s1090_s30 = sadd.s32 4294967295, %s1444_s29   ;;  %s1091_s8 = sadd.s32 4294967294, %s1444_s29   ;;  %s1444_s29 = sphi %s1499_s29, %s20_s29   ;;  %s1440_s28 = sphi %s1497_s28, %s1734_s28   ;;  %s1436_s27 = sphi %s1495_s27, %s1733_s27   ;;  %s1432_s26 = sphi %s1493_s26, %s1732_s26   ;;  %s1428_s25 = sphi %s1491_s25, %s1731_s25   ;;  %s1424_s24 = sphi %s1489_s24, %s1730_s24  }
   0x5   : > { %s32_s9 = sadd.s32 1, %s1440_s28  ;;  %s200_s10 = sadd.s32 1, %s1432_s26 }
   0x6   : > { %p34_p0 = scmp.ge.s32.totalorder %s32_s9, 2  ;;  %p210_p1 = scmp.ne.s32.totalorder %s1432_s26, %s1428_s25 }
   0x7   : > { %p211_p2 = scmp.eq.s32.totalorder %s1090_s30, 1  ;;  %p216_p3 = scmp.ne.s32.totalorder %s1428_s25, %s1424_s24 }
   0x8   : > { %s1736_s9 = smov (%p34_p0, %s32_s9), 0  ;;  %p217_p5 = scmp.eq.s32.totalorder %s1091_s8, 1 }
   0x9   : > { %p1529_p4 = por %p211_p2, %p210_p1  ;;  %s195_s12 = ssub.s32 %s1440_s28, %s1736_s9 }
   0xa   : > { %p1094_p6 = scmp.ge.s32.totalorder %s1444_s29, 1  ;;  %p198_p7 = scmp.eq.s32.totalorder %s195_s12, 0 }
   0xb   : > { %p1536_p8 = por %p217_p5, %p216_p3  ;;  %p271_p9 = scmp.lt.s32.totalorder %s1444_s29, 3 }
   0xc   : > { %s1542_s14 = scalar_select %p198_p7, %s1432_s26, %s200_s10  }
   0xd   : > { %p272_p10 = pnand %p1094_p6, %p271_p9 }
   0xe   : > { %p313_p11 = scmp.lt.s32.totalorder (!%p272_p10), %s1436_s27, 1  ;;  %s309_s15 = sand.u32 (!%p272_p10), 1, %s1428_s25  }
   0xf   : > { %275 = sbr.rel (%p272_p10) target bundleno = 851 (0x353), region = 48  ;;  %s1095_s16 = sshll.u32 (!%p272_p10), %s309_s15, 7 }
  0x10   : > { %s1675_s23 = scalar_lea.sflag (!%p272_p10), [#allocation3], %s309_s15 }
  0x14   : > { %v1356_v0 = vld [vmem:[%s1723_s3 + $0x18] sm:$0xff]   ;;  %s314_s17 = scalar_select %p313_p11, %s1436_s27, 1  ;;  %vm423_vm0 = vcmask 523264   ;;  %v1357_v13 = vld [vmem:[%s1723_s3 + $0x10] sm:$0xff]   ;;  %v1358_v14 = vld [vmem:[%s1723_s3 + $0x8] sm:$0xff]  }
  0x15   : > { %1215 = vmatprep.subr.bf16.mxu1 %v1356_v0  ;;  %v1359_v15 = vld [vmem:[%s1723_s3] sm:$0xff]   ;;  %v1360_v16 = vld [vmem:[%s1725_s5 + $0x38] sm:$0xff]   ;;  %v1361_v17 = vld [vmem:[%s1725_s5 + $0x30] sm:$0xff]  }
  0x16   : > { %s1148_s18 = sshll.u32 %s314_s17, 6  ;;  %s1149_s19 = sshll.u32 %s314_s17, 5  ;;  %1216 = vmatpush3.bf16.msra.mxu1 %v1356_v0  ;;  %v1362_v18 = vld [vmem:[%s1725_s5 + $0x28] sm:$0xff]   ;;  %v1584_v19 = vld [vmem:[%s1725_s5 + $0x20] sm:$0xff]   ;;  %v1590_v20 = vld [vmem:[%s1725_s5 + $0x18] sm:$0xff]  }
  0x17   : > { %s326_s22 = scalar_lea.vmem %s1721_s1, %s1149_s19  ;;  %s320_s8 = scalar_lea.vmem %s1720_s0, %s1148_s18  ;;  %1217 = vmatprep.subr.bf16.mxu1 %v1357_v13  ;;  %v1598_v23 = vld [vmem:[%s1722_s2] ss:$0 sm:$0xff] }
  0x18   : > { %v1344_v1 = vld [vmem:[%s326_s22 + $0x18] sm:$0xff]   ;;  %v1345_v2 = vld [vmem:[%s326_s22 + $0x10] sm:$0xff]   ;;  %v1346_v3 = vld [vmem:[%s326_s22 + $0x8] sm:$0xff]   ;;  %s1646_s17 = scalar_lea.vmem [#allocation2], %s1095_s16  ;;  %s1150_s18 = sshll.u32 %s1436_s27, 11 }
  0x19   : > { %1191 = vmatprep.subr.bf16.mxu0 %v1344_v1  ;;  %v1348_v4 = vld [vmem:[%s320_s8] sm:$0xff]   ;;  %v1349_v6 = vld [vmem:[%s320_s8 + $0x8] sm:$0xff]   ;;  %v1350_v7 = vld [vmem:[%s320_s8 + $0x10] sm:$0xff]   ;;  %s1000_s19 = sshll.u32 %s1646_s17, 4  ;;  %s1446_s27 = smov [#allocation2]   ;;  %s1670_s19 = int_to_ptr.vmem [resolvable:$true] %s1000_s19 }
  0x1a   : > { %1192 = vmatpush3.bf16.msra.mxu0 %v1344_v1  ;;  %1199 = vmatprep.mubr.msk.bf16.mxu0 %vm423_vm0, %v1348_v4  ;;  %v1347_v5 = vld [vmem:[%s326_s22] sm:$0xff]   ;;  %v1351_v8 = vld [vmem:[%s320_s8 + $0x18] sm:$0xff]   ;;  %v1353_v10 = vld [vmem:[%s320_s8 + $0x28] sm:$0xff]   ;;  %s1668_s22 = scalar_lea.hbm %s1727_s7, %s1150_s18  ;;  %s1368_s30 = scalar_lea.vmem %s1670_s19, 2048 }
  0x1b   : > { %1193 = vmatprep.subr.bf16.mxu0 %v1345_v2  ;;  %v1352_v9 = vld [vmem:[%s320_s8 + $0x20] sm:$0xff]   ;;  %v1354_v11 = vld [vmem:[%s320_s8 + $0x30] sm:$0xff]   ;;  %v1355_v12 = vld [vmem:[%s320_s8 + $0x38] sm:$0xff]   ;;  %1218 = vmatpush3.bf16.msra.mxu1 %v1357_v13  ;;  %p1369_p12 = scmp.ne.s32.totalorder %s1670_s19, %s1368_s30  ;;  %s1372_s8 = sshll.u32 %s1446_s27, 4  ;;  %s1373_s8 = int_to_ptr.vmem [resolvable:$false] %s1372_s8 }
  0x1c   : > { %1219 = vmatprep.subr.bf16.mxu1 %v1358_v14  ;;  %s1374_s10 = scalar_lea.vmem %s1373_s8, 4096  ;;  %p1375_p1 = scmp.lt.s32.totalorder %s1670_s19, %s1373_s8 }
  0x1d   : > { %p1370_p13 = pnand %p1369_p12, %p1529_p4  ;;  %p1376_p2 = scmp.lt.s32.totalorder %s1374_s10, %s1368_s30 }
  0x1e   : > { %1194 = vmatpush3.bf16.msra.mxu0 %v1345_v2 }
  0x1f   : > { %1195 = vmatprep.subr.bf16.mxu0 %v1346_v3  ;;  %1220 = vmatpush3.bf16.msra.mxu1 %v1358_v14  ;;  %v1365_v14 = vld [vmem:[%s1725_s5 + $0x10] sm:$0xff]   ;;  %p1371_p0 = pneg %p1370_p13  ;;  %p1377_p3 = por %p1376_p2, %p1375_p1 }
  0x20   : > { %1221 = vmatprep.subr.bf16.mxu1 %v1359_v15 }
  0x21   : > { %p1378_p5 = pnand %p1377_p3, %p1371_p0 }
  0x22   : > { %1196 = vmatpush3.bf16.msra.mxu0 %v1346_v3 }
  0x23   : > { %1197 = vmatprep.subr.bf16.mxu0 %v1347_v5  ;;  %1222 = vmatpush3.bf16.msra.mxu1 %v1359_v15  ;;  %v1366_v15 = vld [vmem:[%s1725_s5 + $0x8] sm:$0xff]  }
  0x24   : > { %1271 = vmatprep.subr.bf16.mxu1 %v1360_v16 }
  0x26   : > { %1198 = vmatpush3.bf16.msra.mxu0 %v1347_v5 }
  0x27   : > { %1239 = vmatprep.subr.bf16.mxu0 %v1360_v16 }
  0x29   : > { %1200 = vmatmul.mubr.msk.bf16.vlgmr.msra.gmra.mxu0 %vm423_vm0, %v1349_v6 }
  0x2a   : > { %1203 = vmatprep.mubr.msk.bf16.mxu0 %vm423_vm0, %v1350_v7  ;;  %1240 = vmatpush3.bf16.msra.mxu0 %v1360_v16 }
  0x2b   : > { %1241 = vmatprep.subr.bf16.mxu0 %v1361_v17 }
  0x2e   : > { %1242 = vmatpush3.bf16.msra.mxu0 %v1361_v17 }
  0x2f   : > { %1243 = vmatprep.subr.bf16.mxu0 %v1362_v18 }
  0x31   : > { %1204 = vmatmul.mubr.msk.bf16.gmra.mxu0 %vm423_vm0, %v1351_v8 }
  0x32   : > { %1207 = vmatprep.mubr.msk.bf16.mxu0 %vm423_vm0, %v1352_v9  ;;  %1244 = vmatpush3.bf16.msra.mxu0 %v1362_v18 }
  0x33   : > { %1245 = vmatprep.subr.bf16.mxu0 %v1584_v19 }
  0x36   : > { %1246 = vmatpush3.bf16.msra.mxu0 %v1584_v19 }
  0x37   : > { %1247 = vmatprep.subr.bf16.mxu0 %v1590_v20 }
  0x39   : > { %1208 = vmatmul.mubr.msk.bf16.gmra.mxu0 %vm423_vm0, %v1353_v10 }
  0x3a   : > { %1211 = vmatprep.mubr.msk.bf16.mxu0 %vm423_vm0, %v1354_v11  ;;  %1248 = vmatpush3.bf16.msra.mxu0 %v1590_v20 }
  0x3b   : > { %1249 = vmatprep.subr.bf16.mxu0 %v1365_v14 }
  0x3e   : > { %1250 = vmatpush3.bf16.msra.mxu0 %v1365_v14 }
  0x3f   : > { %1251 = vmatprep.subr.bf16.mxu0 %v1366_v15 }
  0x41   : > { %1212 = vmatmul.mubr.msk.bf16.gmra.mxu0 %vm423_vm0, %v1355_v12 }
  0x42   : > { %1252 = vmatpush3.bf16.msra.mxu0 %v1366_v15 }
  0xe9   : > { %v1201_v21 = vpop.f32.mrf.mxu0 }
  0xea   : > { %v491_v27 = vadd.f32 %v1201_v21, %v1598_v23 }
  0xeb   : > { %v482_v22 = vpop.f32.mrf.mxu0 }
  0xec   : > { %v483_v25 = vadd.f32 %v1598_v23, %v482_v22  ;;  %v547_v34 = vmax.f32 %v491_v27, 0.0 }
  0xed   : > { %v1202_v24 = vpop.f32.mrf.mxu0 }
  0xee   : > { %v494_v26 = vadd.f32 %v1202_v24, %v1598_v23  ;;  %v545_v32 = vmax.f32 %v483_v25, 0.0 }
  0xef   : > { %v485_v28 = vpop.f32.mrf.mxu0 }
  0xf0   : > { %v486_v29 = vadd.f32 %v1598_v23, %v485_v28  ;;  %v548_v30 = vmax.f32 %v494_v26, 0.0 }
  0xf1   : > { %v1205_v31 = vpop.f32.mrf.mxu0 }
  0xf2   : > { %v546_v33 = vmax.f32 %v486_v29, 0.0  ;;  %v507_v35 = vadd.f32 %v1205_v31, %v1598_v23  ;;  %v562_v39 = vpack.c.bf16 %v548_v30, %v547_v34 }
  0xf3   : > { %v498_v36 = vpop.f32.mrf.mxu0 }
  0xf4   : > { %v499_v37 = vadd.f32 %v1598_v23, %v498_v36  ;;  %v561_v38 = vpack.c.bf16 %v546_v33, %v545_v32  ;;  %v551_v42 = vmax.f32 %v507_v35, 0.0 }
  0xf5   : > { %v1206_v40 = vpop.f32.mrf.mxu0 }
  0xf6   : > { %v510_v41 = vadd.f32 %v1206_v40, %v1598_v23  ;;  %1223 = vmatprep.mubr.msk.bf16.mxu1 %vm423_vm0, %v561_v38  ;;  %v549_v44 = vmax.f32 %v499_v37, 0.0 }
  0xf7   : > { %v501_v43 = vpop.f32.mrf.mxu0  ;;  %1224 = vmatmul.mubr.msk.bf16.vlgmr.msra.gmra.mxu1 %vm423_vm0, %v562_v39 }
  0xf8   : > { %v552_v45 = vmax.f32 %v510_v41, 0.0  ;;  %v502_v46 = vadd.f32 %v1598_v23, %v501_v43  ;;  %1279 = vmatpush3.bf16.msra.mxu1 %v1360_v16  ;;  %v1367_v16 = vld [vmem:[%s1725_s5] sm:$0xff]  }
  0xf9   : > { %v1209_v47 = vpop.f32.mrf.mxu0  ;;  %1272 = vmatprep.subr.bf16.mxu1 %v1361_v17  ;;  %1253 = vmatprep.subr.bf16.mxu0 %v1367_v16 }
  0xfa   : > { %v550_v48 = vmax.f32 %v502_v46, 0.0  ;;  %v564_v49 = vpack.c.bf16 %v552_v45, %v551_v42  ;;  %v523_v50 = vadd.f32 %v1209_v47, %v1598_v23  ;;  %1254 = vmatpush3.bf16.msra.mxu0 %v1367_v16 }
  0xfb   : > { %v514_v51 = vpop.f32.mrf.mxu0 }
  0xfc   : > { %v563_v52 = vpack.c.bf16 %v550_v48, %v549_v44  ;;  %v515_v53 = vadd.f32 %v1598_v23, %v514_v51  ;;  %1280 = vmatpush3.bf16.msra.mxu1 %v1361_v17  ;;  %v555_v56 = vmax.f32 %v523_v50, 0.0 }
  0xfd   : > { %v1210_v54 = vpop.f32.mrf.mxu0  ;;  %1273 = vmatprep.subr.bf16.mxu1 %v1362_v18 }
  0xfe   : > { %v526_v55 = vadd.f32 %v1210_v54, %v1598_v23  ;;  %1227 = vmatprep.mubr.msk.bf16.mxu1 %vm423_vm0, %v563_v52  ;;  %v553_v58 = vmax.f32 %v515_v53, 0.0 }
  0xff   : > { %v517_v57 = vpop.f32.mrf.mxu0  ;;  %1228 = vmatmul.mubr.msk.bf16.gmra.mxu1 %vm423_vm0, %v564_v49 }
 0x100   : > { %v556_v59 = vmax.f32 %v526_v55, 0.0  ;;  %v518_v60 = vadd.f32 %v1598_v23, %v517_v57  ;;  %1281 = vmatpush3.bf16.msra.mxu1 %v1362_v18 }
 0x101   : > { %v1213_v61 = vpop.f32.mrf.mxu0  ;;  %1274 = vmatprep.subr.bf16.mxu1 %v1584_v19 }
 0x102   : > { %v554_v62 = vmax.f32 %v518_v60, 0.0  ;;  %v566_v63 = vpack.c.bf16 %v556_v59, %v555_v56  ;;  %v539_v0 = vadd.f32 %v1213_v61, %v1598_v23 }
 0x103   : > { %v530_v1 = vpop.f32.mrf.mxu0 }
 0x104   : > { %v565_v2 = vpack.c.bf16 %v554_v62, %v553_v58  ;;  %v531_v3 = vadd.f32 %v1598_v23, %v530_v1  ;;  %1282 = vmatpush3.bf16.msra.mxu1 %v1584_v19  ;;  %v559_v6 = vmax.f32 %v539_v0, 0.0  ;;  %v1121_v19 = vld [vmem:[%s1724_s4] ss:$0 sm:$0xff] }
 0x105   : > { %v1214_v4 = vpop.f32.mrf.mxu0  ;;  %1275 = vmatprep.subr.bf16.mxu1 %v1590_v20 }
 0x106   : > { %1231 = vmatprep.mubr.msk.bf16.mxu1 %vm423_vm0, %v565_v2  ;;  %v542_v5 = vadd.f32 %v1214_v4, %v1598_v23  ;;  %v557_v8 = vmax.f32 %v531_v3, 0.0 }
 0x107   : > { %1232 = vmatmul.mubr.msk.bf16.gmra.mxu1 %vm423_vm0, %v566_v63  ;;  %v533_v7 = vpop.f32.mrf.mxu0 }
 0x108   : > { %v560_v9 = vmax.f32 %v542_v5, 0.0  ;;  %v534_v10 = vadd.f32 %v1598_v23, %v533_v7  ;;  %1283 = vmatpush3.bf16.msra.mxu1 %v1590_v20 }
 0x109   : > { %1276 = vmatprep.subr.bf16.mxu1 %v1365_v14 }
 0x10a   : > { %v558_v11 = vmax.f32 %v534_v10, 0.0  ;;  %v568_v12 = vpack.c.bf16 %v560_v9, %v559_v6 }
 0x10c   : > { %v567_v13 = vpack.c.bf16 %v558_v11, %v557_v8  ;;  %1284 = vmatpush3.bf16.msra.mxu1 %v1365_v14  ;;  %v1134_v11 = vld [vmem:[%s1726_s6] ss:$0 sm:$0xff] }
 0x10d   : > { %1277 = vmatprep.subr.bf16.mxu1 %v1366_v15 }
 0x10e   : > { %1235 = vmatprep.mubr.msk.bf16.mxu1 %vm423_vm0, %v567_v13 }
 0x10f   : > { %1236 = vmatmul.mubr.msk.bf16.gmra.mxu1 %vm423_vm0, %v568_v12 }
 0x110   : > { %1285 = vmatpush3.bf16.msra.mxu1 %v1366_v15 }
 0x111   : > { %1278 = vmatprep.subr.bf16.mxu1 %v1367_v16 }
 0x114   : > { %1286 = vmatpush3.bf16.msra.mxu1 %v1367_v16 }
 0x1b7   : > { %v1225_v17 = vpop.f32.mrf.mxu1 }
 0x1b8   : > { %v675_v23 = vadd.f32 %v1225_v17, %v1121_v19 }
 0x1b9   : > { %v666_v18 = vpop.f32.mrf.mxu1 }
 0x1ba   : > { %v667_v21 = vadd.f32 %v1121_v19, %v666_v18  ;;  %v731_v30 = vmax.f32 %v675_v23, 0.0 }
 0x1bb   : > { %v1226_v20 = vpop.f32.mrf.mxu1 }
 0x1bc   : > { %v678_v22 = vadd.f32 %v1226_v20, %v1121_v19  ;;  %v729_v28 = vmax.f32 %v667_v21, 0.0 }
 0x1bd   : > { %v669_v24 = vpop.f32.mrf.mxu1 }
 0x1be   : > { %v670_v25 = vadd.f32 %v1121_v19, %v669_v24  ;;  %v732_v26 = vmax.f32 %v678_v22, 0.0 }
 0x1bf   : > { %v1229_v27 = vpop.f32.mrf.mxu1 }
 0x1c0   : > { %v730_v29 = vmax.f32 %v670_v25, 0.0  ;;  %v746_v33 = vpack.c.bf16 %v732_v26, %v731_v30  ;;  %v691_v37 = vadd.f32 %v1229_v27, %v1121_v19 }
 0x1c1   : > { %v682_v31 = vpop.f32.mrf.mxu1 }
 0x1c2   : > { %v745_v32 = vpack.c.bf16 %v730_v29, %v729_v28  ;;  %v683_v35 = vadd.f32 %v1121_v19, %v682_v31  ;;  %v735_v44 = vmax.f32 %v691_v37, 0.0 }
 0x1c3   : > { %v1230_v34 = vpop.f32.mrf.mxu1 }
 0x1c4   : > { %v694_v36 = vadd.f32 %v1230_v34, %v1121_v19  ;;  %1255 = vmatprep.mubr.bf16.mxu0 %v745_v32  ;;  %v733_v42 = vmax.f32 %v683_v35, 0.0 }
 0x1c5   : > { %v685_v38 = vpop.f32.mrf.mxu1  ;;  %1256 = vmatmul.mubr.bf16.vlgmr.msra.gmra.mxu0 %v746_v33 }
 0x1c6   : > { %v686_v39 = vadd.f32 %v1121_v19, %v685_v38  ;;  %v736_v40 = vmax.f32 %v694_v36, 0.0 }
 0x1c7   : > { %v1233_v41 = vpop.f32.mrf.mxu1 }
 0x1c8   : > { %v734_v43 = vmax.f32 %v686_v39, 0.0  ;;  %v707_v45 = vadd.f32 %v1233_v41, %v1121_v19  ;;  %v748_v49 = vpack.c.bf16 %v736_v40, %v735_v44 }
 0x1c9   : > { %v698_v46 = vpop.f32.mrf.mxu1 }
 0x1ca   : > { %v747_v47 = vpack.c.bf16 %v734_v43, %v733_v42  ;;  %v699_v48 = vadd.f32 %v1121_v19, %v698_v46  ;;  %v739_v52 = vmax.f32 %v707_v45, 0.0 }
 0x1cb   : > { %v1234_v50 = vpop.f32.mrf.mxu1 }
 0x1cc   : > { %v710_v51 = vadd.f32 %v1234_v50, %v1121_v19  ;;  %1259 = vmatprep.mubr.bf16.mxu0 %v747_v47  ;;  %v737_v54 = vmax.f32 %v699_v48, 0.0 }
 0x1cd   : > { %v701_v53 = vpop.f32.mrf.mxu1  ;;  %1260 = vmatmul.mubr.bf16.gmra.mxu0 %v748_v49 }
 0x1ce   : > { %v740_v55 = vmax.f32 %v710_v51, 0.0  ;;  %v702_v56 = vadd.f32 %v1121_v19, %v701_v53 }
 0x1cf   : > { %v1237_v57 = vpop.f32.mrf.mxu1 }
 0x1d0   : > { %v738_v58 = vmax.f32 %v702_v56, 0.0  ;;  %v750_v59 = vpack.c.bf16 %v740_v55, %v739_v52  ;;  %v723_v60 = vadd.f32 %v1237_v57, %v1121_v19 }
 0x1d1   : > { %v714_v61 = vpop.f32.mrf.mxu1 }
 0x1d2   : > { %v749_v62 = vpack.c.bf16 %v738_v58, %v737_v54  ;;  %v715_v63 = vadd.f32 %v1121_v19, %v714_v61  ;;  %v743_v2 = vmax.f32 %v723_v60, 0.0 }
 0x1d3   : > { %v1238_v0 = vpop.f32.mrf.mxu1 }
 0x1d4   : > { %1263 = vmatprep.mubr.bf16.mxu1 %v749_v62  ;;  %v726_v1 = vadd.f32 %v1238_v0, %v1121_v19  ;;  %v741_v4 = vmax.f32 %v715_v63, 0.0 }
 0x1d5   : > { %1264 = vmatmul.mubr.bf16.vlgmr.msra.gmra.mxu1 %v750_v59  ;;  %v717_v3 = vpop.f32.mrf.mxu1 }
 0x1d6   : > { %v744_v5 = vmax.f32 %v726_v1, 0.0  ;;  %v718_v6 = vadd.f32 %v1121_v19, %v717_v3 }
 0x1d8   : > { %v742_v7 = vmax.f32 %v718_v6, 0.0  ;;  %v752_v8 = vpack.c.bf16 %v744_v5, %v743_v2 }
 0x1da   : > { %v751_v9 = vpack.c.bf16 %v742_v7, %v741_v4 }
 0x1dc   : > { %1267 = vmatprep.mubr.bf16.mxu1 %v751_v9 }
 0x1dd   : > { %1268 = vmatmul.mubr.bf16.gmra.mxu1 %v752_v8 }
 0x285   : > { %v1257_v10 = vpop.f32.mrf.mxu0 }
 0x286   : > { %v867_v20 = vadd.f32 %v1257_v10, %v1134_v11 }
 0x287   : > { %v858_v12 = vpop.f32.mrf.mxu0 }
 0x288   : > { %v859_v13 = vadd.f32 %v1134_v11, %v858_v12  ;;  %v923_v22 = vmax.f32 %v867_v20, 0.0 }
 0x289   : > { %v1258_v14 = vpop.f32.mrf.mxu0 }
 0x28a   : > { %v921_v15 = vmax.f32 %v859_v13, 0.0  ;;  %v870_v23 = vadd.f32 %v1258_v14, %v1134_v11 }
 0x28b   : > { %v861_v16 = vpop.f32.mrf.mxu0 }
 0x28c   : > { %v862_v17 = vadd.f32 %v1134_v11, %v861_v16  ;;  %937 = vxpose.xlu0.b32.start [1/16] %v921_v15, 128  ;;  %v924_v25 = vmax.f32 %v870_v23, 0.0 }
 0x28d   : > { %v1261_v18 = vpop.f32.mrf.mxu0 }
 0x28e   : > { %v922_v19 = vmax.f32 %v862_v17, 0.0  ;;  %v883_v31 = vadd.f32 %v1261_v18, %v1134_v11 }
 0x28f   : > { %v874_v21 = vpop.f32.mrf.mxu0 }
 0x290   : > { %938 = vxpose.xlu0.b32.cont [2/16] %v922_v19, 128  ;;  %v875_v26 = vadd.f32 %v1134_v11, %v874_v21  ;;  %v927_v34 = vmax.f32 %v883_v31, 0.0 }
 0x291   : > { %v1262_v24 = vpop.f32.mrf.mxu0 }
 0x292   : > { %v925_v28 = vmax.f32 %v875_v26, 0.0  ;;  %v886_v35 = vadd.f32 %v1262_v24, %v1134_v11 }
 0x293   : > { %v877_v27 = vpop.f32.mrf.mxu0 }
 0x294   : > { %939 = vxpose.xlu0.b32.cont [3/16] %v923_v22, 128  ;;  %v878_v29 = vadd.f32 %v1134_v11, %v877_v27  ;;  %v928_v37 = vmax.f32 %v886_v35, 0.0 }
 0x295   : > { %v1265_v30 = vpop.f32.mrf.mxu1 }
 0x296   : > { %v926_v32 = vmax.f32 %v878_v29, 0.0  ;;  %v899_v43 = vadd.f32 %v1265_v30, %v1134_v11 }
 0x297   : > { %v890_v33 = vpop.f32.mrf.mxu1 }
 0x298   : > { %940 = vxpose.xlu0.b32.cont [4/16] %v924_v25, 128  ;;  %v891_v38 = vadd.f32 %v1134_v11, %v890_v33  ;;  %v931_v46 = vmax.f32 %v899_v43, 0.0 }
 0x299   : > { %v1266_v36 = vpop.f32.mrf.mxu1 }
 0x29a   : > { %v929_v40 = vmax.f32 %v891_v38, 0.0  ;;  %v902_v47 = vadd.f32 %v1266_v36, %v1134_v11 }
 0x29b   : > { %v893_v39 = vpop.f32.mrf.mxu1 }
 0x29c   : > { %941 = vxpose.xlu0.b32.cont [5/16] %v925_v28, 128  ;;  %v894_v41 = vadd.f32 %v1134_v11, %v893_v39  ;;  %v932_v49 = vmax.f32 %v902_v47, 0.0 }
 0x29d   : > { %v1269_v42 = vpop.f32.mrf.mxu1 }
 0x29e   : > { %v930_v44 = vmax.f32 %v894_v41, 0.0  ;;  %v915_v54 = vadd.f32 %v1269_v42, %v1134_v11 }
 0x29f   : > { %v906_v45 = vpop.f32.mrf.mxu1 }
 0x2a0   : > { %942 = vxpose.xlu0.b32.cont [6/16] %v926_v32, 128  ;;  %v907_v50 = vadd.f32 %v1134_v11, %v906_v45  ;;  %v935_v56 = vmax.f32 %v915_v54, 0.0 }
 0x2a1   : > { %v1270_v48 = vpop.f32.mrf.mxu1 }
 0x2a2   : > { %v933_v52 = vmax.f32 %v907_v50, 0.0  ;;  %v918_v57 = vadd.f32 %v1270_v48, %v1134_v11 }
 0x2a3   : > { %v909_v51 = vpop.f32.mrf.mxu1 }
 0x2a4   : > { %943 = vxpose.xlu0.b32.cont [7/16] %v927_v34, 128  ;;  %v910_v53 = vadd.f32 %v1134_v11, %v909_v51  ;;  %v936_v58 = vmax.f32 %v918_v57, 0.0 }
 0x2a6   : > { %v934_v55 = vmax.f32 %v910_v53, 0.0 }
 0x2a8   : > { %944 = vxpose.xlu0.b32.cont [8/16] %v928_v37, 128 }
 0x2ac   : > { %945 = vxpose.xlu0.b32.cont [9/16] %v929_v40, 128 }
 0x2b0   : > { %946 = vxpose.xlu0.b32.cont [10/16] %v930_v44, 128 }
 0x2b4   : > { %947 = vxpose.xlu0.b32.cont [11/16] %v931_v46, 128 }
 0x2b8   : > { %948 = vxpose.xlu0.b32.cont [12/16] %v932_v49, 128 }
 0x2bc   : > { %949 = vxpose.xlu0.b32.cont [13/16] %v933_v52, 128 }
 0x2c0   : > { %950 = vxpose.xlu0.b32.cont [14/16] %v934_v55, 128 }
 0x2c4   : > { %951 = vxpose.xlu0.b32.cont [15/16] %v935_v56, 128 }
 0x2c8   : > { %952 = vxpose.xlu0.b32.end [16/16] %v936_v58, 128 }
 0x308   : > { %v953_v59 = vpop.trf.xlu0 }
 0x309   : > { %969 = vst [vmem:[%s1646_s17] sm:$0xff] %v953_v59 }
 0x30c   : > { %v954_v60 = vpop.trf.xlu0 }
 0x30d   : > { %970 = vst [vmem:[%s1646_s17 + $0x8] sm:$0xff] %v954_v60 }
 0x310   : > { %v955_v61 = vpop.trf.xlu0 }
 0x311   : > { %971 = vst [vmem:[%s1646_s17 + $0x10] sm:$0xff] %v955_v61 }
 0x314   : > { %v956_v62 = vpop.trf.xlu0 }
 0x315   : > { %972 = vst [vmem:[%s1646_s17 + $0x18] sm:$0xff] %v956_v62 }
 0x318   : > { %v957_v63 = vpop.trf.xlu0 }
 0x319   : > { %973 = vst [vmem:[%s1646_s17 + $0x20] sm:$0xff] %v957_v63 }
 0x31c   : > { %v958_v0 = vpop.trf.xlu0 }
 0x31d   : > { %974 = vst [vmem:[%s1646_s17 + $0x28] sm:$0xff] %v958_v0 }
 0x320   : > { %v959_v1 = vpop.trf.xlu0 }
 0x321   : > { %975 = vst [vmem:[%s1646_s17 + $0x30] sm:$0xff] %v959_v1 }
 0x324   : > { %v960_v2 = vpop.trf.xlu0 }
 0x325   : > { %976 = vst [vmem:[%s1646_s17 + $0x38] sm:$0xff] %v960_v2 }
 0x328   : > { %v961_v3 = vpop.trf.xlu0 }
 0x329   : > { %977 = vst [vmem:[%s1646_s17 + $0x40] sm:$0xff] %v961_v3 }
 0x32c   : > { %v962_v4 = vpop.trf.xlu0 }
 0x32d   : > { %978 = vst [vmem:[%s1646_s17 + $0x48] sm:$0xff] %v962_v4 }
 0x330   : > { %v963_v5 = vpop.trf.xlu0 }
 0x331   : > { %979 = vst [vmem:[%s1646_s17 + $0x50] sm:$0xff] %v963_v5 }
 0x334   : > { %v964_v6 = vpop.trf.xlu0 }
 0x335   : > { %980 = vst [vmem:[%s1646_s17 + $0x58] sm:$0xff] %v964_v6 }
 0x338   : > { %v965_v7 = vpop.trf.xlu0 }
 0x339   : > { %981 = vst [vmem:[%s1646_s17 + $0x60] sm:$0xff] %v965_v7 }
 0x33c   : > { %v966_v8 = vpop.trf.xlu0 }
 0x33d   : > { %982 = vst [vmem:[%s1646_s17 + $0x68] sm:$0xff] %v966_v8 }
 0x340   : > { %v967_v9 = vpop.trf.xlu0 }
 0x341   : > { %983 = vst [vmem:[%s1646_s17 + $0x70] sm:$0xff] %v967_v9 }
 0x344   : > { %v968_v10 = vpop.trf.xlu0 }
 0x345   : > { %984 = vst [vmem:[%s1646_s17 + $0x78] sm:$0xff] %v968_v10 }
 0x346   : > { %1381 = shalt.err (!%p1378_p5)
}
 0x347   : > { %s1382_s12 = scalar_lea.hbm %s1668_s22, 2048  ;;  %s1386_s17 = scalar_lea.hbm %s1727_s7, 4096 }
 0x348   : > { %p1383_p6 = scmp.ne.s32.totalorder %s1668_s22, %s1382_s12  ;;  %p1387_p10 = scmp.lt.s32.totalorder %s1668_s22, %s1727_s7 }
 0x349   : > { %p1388_p11 = scmp.lt.s32.totalorder %s1386_s17, %s1382_s12 }
 0x34a   : > { %p1384_p7 = pnand %p1383_p6, %p1529_p4 }
 0x34b   : > { %p1389_p12 = por %p1388_p11, %p1387_p10 }
 0x34c   : > { %p1385_p9 = pneg %p1384_p7 }
 0x34e   : > { %p1390_p13 = pnand %p1389_p12, %p1385_p9 }
 0x350   : > { %1393 = shalt.err (!%p1390_p13)
}
 0x351   : > { %s1447_s21 = smov 128   ;;  %s1448_s30 = smov 8  }
 0x352   : > { %1287 = dma.vmem_to_hbm [thread:$0]  (%p1529_p4), %s1670_s19, 2048, %s1668_s22, %s1675_s23, %s1447_s21, %s1447_s21, %s1448_s30  }
 0x353 PF: > { %p1293_p0 = scmp.ge.s32.totalorder %s1444_s29, 2  ;;  %s1015_s27 = sand.u32 1, %s1424_s24  }
 0x354   : > { %s1016_s8 = scalar_lea.sflag [#allocation3], %s1015_s27 }
 0x355   : > { %p1290_p1 = pnand %p1293_p0, %p1536_p8 }
 0x357   : > { %p1291_p2 = pneg %p1290_p1 }
 0x359   : > { %1419 = dma.done.wait (%p1291_p2), %s1016_s8, 2048  }
 0x35a   : > { %1421 = vsyncadd (%p1291_p2), %s1016_s8, 4294965248  ;;  %s20_s29 = sadd.s32 1, %s1444_s29   ;;  %s1730_s24 = smov %s1428_s25 }
 0x35b   : > { %p17_p3 = scmp.ge.s32.totalorder %s20_s29, 4   ;;  %s1731_s25 = smov %s1432_s26 }
 0x35c   : > { %s1732_s26 = smov %s1542_s14  ;;  %s1733_s27 = smov %s1440_s28 }
 0x35d   : > { %s1734_s28 = smov %s1736_s9  ;;  %19 = sbr.rel (!%p17_p3) target bundleno = 4 (0x4), region = 86 }
 0x362   :  { %1021 = vsyncpa [#allocation3], 1 }
 0x363   :  { %1023 = vsyncpa [#allocation3 + $0x1], 1 }

// kernel: base_pointnet_forward.6
= control target key start
LH: loop header
LB: loop body
LE: loop exit
PB: predicated region body
PF: predicated region fallthrough
CT: control target
= control target key end

     0   :  { %s5272_s0 = inlined_call_operand.vmem [shape: bf16[2,128,64], index: 0, kind: input, shape index: {}]   ;;  %s5273_s1 = inlined_call_operand.hbm [shape: bf16[64,64], index: 1, kind: input, shape index: {}]   ;;  %s5274_s2 = inlined_call_operand.hbm [shape: f32[1,64], index: 2, kind: input, shape index: {}]   ;;  %s5275_s3 = inlined_call_operand.hbm [shape: bf16[64,128], index: 3, kind: input, shape index: {}]   ;;  %s5276_s4 = inlined_call_operand.hbm [shape: f32[1,128], index: 4, kind: input, shape index: {}]   ;;  %s5277_s5 = inlined_call_operand.hbm [shape: bf16[128,256], index: 5, kind: input, shape index: {}]   ;;  %s5278_s6 = inlined_call_operand.hbm [shape: f32[1,256], index: 6, kind: input, shape index: {}]   ;;  %s5279_s7 = inlined_call_operand.hbm [shape: f32[256,256], index: 7, kind: input, shape index: {}]   ;;  %s5280_s8 = inlined_call_operand.hbm [shape: f32[1,256], index: 8, kind: input, shape index: {}]   ;;  %s5281_s9 = inlined_call_operand.hbm [shape: f32[256,128], index: 9, kind: input, shape index: {}]   ;;  %s5282_s10 = inlined_call_operand.hbm [shape: f32[1,128], index: 10, kind: input, shape index: {}]   ;;  %s5283_s11 = inlined_call_operand.hbm [shape: f32[128,4096], index: 11, kind: input, shape index: {}]   ;;  %s5284_s12 = inlined_call_operand.hbm [shape: f32[1,4096], index: 12, kind: input, shape index: {}]   ;;  %s5285_s13 = inlined_call_operand.vmem [shape: f32[2,1,4096], index: 13, kind: output, shape index: {}]  }
   0x1   :  { %5290 = sst [smem:[#allocation29_spill]] %s5274_s2 }
   0x2   :  { %5291 = sst [smem:[#allocation30_spill]] %s5276_s4 }
   0x3   :  { %18 = vsyncpa [#allocation4], 0 }
   0x4   :  { %19 = vsyncpa [#allocation6], 0 }
   0x5   :  { %20 = vsyncpa [#allocation9], 0 }
   0x6   :  { %21 = vsyncpa [#allocation12], 0 }
   0x7   :  { %22 = vsyncpa [#allocation15], 0 }
   0x8   :  { %23 = vsyncpa [#allocation18], 0 }
   0x9   :  { %24 = vsyncpa [#allocation21], 0  ;;  %s4850_s25 = smov 0   ;;  %s4852_s26 = smov 0  }
   0xa   :  { %s4854_s27 = smov 0  }
   0xb LB: > { %s4757_s28 = smov [#allocation5]   ;;  %s4005_s30 = sadd.s32 4294967295, %s4755_s27   ;;  %s4755_s27 = sphi %s4854_s27, %s30_s27   ;;  %s4751_s26 = sphi %s4852_s26, %s5304_s26   ;;  %s4747_s25 = sphi %s4850_s25, %s5303_s25  }
   0xc   : > { %s379_s29 = sshll.u32 %s4757_s28, 4  ;;  %p4007_p0 = scmp.ge.s32.totalorder %s4755_s27, 1  ;;  %s380_s29 = int_to_ptr.vmem [resolvable:$true] %s379_s29 }
   0xd   : > { %p353_p1 = scmp.lt.s32.totalorder %s4755_s27, 3  ;;  %p4868_p2 = scmp.eq.s32.totalorder %s4005_s30, 0 }
   0xe   : > { %s4758_s16 = smov [#allocation8]   ;;  %s4759_s18 = smov [#allocation11]  }
   0xf   : > { %s5292_s14 = scalar_select %p4868_p2, 1, 0 }
  0x10   : > { %p4872_p3 = pnand %p4007_p0, %p353_p1  ;;  %s403_s17 = sshll.u32 %s4758_s16, 4  ;;  %s4878_s17 = int_to_ptr.vmem [resolvable:$true] %s403_s17 }
  0x11   : > { %s427_s19 = sshll.u32 %s4759_s18, 4  ;;  %s4760_s21 = smov [#allocation14]   ;;  %s4886_s19 = int_to_ptr.vmem [resolvable:$true] %s427_s19 }
  0x12   : > { %s5293_s15 = scalar_select %p4872_p3, 1, 0 }
  0x13   : > { %p4245_p4 = pneg %p4872_p3  ;;  %s451_s22 = sshll.u32 %s4760_s21, 4  ;;  %s4888_s22 = int_to_ptr.vmem [resolvable:$true] %s451_s22 }
  0x14   : > { %s4404_s24 = scalar_lea.vmem %s380_s29, 16  ;;  %s4411_s28 = scalar_lea.vmem %s380_s29, 32 }
  0x15   : > { %p4882_p5 = pnand %p4868_p2, %p4245_p4  ;;  %p4405_p7 = scmp.ne.s32.totalorder %s380_s29, %s4404_s24 }
  0x16   : > { %p4412_p10 = scmp.lt.s32.totalorder %s380_s29, %s380_s29  ;;  %p4413_p11 = scmp.lt.s32.totalorder %s4411_s28, %s4404_s24 }
  0x17   : > { %p4892_p6 = pneg %p4882_p5 }
  0x18   : > { %p4414_p12 = por %p4413_p11, %p4412_p10 }
  0x19   : > { %p4407_p8 = pnand %p4405_p7, %p4892_p6 }
  0x1b   : > { %p4408_p9 = pneg %p4407_p8 }
  0x1d   : > { %p4415_p13 = pnand %p4414_p12, %p4408_p9 }
  0x1f   : > { %4418 = shalt.err (!%p4415_p13)
}
  0x20   : > { %s5296_s2 = sld [smem:[#allocation29_spill]]  ;;  %s4430_s18 = scalar_lea.vmem %s4878_s17, 16 }
  0x21   : > { %p4431_p0 = scmp.ne.s32.totalorder %s4878_s17, %s4430_s18  ;;  %s4437_s21 = scalar_lea.vmem %s4878_s17, 32 }
  0x22   : > { %p4438_p7 = scmp.lt.s32.totalorder %s4878_s17, %s4878_s17  ;;  %p4439_p8 = scmp.lt.s32.totalorder %s4437_s21, %s4430_s18 }
  0x23   : > { %p4433_p1 = pnand %p4431_p0, %p4892_p6 }
  0x24   : > { %p4440_p9 = por %p4439_p8, %p4438_p7 }
  0x25   : > { %p4434_p4 = pneg %p4433_p1 }
  0x26   : > { %4251 = dma.hbm_to_vmem [thread:$0]  (!%p4882_p5), %s5296_s2, 16, %s380_s29, [#allocation6]  }
  0x27   : > { %p4441_p10 = pnand %p4440_p9, %p4434_p4 }
  0x29   : > { %4444 = shalt.err (!%p4441_p10)
}
  0x2a   : > { %s5297_s4 = sld [smem:[#allocation30_spill]]  ;;  %s4456_s29 = scalar_lea.vmem %s4886_s19, 32 }
  0x2b   : > { %p4457_p11 = scmp.ne.s32.totalorder %s4886_s19, %s4456_s29  ;;  %p4464_p0 = scmp.lt.s32.totalorder %s4886_s19, %s4886_s19 }
  0x2c   : > { %p4465_p1 = scmp.lt.s32.totalorder %s4456_s29, %s4456_s29 }
  0x2d   : > { %p4459_p12 = pnand %p4457_p11, %p4892_p6 }
  0x2e   : > { %p4466_p4 = por %p4465_p1, %p4464_p0 }
  0x2f   : > { %p4460_p13 = pneg %p4459_p12 }
  0x30   : > { %4257 = dma.hbm_to_vmem [thread:$0]  (!%p4882_p5), %s5297_s4, 16, %s4878_s17, [#allocation9]  }
  0x31   : > { %p4467_p7 = pnand %p4466_p4, %p4460_p13 }
  0x33   : > { %4470 = shalt.err (!%p4467_p7)
}
  0x34   : > { %4263 = dma.hbm_to_vmem [thread:$0]  (!%p4882_p5), %s5278_s6, 32, %s4886_s19, [#allocation12]  }
  0x35   : > { %s4482_s17 = scalar_lea.vmem %s4888_s22, 32  ;;  %p4490_p11 = scmp.lt.s32.totalorder %s4888_s22, %s4888_s22 }
  0x36   : > { %p4483_p8 = scmp.ne.s32.totalorder %s4888_s22, %s4482_s17  ;;  %p4491_p12 = scmp.lt.s32.totalorder %s4482_s17, %s4482_s17 }
  0x38   : > { %p4485_p9 = pnand %p4483_p8, %p4892_p6  ;;  %p4492_p13 = por %p4491_p12, %p4490_p11 }
  0x3a   : > { %p4486_p10 = pneg %p4485_p9 }
  0x3c   : > { %p4493_p0 = pnand %p4492_p13, %p4486_p10 }
  0x3e   : > { %4496 = shalt.err (!%p4493_p0)
}
  0x3f   : > { %4269 = dma.hbm_to_vmem [thread:$0]  (!%p4882_p5), %s5280_s8, 32, %s4888_s22, [#allocation15]  }
  0x40   : > { %s4761_s19 = smov [#allocation17]  }
  0x41   : > { %s475_s24 = sshll.u32 %s4761_s19, 4  ;;  %s476_s24 = int_to_ptr.vmem [resolvable:$true] %s475_s24 }
  0x42   : > { %s4508_s28 = scalar_lea.vmem %s476_s24, 16  ;;  %s4515_s29 = scalar_lea.vmem %s476_s24, 32 }
  0x43   : > { %p4509_p1 = scmp.ne.s32.totalorder %s476_s24, %s4508_s28  ;;  %p4516_p8 = scmp.lt.s32.totalorder %s476_s24, %s476_s24 }
  0x44   : > { %p4517_p9 = scmp.lt.s32.totalorder %s4515_s29, %s4508_s28 }
  0x45   : > { %p4511_p4 = pnand %p4509_p1, %p4892_p6 }
  0x46   : > { %p4518_p10 = por %p4517_p9, %p4516_p8 }
  0x47   : > { %p4512_p7 = pneg %p4511_p4 }
  0x49   : > { %p4519_p11 = pnand %p4518_p10, %p4512_p7 }
  0x4b   : > { %4522 = shalt.err (!%p4519_p11)
}
  0x4c   : > { %4275 = dma.hbm_to_vmem [thread:$0]  (!%p4882_p5), %s5282_s10, 16, %s476_s24, [#allocation18]  }
  0x4d   : > { %s42_s22 = sadd.s32 1, %s4751_s26  ;;  %s4762_s17 = smov [#allocation3]  }
  0x4e   : > { %p44_p12 = scmp.ge.s32.totalorder %s42_s22, 2  ;;  %s365_s18 = sshll.u32 %s4762_s17, 4  ;;  %s366_s18 = int_to_ptr.vmem [resolvable:$true] %s365_s18 }
  0x4f   : > { %s4534_s21 = scalar_lea.vmem %s366_s18, 512  ;;  %p4542_p4 = scmp.lt.s32.totalorder %s366_s18, %s366_s18 }
  0x50   : > { %s5306_s22 = smov (%p44_p12, %s42_s22), 0  ;;  %p4535_p13 = scmp.ne.s32.totalorder %s366_s18, %s4534_s21 }
  0x51   : > { %p4543_p7 = scmp.lt.s32.totalorder %s4534_s21, %s4534_s21 }
  0x52   : > { %p4537_p0 = pnand %p4535_p13, %p4892_p6 }
  0x53   : > { %p4544_p8 = por %p4543_p7, %p4542_p4 }
  0x54   : > { %p4538_p1 = pneg %p4537_p0 }
  0x56   : > { %p4545_p9 = pnand %p4544_p8, %p4538_p1 }
  0x58   : > { %4548 = shalt.err (!%p4545_p9)
}
  0x59   : > { %s4763_s19 = smov 64   ;;  %s4764_s24 = smov 4  }
  0x5a   : > { %4248 = dma.hbm_to_vmem [thread:$0]  (!%p4882_p5), %s5273_s1, 512, %s366_s18, [#allocation4], %s4763_s19, %s4763_s19, %s4764_s24  }
  0x5b   : > { %s4765_s30 = smov [#allocation7]   ;;  %s4766_s17 = smov [#allocation10]  }
  0x5c   : > { %s389_s16 = sshll.u32 %s4765_s30, 4  ;;  %s413_s2 = sshll.u32 %s4766_s17, 4  ;;  %s390_s16 = int_to_ptr.vmem [resolvable:$true] %s389_s16  ;;  %s414_s2 = int_to_ptr.vmem [resolvable:$true] %s413_s2 }
  0x5d   : > { %s4560_s4 = scalar_lea.vmem %s390_s16, 512  ;;  %p4568_p13 = scmp.lt.s32.totalorder %s390_s16, %s390_s16 }
  0x5e   : > { %p4561_p10 = scmp.ne.s32.totalorder %s390_s16, %s4560_s4  ;;  %p4569_p0 = scmp.lt.s32.totalorder %s4560_s4, %s4560_s4 }
  0x60   : > { %p4563_p11 = pnand %p4561_p10, %p4892_p6  ;;  %p4570_p1 = por %p4569_p0, %p4568_p13 }
  0x62   : > { %p4564_p12 = pneg %p4563_p11 }
  0x64   : > { %p4571_p4 = pnand %p4570_p1, %p4564_p12 }
  0x66   : > { %4574 = shalt.err (!%p4571_p4)
}
  0x67   : > { %4254 = dma.hbm_to_vmem [thread:$0]  (!%p4882_p5), %s5275_s3, 512, %s390_s16, [#allocation6], %s4763_s19, %s4763_s19, %s4764_s24  }
  0x68   : > { %s4586_s18 = scalar_lea.vmem %s414_s2, 2048  ;;  %p4594_p10 = scmp.lt.s32.totalorder %s414_s2, %s414_s2 }
  0x69   : > { %p4587_p7 = scmp.ne.s32.totalorder %s414_s2, %s4586_s18  ;;  %p4595_p11 = scmp.lt.s32.totalorder %s4586_s18, %s4586_s18 }
  0x6b   : > { %p4589_p8 = pnand %p4587_p7, %p4892_p6  ;;  %p4596_p2 = por %p4595_p11, %p4594_p10 }
  0x6d   : > { %p4590_p9 = pneg %p4589_p8 }
  0x6f   : > { %p4597_p3 = pnand %p4596_p2, %p4590_p9 }
  0x71   : > { %4600 = shalt.err (!%p4597_p3)
}
  0x72   : > { %s5289_s4 = smov 128   ;;  %s4768_s29 = smov 8  }
  0x73   : > { %4260 = dma.hbm_to_vmem [thread:$0]  (!%p4882_p5), %s5277_s5, 2048, %s414_s2, [#allocation9], %s5289_s4, %s5289_s4, %s4768_s29  }
  0x74   : > { %s4769_s30 = smov [#allocation13]  }
  0x75   : > { %s437_s16 = sshll.u32 %s4769_s30, 4  ;;  %s438_s16 = int_to_ptr.vmem [resolvable:$true] %s437_s16 }
  0x76   : > { %s4612_s17 = scalar_lea.vmem %s438_s16, 8192  ;;  %p4620_p13 = scmp.lt.s32.totalorder %s438_s16, %s438_s16 }
  0x77   : > { %p4613_p12 = scmp.ne.s32.totalorder %s438_s16, %s4612_s17  ;;  %p4621_p0 = scmp.lt.s32.totalorder %s4612_s17, %s4612_s17 }
  0x79   : > { %p4615_p2 = pnand %p4613_p12, %p4892_p6  ;;  %p4622_p1 = por %p4621_p0, %p4620_p13 }
  0x7b   : > { %p4616_p3 = pneg %p4615_p2 }
  0x7d   : > { %p4623_p4 = pnand %p4622_p1, %p4616_p3 }
  0x7f   : > { %4626 = shalt.err (!%p4623_p4)
}
  0x80   : > { %s4770_s21 = smov 256   ;;  %s4771_s28 = smov 16  }
  0x81   : > { %4266 = dma.hbm_to_vmem [thread:$0]  (!%p4882_p5), %s5279_s7, 8192, %s438_s16, [#allocation12], %s4770_s21, %s4770_s21, %s4771_s28  }
  0x82   : > { %s4772_s19 = smov [#allocation16]   ;;  %s4773_s30 = smov [#allocation19]  }
  0x83   : > { %s461_s24 = sshll.u32 %s4772_s19, 4  ;;  %s485_s4 = sshll.u32 %s4773_s30, 4  ;;  %s462_s24 = int_to_ptr.vmem [resolvable:$true] %s461_s24  ;;  %s486_s4 = int_to_ptr.vmem [resolvable:$true] %s485_s4 }
  0x84   : > { %s4638_s17 = scalar_lea.vmem %s462_s24, 4096  ;;  %p4646_p10 = scmp.lt.s32.totalorder %s462_s24, %s462_s24 }
  0x85   : > { %p4639_p7 = scmp.ne.s32.totalorder %s462_s24, %s4638_s17  ;;  %p4647_p11 = scmp.lt.s32.totalorder %s4638_s17, %s4638_s17 }
  0x87   : > { %p4641_p8 = pnand %p4639_p7, %p4892_p6  ;;  %p4648_p12 = por %p4647_p11, %p4646_p10 }
  0x89   : > { %p4642_p9 = pneg %p4641_p8 }
  0x8b   : > { %p4649_p2 = pnand %p4648_p12, %p4642_p9 }
  0x8d   : > { %4652 = shalt.err (!%p4649_p2)
}
  0x8e   : > { %s5298_s16 = smov 128   ;;  %s4664_s18 = scalar_lea.vmem %s486_s4, 65536 }
  0x8f   : > { %4272 = dma.hbm_to_vmem [thread:$0]  (!%p4882_p5), %s5281_s9, 4096, %s462_s24, [#allocation15], %s5298_s16, %s5298_s16, %s4768_s29  }
  0x90   : > { %p4665_p3 = scmp.ne.s32.totalorder %s486_s4, %s4664_s18  ;;  %p4672_p1 = scmp.lt.s32.totalorder %s486_s4, %s486_s4 }
  0x91   : > { %p4673_p4 = scmp.lt.s32.totalorder %s4664_s18, %s4664_s18 }
  0x92   : > { %p4667_p13 = pnand %p4665_p3, %p4892_p6 }
  0x93   : > { %p4674_p7 = por %p4673_p4, %p4672_p1 }
  0x94   : > { %p4668_p0 = pneg %p4667_p13 }
  0x96   : > { %p4675_p8 = pnand %p4674_p7, %p4668_p0 }
  0x98   : > { %4678 = shalt.err (!%p4675_p8)
}
  0x99   : > { %s4774_s19 = smov 4096   ;;  %s4775_s29 = smov [#allocation20]  }
  0x9a   : > { %4278 = dma.hbm_to_vmem [thread:$0]  (!%p4882_p5), %s5283_s11, 65536, %s486_s4, [#allocation18], %s4774_s19, %s4774_s19, %s4770_s21  }
  0x9b   : > { %s499_s24 = sshll.u32 %s4775_s29, 4  ;;  %s500_s24 = int_to_ptr.vmem [resolvable:$true] %s499_s24 }
  0x9c   : > { %s4690_s16 = scalar_lea.vmem %s500_s24, 512  ;;  %p4698_p12 = scmp.lt.s32.totalorder %s500_s24, %s500_s24 }
  0x9d   : > { %p4691_p9 = scmp.ne.s32.totalorder %s500_s24, %s4690_s16  ;;  %p4699_p2 = scmp.lt.s32.totalorder %s4690_s16, %s4690_s16 }
  0x9f   : > { %p4693_p10 = pnand %p4691_p9, %p4892_p6  ;;  %p4700_p3 = por %p4699_p2, %p4698_p12 }
  0xa1   : > { %p4694_p11 = pneg %p4693_p10 }
  0xa3   : > { %p4701_p13 = pnand %p4700_p3, %p4694_p11 }
  0xa5   : > { %4704 = shalt.err (!%p4701_p13)
}
  0xa6   : > { %4281 = dma.hbm_to_vmem [thread:$0]  (!%p4882_p5), %s5284_s12, 512, %s500_s24, [#allocation21]  }
  0xa7   : > { %p5299_p0 = scmp.ne.s32.totalorder %s5293_s15, 0 }
  0xa8   : > { %p5300_p1 = scmp.ne.s32.totalorder (!%p5299_p0), %s5292_s14, 0 }
  0xa9   : > { %525 = sbr.rel (%p5299_p0) target bundleno = 1755 (0x6db), region = 72 }
  0xae   : > { %4718 = dma.done.wait (%p5300_p1), [#allocation4], 512  }
  0xaf   : > { %4720 = vsyncadd (%p5300_p1), [#allocation4], 4294966784 }
  0xb0   : > { %4722 = dma.done.wait (%p5300_p1), [#allocation6], 528  }
  0xb1   : > { %4724 = vsyncadd (%p5300_p1), [#allocation6], 4294966768 }
  0xb2   : > { %4726 = dma.done.wait (%p5300_p1), [#allocation9], 2064  }
  0xb3   : > { %4728 = vsyncadd (%p5300_p1), [#allocation9], 4294965232 }
  0xb4   : > { %4730 = dma.done.wait (%p5300_p1), [#allocation12], 8224  }
  0xb5   : > { %4732 = vsyncadd (%p5300_p1), [#allocation12], 4294959072 }
  0xb6   : > { %4734 = dma.done.wait (%p5300_p1), [#allocation15], 4128  }
  0xb7   : > { %4736 = vsyncadd (%p5300_p1), [#allocation15], 4294963168 }
  0xb8   : > { %4738 = dma.done.wait (%p5300_p1), [#allocation18], 65552  }
  0xb9   : > { %4740 = vsyncadd (%p5300_p1), [#allocation18], 4294901744 }
  0xba   : > { %4742 = dma.done.wait (%p5300_p1), [#allocation21], 512  }
  0xbb   : > { %4744 = vsyncadd (%p5300_p1), [#allocation21], 4294966784  ;;  %p617_p5 = scmp.lt.s32.totalorder %s4747_s25, 1  ;;  %v4353_v0 = vld [vmem:[#allocation3 + $0x18] sm:$0xff]   ;;  %v4354_v1 = vld [vmem:[#allocation3 + $0x10] sm:$0xff]   ;;  %vm735_vm0 = vcmask 523264  }
  0xbc   : > { %4149 = vmatprep.subr.bf16.mxu0 %v4353_v0  ;;  %v4355_v2 = vld [vmem:[#allocation3 + $0x8] sm:$0xff]   ;;  %v4356_v4 = vld [vmem:[#allocation3] sm:$0xff]   ;;  %v4366_v13 = vld [vmem:[#allocation7 + $0x10] sm:$0xff]  }
  0xbd   : > { %s5308_s25 = smov (!%p617_p5, %s4747_s25), 1  ;;  %4150 = vmatpush3.bf16.msra.mxu0 %v4353_v0  ;;  %v4365_v6 = vld [vmem:[#allocation7 + $0x18] sm:$0xff]   ;;  %v4367_v14 = vld [vmem:[#allocation7 + $0x8] sm:$0xff]   ;;  %v4368_v15 = vld [vmem:[#allocation7] sm:$0xff]  }
  0xbe   : > { %s4089_s15 = sshll.u32 %s5308_s25, 6  ;;  %4151 = vmatprep.subr.bf16.mxu0 %v4354_v1  ;;  %4173 = vmatprep.subr.bf16.mxu1 %v4365_v6  ;;  %v4369_v16 = vld [vmem:[#allocation10 + $0x70] ss:$8 sps:$4 sm:$0xff]   ;;  %v4371_v17 = vld [vmem:[#allocation10 + $0x74] ss:$8 sps:$4 sm:$0xff]   ;;  %s4036_s14 = sshll.u32 %s5308_s25, 5 }
  0xbf   : > { %s624_s4 = scalar_lea.vmem %s5272_s0, %s4089_s15  ;;  %4174 = vmatpush3.bf16.msra.mxu1 %v4365_v6  ;;  %v4374_v18 = vld [vmem:[#allocation10 + $0x64] ss:$8 sps:$4 sm:$0xff]   ;;  %v4372_v19 = vld [vmem:[#allocation10 + $0x60] ss:$8 sps:$4 sm:$0xff]   ;;  %v4377_v20 = vld [vmem:[#allocation10 + $0x54] ss:$8 sps:$4 sm:$0xff]   ;;  %s5215_s19 = scalar_lea.vmem %s5285_s13, %s4036_s14 }
  0xc0   : > { %v4357_v3 = vld [vmem:[%s624_s4] sm:$0xff]   ;;  %v4358_v5 = vld [vmem:[%s624_s4 + $0x8] sm:$0xff]   ;;  %v4359_v7 = vld [vmem:[%s624_s4 + $0x10] sm:$0xff]   ;;  %4175 = vmatprep.subr.bf16.mxu1 %v4366_v13 }
  0xc1   : > { %4157 = vmatprep.mubr.msk.bf16.mxu0 %vm735_vm0, %v4357_v3  ;;  %4152 = vmatpush3.bf16.msra.mxu0 %v4354_v1  ;;  %v4360_v8 = vld [vmem:[%s624_s4 + $0x18] sm:$0xff]   ;;  %v4361_v9 = vld [vmem:[%s624_s4 + $0x20] sm:$0xff]   ;;  %v4362_v10 = vld [vmem:[%s624_s4 + $0x28] sm:$0xff]  }
  0xc2   : > { %4153 = vmatprep.subr.bf16.mxu0 %v4355_v2  ;;  %v4363_v11 = vld [vmem:[%s624_s4 + $0x30] sm:$0xff]   ;;  %v4364_v12 = vld [vmem:[%s624_s4 + $0x38] sm:$0xff]   ;;  %v4037_v28 = vld [vmem:[#allocation5] ss:$0 sm:$0xff] }
  0xc3   : > { %4176 = vmatpush3.bf16.msra.mxu1 %v4366_v13  ;;  %v4375_v21 = vld [vmem:[#allocation10 + $0x50] ss:$8 sps:$4 sm:$0xff]   ;;  %v4380_v22 = vld [vmem:[#allocation10 + $0x44] ss:$8 sps:$4 sm:$0xff]   ;;  %v4378_v23 = vld [vmem:[#allocation10 + $0x40] ss:$8 sps:$4 sm:$0xff]  }
  0xc4   : > { %4177 = vmatprep.subr.bf16.mxu1 %v4367_v14  ;;  %v4383_v24 = vld [vmem:[#allocation10 + $0x34] ss:$8 sps:$4 sm:$0xff]   ;;  %v4381_v25 = vld [vmem:[#allocation10 + $0x30] ss:$8 sps:$4 sm:$0xff]  }
  0xc5   : > { %4154 = vmatpush3.bf16.msra.mxu0 %v4355_v2 }
  0xc6   : > { %4155 = vmatprep.subr.bf16.mxu0 %v4356_v4 }
  0xc7   : > { %4178 = vmatpush3.bf16.msra.mxu1 %v4367_v14 }
  0xc8   : > { %4179 = vmatprep.subr.bf16.mxu1 %v4368_v15 }
  0xc9   : > { %4156 = vmatpush3.bf16.msra.mxu0 %v4356_v4 }
  0xca   : > { %1173 = vmatprep.subr.bf16.mxu0 %v4371_v17 }
  0xcb   : > { %4180 = vmatpush3.bf16.msra.mxu1 %v4368_v15 }
  0xcc   : > { %4158 = vmatmul.mubr.msk.bf16.vlgmr.msra.gmra.mxu0 %vm735_vm0, %v4358_v5 }
  0xcd   : > { %4161 = vmatprep.mubr.msk.bf16.mxu0 %vm735_vm0, %v4359_v7  ;;  %1174 = vmatpush1.bf16.msra.mxu0 %v4369_v16 }
  0xce   : > { %1175 = vmatprep.subr.bf16.mxu0 %v4374_v18 }
  0xd1   : > { %1176 = vmatpush1.bf16.msra.mxu0 %v4372_v19  ;;  %v4386_v19 = vld [vmem:[#allocation10 + $0x24] ss:$8 sps:$4 sm:$0xff]  }
  0xd2   : > { %1177 = vmatprep.subr.bf16.mxu0 %v4377_v20  ;;  %v4384_v20 = vld [vmem:[#allocation10 + $0x20] ss:$8 sps:$4 sm:$0xff]  }
  0xd4   : > { %4162 = vmatmul.mubr.msk.bf16.gmra.mxu0 %vm735_vm0, %v4360_v8 }
  0xd5   : > { %4165 = vmatprep.mubr.msk.bf16.mxu0 %vm735_vm0, %v4361_v9  ;;  %1178 = vmatpush1.bf16.msra.mxu0 %v4375_v21  ;;  %v4389_v21 = vld [vmem:[#allocation10 + $0x14] ss:$8 sps:$4 sm:$0xff]  }
  0xd6   : > { %1179 = vmatprep.subr.bf16.mxu0 %v4380_v22  ;;  %v4387_v22 = vld [vmem:[#allocation10 + $0x10] ss:$8 sps:$4 sm:$0xff]  }
  0xd9   : > { %1180 = vmatpush1.bf16.msra.mxu0 %v4378_v23  ;;  %v4392_v23 = vld [vmem:[#allocation10 + $0x4] ss:$8 sps:$4 sm:$0xff]  }
  0xda   : > { %1181 = vmatprep.subr.bf16.mxu0 %v4383_v24  ;;  %v4390_v24 = vld [vmem:[#allocation10] ss:$8 sps:$4 sm:$0xff]  }
  0xdc   : > { %4166 = vmatmul.mubr.msk.bf16.gmra.mxu0 %vm735_vm0, %v4362_v10 }
  0xdd   : > { %4169 = vmatprep.mubr.msk.bf16.mxu0 %vm735_vm0, %v4363_v11  ;;  %1182 = vmatpush1.bf16.msra.mxu0 %v4381_v25  ;;  %v4776_v25 = vmov 0  }
  0xde   : > { %1183 = vmatprep.subr.bf16.mxu0 %v4386_v19  ;;  %v1535_v19 = vld [vmem:[#allocation13 + $0xf8] sm:$0xff] }
  0xdf   : > { %1591 = vmatprep.subr.mxu1 %v1535_v19  ;;  %v1538_v19 = vld [vmem:[#allocation13 + $0x110] sm:$0xff] }
  0xe1   : > { %1184 = vmatpush1.bf16.msra.mxu0 %v4384_v20  ;;  %v1534_v20 = vld [vmem:[#allocation13 + $0xf0] sm:$0xff] }
  0xe2   : > { %1185 = vmatprep.subr.bf16.mxu0 %v4389_v21  ;;  %v1533_v21 = vld [vmem:[#allocation13 + $0xe8] sm:$0xff] }
  0xe4   : > { %4170 = vmatmul.mubr.msk.bf16.gmra.mxu0 %vm735_vm0, %v4364_v12 }
  0xe5   : > { %1186 = vmatpush1.bf16.msra.mxu0 %v4387_v22  ;;  %1205 = vmatprep.mubr.bf16.mxu0 %v4776_v25  ;;  %v1532_v22 = vld [vmem:[#allocation13 + $0xe0] sm:$0xff] }
  0xe6   : > { %1187 = vmatprep.subr.bf16.mxu0 %v4392_v23  ;;  %v1531_v23 = vld [vmem:[#allocation13 + $0xd8] sm:$0xff] }
  0xe9   : > { %1188 = vmatpush1.bf16.msra.mxu0 %v4390_v24  ;;  %v1530_v24 = vld [vmem:[#allocation13 + $0xd0] sm:$0xff] }
 0x18c   : > { %v4159_v26 = vpop.f32.mrf.mxu0 }
 0x18d   : > { %v803_v32 = vadd.f32 %v4159_v26, %v4037_v28 }
 0x18e   : > { %v794_v27 = vpop.f32.mrf.mxu0 }
 0x18f   : > { %v795_v30 = vadd.f32 %v4037_v28, %v794_v27  ;;  %v859_v39 = vmax.f32 %v803_v32, 0.0 }
 0x190   : > { %v4160_v29 = vpop.f32.mrf.mxu0 }
 0x191   : > { %v806_v31 = vadd.f32 %v4160_v29, %v4037_v28  ;;  %v857_v37 = vmax.f32 %v795_v30, 0.0 }
 0x192   : > { %v797_v33 = vpop.f32.mrf.mxu0 }
 0x193   : > { %v798_v34 = vadd.f32 %v4037_v28, %v797_v33  ;;  %v860_v35 = vmax.f32 %v806_v31, 0.0 }
 0x194   : > { %v4163_v36 = vpop.f32.mrf.mxu0 }
 0x195   : > { %v858_v38 = vmax.f32 %v798_v34, 0.0  ;;  %v819_v40 = vadd.f32 %v4163_v36, %v4037_v28  ;;  %v874_v44 = vpack.c.bf16 %v860_v35, %v859_v39 }
 0x196   : > { %v810_v41 = vpop.f32.mrf.mxu0 }
 0x197   : > { %v811_v42 = vadd.f32 %v4037_v28, %v810_v41  ;;  %v873_v43 = vpack.c.bf16 %v858_v38, %v857_v37  ;;  %v863_v47 = vmax.f32 %v819_v40, 0.0 }
 0x198   : > { %v4164_v45 = vpop.f32.mrf.mxu0 }
 0x199   : > { %v822_v46 = vadd.f32 %v4164_v45, %v4037_v28  ;;  %4181 = vmatprep.mubr.msk.bf16.mxu1 %vm735_vm0, %v873_v43  ;;  %v861_v49 = vmax.f32 %v811_v42, 0.0 }
 0x19a   : > { %v813_v48 = vpop.f32.mrf.mxu0  ;;  %4182 = vmatmul.mubr.msk.bf16.vlgmr.msra.gmra.mxu1 %vm735_vm0, %v874_v44 }
 0x19b   : > { %v864_v50 = vmax.f32 %v822_v46, 0.0  ;;  %v814_v51 = vadd.f32 %v4037_v28, %v813_v48  ;;  %1592 = vmatpush1.msra.mxu1 %v1534_v20  ;;  %v1537_v20 = vld [vmem:[#allocation13 + $0x108] sm:$0xff] }
 0x19c   : > { %v4167_v52 = vpop.f32.mrf.mxu0  ;;  %1593 = vmatprep.subr.mxu1 %v1533_v21  ;;  %v1536_v21 = vld [vmem:[#allocation13 + $0x100] sm:$0xff] }
 0x19d   : > { %v862_v53 = vmax.f32 %v814_v51, 0.0  ;;  %v876_v54 = vpack.c.bf16 %v864_v50, %v863_v47  ;;  %v835_v55 = vadd.f32 %v4167_v52, %v4037_v28  ;;  %1594 = vmatpush1.msra.mxu1 %v1532_v22  ;;  %v1695_v22 = vld [vmem:[#allocation16 + $0xf8] sm:$0xff] }
 0x19e   : > { %v826_v56 = vpop.f32.mrf.mxu0  ;;  %1595 = vmatprep.subr.mxu1 %v1531_v23  ;;  %v1679_v23 = vld [vmem:[#allocation16 + $0x78] sm:$0xff]  ;;  %4114 = vmatprep.subr.mxu0 %v1695_v22 }
 0x19f   : > { %v875_v57 = vpack.c.bf16 %v862_v53, %v861_v49  ;;  %v827_v58 = vadd.f32 %v4037_v28, %v826_v56  ;;  %v867_v61 = vmax.f32 %v835_v55, 0.0  ;;  %1596 = vmatpush1.msra.mxu1 %v1530_v24  ;;  %v1694_v24 = vld [vmem:[#allocation16 + $0xf0] sm:$0xff] }
 0x1a0   : > { %v4168_v59 = vpop.f32.mrf.mxu0 }
 0x1a1   : > { %4185 = vmatprep.mubr.msk.bf16.mxu1 %vm735_vm0, %v875_v57  ;;  %v838_v60 = vadd.f32 %v4168_v59, %v4037_v28  ;;  %v865_v63 = vmax.f32 %v827_v58, 0.0 }
 0x1a2   : > { %4186 = vmatmul.mubr.msk.bf16.gmra.mxu1 %vm735_vm0, %v876_v54  ;;  %v829_v62 = vpop.f32.mrf.mxu0 }
 0x1a3   : > { %v868_v0 = vmax.f32 %v838_v60, 0.0  ;;  %v830_v1 = vadd.f32 %v4037_v28, %v829_v62 }
 0x1a4   : > { %v4171_v2 = vpop.f32.mrf.mxu0 }
 0x1a5   : > { %v866_v3 = vmax.f32 %v830_v1, 0.0  ;;  %v878_v4 = vpack.c.bf16 %v868_v0, %v867_v61  ;;  %v851_v5 = vadd.f32 %v4171_v2, %v4037_v28 }
 0x1a6   : > { %v842_v6 = vpop.f32.mrf.mxu0 }
 0x1a7   : > { %v877_v7 = vpack.c.bf16 %v866_v3, %v865_v63  ;;  %v843_v8 = vadd.f32 %v4037_v28, %v842_v6  ;;  %v871_v11 = vmax.f32 %v851_v5, 0.0 }
 0x1a8   : > { %v4172_v9 = vpop.f32.mrf.mxu0 }
 0x1a9   : > { %4189 = vmatprep.mubr.msk.bf16.mxu1 %vm735_vm0, %v877_v7  ;;  %v854_v10 = vadd.f32 %v4172_v9, %v4037_v28  ;;  %v869_v13 = vmax.f32 %v843_v8, 0.0 }
 0x1aa   : > { %4190 = vmatmul.mubr.msk.bf16.gmra.mxu1 %vm735_vm0, %v878_v4  ;;  %v845_v12 = vpop.f32.mrf.mxu0 }
 0x1ab   : > { %v872_v14 = vmax.f32 %v854_v10, 0.0  ;;  %v846_v15 = vadd.f32 %v4037_v28, %v845_v12  ;;  %v4058_v28 = vld [vmem:[#allocation8] ss:$0 sm:$0xff] }
 0x1ad   : > { %v870_v16 = vmax.f32 %v846_v15, 0.0  ;;  %v880_v17 = vpack.c.bf16 %v872_v14, %v871_v11 }
 0x1af   : > { %v879_v18 = vpack.c.bf16 %v870_v16, %v869_v13 }
 0x1b1   : > { %4193 = vmatprep.mubr.msk.bf16.mxu1 %vm735_vm0, %v879_v18 }
 0x1b2   : > { %4194 = vmatmul.mubr.msk.bf16.gmra.mxu1 %vm735_vm0, %v880_v17 }
 0x25a   : > { %v4183_v26 = vpop.f32.mrf.mxu1 }
 0x25b   : > { %v987_v40 = vadd.f32 %v4183_v26, %v4058_v28  ;;  %v1529_v26 = vld [vmem:[#allocation13 + $0xc8] sm:$0xff] }
 0x25c   : > { %v978_v27 = vpop.f32.mrf.mxu1  ;;  %1597 = vmatprep.subr.mxu1 %v1529_v26  ;;  %v1678_v26 = vld [vmem:[#allocation16 + $0x70] sm:$0xff] }
 0x25d   : > { %v979_v30 = vadd.f32 %v4058_v28, %v978_v27  ;;  %v1043_v43 = vmax.f32 %v987_v40, 0.0  ;;  %v1528_v27 = vld [vmem:[#allocation13 + $0xc0] sm:$0xff]  ;;  %v1514_v40 = vld [vmem:[#allocation13 + $0x50] sm:$0xff] }
 0x25e   : > { %v4184_v29 = vpop.f32.mrf.mxu1  ;;  %1598 = vmatpush1.msra.mxu1 %v1528_v27  ;;  %v1693_v27 = vld [vmem:[#allocation16 + $0xe8] sm:$0xff] }
 0x25f   : > { %v1041_v34 = vmax.f32 %v979_v30, 0.0  ;;  %v990_v37 = vadd.f32 %v4184_v29, %v4058_v28  ;;  %v1525_v29 = vld [vmem:[#allocation13 + $0xa8] sm:$0xff]  ;;  %v1524_v30 = vld [vmem:[#allocation13 + $0xa0] sm:$0xff] }
 0x260   : > { %v981_v31 = vpop.f32.mrf.mxu1 }
 0x261   : > { %v982_v32 = vadd.f32 %v4058_v28, %v981_v31  ;;  %v1044_v41 = vmax.f32 %v990_v37, 0.0  ;;  %v1523_v31 = vld [vmem:[#allocation13 + $0x98] sm:$0xff]  ;;  %v1517_v37 = vld [vmem:[#allocation13 + $0x68] sm:$0xff] }
 0x262   : > { %v4187_v33 = vpop.f32.mrf.mxu1 }
 0x263   : > { %v1042_v35 = vmax.f32 %v982_v32, 0.0  ;;  %v1058_v44 = vpack.c.bf16 %v1044_v41, %v1043_v43  ;;  %v1003_v54 = vadd.f32 %v4187_v33, %v4058_v28  ;;  %v1522_v32 = vld [vmem:[#allocation13 + $0x90] sm:$0xff]  ;;  %v1521_v33 = vld [vmem:[#allocation13 + $0x88] sm:$0xff]  ;;  %v1511_v43 = vld [vmem:[#allocation13 + $0x38] sm:$0xff] }
 0x264   : > { %v994_v36 = vpop.f32.mrf.mxu1  ;;  %v1513_v41 = vld [vmem:[#allocation13 + $0x48] sm:$0xff] }
 0x265   : > { %v1057_v38 = vpack.c.bf16 %v1042_v35, %v1041_v34  ;;  %v995_v47 = vadd.f32 %v4058_v28, %v994_v36  ;;  %v1047_v57 = vmax.f32 %v1003_v54, 0.0  ;;  %v1520_v34 = vld [vmem:[#allocation13 + $0x80] sm:$0xff]  ;;  %v1519_v35 = vld [vmem:[#allocation13 + $0x78] sm:$0xff]  ;;  %v1518_v36 = vld [vmem:[#allocation13 + $0x70] sm:$0xff] }
 0x266   : > { %v4188_v39 = vpop.f32.mrf.mxu1  ;;  %v1564_v54 = vld [vmem:[#allocation13 + $0x1e0] sm:$0xff] }
 0x267   : > { %1206 = vmatmul.mubr.bf16.vlgmr.msra.gmra.mxu0 %v1057_v38  ;;  %v1045_v50 = vmax.f32 %v995_v47, 0.0  ;;  %v1006_v51 = vadd.f32 %v4188_v39, %v4058_v28  ;;  %v1516_v38 = vld [vmem:[#allocation13 + $0x60] sm:$0xff]  ;;  %v1515_v39 = vld [vmem:[#allocation13 + $0x58] sm:$0xff] }
 0x268   : > { %1215 = vmatprep.mubr.bf16.mxu0 %v4776_v25  ;;  %v997_v42 = vpop.f32.mrf.mxu1  ;;  %v1507_v47 = vld [vmem:[#allocation13 + $0x18] sm:$0xff]  ;;  %4115 = vmatpush3.msra.mxu0 %v1679_v23 }
 0x269   : > { %v998_v45 = vadd.f32 %v4058_v28, %v997_v42  ;;  %v1048_v55 = vmax.f32 %v1006_v51, 0.0  ;;  %v1512_v42 = vld [vmem:[#allocation13 + $0x40] sm:$0xff]  ;;  %v1567_v51 = vld [vmem:[#allocation13 + $0x1f8] sm:$0xff]  ;;  %4116 = vmatprep.subr.mxu0 %v1694_v24 }
 0x26a   : > { %v4191_v46 = vpop.f32.mrf.mxu1  ;;  %4117 = vmatpush3.msra.mxu0 %v1678_v26 }
 0x26b   : > { %v1046_v48 = vmax.f32 %v998_v45, 0.0  ;;  %v1060_v58 = vpack.c.bf16 %v1048_v55, %v1047_v57  ;;  %v1019_v1 = vadd.f32 %v4191_v46, %v4058_v28  ;;  %v1509_v45 = vld [vmem:[#allocation13 + $0x28] sm:$0xff]  ;;  %v1508_v46 = vld [vmem:[#allocation13 + $0x20] sm:$0xff]  ;;  %v1563_v55 = vld [vmem:[#allocation13 + $0x1d8] sm:$0xff]  ;;  %4118 = vmatprep.subr.mxu0 %v1693_v27 }
 0x26c   : > { %v1010_v49 = vpop.f32.mrf.mxu1  ;;  %v1561_v57 = vld [vmem:[#allocation13 + $0x1c8] sm:$0xff] }
 0x26d   : > { %v1059_v52 = vpack.c.bf16 %v1046_v48, %v1045_v50  ;;  %v1011_v59 = vadd.f32 %v4058_v28, %v1010_v49  ;;  %v1051_v5 = vmax.f32 %v1019_v1, 0.0  ;;  %v1506_v48 = vld [vmem:[#allocation13 + $0x10] sm:$0xff]  ;;  %v1505_v49 = vld [vmem:[#allocation13 + $0x8] sm:$0xff]  ;;  %v1504_v50 = vld [vmem:[#allocation13] sm:$0xff] }
 0x26e   : > { %v4192_v53 = vpop.f32.mrf.mxu1  ;;  %v1556_v1 = vld [vmem:[#allocation13 + $0x1a0] sm:$0xff] }
 0x26f   : > { %1216 = vmatmul.mubr.bf16.gmra.mxu0 %v1058_v44  ;;  %v1049_v62 = vmax.f32 %v1011_v59, 0.0  ;;  %v1022_v2 = vadd.f32 %v4192_v53, %v4058_v28  ;;  %v1510_v44 = vld [vmem:[#allocation13 + $0x30] sm:$0xff]  ;;  %v1565_v53 = vld [vmem:[#allocation13 + $0x1e8] sm:$0xff]  ;;  %v635_v59 = vlaneseq }
 0x270   : > { %1225 = vmatprep.mubr.bf16.mxu0 %v4776_v25  ;;  %v1013_v56 = vpop.f32.mrf.mxu1 }
 0x271   : > { %v1014_v60 = vadd.f32 %v4058_v28, %v1013_v56  ;;  %v1052_v6 = vmax.f32 %v1022_v2, 0.0  ;;  %v1562_v56 = vld [vmem:[#allocation13 + $0x1d0] sm:$0xff]  ;;  %vm5071_vm1 = vcmp.lt.s32.totalorder %v635_v59, 256  ;;  %v1555_v2 = vld [vmem:[#allocation13 + $0x198] sm:$0xff] }
 0x272   : > { %v4195_v61 = vpop.f32.mrf.mxu1 }
 0x273   : > { %v1050_v63 = vmax.f32 %v1014_v60, 0.0  ;;  %v1062_v8 = vpack.c.bf16 %v1052_v6, %v1051_v5  ;;  %v1035_v13 = vadd.f32 %v4195_v61, %v4058_v28  ;;  %v1559_v60 = vld [vmem:[#allocation13 + $0x1b8] sm:$0xff]  ;;  %v1558_v61 = vld [vmem:[#allocation13 + $0x1b0] sm:$0xff]  ;;  %v1552_v5 = vld [vmem:[#allocation13 + $0x180] sm:$0xff] }
 0x274   : > { %v1026_v0 = vpop.f32.mrf.mxu1  ;;  %v1551_v6 = vld [vmem:[#allocation13 + $0x178] sm:$0xff] }
 0x275   : > { %v1061_v3 = vpack.c.bf16 %v1050_v63, %v1049_v62  ;;  %v1027_v9 = vadd.f32 %v4058_v28, %v1026_v0  ;;  %v1055_v16 = vmax.f32 %v1035_v13, 0.0  ;;  %v1557_v63 = vld [vmem:[#allocation13 + $0x1a8] sm:$0xff]  ;;  %v4777_v0 = vmov -inf   ;;  %v1544_v13 = vld [vmem:[#allocation13 + $0x140] sm:$0xff] }
 0x276   : > { %v4196_v4 = vpop.f32.mrf.mxu1  ;;  %639 = vst.msk [vmem:[#allocation2] sm:$0x3] %vm5071_vm1, %v4777_v0  ;;  %v2217_v62 = vld [vmem:[#allocation19 + $0xe08] sm:$0xff] }
 0x277   : > { %1226 = vmatmul.mubr.bf16.gmra.mxu0 %v1059_v52  ;;  %v1053_v11 = vmax.f32 %v1027_v9, 0.0  ;;  %v1038_v14 = vadd.f32 %v4196_v4, %v4058_v28  ;;  %v1566_v52 = vld [vmem:[#allocation13 + $0x1f0] sm:$0xff]  ;;  %v1553_v4 = vld [vmem:[#allocation13 + $0x188] sm:$0xff]  ;;  %v1548_v9 = vld [vmem:[#allocation13 + $0x160] sm:$0xff] }
 0x278   : > { %1235 = vmatprep.mubr.bf16.mxu0 %v4776_v25  ;;  %v1029_v7 = vpop.f32.mrf.mxu1 }
 0x279   : > { %v1030_v10 = vadd.f32 %v4058_v28, %v1029_v7  ;;  %v1056_v17 = vmax.f32 %v1038_v14, 0.0  ;;  %v1526_v28 = vld [vmem:[#allocation13 + $0xb0] sm:$0xff]  ;;  %v1543_v14 = vld [vmem:[#allocation13 + $0x138] sm:$0xff] }
 0x27a   : > { %v1550_v7 = vld [vmem:[#allocation13 + $0x170] sm:$0xff] }
 0x27b   : > { %v1054_v12 = vmax.f32 %v1030_v10, 0.0  ;;  %v1064_v18 = vpack.c.bf16 %v1056_v17, %v1055_v16  ;;  %v1547_v10 = vld [vmem:[#allocation13 + $0x158] sm:$0xff]  ;;  %v1541_v16 = vld [vmem:[#allocation13 + $0x128] sm:$0xff]  ;;  %v1540_v17 = vld [vmem:[#allocation13 + $0x120] sm:$0xff] }
 0x27d   : > { %v1063_v15 = vpack.c.bf16 %v1054_v12, %v1053_v11  ;;  %v1546_v11 = vld [vmem:[#allocation13 + $0x150] sm:$0xff]  ;;  %v1545_v12 = vld [vmem:[#allocation13 + $0x148] sm:$0xff] }
 0x27f   : > { %1236 = vmatmul.mubr.bf16.gmra.mxu0 %v1060_v58  ;;  %v1560_v58 = vld [vmem:[#allocation13 + $0x1c0] sm:$0xff] }
 0x280   : > { %1245 = vmatprep.mubr.bf16.mxu0 %v4776_v25 }
 0x287   : > { %1246 = vmatmul.mubr.bf16.gmra.mxu0 %v1061_v3  ;;  %v1554_v3 = vld [vmem:[#allocation13 + $0x190] sm:$0xff] }
 0x288   : > { %1255 = vmatprep.mubr.bf16.mxu0 %v4776_v25 }
 0x28f   : > { %1256 = vmatmul.mubr.bf16.gmra.mxu0 %v1062_v8  ;;  %v1549_v8 = vld [vmem:[#allocation13 + $0x168] sm:$0xff] }
 0x290   : > { %1265 = vmatprep.mubr.bf16.mxu0 %v4776_v25 }
 0x297   : > { %1266 = vmatmul.mubr.bf16.gmra.mxu0 %v1063_v15  ;;  %v1542_v15 = vld [vmem:[#allocation13 + $0x130] sm:$0xff] }
 0x298   : > { %1275 = vmatprep.mubr.bf16.mxu0 %v4776_v25  ;;  %v1527_v25 = vld [vmem:[#allocation13 + $0xb8] sm:$0xff] }
 0x299   : > { %1599 = vmatprep.subr.mxu1 %v1527_v25  ;;  %v1677_v25 = vld [vmem:[#allocation16 + $0x68] sm:$0xff] }
 0x29a   : > { %1600 = vmatpush1.msra.mxu1 %v1526_v28  ;;  %v1692_v28 = vld [vmem:[#allocation16 + $0xe0] sm:$0xff]  ;;  %4119 = vmatpush3.msra.mxu0 %v1677_v25 }
 0x29b   : > { %1601 = vmatprep.subr.mxu1 %v1525_v29  ;;  %v1676_v29 = vld [vmem:[#allocation16 + $0x60] sm:$0xff]  ;;  %4120 = vmatprep.subr.mxu0 %v1692_v28 }
 0x29c   : > { %1602 = vmatpush1.msra.mxu1 %v1524_v30  ;;  %v1691_v30 = vld [vmem:[#allocation16 + $0xd8] sm:$0xff]  ;;  %4121 = vmatpush3.msra.mxu0 %v1676_v29 }
 0x29d   : > { %1603 = vmatprep.subr.mxu1 %v1523_v31  ;;  %v1675_v31 = vld [vmem:[#allocation16 + $0x58] sm:$0xff]  ;;  %4122 = vmatprep.subr.mxu0 %v1691_v30 }
 0x29e   : > { %1604 = vmatpush1.msra.mxu1 %v1522_v32  ;;  %v1690_v32 = vld [vmem:[#allocation16 + $0xd0] sm:$0xff]  ;;  %4123 = vmatpush3.msra.mxu0 %v1675_v31 }
 0x29f   : > { %1276 = vmatmul.mubr.bf16.gmra.mxu0 %v1064_v18  ;;  %1605 = vmatprep.subr.mxu1 %v1521_v33  ;;  %v1539_v18 = vld [vmem:[#allocation13 + $0x118] sm:$0xff] }
 0x2a0   : > { %1606 = vmatpush1.msra.mxu1 %v1520_v34  ;;  %v1674_v33 = vld [vmem:[#allocation16 + $0x50] sm:$0xff]  ;;  %v1689_v34 = vld [vmem:[#allocation16 + $0xc8] sm:$0xff]  ;;  %4124 = vmatprep.subr.mxu0 %v1690_v32 }
 0x2a1   : > { %1607 = vmatprep.subr.mxu1 %v1519_v35  ;;  %v1673_v35 = vld [vmem:[#allocation16 + $0x48] sm:$0xff]  ;;  %4125 = vmatpush3.msra.mxu0 %v1674_v33 }
 0x2a2   : > { %1608 = vmatpush1.msra.mxu1 %v1518_v36  ;;  %v1688_v36 = vld [vmem:[#allocation16 + $0xc0] sm:$0xff]  ;;  %4126 = vmatprep.subr.mxu0 %v1689_v34 }
 0x2a3   : > { %1609 = vmatprep.subr.mxu1 %v1517_v37  ;;  %v1672_v37 = vld [vmem:[#allocation16 + $0x40] sm:$0xff]  ;;  %4127 = vmatpush3.msra.mxu0 %v1673_v35 }
 0x2a4   : > { %1610 = vmatpush1.msra.mxu1 %v1516_v38  ;;  %v1687_v38 = vld [vmem:[#allocation16 + $0xb8] sm:$0xff]  ;;  %4128 = vmatprep.subr.mxu0 %v1688_v36 }
 0x2a5   : > { %1611 = vmatprep.subr.mxu1 %v1515_v39  ;;  %v1671_v39 = vld [vmem:[#allocation16 + $0x38] sm:$0xff]  ;;  %4129 = vmatpush3.msra.mxu0 %v1672_v37 }
 0x2a6   : > { %1612 = vmatpush1.msra.mxu1 %v1514_v40  ;;  %v1686_v40 = vld [vmem:[#allocation16 + $0xb0] sm:$0xff]  ;;  %4130 = vmatprep.subr.mxu0 %v1687_v38 }
 0x2a7   : > { %1613 = vmatprep.subr.mxu1 %v1513_v41  ;;  %v1670_v41 = vld [vmem:[#allocation16 + $0x30] sm:$0xff]  ;;  %4131 = vmatpush3.msra.mxu0 %v1671_v39 }
 0x2a8   : > { %1614 = vmatpush1.msra.mxu1 %v1512_v42  ;;  %v1685_v42 = vld [vmem:[#allocation16 + $0xa8] sm:$0xff]  ;;  %4132 = vmatprep.subr.mxu0 %v1686_v40 }
 0x2a9   : > { %1615 = vmatprep.subr.mxu1 %v1511_v43  ;;  %v1669_v43 = vld [vmem:[#allocation16 + $0x28] sm:$0xff]  ;;  %4133 = vmatpush3.msra.mxu0 %v1670_v41 }
 0x2aa   : > { %1616 = vmatpush1.msra.mxu1 %v1510_v44  ;;  %v1684_v44 = vld [vmem:[#allocation16 + $0xa0] sm:$0xff]  ;;  %4134 = vmatprep.subr.mxu0 %v1685_v42 }
 0x2ab   : > { %1617 = vmatprep.subr.mxu1 %v1509_v45  ;;  %v1668_v45 = vld [vmem:[#allocation16 + $0x20] sm:$0xff]  ;;  %4135 = vmatpush3.msra.mxu0 %v1669_v43 }
 0x2ac   : > { %1618 = vmatpush1.msra.mxu1 %v1508_v46  ;;  %v1683_v46 = vld [vmem:[#allocation16 + $0x98] sm:$0xff]  ;;  %4136 = vmatprep.subr.mxu0 %v1684_v44 }
 0x2ad   : > { %1619 = vmatprep.subr.mxu1 %v1507_v47  ;;  %v1667_v47 = vld [vmem:[#allocation16 + $0x18] sm:$0xff]  ;;  %4137 = vmatpush3.msra.mxu0 %v1668_v45 }
 0x2ae   : > { %1620 = vmatpush1.msra.mxu1 %v1506_v48  ;;  %v1682_v48 = vld [vmem:[#allocation16 + $0x90] sm:$0xff]  ;;  %4138 = vmatprep.subr.mxu0 %v1683_v46 }
 0x2af   : > { %1621 = vmatprep.subr.mxu1 %v1505_v49  ;;  %v1666_v49 = vld [vmem:[#allocation16 + $0x10] sm:$0xff]  ;;  %4139 = vmatpush3.msra.mxu0 %v1667_v47 }
 0x2b0   : > { %1622 = vmatpush1.msra.mxu1 %v1504_v50  ;;  %4140 = vmatprep.subr.mxu0 %v1682_v48 }
 0x2b1   : > { %1623 = vmatprep.subr.mxu1 %v1567_v51  ;;  %v1681_v51 = vld [vmem:[#allocation16 + $0x88] sm:$0xff]  ;;  %4141 = vmatpush3.msra.mxu0 %v1666_v49 }
 0x2b2   : > { %1624 = vmatpush2.msra.mxu1 %v1566_v52  ;;  %4142 = vmatprep.subr.mxu0 %v1681_v51 }
 0x2b3   : > { %1625 = vmatprep.subr.mxu1 %v1565_v53 }
 0x2b4   : > { %1626 = vmatpush2.msra.mxu1 %v1564_v54 }
 0x2b5   : > { %1627 = vmatprep.subr.mxu1 %v1563_v55 }
 0x2b6   : > { %1628 = vmatpush2.msra.mxu1 %v1562_v56 }
 0x2b7   : > { %1629 = vmatprep.subr.mxu1 %v1561_v57 }
 0x2b8   : > { %1630 = vmatpush2.msra.mxu1 %v1560_v58 }
 0x2b9   : > { %1631 = vmatprep.subr.mxu1 %v1559_v60 }
 0x2ba   : > { %1632 = vmatpush2.msra.mxu1 %v1558_v61 }
 0x2bb   : > { %1633 = vmatprep.subr.mxu1 %v1557_v63 }
 0x2bc   : > { %1634 = vmatpush2.msra.mxu1 %v1556_v1 }
 0x2bd   : > { %1635 = vmatprep.subr.mxu1 %v1555_v2 }
 0x2be   : > { %1636 = vmatpush2.msra.mxu1 %v1554_v3 }
 0x2bf   : > { %1637 = vmatprep.subr.mxu1 %v1553_v4  ;;  %v5078_v4 = vshrl.u32 %v635_v59, 7 }
 0x2c0   : > { %1638 = vmatpush2.msra.mxu1 %v1552_v5 }
 0x2c1   : > { %1639 = vmatprep.subr.mxu1 %v1551_v6 }
 0x2c2   : > { %1640 = vmatpush2.msra.mxu1 %v1550_v7  ;;  %v5081_v7 = vsub.s32 0, %v5078_v4 }
 0x2c3   : > { %1641 = vmatprep.subr.mxu1 %v1549_v8 }
 0x2c4   : > { %1642 = vmatpush2.msra.mxu1 %v1548_v9  ;;  %v1081_v9 = vld [vmem:[#allocation11] sm:$0x3] }
 0x2c5   : > { %1643 = vmatprep.subr.mxu1 %v1547_v10  ;;  %v5084_v10 = vsub.s32 1, %v5078_v4 }
 0x2c6   : > { %1644 = vmatpush2.msra.mxu1 %v1546_v11 }
 0x2c7   : > { %1645 = vmatprep.subr.mxu1 %v1545_v12  ;;  %v5087_v12 = vrot.slane %v1081_v9, %v5081_v7 }
 0x2c8   : > { %1646 = vmatpush2.msra.mxu1 %v1544_v13 }
 0x2c9   : > { %1647 = vmatprep.subr.mxu1 %v1543_v14  ;;  %v5090_v14 = vrot.slane %v1081_v9, %v5084_v10 }
 0x2ca   : > { %1648 = vmatpush2.msra.mxu1 %v1542_v15 }
 0x2cb   : > { %1649 = vmatprep.subr.mxu1 %v1541_v16 }
 0x2cc   : > { %1650 = vmatpush2.msra.mxu1 %v1540_v17 }
 0x2cd   : > { %1651 = vmatprep.subr.mxu1 %v1539_v18 }
 0x2ce   : > { %1652 = vmatpush2.msra.mxu1 %v1538_v19 }
 0x2cf   : > { %1653 = vmatprep.subr.mxu1 %v1537_v20 }
 0x2d0   : > { %1654 = vmatpush2.msra.mxu1 %v1536_v21 }
 0x327   : > { %v1207_v50 = vpop.f32.mrf.mxu0 }
 0x328   : > { %v1208_v17 = vadd.f32 %v1207_v50, %v5087_v12 }
 0x329   : > { %v1209_v52 = vpop.f32.mrf.mxu0 }
 0x32a   : > { %v1210_v22 = vadd.f32 %v1209_v52, %v5090_v14  ;;  %v1286_v32 = vmax.f32 %v1208_v17, 0.0 }
 0x32b   : > { %v1211_v53 = vpop.f32.mrf.mxu0 }
 0x32c   : > { %v1212_v24 = vadd.f32 %v1211_v53, %v5087_v12  ;;  %v1287_v37 = vmax.f32 %v1210_v22, 0.0 }
 0x32d   : > { %v1213_v54 = vpop.f32.mrf.mxu0 }
 0x32e   : > { %v1214_v26 = vadd.f32 %v1213_v54, %v5090_v14  ;;  %v1288_v41 = vmax.f32 %v1212_v24, 0.0 }
 0x32f   : > { %v1217_v55 = vpop.f32.mrf.mxu0 }
 0x330   : > { %v1218_v59 = vadd.f32 %v1217_v55, %v5087_v12  ;;  %v1289_v42 = vmax.f32 %v1214_v26, 0.0 }
 0x331   : > { %v1219_v56 = vpop.f32.mrf.mxu0 }
 0x332   : > { %v1220_v16 = vadd.f32 %v1219_v56, %v5090_v14  ;;  %v1290_v27 = vmax.f32 %v1218_v59, 0.0 }
 0x333   : > { %v1221_v57 = vpop.f32.mrf.mxu0 }
 0x334   : > { %v1222_v18 = vadd.f32 %v1221_v57, %v5087_v12  ;;  %v1291_v29 = vmax.f32 %v1220_v16, 0.0  ;;  %v1434_v43 = vmax.f32 %v1286_v32, %v1290_v27 }
 0x335   : > { %v1223_v58 = vpop.f32.mrf.mxu0 }
 0x336   : > { %v1224_v19 = vadd.f32 %v1223_v58, %v5090_v14  ;;  %v1292_v33 = vmax.f32 %v1222_v18, 0.0  ;;  %v1455_v46 = vmax.f32 %v1287_v37, %v1291_v29 }
 0x337   : > { %v1227_v60 = vpop.f32.mrf.mxu0 }
 0x338   : > { %v1228_v20 = vadd.f32 %v1227_v60, %v5087_v12  ;;  %v1293_v34 = vmax.f32 %v1224_v19, 0.0  ;;  %v1435_v50 = vmax.f32 %v1288_v41, %v1292_v33 }
 0x339   : > { %v1229_v61 = vpop.f32.mrf.mxu0 }
 0x33a   : > { %v1230_v23 = vadd.f32 %v1229_v61, %v5090_v14  ;;  %v1294_v35 = vmax.f32 %v1228_v20, 0.0  ;;  %v1456_v51 = vmax.f32 %v1289_v42, %v1293_v34 }
 0x33b   : > { %v1231_v63 = vpop.f32.mrf.mxu0 }
 0x33c   : > { %v1232_v25 = vadd.f32 %v1231_v63, %v5087_v12  ;;  %v1295_v38 = vmax.f32 %v1230_v23, 0.0  ;;  %v1436_v52 = vmax.f32 %v1434_v43, %v1294_v35 }
 0x33d   : > { %v1233_v0 = vpop.f32.mrf.mxu0 }
 0x33e   : > { %v1234_v30 = vadd.f32 %v1233_v0, %v5090_v14  ;;  %v1296_v44 = vmax.f32 %v1232_v25, 0.0  ;;  %v1457_v55 = vmax.f32 %v1455_v46, %v1295_v38 }
 0x33f   : > { %v1237_v1 = vpop.f32.mrf.mxu0 }
 0x340   : > { %v1238_v31 = vadd.f32 %v1237_v1, %v5087_v12  ;;  %v1297_v47 = vmax.f32 %v1234_v30, 0.0  ;;  %v1437_v60 = vmax.f32 %v1435_v50, %v1296_v44 }
 0x341   : > { %v1239_v2 = vpop.f32.mrf.mxu0 }
 0x342   : > { %v1240_v39 = vadd.f32 %v1239_v2, %v5090_v14  ;;  %v1298_v48 = vmax.f32 %v1238_v31, 0.0  ;;  %v1458_v2 = vmax.f32 %v1456_v51, %v1297_v47 }
 0x343   : > { %v1241_v3 = vpop.f32.mrf.mxu0 }
 0x344   : > { %v1242_v40 = vadd.f32 %v1241_v3, %v5087_v12  ;;  %v1299_v56 = vmax.f32 %v1240_v39, 0.0  ;;  %v1438_v3 = vmax.f32 %v1436_v52, %v1298_v48 }
 0x345   : > { %v1243_v5 = vpop.f32.mrf.mxu0 }
 0x346   : > { %v1244_v49 = vadd.f32 %v1243_v5, %v5090_v14  ;;  %v1300_v57 = vmax.f32 %v1242_v40, 0.0  ;;  %v1459_v18 = vmax.f32 %v1457_v55, %v1299_v56 }
 0x347   : > { %v1247_v6 = vpop.f32.mrf.mxu0 }
 0x348   : > { %v1248_v53 = vadd.f32 %v1247_v6, %v5087_v12  ;;  %v1301_v5 = vmax.f32 %v1244_v49, 0.0 }
 0x349   : > { %v1249_v8 = vpop.f32.mrf.mxu0 }
 0x34a   : > { %v1250_v61 = vadd.f32 %v1249_v8, %v5090_v14  ;;  %v1302_v6 = vmax.f32 %v1248_v53, 0.0  ;;  %v1439_v8 = vmax.f32 %v1437_v60, %v1300_v57  ;;  %v1460_v26 = vmax.f32 %v1458_v2, %v1301_v5 }
 0x34b   : > { %v1251_v11 = vpop.f32.mrf.mxu0  ;;  %v4778_v5 = vmov 1966171168  }
 0x34c   : > { %v1252_v58 = vadd.f32 %v1251_v11, %v5087_v12 }
 0x34d   : > { %v1253_v13 = vpop.f32.mrf.mxu0 }
 0x34e   : > { %v1254_v63 = vadd.f32 %v1253_v13, %v5090_v14  ;;  %v1304_v19 = vmax.f32 %v1252_v58, 0.0 }
 0x34f   : > { %v1257_v15 = vpop.f32.mrf.mxu0 }
 0x350   : > { %v1258_v0 = vadd.f32 %v1257_v15, %v5087_v12  ;;  %v1303_v15 = vmax.f32 %v1250_v61, 0.0  ;;  %v1305_v20 = vmax.f32 %v1254_v63, 0.0  ;;  %v1441_v33 = vmax.f32 %v1439_v8, %v1304_v19 }
 0x351   : > { %v1259_v21 = vpop.f32.mrf.mxu0 }
 0x352   : > { %v1260_v59 = vadd.f32 %v1259_v21, %v5090_v14  ;;  %v1306_v22 = vmax.f32 %v1258_v0, 0.0  ;;  %v1462_v37 = vmax.f32 %v1460_v26, %v1305_v20  ;;  %v1433_v20 = vld [vmem:[#allocation2] sm:$0x3] }
 0x353   : > { %v1261_v28 = vpop.f32.mrf.mxu0 }
 0x354   : > { %v1262_v9 = vadd.f32 %v1261_v28, %v5087_v12  ;;  %v1440_v28 = vmax.f32 %v1438_v3, %v1302_v6  ;;  %v1307_v29 = vmax.f32 %v1260_v59, 0.0 }
 0x355   : > { %v1263_v36 = vpop.f32.mrf.mxu0 }
 0x356   : > { %v1264_v16 = vadd.f32 %v1263_v36, %v5090_v14  ;;  %v1308_v27 = vmax.f32 %v1262_v9, 0.0  ;;  %v1461_v36 = vmax.f32 %v1459_v18, %v1303_v15  ;;  %v1442_v38 = vmax.f32 %v1440_v28, %v1306_v22  ;;  %v1664_v28 = vld [vmem:[#allocation16] sm:$0xff] }
 0x357   : > { %v1267_v45 = vpop.f32.mrf.mxu0  ;;  %v1480_v9 = vunpack.c.l.s4 %v4778_v5  ;;  %v2155_v5 = vld [vmem:[#allocation19 + $0xc18] sm:$0xff] }
 0x358   : > { %v1268_v11 = vadd.f32 %v1267_v45, %v5087_v12  ;;  %v1309_v30 = vmax.f32 %v1264_v16, 0.0  ;;  %v1443_v41 = vmax.f32 %v1441_v33, %v1308_v27  ;;  %v1463_v45 = vmax.f32 %v1461_v36, %v1307_v29  ;;  %v2249_v29 = vld [vmem:[#allocation19 + $0xf08] sm:$0xff]  ;;  %v2152_v36 = vld [vmem:[#allocation19 + $0xc00] sm:$0xff] }
 0x359   : > { %v1269_v54 = vpop.f32.mrf.mxu0  ;;  %2448 = vmatprep.subr.mxu1 %v2249_v29  ;;  %v2185_v33 = vld [vmem:[#allocation19 + $0xd08] sm:$0xff]  ;;  %v1866_v29 = vld [vmem:[#allocation19 + $0x310] sm:$0xff] }
 0x35a   : > { %v1270_v23 = vadd.f32 %v1269_v54, %v5090_v14  ;;  %v1310_v31 = vmax.f32 %v1268_v11, 0.0  ;;  %v1464_v46 = vmax.f32 %v1462_v37, %v1309_v30  ;;  %v1481_v11 = vunpack.c.0.s8 %v1480_v9  ;;  %v2251_v30 = vld [vmem:[#allocation19 + $0xf18] sm:$0xff]  ;;  %v2121_v37 = vld [vmem:[#allocation19 + $0xb08] sm:$0xff]  ;;  %v2154_v9 = vld [vmem:[#allocation19 + $0xc10] sm:$0xff] }
 0x35b   : > { %v1271_v1 = vpop.f32.mrf.mxu0 }
 0x35c   : > { %v1272_v13 = vadd.f32 %v1271_v1, %v5087_v12  ;;  %v1311_v39 = vmax.f32 %v1270_v23, 0.0  ;;  %v1444_v47 = vmax.f32 %v1442_v38, %v1310_v31  ;;  %v5125_v19 = vsub.s32 %v1481_v11, %v5078_v4  ;;  %v2248_v31 = vld [vmem:[#allocation19 + $0xf00] sm:$0xff]  ;;  %v2059_v11 = vld [vmem:[#allocation19 + $0x918] sm:$0xff] }
 0x35d   : > { %v1273_v17 = vpop.f32.mrf.mxu0  ;;  %v2120_v38 = vld [vmem:[#allocation19 + $0xb00] sm:$0xff] }
 0x35e   : > { %v1274_v21 = vadd.f32 %v1273_v17, %v5090_v14  ;;  %v1312_v34 = vmax.f32 %v1272_v13, 0.0  ;;  %v1465_v53 = vmax.f32 %v1463_v45, %v1311_v39  ;;  %v2089_v39 = vld [vmem:[#allocation19 + $0xa08] sm:$0xff] }
 0x35f   : > { %v1277_v24 = vpop.f32.mrf.mxu0  ;;  %v1993_v45 = vld [vmem:[#allocation19 + $0x708] sm:$0xff] }
 0x360   : > { %v1278_v25 = vadd.f32 %v1277_v24, %v5087_v12  ;;  %v1313_v42 = vmax.f32 %v1274_v21, 0.0  ;;  %v1445_v49 = vmax.f32 %v1443_v41, %v1312_v34  ;;  %v1665_v21 = vld [vmem:[#allocation16 + $0x8] sm:$0xff] }
 0x361   : > { %v1279_v32 = vpop.f32.mrf.mxu0  ;;  %4143 = vmatpush3.msra.mxu0 %v1665_v21  ;;  %v2184_v34 = vld [vmem:[#allocation19 + $0xd00] sm:$0xff]  ;;  %v2057_v41 = vld [vmem:[#allocation19 + $0x908] sm:$0xff] }
 0x362   : > { %v1280_v35 = vadd.f32 %v1279_v32, %v5090_v14  ;;  %v1314_v43 = vmax.f32 %v1278_v25, 0.0  ;;  %v1466_v54 = vmax.f32 %v1464_v46, %v1313_v42  ;;  %v1680_v25 = vld [vmem:[#allocation16 + $0x80] sm:$0xff]  ;;  %v1865_v21 = vld [vmem:[#allocation19 + $0x308] sm:$0xff] }
 0x363   : > { %v1281_v40 = vpop.f32.mrf.mxu0  ;;  %4144 = vmatprep.subr.mxu0 %v1680_v25  ;;  %v2216_v32 = vld [vmem:[#allocation19 + $0xe00] sm:$0xff]  ;;  %v1867_v25 = vld [vmem:[#allocation19 + $0x318] sm:$0xff] }
 0x364   : > { %v1282_v44 = vadd.f32 %v1281_v40, %v5087_v12  ;;  %v1315_v50 = vmax.f32 %v1280_v35, 0.0  ;;  %v1446_v55 = vmax.f32 %v1444_v47, %v1314_v43  ;;  %4145 = vmatpush3.msra.mxu0 %v1664_v28  ;;  %v2153_v35 = vld [vmem:[#allocation19 + $0xc08] sm:$0xff]  ;;  %v2088_v40 = vld [vmem:[#allocation19 + $0xa00] sm:$0xff] }
 0x365   : > { %v1283_v48 = vpop.f32.mrf.mxu0  ;;  %2519 = vmatprep.subr.mxu0 %v2251_v30  ;;  %v2056_v42 = vld [vmem:[#allocation19 + $0x900] sm:$0xff]  ;;  %v2025_v43 = vld [vmem:[#allocation19 + $0x808] sm:$0xff] }
 0x366   : > { %v1316_v51 = vmax.f32 %v1282_v44, 0.0  ;;  %v1284_v52 = vadd.f32 %v1283_v48, %v5090_v14  ;;  %v1467_v58 = vmax.f32 %v1465_v53, %v1315_v50  ;;  %v2024_v44 = vld [vmem:[#allocation19 + $0x800] sm:$0xff]  ;;  %v1961_v47 = vld [vmem:[#allocation19 + $0x608] sm:$0xff]  ;;  %v1568_v53 = vld [vmem:[#allocation14] sm:$0x3] }
 0x367   : > { %v1992_v46 = vld [vmem:[#allocation19 + $0x700] sm:$0xff]  ;;  %v1833_v30 = vld [vmem:[#allocation19 + $0x208] sm:$0xff] }
 0x368   : > { %v1447_v56 = vmax.f32 %v1445_v49, %v1316_v51  ;;  %v1317_v57 = vmax.f32 %v1284_v52, 0.0  ;;  %v1960_v48 = vld [vmem:[#allocation19 + $0x600] sm:$0xff]  ;;  %v1929_v49 = vld [vmem:[#allocation19 + $0x508] sm:$0xff] }
 0x369   : > { %v1928_v50 = vld [vmem:[#allocation19 + $0x500] sm:$0xff]  ;;  %v1897_v51 = vld [vmem:[#allocation19 + $0x408] sm:$0xff] }
 0x36a   : > { %v1448_v60 = vmax.f32 %v1446_v55, %v1447_v56  ;;  %v1468_v61 = vmax.f32 %v1466_v54, %v1317_v57  ;;  %v1896_v52 = vld [vmem:[#allocation19 + $0x400] sm:$0xff]  ;;  %v1584_v54 = vrot.slane %v1568_v53, %v5081_v7  ;;  %v1588_v55 = vrot.slane %v1568_v53, %v5084_v10  ;;  %v2223_v53 = vld [vmem:[#allocation19 + $0xe38] sm:$0xff] }
 0x36b   : > { %v1864_v28 = vld [vmem:[#allocation19 + $0x300] sm:$0xff] }
 0x36c   : > { %v1449_v63 = vrot.slane %v1448_v60, 4  ;;  %v1469_v0 = vmax.f32 %v1467_v58, %v1468_v61 }
 0x36e   : > { %v1450_v12 = vmax.f32 %v1448_v60, %v1449_v63  ;;  %v1470_v1 = vrot.slane %v1469_v0, 4 }
 0x370   : > { %v1451_v2 = vrot.slane %v1450_v12, 2  ;;  %v1471_v3 = vmax.f32 %v1469_v0, %v1470_v1  ;;  %v2250_v0 = vld [vmem:[#allocation19 + $0xf10] sm:$0xff] }
 0x371   : > { %v2218_v1 = vld [vmem:[#allocation19 + $0xe10] sm:$0xff] }
 0x372   : > { %v1452_v6 = vmax.f32 %v1450_v12, %v1451_v2  ;;  %v1472_v59 = vrot.slane %v1471_v3, 2  ;;  %v2219_v12 = vld [vmem:[#allocation19 + $0xe18] sm:$0xff] }
 0x373   : > { %v2187_v2 = vld [vmem:[#allocation19 + $0xd18] sm:$0xff] }
 0x374   : > { %v1453_v16 = vrot.slane %v1452_v6, 1  ;;  %v1473_v14 = vmax.f32 %v1471_v3, %v1472_v59  ;;  %v2186_v3 = vld [vmem:[#allocation19 + $0xd10] sm:$0xff] }
 0x375   : > { %v2122_v59 = vld [vmem:[#allocation19 + $0xb10] sm:$0xff] }
 0x376   : > { %v1474_v17 = vrot.slane %v1473_v14, 1  ;;  %v1454_v18 = vmax.f32 %v1452_v6, %v1453_v16  ;;  %v2123_v6 = vld [vmem:[#allocation19 + $0xb18] sm:$0xff] }
 0x377   : > { %v2091_v16 = vld [vmem:[#allocation19 + $0xa18] sm:$0xff] }
 0x378   : > { %v1475_v8 = vmax.f32 %v1473_v14, %v1474_v17  ;;  %v2090_v14 = vld [vmem:[#allocation19 + $0xa10] sm:$0xff] }
 0x379   : > { %v2058_v17 = vld [vmem:[#allocation19 + $0x910] sm:$0xff] }
 0x37a   : > { %v1478_v13 = vcombine.low %v1454_v18, %v1475_v8  ;;  %v2027_v18 = vld [vmem:[#allocation19 + $0x818] sm:$0xff]  ;;  %v2026_v8 = vld [vmem:[#allocation19 + $0x810] sm:$0xff] }
 0x37c   : > { %v1485_v15 = vrot.slane %v1478_v13, %v5125_v19  ;;  %v1995_v13 = vld [vmem:[#allocation19 + $0x718] sm:$0xff] }
 0x37e   : > { %v1492_v22 = vrot.slane %v1485_v15, %v5125_v19  ;;  %v1994_v15 = vld [vmem:[#allocation19 + $0x710] sm:$0xff] }
 0x380   : > { %v1494_v23 = vmax.f32 %v1433_v20, %v1492_v22  ;;  %v1963_v20 = vld [vmem:[#allocation19 + $0x618] sm:$0xff]  ;;  %v1962_v22 = vld [vmem:[#allocation19 + $0x610] sm:$0xff] }
 0x382   : > { %1499 = vst.msk [vmem:[#allocation2] sm:$0x3] %vm5071_vm1, %v1494_v23  ;;  %v1931_v23 = vld [vmem:[#allocation19 + $0x518] sm:$0xff] }
 0x389   : > { %v1503_v24 = vld [vmem:[#allocation2] sm:$0x3] }
 0x38a   : > { %v1573_v26 = vrot.slane %v1503_v24, %v5081_v7  ;;  %v1577_v27 = vrot.slane %v1503_v24, %v5084_v10  ;;  %v1930_v24 = vld [vmem:[#allocation19 + $0x510] sm:$0xff] }
 0x38c   : > { %1655 = vmatprep.mubr.f32.mxu1 %v1577_v27  ;;  %v1898_v27 = vld [vmem:[#allocation19 + $0x410] sm:$0xff] }
 0x38d   : > { %1656 = vmatmul.mubr.f32.vlgmr.msra.gmra.mxu1 %v1573_v26  ;;  %v1899_v26 = vld [vmem:[#allocation19 + $0x418] sm:$0xff] }
 0x38e   : > { %2449 = vmatpush1.msra.mxu1 %v2248_v31  ;;  %v1835_v31 = vld [vmem:[#allocation19 + $0x218] sm:$0xff] }
 0x38f   : > { %2450 = vmatprep.subr.mxu1 %v2217_v62  ;;  %v1832_v62 = vld [vmem:[#allocation19 + $0x200] sm:$0xff] }
 0x390   : > { %2451 = vmatpush1.msra.mxu1 %v2216_v32  ;;  %v1834_v32 = vld [vmem:[#allocation19 + $0x210] sm:$0xff] }
 0x391   : > { %2452 = vmatprep.subr.mxu1 %v2185_v33  ;;  %v1801_v33 = vld [vmem:[#allocation19 + $0x108] sm:$0xff] }
 0x392   : > { %2453 = vmatpush1.msra.mxu1 %v2184_v34  ;;  %v1803_v34 = vld [vmem:[#allocation19 + $0x118] sm:$0xff] }
 0x393   : > { %2454 = vmatprep.subr.mxu1 %v2153_v35  ;;  %v1800_v35 = vld [vmem:[#allocation19 + $0x100] sm:$0xff] }
 0x394   : > { %2455 = vmatpush1.msra.mxu1 %v2152_v36  ;;  %v1802_v36 = vld [vmem:[#allocation19 + $0x110] sm:$0xff] }
 0x395   : > { %2456 = vmatprep.subr.mxu1 %v2121_v37  ;;  %v1769_v37 = vld [vmem:[#allocation19 + $0x8] sm:$0xff] }
 0x396   : > { %2457 = vmatpush1.msra.mxu1 %v2120_v38  ;;  %v1771_v38 = vld [vmem:[#allocation19 + $0x18] sm:$0xff] }
 0x397   : > { %2458 = vmatprep.subr.mxu1 %v2089_v39  ;;  %v1768_v39 = vld [vmem:[#allocation19] sm:$0xff] }
 0x398   : > { %2459 = vmatpush1.msra.mxu1 %v2088_v40  ;;  %v1770_v40 = vld [vmem:[#allocation19 + $0x10] sm:$0xff] }
 0x399   : > { %2460 = vmatprep.subr.mxu1 %v2057_v41  ;;  %v2253_v41 = vld [vmem:[#allocation19 + $0xf28] sm:$0xff] }
 0x39a   : > { %2461 = vmatpush1.msra.mxu1 %v2056_v42  ;;  %v2255_v42 = vld [vmem:[#allocation19 + $0xf38] sm:$0xff] }
 0x39b   : > { %2462 = vmatprep.subr.mxu1 %v2025_v43  ;;  %v4779_v43 = vmov 0.0  }
 0x39c   : > { %2463 = vmatpush1.msra.mxu1 %v2024_v44  ;;  %2512 = vmatprep.mubr.f32.mxu1 %v4779_v43 }
 0x39d   : > { %2464 = vmatprep.subr.mxu1 %v1993_v45  ;;  %v1696_v45 = vld [vmem:[#allocation17] sm:$0x1] }
 0x39e   : > { %2465 = vmatpush1.msra.mxu1 %v1992_v46 }
 0x39f   : > { %2466 = vmatprep.subr.mxu1 %v1961_v47 }
 0x3a0   : > { %2467 = vmatpush1.msra.mxu1 %v1960_v48 }
 0x3a1   : > { %2468 = vmatprep.subr.mxu1 %v1929_v49 }
 0x3a2   : > { %2469 = vmatpush1.msra.mxu1 %v1928_v50  ;;  %v2252_v50 = vld [vmem:[#allocation19 + $0xf20] sm:$0xff] }
 0x3a3   : > { %2470 = vmatprep.subr.mxu1 %v1897_v51  ;;  %v2254_v51 = vld [vmem:[#allocation19 + $0xf30] sm:$0xff] }
 0x3a4   : > { %2471 = vmatpush1.msra.mxu1 %v1896_v52  ;;  %v2221_v52 = vld [vmem:[#allocation19 + $0xe28] sm:$0xff] }
 0x3a5   : > { %2472 = vmatprep.subr.mxu1 %v1865_v21  ;;  %v1967_v21 = vld [vmem:[#allocation19 + $0x638] sm:$0xff] }
 0x3a6   : > { %2473 = vmatpush1.msra.mxu1 %v1864_v28  ;;  %v1966_v28 = vld [vmem:[#allocation19 + $0x630] sm:$0xff] }
 0x3a7   : > { %2474 = vmatprep.subr.mxu1 %v1833_v30  ;;  %v1935_v30 = vld [vmem:[#allocation19 + $0x538] sm:$0xff] }
 0x3a8   : > { %2475 = vmatpush1.msra.mxu1 %v1832_v62  ;;  %v1934_v62 = vld [vmem:[#allocation19 + $0x530] sm:$0xff] }
 0x3a9   : > { %2476 = vmatprep.subr.mxu1 %v1801_v33  ;;  %v1903_v33 = vld [vmem:[#allocation19 + $0x438] sm:$0xff] }
 0x3aa   : > { %2477 = vmatpush1.msra.mxu1 %v1800_v35  ;;  %v1902_v35 = vld [vmem:[#allocation19 + $0x430] sm:$0xff] }
 0x3ab   : > { %2478 = vmatprep.subr.mxu1 %v1769_v37  ;;  %v1871_v37 = vld [vmem:[#allocation19 + $0x338] sm:$0xff] }
 0x3ac   : > { %2479 = vmatpush1.msra.mxu1 %v1768_v39  ;;  %v1870_v39 = vld [vmem:[#allocation19 + $0x330] sm:$0xff] }
 0x3ad   : > { %2590 = vmatprep.subr.mxu1 %v2253_v41  ;;  %v1839_v41 = vld [vmem:[#allocation19 + $0x238] sm:$0xff] }
 0x44d   : > { %v1657_v56 = vpop.f32.mrf.mxu1 }
 0x44e   : > { %v1658_v57 = vadd.f32 %v1657_v56, %v1584_v54  ;;  %v2220_v54 = vld [vmem:[#allocation19 + $0xe20] sm:$0xff]  ;;  %v2189_v56 = vld [vmem:[#allocation19 + $0xd28] sm:$0xff] }
 0x44f   : > { %v1659_v58 = vpop.f32.mrf.mxu1 }
 0x450   : > { %v1660_v60 = vadd.f32 %v1659_v58, %v1588_v55  ;;  %v1662_v63 = vmax.f32 %v1658_v57, 0.0  ;;  %v2222_v55 = vld [vmem:[#allocation19 + $0xe30] sm:$0xff]  ;;  %v2191_v57 = vld [vmem:[#allocation19 + $0xd38] sm:$0xff]  ;;  %v2188_v58 = vld [vmem:[#allocation19 + $0xd20] sm:$0xff] }
 0x452   : > { %v1663_v61 = vmax.f32 %v1660_v60, 0.0  ;;  %v2190_v60 = vld [vmem:[#allocation19 + $0xd30] sm:$0xff] }
 0x454   : > { %1761 = vmatprep.mubr.f32.mxu0 %v1663_v61  ;;  %v2157_v61 = vld [vmem:[#allocation19 + $0xc28] sm:$0xff] }
 0x455   : > { %1762 = vmatmul.mubr.f32.vlgmr.msra.gmra.mxu0 %v1662_v63  ;;  %v2159_v63 = vld [vmem:[#allocation19 + $0xc38] sm:$0xff] }
 0x456   : > { %2520 = vmatpush1.msra.mxu0 %v2250_v0  ;;  %2583 = vmatprep.mubr.f32.mxu0 %v4779_v43  ;;  %v2156_v0 = vld [vmem:[#allocation19 + $0xc20] sm:$0xff] }
 0x457   : > { %2521 = vmatprep.subr.mxu0 %v2219_v12  ;;  %v2158_v12 = vld [vmem:[#allocation19 + $0xc30] sm:$0xff] }
 0x458   : > { %2522 = vmatpush1.msra.mxu0 %v2218_v1  ;;  %v2125_v1 = vld [vmem:[#allocation19 + $0xb28] sm:$0xff] }
 0x459   : > { %2523 = vmatprep.subr.mxu0 %v2187_v2  ;;  %v2127_v2 = vld [vmem:[#allocation19 + $0xb38] sm:$0xff] }
 0x45a   : > { %2524 = vmatpush1.msra.mxu0 %v2186_v3  ;;  %v2124_v3 = vld [vmem:[#allocation19 + $0xb20] sm:$0xff] }
 0x45b   : > { %2525 = vmatprep.subr.mxu0 %v2155_v5  ;;  %v2126_v5 = vld [vmem:[#allocation19 + $0xb30] sm:$0xff] }
 0x45c   : > { %2526 = vmatpush1.msra.mxu0 %v2154_v9  ;;  %v2093_v9 = vld [vmem:[#allocation19 + $0xa28] sm:$0xff] }
 0x45d   : > { %2527 = vmatprep.subr.mxu0 %v2123_v6  ;;  %v2095_v6 = vld [vmem:[#allocation19 + $0xa38] sm:$0xff] }
 0x45e   : > { %2528 = vmatpush1.msra.mxu0 %v2122_v59  ;;  %v2092_v59 = vld [vmem:[#allocation19 + $0xa20] sm:$0xff] }
 0x45f   : > { %2529 = vmatprep.subr.mxu0 %v2091_v16  ;;  %v2094_v16 = vld [vmem:[#allocation19 + $0xa30] sm:$0xff] }
 0x460   : > { %2530 = vmatpush1.msra.mxu0 %v2090_v14  ;;  %v2061_v14 = vld [vmem:[#allocation19 + $0x928] sm:$0xff] }
 0x461   : > { %2531 = vmatprep.subr.mxu0 %v2059_v11  ;;  %v2063_v11 = vld [vmem:[#allocation19 + $0x938] sm:$0xff] }
 0x462   : > { %2532 = vmatpush1.msra.mxu0 %v2058_v17  ;;  %v2060_v17 = vld [vmem:[#allocation19 + $0x920] sm:$0xff] }
 0x463   : > { %2533 = vmatprep.subr.mxu0 %v2027_v18  ;;  %v2062_v18 = vld [vmem:[#allocation19 + $0x930] sm:$0xff] }
 0x464   : > { %2534 = vmatpush1.msra.mxu0 %v2026_v8  ;;  %v2029_v8 = vld [vmem:[#allocation19 + $0x828] sm:$0xff] }
 0x465   : > { %2535 = vmatprep.subr.mxu0 %v1995_v13  ;;  %v2031_v13 = vld [vmem:[#allocation19 + $0x838] sm:$0xff] }
 0x466   : > { %2536 = vmatpush1.msra.mxu0 %v1994_v15  ;;  %v2028_v15 = vld [vmem:[#allocation19 + $0x820] sm:$0xff] }
 0x467   : > { %2537 = vmatprep.subr.mxu0 %v1963_v20  ;;  %v2030_v20 = vld [vmem:[#allocation19 + $0x830] sm:$0xff] }
 0x468   : > { %2538 = vmatpush1.msra.mxu0 %v1962_v22  ;;  %v1997_v22 = vld [vmem:[#allocation19 + $0x728] sm:$0xff] }
 0x469   : > { %2539 = vmatprep.subr.mxu0 %v1931_v23  ;;  %v1999_v23 = vld [vmem:[#allocation19 + $0x738] sm:$0xff] }
 0x46a   : > { %2540 = vmatpush1.msra.mxu0 %v1930_v24  ;;  %v1996_v24 = vld [vmem:[#allocation19 + $0x720] sm:$0xff] }
 0x46b   : > { %2541 = vmatprep.subr.mxu0 %v1899_v26  ;;  %v1998_v26 = vld [vmem:[#allocation19 + $0x730] sm:$0xff] }
 0x46c   : > { %2542 = vmatpush1.msra.mxu0 %v1898_v27  ;;  %v1965_v27 = vld [vmem:[#allocation19 + $0x628] sm:$0xff] }
 0x46d   : > { %2543 = vmatprep.subr.mxu0 %v1867_v25  ;;  %v1964_v25 = vld [vmem:[#allocation19 + $0x620] sm:$0xff] }
 0x46e   : > { %2544 = vmatpush1.msra.mxu0 %v1866_v29  ;;  %v1933_v29 = vld [vmem:[#allocation19 + $0x528] sm:$0xff] }
 0x46f   : > { %2545 = vmatprep.subr.mxu0 %v1835_v31  ;;  %v1932_v31 = vld [vmem:[#allocation19 + $0x520] sm:$0xff] }
 0x470   : > { %2546 = vmatpush1.msra.mxu0 %v1834_v32  ;;  %v1901_v32 = vld [vmem:[#allocation19 + $0x428] sm:$0xff] }
 0x471   : > { %2547 = vmatprep.subr.mxu0 %v1803_v34  ;;  %v1900_v34 = vld [vmem:[#allocation19 + $0x420] sm:$0xff] }
 0x472   : > { %2548 = vmatpush1.msra.mxu0 %v1802_v36  ;;  %v1869_v36 = vld [vmem:[#allocation19 + $0x328] sm:$0xff] }
 0x473   : > { %2549 = vmatprep.subr.mxu0 %v1771_v38  ;;  %v1868_v38 = vld [vmem:[#allocation19 + $0x320] sm:$0xff] }
 0x474   : > { %2550 = vmatpush1.msra.mxu0 %v1770_v40  ;;  %v1837_v40 = vld [vmem:[#allocation19 + $0x228] sm:$0xff] }
 0x475   : > { %2661 = vmatprep.subr.mxu0 %v2255_v42  ;;  %v1836_v42 = vld [vmem:[#allocation19 + $0x220] sm:$0xff] }
 0x515   : > { %v4146_v44 = vpop.f32.mrf.mxu0 }
 0x517   : > { %v4147_v46 = vpop.f32.mrf.mxu0 }
 0x518   : > { %v4148_v47 = vadd.f32 %v4147_v46, %v4146_v44  ;;  %v1838_v44 = vld [vmem:[#allocation19 + $0x230] sm:$0xff]  ;;  %v1807_v46 = vld [vmem:[#allocation19 + $0x138] sm:$0xff] }
 0x51a   : > { %v1764_v48 = vadd.f32 %v4148_v47, %v1696_v45  ;;  %v1805_v45 = vld [vmem:[#allocation19 + $0x128] sm:$0xff]  ;;  %v1804_v47 = vld [vmem:[#allocation19 + $0x120] sm:$0xff] }
 0x51c   : > { %v5137_v49 = vmax.f32 %v1764_v48, 0.0  ;;  %v1806_v48 = vld [vmem:[#allocation19 + $0x130] sm:$0xff] }
 0x51e   : > { %2513 = vmatmul.mubr.f32.vlgmr.msra.gmra.mxu1 %v5137_v49  ;;  %2584 = vmatmul.mubr.f32.vlgmr.msra.gmra.mxu0 %v5137_v49 }
 0x51f   : > { %2591 = vmatpush1.msra.mxu1 %v2252_v50  ;;  %2662 = vmatpush1.msra.mxu0 %v2254_v51  ;;  %v1773_v50 = vld [vmem:[#allocation19 + $0x28] sm:$0xff]  ;;  %v1775_v51 = vld [vmem:[#allocation19 + $0x38] sm:$0xff] }
 0x520   : > { %2592 = vmatprep.subr.mxu1 %v2221_v52  ;;  %2663 = vmatprep.subr.mxu0 %v2223_v53  ;;  %v1772_v52 = vld [vmem:[#allocation19 + $0x20] sm:$0xff]  ;;  %v1774_v53 = vld [vmem:[#allocation19 + $0x30] sm:$0xff] }
 0x521   : > { %2593 = vmatpush1.msra.mxu1 %v2220_v54  ;;  %2664 = vmatpush1.msra.mxu0 %v2222_v55  ;;  %v2257_v54 = vld [vmem:[#allocation19 + $0xf48] sm:$0xff]  ;;  %v2259_v55 = vld [vmem:[#allocation19 + $0xf58] sm:$0xff] }
 0x522   : > { %2594 = vmatprep.subr.mxu1 %v2189_v56  ;;  %2665 = vmatprep.subr.mxu0 %v2191_v57  ;;  %v2256_v56 = vld [vmem:[#allocation19 + $0xf40] sm:$0xff]  ;;  %v2258_v57 = vld [vmem:[#allocation19 + $0xf50] sm:$0xff] }
 0x523   : > { %2595 = vmatpush1.msra.mxu1 %v2188_v58  ;;  %2666 = vmatpush1.msra.mxu0 %v2190_v60  ;;  %v2225_v58 = vld [vmem:[#allocation19 + $0xe48] sm:$0xff]  ;;  %v2227_v60 = vld [vmem:[#allocation19 + $0xe58] sm:$0xff] }
 0x524   : > { %2596 = vmatprep.subr.mxu1 %v2157_v61  ;;  %2667 = vmatprep.subr.mxu0 %v2159_v63  ;;  %v2224_v61 = vld [vmem:[#allocation19 + $0xe40] sm:$0xff]  ;;  %v2226_v63 = vld [vmem:[#allocation19 + $0xe50] sm:$0xff] }
 0x525   : > { %2597 = vmatpush1.msra.mxu1 %v2156_v0  ;;  %2668 = vmatpush1.msra.mxu0 %v2158_v12  ;;  %v2193_v0 = vld [vmem:[#allocation19 + $0xd48] sm:$0xff]  ;;  %v2195_v12 = vld [vmem:[#allocation19 + $0xd58] sm:$0xff] }
 0x526   : > { %2598 = vmatprep.subr.mxu1 %v2125_v1  ;;  %2669 = vmatprep.subr.mxu0 %v2127_v2  ;;  %v2192_v1 = vld [vmem:[#allocation19 + $0xd40] sm:$0xff]  ;;  %v2194_v2 = vld [vmem:[#allocation19 + $0xd50] sm:$0xff] }
 0x527   : > { %2599 = vmatpush1.msra.mxu1 %v2124_v3  ;;  %2670 = vmatpush1.msra.mxu0 %v2126_v5  ;;  %v2161_v3 = vld [vmem:[#allocation19 + $0xc48] sm:$0xff]  ;;  %v2163_v5 = vld [vmem:[#allocation19 + $0xc58] sm:$0xff] }
 0x528   : > { %2600 = vmatprep.subr.mxu1 %v2093_v9  ;;  %2671 = vmatprep.subr.mxu0 %v2095_v6  ;;  %v2160_v9 = vld [vmem:[#allocation19 + $0xc40] sm:$0xff]  ;;  %v2162_v6 = vld [vmem:[#allocation19 + $0xc50] sm:$0xff] }
 0x529   : > { %2601 = vmatpush1.msra.mxu1 %v2092_v59  ;;  %2672 = vmatpush1.msra.mxu0 %v2094_v16  ;;  %v2129_v59 = vld [vmem:[#allocation19 + $0xb48] sm:$0xff]  ;;  %v2131_v16 = vld [vmem:[#allocation19 + $0xb58] sm:$0xff] }
 0x52a   : > { %2602 = vmatprep.subr.mxu1 %v2061_v14  ;;  %2673 = vmatprep.subr.mxu0 %v2063_v11  ;;  %v2128_v14 = vld [vmem:[#allocation19 + $0xb40] sm:$0xff]  ;;  %v2130_v11 = vld [vmem:[#allocation19 + $0xb50] sm:$0xff] }
 0x52b   : > { %2603 = vmatpush1.msra.mxu1 %v2060_v17  ;;  %2674 = vmatpush1.msra.mxu0 %v2062_v18  ;;  %v2097_v17 = vld [vmem:[#allocation19 + $0xa48] sm:$0xff]  ;;  %v2099_v18 = vld [vmem:[#allocation19 + $0xa58] sm:$0xff] }
 0x52c   : > { %2604 = vmatprep.subr.mxu1 %v2029_v8  ;;  %2675 = vmatprep.subr.mxu0 %v2031_v13  ;;  %v2096_v8 = vld [vmem:[#allocation19 + $0xa40] sm:$0xff]  ;;  %v2098_v13 = vld [vmem:[#allocation19 + $0xa50] sm:$0xff] }
 0x52d   : > { %2605 = vmatpush1.msra.mxu1 %v2028_v15  ;;  %2676 = vmatpush1.msra.mxu0 %v2030_v20  ;;  %v2065_v15 = vld [vmem:[#allocation19 + $0x948] sm:$0xff]  ;;  %v2067_v20 = vld [vmem:[#allocation19 + $0x958] sm:$0xff] }
 0x52e   : > { %2606 = vmatprep.subr.mxu1 %v1997_v22  ;;  %2677 = vmatprep.subr.mxu0 %v1999_v23  ;;  %v2064_v22 = vld [vmem:[#allocation19 + $0x940] sm:$0xff]  ;;  %v2066_v23 = vld [vmem:[#allocation19 + $0x950] sm:$0xff] }
 0x52f   : > { %2607 = vmatpush1.msra.mxu1 %v1996_v24  ;;  %2678 = vmatpush1.msra.mxu0 %v1998_v26  ;;  %v2033_v24 = vld [vmem:[#allocation19 + $0x848] sm:$0xff]  ;;  %v2035_v26 = vld [vmem:[#allocation19 + $0x858] sm:$0xff] }
 0x530   : > { %2608 = vmatprep.subr.mxu1 %v1965_v27  ;;  %2679 = vmatprep.subr.mxu0 %v1967_v21  ;;  %v2032_v27 = vld [vmem:[#allocation19 + $0x840] sm:$0xff]  ;;  %v2034_v21 = vld [vmem:[#allocation19 + $0x850] sm:$0xff] }
 0x531   : > { %2609 = vmatpush1.msra.mxu1 %v1964_v25  ;;  %2680 = vmatpush1.msra.mxu0 %v1966_v28  ;;  %v2001_v25 = vld [vmem:[#allocation19 + $0x748] sm:$0xff]  ;;  %v2003_v28 = vld [vmem:[#allocation19 + $0x758] sm:$0xff] }
 0x532   : > { %2610 = vmatprep.subr.mxu1 %v1933_v29  ;;  %2681 = vmatprep.subr.mxu0 %v1935_v30  ;;  %v2000_v29 = vld [vmem:[#allocation19 + $0x740] sm:$0xff]  ;;  %v2002_v30 = vld [vmem:[#allocation19 + $0x750] sm:$0xff] }
 0x533   : > { %2611 = vmatpush1.msra.mxu1 %v1932_v31  ;;  %2682 = vmatpush1.msra.mxu0 %v1934_v62  ;;  %v1969_v31 = vld [vmem:[#allocation19 + $0x648] sm:$0xff]  ;;  %v1971_v62 = vld [vmem:[#allocation19 + $0x658] sm:$0xff] }
 0x534   : > { %2612 = vmatprep.subr.mxu1 %v1901_v32  ;;  %2683 = vmatprep.subr.mxu0 %v1903_v33  ;;  %v1968_v32 = vld [vmem:[#allocation19 + $0x640] sm:$0xff]  ;;  %v1970_v33 = vld [vmem:[#allocation19 + $0x650] sm:$0xff] }
 0x535   : > { %2613 = vmatpush1.msra.mxu1 %v1900_v34  ;;  %2684 = vmatpush1.msra.mxu0 %v1902_v35  ;;  %v1937_v34 = vld [vmem:[#allocation19 + $0x548] sm:$0xff]  ;;  %v1939_v35 = vld [vmem:[#allocation19 + $0x558] sm:$0xff] }
 0x536   : > { %2614 = vmatprep.subr.mxu1 %v1869_v36  ;;  %2685 = vmatprep.subr.mxu0 %v1871_v37  ;;  %v1936_v36 = vld [vmem:[#allocation19 + $0x540] sm:$0xff]  ;;  %v1938_v37 = vld [vmem:[#allocation19 + $0x550] sm:$0xff] }
 0x537   : > { %2615 = vmatpush1.msra.mxu1 %v1868_v38  ;;  %2686 = vmatpush1.msra.mxu0 %v1870_v39  ;;  %v1905_v38 = vld [vmem:[#allocation19 + $0x448] sm:$0xff]  ;;  %v1907_v39 = vld [vmem:[#allocation19 + $0x458] sm:$0xff] }
 0x538   : > { %2616 = vmatprep.subr.mxu1 %v1837_v40  ;;  %2687 = vmatprep.subr.mxu0 %v1839_v41  ;;  %v1904_v40 = vld [vmem:[#allocation19 + $0x440] sm:$0xff]  ;;  %v1906_v41 = vld [vmem:[#allocation19 + $0x450] sm:$0xff] }
 0x539   : > { %2617 = vmatpush1.msra.mxu1 %v1836_v42  ;;  %2688 = vmatpush1.msra.mxu0 %v1838_v44  ;;  %v1873_v42 = vld [vmem:[#allocation19 + $0x348] sm:$0xff]  ;;  %v1875_v44 = vld [vmem:[#allocation19 + $0x358] sm:$0xff] }
 0x53a   : > { %2618 = vmatprep.subr.mxu1 %v1805_v45  ;;  %2689 = vmatprep.subr.mxu0 %v1807_v46  ;;  %v1872_v45 = vld [vmem:[#allocation19 + $0x340] sm:$0xff]  ;;  %v1874_v46 = vld [vmem:[#allocation19 + $0x350] sm:$0xff] }
 0x53b   : > { %2619 = vmatpush1.msra.mxu1 %v1804_v47  ;;  %2690 = vmatpush1.msra.mxu0 %v1806_v48  ;;  %v1841_v47 = vld [vmem:[#allocation19 + $0x248] sm:$0xff]  ;;  %v1843_v48 = vld [vmem:[#allocation19 + $0x258] sm:$0xff] }
 0x53c   : > { %2620 = vmatprep.subr.mxu1 %v1773_v50  ;;  %2691 = vmatprep.subr.mxu0 %v1775_v51  ;;  %v1840_v50 = vld [vmem:[#allocation19 + $0x240] sm:$0xff]  ;;  %v1842_v51 = vld [vmem:[#allocation19 + $0x250] sm:$0xff] }
 0x53d   : > { %2621 = vmatpush1.msra.mxu1 %v1772_v52  ;;  %2654 = vmatprep.mubr.f32.mxu1 %v4779_v43  ;;  %v1809_v52 = vld [vmem:[#allocation19 + $0x148] sm:$0xff] }
 0x53e   : > { %2692 = vmatpush1.msra.mxu0 %v1774_v53  ;;  %2725 = vmatprep.mubr.f32.mxu0 %v4779_v43  ;;  %v1811_v53 = vld [vmem:[#allocation19 + $0x158] sm:$0xff] }
 0x53f   : > { %2655 = vmatmul.mubr.f32.vlgmr.msra.gmra.mxu1 %v5137_v49  ;;  %2726 = vmatmul.mubr.f32.vlgmr.msra.gmra.mxu0 %v5137_v49 }
 0x540   : > { %2732 = vmatprep.subr.mxu1 %v2257_v54  ;;  %2803 = vmatprep.subr.mxu0 %v2259_v55  ;;  %v1808_v54 = vld [vmem:[#allocation19 + $0x140] sm:$0xff]  ;;  %v1810_v55 = vld [vmem:[#allocation19 + $0x150] sm:$0xff] }
 0x541   : > { %2733 = vmatpush1.msra.mxu1 %v2256_v56  ;;  %2804 = vmatpush1.msra.mxu0 %v2258_v57  ;;  %v1777_v56 = vld [vmem:[#allocation19 + $0x48] sm:$0xff]  ;;  %v1779_v57 = vld [vmem:[#allocation19 + $0x58] sm:$0xff] }
 0x542   : > { %2734 = vmatprep.subr.mxu1 %v2225_v58  ;;  %2805 = vmatprep.subr.mxu0 %v2227_v60  ;;  %v1776_v58 = vld [vmem:[#allocation19 + $0x40] sm:$0xff]  ;;  %v1778_v60 = vld [vmem:[#allocation19 + $0x50] sm:$0xff] }
 0x543   : > { %2735 = vmatpush1.msra.mxu1 %v2224_v61  ;;  %2806 = vmatpush1.msra.mxu0 %v2226_v63  ;;  %v2261_v61 = vld [vmem:[#allocation19 + $0xf68] sm:$0xff]  ;;  %v2263_v63 = vld [vmem:[#allocation19 + $0xf78] sm:$0xff] }
 0x544   : > { %2736 = vmatprep.subr.mxu1 %v2193_v0  ;;  %2807 = vmatprep.subr.mxu0 %v2195_v12  ;;  %v2260_v0 = vld [vmem:[#allocation19 + $0xf60] sm:$0xff]  ;;  %v2262_v12 = vld [vmem:[#allocation19 + $0xf70] sm:$0xff] }
 0x545   : > { %2737 = vmatpush1.msra.mxu1 %v2192_v1  ;;  %2808 = vmatpush1.msra.mxu0 %v2194_v2  ;;  %v2229_v1 = vld [vmem:[#allocation19 + $0xe68] sm:$0xff]  ;;  %v2231_v2 = vld [vmem:[#allocation19 + $0xe78] sm:$0xff] }
 0x546   : > { %2738 = vmatprep.subr.mxu1 %v2161_v3  ;;  %2809 = vmatprep.subr.mxu0 %v2163_v5  ;;  %v2228_v3 = vld [vmem:[#allocation19 + $0xe60] sm:$0xff]  ;;  %v2230_v5 = vld [vmem:[#allocation19 + $0xe70] sm:$0xff] }
 0x547   : > { %2739 = vmatpush1.msra.mxu1 %v2160_v9  ;;  %2810 = vmatpush1.msra.mxu0 %v2162_v6  ;;  %v2197_v9 = vld [vmem:[#allocation19 + $0xd68] sm:$0xff]  ;;  %v2199_v6 = vld [vmem:[#allocation19 + $0xd78] sm:$0xff] }
 0x548   : > { %2740 = vmatprep.subr.mxu1 %v2129_v59  ;;  %2811 = vmatprep.subr.mxu0 %v2131_v16  ;;  %v2196_v59 = vld [vmem:[#allocation19 + $0xd60] sm:$0xff]  ;;  %v2198_v16 = vld [vmem:[#allocation19 + $0xd70] sm:$0xff] }
 0x549   : > { %2741 = vmatpush1.msra.mxu1 %v2128_v14  ;;  %2812 = vmatpush1.msra.mxu0 %v2130_v11  ;;  %v2165_v14 = vld [vmem:[#allocation19 + $0xc68] sm:$0xff]  ;;  %v2167_v11 = vld [vmem:[#allocation19 + $0xc78] sm:$0xff] }
 0x54a   : > { %2742 = vmatprep.subr.mxu1 %v2097_v17  ;;  %2813 = vmatprep.subr.mxu0 %v2099_v18  ;;  %v2164_v17 = vld [vmem:[#allocation19 + $0xc60] sm:$0xff]  ;;  %v2166_v18 = vld [vmem:[#allocation19 + $0xc70] sm:$0xff] }
 0x54b   : > { %2743 = vmatpush1.msra.mxu1 %v2096_v8  ;;  %2814 = vmatpush1.msra.mxu0 %v2098_v13  ;;  %v2133_v8 = vld [vmem:[#allocation19 + $0xb68] sm:$0xff]  ;;  %v2135_v13 = vld [vmem:[#allocation19 + $0xb78] sm:$0xff] }
 0x54c   : > { %2744 = vmatprep.subr.mxu1 %v2065_v15  ;;  %2815 = vmatprep.subr.mxu0 %v2067_v20  ;;  %v2132_v15 = vld [vmem:[#allocation19 + $0xb60] sm:$0xff]  ;;  %v2134_v20 = vld [vmem:[#allocation19 + $0xb70] sm:$0xff] }
 0x54d   : > { %2745 = vmatpush1.msra.mxu1 %v2064_v22  ;;  %2816 = vmatpush1.msra.mxu0 %v2066_v23  ;;  %v2101_v22 = vld [vmem:[#allocation19 + $0xa68] sm:$0xff]  ;;  %v2103_v23 = vld [vmem:[#allocation19 + $0xa78] sm:$0xff] }
 0x54e   : > { %2746 = vmatprep.subr.mxu1 %v2033_v24  ;;  %2817 = vmatprep.subr.mxu0 %v2035_v26  ;;  %v2100_v24 = vld [vmem:[#allocation19 + $0xa60] sm:$0xff]  ;;  %v2102_v26 = vld [vmem:[#allocation19 + $0xa70] sm:$0xff] }
 0x54f   : > { %2747 = vmatpush1.msra.mxu1 %v2032_v27  ;;  %2818 = vmatpush1.msra.mxu0 %v2034_v21  ;;  %v2069_v27 = vld [vmem:[#allocation19 + $0x968] sm:$0xff]  ;;  %v2071_v21 = vld [vmem:[#allocation19 + $0x978] sm:$0xff] }
 0x550   : > { %2748 = vmatprep.subr.mxu1 %v2001_v25  ;;  %2819 = vmatprep.subr.mxu0 %v2003_v28  ;;  %v2068_v25 = vld [vmem:[#allocation19 + $0x960] sm:$0xff]  ;;  %v2070_v28 = vld [vmem:[#allocation19 + $0x970] sm:$0xff] }
 0x551   : > { %2749 = vmatpush1.msra.mxu1 %v2000_v29  ;;  %2820 = vmatpush1.msra.mxu0 %v2002_v30  ;;  %v2037_v29 = vld [vmem:[#allocation19 + $0x868] sm:$0xff]  ;;  %v2039_v30 = vld [vmem:[#allocation19 + $0x878] sm:$0xff] }
 0x552   : > { %2750 = vmatprep.subr.mxu1 %v1969_v31  ;;  %2821 = vmatprep.subr.mxu0 %v1971_v62  ;;  %v2036_v31 = vld [vmem:[#allocation19 + $0x860] sm:$0xff]  ;;  %v2038_v62 = vld [vmem:[#allocation19 + $0x870] sm:$0xff] }
 0x553   : > { %2751 = vmatpush1.msra.mxu1 %v1968_v32  ;;  %2822 = vmatpush1.msra.mxu0 %v1970_v33  ;;  %v2005_v32 = vld [vmem:[#allocation19 + $0x768] sm:$0xff]  ;;  %v2007_v33 = vld [vmem:[#allocation19 + $0x778] sm:$0xff] }
 0x554   : > { %2752 = vmatprep.subr.mxu1 %v1937_v34  ;;  %2823 = vmatprep.subr.mxu0 %v1939_v35  ;;  %v2004_v34 = vld [vmem:[#allocation19 + $0x760] sm:$0xff]  ;;  %v2006_v35 = vld [vmem:[#allocation19 + $0x770] sm:$0xff] }
 0x555   : > { %2753 = vmatpush1.msra.mxu1 %v1936_v36  ;;  %2824 = vmatpush1.msra.mxu0 %v1938_v37  ;;  %v1973_v36 = vld [vmem:[#allocation19 + $0x668] sm:$0xff]  ;;  %v1975_v37 = vld [vmem:[#allocation19 + $0x678] sm:$0xff] }
 0x556   : > { %2754 = vmatprep.subr.mxu1 %v1905_v38  ;;  %2825 = vmatprep.subr.mxu0 %v1907_v39  ;;  %v1972_v38 = vld [vmem:[#allocation19 + $0x660] sm:$0xff]  ;;  %v1974_v39 = vld [vmem:[#allocation19 + $0x670] sm:$0xff] }
 0x557   : > { %2755 = vmatpush1.msra.mxu1 %v1904_v40  ;;  %2826 = vmatpush1.msra.mxu0 %v1906_v41  ;;  %v1941_v40 = vld [vmem:[#allocation19 + $0x568] sm:$0xff]  ;;  %v1943_v41 = vld [vmem:[#allocation19 + $0x578] sm:$0xff] }
 0x558   : > { %2756 = vmatprep.subr.mxu1 %v1873_v42  ;;  %2827 = vmatprep.subr.mxu0 %v1875_v44  ;;  %v1940_v42 = vld [vmem:[#allocation19 + $0x560] sm:$0xff]  ;;  %v1942_v44 = vld [vmem:[#allocation19 + $0x570] sm:$0xff] }
 0x559   : > { %2757 = vmatpush1.msra.mxu1 %v1872_v45  ;;  %2828 = vmatpush1.msra.mxu0 %v1874_v46  ;;  %v1909_v45 = vld [vmem:[#allocation19 + $0x468] sm:$0xff]  ;;  %v1911_v46 = vld [vmem:[#allocation19 + $0x478] sm:$0xff] }
 0x55a   : > { %2758 = vmatprep.subr.mxu1 %v1841_v47  ;;  %2829 = vmatprep.subr.mxu0 %v1843_v48  ;;  %v1908_v47 = vld [vmem:[#allocation19 + $0x460] sm:$0xff]  ;;  %v1910_v48 = vld [vmem:[#allocation19 + $0x470] sm:$0xff] }
 0x55b   : > { %2759 = vmatpush1.msra.mxu1 %v1840_v50  ;;  %2830 = vmatpush1.msra.mxu0 %v1842_v51  ;;  %v1877_v50 = vld [vmem:[#allocation19 + $0x368] sm:$0xff]  ;;  %v1879_v51 = vld [vmem:[#allocation19 + $0x378] sm:$0xff] }
 0x55c   : > { %2760 = vmatprep.subr.mxu1 %v1809_v52  ;;  %2831 = vmatprep.subr.mxu0 %v1811_v53  ;;  %v1876_v52 = vld [vmem:[#allocation19 + $0x360] sm:$0xff]  ;;  %v1878_v53 = vld [vmem:[#allocation19 + $0x370] sm:$0xff] }
 0x55d   : > { %2761 = vmatpush1.msra.mxu1 %v1808_v54  ;;  %2832 = vmatpush1.msra.mxu0 %v1810_v55  ;;  %v1845_v54 = vld [vmem:[#allocation19 + $0x268] sm:$0xff]  ;;  %v1847_v55 = vld [vmem:[#allocation19 + $0x278] sm:$0xff] }
 0x55e   : > { %2762 = vmatprep.subr.mxu1 %v1777_v56  ;;  %2833 = vmatprep.subr.mxu0 %v1779_v57  ;;  %v1844_v56 = vld [vmem:[#allocation19 + $0x260] sm:$0xff]  ;;  %v1846_v57 = vld [vmem:[#allocation19 + $0x270] sm:$0xff] }
 0x55f   : > { %2763 = vmatpush1.msra.mxu1 %v1776_v58  ;;  %2796 = vmatprep.mubr.f32.mxu1 %v4779_v43  ;;  %v1813_v58 = vld [vmem:[#allocation19 + $0x168] sm:$0xff] }
 0x560   : > { %2834 = vmatpush1.msra.mxu0 %v1778_v60  ;;  %2867 = vmatprep.mubr.f32.mxu0 %v4779_v43  ;;  %v1815_v60 = vld [vmem:[#allocation19 + $0x178] sm:$0xff] }
 0x561   : > { %2797 = vmatmul.mubr.f32.vlgmr.msra.gmra.mxu1 %v5137_v49  ;;  %2868 = vmatmul.mubr.f32.vlgmr.msra.gmra.mxu0 %v5137_v49 }
 0x562   : > { %2874 = vmatprep.subr.mxu1 %v2261_v61  ;;  %2945 = vmatprep.subr.mxu0 %v2263_v63  ;;  %v1812_v61 = vld [vmem:[#allocation19 + $0x160] sm:$0xff]  ;;  %v1814_v63 = vld [vmem:[#allocation19 + $0x170] sm:$0xff] }
 0x563   : > { %2875 = vmatpush1.msra.mxu1 %v2260_v0  ;;  %2946 = vmatpush1.msra.mxu0 %v2262_v12  ;;  %v1781_v0 = vld [vmem:[#allocation19 + $0x68] sm:$0xff]  ;;  %v1783_v12 = vld [vmem:[#allocation19 + $0x78] sm:$0xff] }
 0x564   : > { %2876 = vmatprep.subr.mxu1 %v2229_v1  ;;  %2947 = vmatprep.subr.mxu0 %v2231_v2  ;;  %v1780_v1 = vld [vmem:[#allocation19 + $0x60] sm:$0xff]  ;;  %v1782_v2 = vld [vmem:[#allocation19 + $0x70] sm:$0xff] }
 0x565   : > { %2877 = vmatpush1.msra.mxu1 %v2228_v3  ;;  %2948 = vmatpush1.msra.mxu0 %v2230_v5  ;;  %v2265_v3 = vld [vmem:[#allocation19 + $0xf88] sm:$0xff]  ;;  %v2267_v5 = vld [vmem:[#allocation19 + $0xf98] sm:$0xff] }
 0x566   : > { %2878 = vmatprep.subr.mxu1 %v2197_v9  ;;  %2949 = vmatprep.subr.mxu0 %v2199_v6  ;;  %v2264_v9 = vld [vmem:[#allocation19 + $0xf80] sm:$0xff]  ;;  %v2266_v6 = vld [vmem:[#allocation19 + $0xf90] sm:$0xff] }
 0x567   : > { %2879 = vmatpush1.msra.mxu1 %v2196_v59  ;;  %2950 = vmatpush1.msra.mxu0 %v2198_v16  ;;  %v2233_v59 = vld [vmem:[#allocation19 + $0xe88] sm:$0xff]  ;;  %v2235_v16 = vld [vmem:[#allocation19 + $0xe98] sm:$0xff] }
 0x568   : > { %2880 = vmatprep.subr.mxu1 %v2165_v14  ;;  %2951 = vmatprep.subr.mxu0 %v2167_v11  ;;  %v2232_v14 = vld [vmem:[#allocation19 + $0xe80] sm:$0xff]  ;;  %v2234_v11 = vld [vmem:[#allocation19 + $0xe90] sm:$0xff] }
 0x569   : > { %2881 = vmatpush1.msra.mxu1 %v2164_v17  ;;  %2952 = vmatpush1.msra.mxu0 %v2166_v18  ;;  %v2201_v17 = vld [vmem:[#allocation19 + $0xd88] sm:$0xff]  ;;  %v2203_v18 = vld [vmem:[#allocation19 + $0xd98] sm:$0xff] }
 0x56a   : > { %2882 = vmatprep.subr.mxu1 %v2133_v8  ;;  %2953 = vmatprep.subr.mxu0 %v2135_v13  ;;  %v2200_v8 = vld [vmem:[#allocation19 + $0xd80] sm:$0xff]  ;;  %v2202_v13 = vld [vmem:[#allocation19 + $0xd90] sm:$0xff] }
 0x56b   : > { %2883 = vmatpush1.msra.mxu1 %v2132_v15  ;;  %2954 = vmatpush1.msra.mxu0 %v2134_v20  ;;  %v2169_v15 = vld [vmem:[#allocation19 + $0xc88] sm:$0xff]  ;;  %v2171_v20 = vld [vmem:[#allocation19 + $0xc98] sm:$0xff] }
 0x56c   : > { %2884 = vmatprep.subr.mxu1 %v2101_v22  ;;  %2955 = vmatprep.subr.mxu0 %v2103_v23  ;;  %v2168_v22 = vld [vmem:[#allocation19 + $0xc80] sm:$0xff]  ;;  %v2170_v23 = vld [vmem:[#allocation19 + $0xc90] sm:$0xff] }
 0x56d   : > { %2885 = vmatpush1.msra.mxu1 %v2100_v24  ;;  %2956 = vmatpush1.msra.mxu0 %v2102_v26  ;;  %v2137_v24 = vld [vmem:[#allocation19 + $0xb88] sm:$0xff]  ;;  %v2139_v26 = vld [vmem:[#allocation19 + $0xb98] sm:$0xff] }
 0x56e   : > { %2886 = vmatprep.subr.mxu1 %v2069_v27  ;;  %2957 = vmatprep.subr.mxu0 %v2071_v21  ;;  %v2136_v27 = vld [vmem:[#allocation19 + $0xb80] sm:$0xff]  ;;  %v2138_v21 = vld [vmem:[#allocation19 + $0xb90] sm:$0xff] }
 0x56f   : > { %2887 = vmatpush1.msra.mxu1 %v2068_v25  ;;  %2958 = vmatpush1.msra.mxu0 %v2070_v28  ;;  %v2105_v25 = vld [vmem:[#allocation19 + $0xa88] sm:$0xff]  ;;  %v2107_v28 = vld [vmem:[#allocation19 + $0xa98] sm:$0xff] }
 0x570   : > { %2888 = vmatprep.subr.mxu1 %v2037_v29  ;;  %2959 = vmatprep.subr.mxu0 %v2039_v30  ;;  %v2104_v29 = vld [vmem:[#allocation19 + $0xa80] sm:$0xff]  ;;  %v2106_v30 = vld [vmem:[#allocation19 + $0xa90] sm:$0xff] }
 0x571   : > { %2889 = vmatpush1.msra.mxu1 %v2036_v31  ;;  %2960 = vmatpush1.msra.mxu0 %v2038_v62  ;;  %v2073_v31 = vld [vmem:[#allocation19 + $0x988] sm:$0xff]  ;;  %v2075_v62 = vld [vmem:[#allocation19 + $0x998] sm:$0xff] }
 0x572   : > { %2890 = vmatprep.subr.mxu1 %v2005_v32  ;;  %2961 = vmatprep.subr.mxu0 %v2007_v33  ;;  %v2072_v32 = vld [vmem:[#allocation19 + $0x980] sm:$0xff]  ;;  %v2074_v33 = vld [vmem:[#allocation19 + $0x990] sm:$0xff] }
 0x573   : > { %2891 = vmatpush1.msra.mxu1 %v2004_v34  ;;  %2962 = vmatpush1.msra.mxu0 %v2006_v35  ;;  %v2041_v34 = vld [vmem:[#allocation19 + $0x888] sm:$0xff]  ;;  %v2043_v35 = vld [vmem:[#allocation19 + $0x898] sm:$0xff] }
 0x574   : > { %2892 = vmatprep.subr.mxu1 %v1973_v36  ;;  %2963 = vmatprep.subr.mxu0 %v1975_v37  ;;  %v2040_v36 = vld [vmem:[#allocation19 + $0x880] sm:$0xff]  ;;  %v2042_v37 = vld [vmem:[#allocation19 + $0x890] sm:$0xff] }
 0x575   : > { %2893 = vmatpush1.msra.mxu1 %v1972_v38  ;;  %2964 = vmatpush1.msra.mxu0 %v1974_v39  ;;  %v2009_v38 = vld [vmem:[#allocation19 + $0x788] sm:$0xff]  ;;  %v2011_v39 = vld [vmem:[#allocation19 + $0x798] sm:$0xff] }
 0x576   : > { %2894 = vmatprep.subr.mxu1 %v1941_v40  ;;  %2965 = vmatprep.subr.mxu0 %v1943_v41  ;;  %v2008_v40 = vld [vmem:[#allocation19 + $0x780] sm:$0xff]  ;;  %v2010_v41 = vld [vmem:[#allocation19 + $0x790] sm:$0xff] }
 0x577   : > { %2895 = vmatpush1.msra.mxu1 %v1940_v42  ;;  %2966 = vmatpush1.msra.mxu0 %v1942_v44  ;;  %v1977_v42 = vld [vmem:[#allocation19 + $0x688] sm:$0xff]  ;;  %v1979_v44 = vld [vmem:[#allocation19 + $0x698] sm:$0xff] }
 0x578   : > { %2896 = vmatprep.subr.mxu1 %v1909_v45  ;;  %2967 = vmatprep.subr.mxu0 %v1911_v46  ;;  %v1976_v45 = vld [vmem:[#allocation19 + $0x680] sm:$0xff]  ;;  %v1978_v46 = vld [vmem:[#allocation19 + $0x690] sm:$0xff] }
 0x579   : > { %2897 = vmatpush1.msra.mxu1 %v1908_v47  ;;  %2968 = vmatpush1.msra.mxu0 %v1910_v48  ;;  %v1945_v47 = vld [vmem:[#allocation19 + $0x588] sm:$0xff]  ;;  %v1947_v48 = vld [vmem:[#allocation19 + $0x598] sm:$0xff] }
 0x57a   : > { %2898 = vmatprep.subr.mxu1 %v1877_v50  ;;  %2969 = vmatprep.subr.mxu0 %v1879_v51  ;;  %v1944_v50 = vld [vmem:[#allocation19 + $0x580] sm:$0xff]  ;;  %v1946_v51 = vld [vmem:[#allocation19 + $0x590] sm:$0xff] }
 0x57b   : > { %2899 = vmatpush1.msra.mxu1 %v1876_v52  ;;  %2970 = vmatpush1.msra.mxu0 %v1878_v53  ;;  %v1913_v52 = vld [vmem:[#allocation19 + $0x488] sm:$0xff]  ;;  %v1915_v53 = vld [vmem:[#allocation19 + $0x498] sm:$0xff] }
 0x57c   : > { %2900 = vmatprep.subr.mxu1 %v1845_v54  ;;  %2971 = vmatprep.subr.mxu0 %v1847_v55  ;;  %v1912_v54 = vld [vmem:[#allocation19 + $0x480] sm:$0xff]  ;;  %v1914_v55 = vld [vmem:[#allocation19 + $0x490] sm:$0xff] }
 0x57d   : > { %2901 = vmatpush1.msra.mxu1 %v1844_v56  ;;  %2972 = vmatpush1.msra.mxu0 %v1846_v57  ;;  %v1881_v56 = vld [vmem:[#allocation19 + $0x388] sm:$0xff]  ;;  %v1883_v57 = vld [vmem:[#allocation19 + $0x398] sm:$0xff] }
 0x57e   : > { %2902 = vmatprep.subr.mxu1 %v1813_v58  ;;  %2973 = vmatprep.subr.mxu0 %v1815_v60  ;;  %v1880_v58 = vld [vmem:[#allocation19 + $0x380] sm:$0xff]  ;;  %v1882_v60 = vld [vmem:[#allocation19 + $0x390] sm:$0xff] }
 0x57f   : > { %2903 = vmatpush1.msra.mxu1 %v1812_v61  ;;  %2974 = vmatpush1.msra.mxu0 %v1814_v63  ;;  %v1849_v61 = vld [vmem:[#allocation19 + $0x288] sm:$0xff]  ;;  %v1851_v63 = vld [vmem:[#allocation19 + $0x298] sm:$0xff] }
 0x580   : > { %2904 = vmatprep.subr.mxu1 %v1781_v0  ;;  %2975 = vmatprep.subr.mxu0 %v1783_v12  ;;  %v1848_v0 = vld [vmem:[#allocation19 + $0x280] sm:$0xff]  ;;  %v1850_v12 = vld [vmem:[#allocation19 + $0x290] sm:$0xff] }
 0x581   : > { %2905 = vmatpush1.msra.mxu1 %v1780_v1  ;;  %2938 = vmatprep.mubr.f32.mxu1 %v4779_v43  ;;  %v1817_v1 = vld [vmem:[#allocation19 + $0x188] sm:$0xff] }
 0x582   : > { %2976 = vmatpush1.msra.mxu0 %v1782_v2  ;;  %3009 = vmatprep.mubr.f32.mxu0 %v4779_v43  ;;  %v1819_v2 = vld [vmem:[#allocation19 + $0x198] sm:$0xff] }
 0x583   : > { %2939 = vmatmul.mubr.f32.vlgmr.msra.gmra.mxu1 %v5137_v49  ;;  %3010 = vmatmul.mubr.f32.vlgmr.msra.gmra.mxu0 %v5137_v49 }
 0x584   : > { %3016 = vmatprep.subr.mxu1 %v2265_v3  ;;  %3087 = vmatprep.subr.mxu0 %v2267_v5  ;;  %v1816_v3 = vld [vmem:[#allocation19 + $0x180] sm:$0xff]  ;;  %v1818_v5 = vld [vmem:[#allocation19 + $0x190] sm:$0xff] }
 0x585   : > { %3017 = vmatpush1.msra.mxu1 %v2264_v9  ;;  %3088 = vmatpush1.msra.mxu0 %v2266_v6  ;;  %v1785_v9 = vld [vmem:[#allocation19 + $0x88] sm:$0xff]  ;;  %v1787_v6 = vld [vmem:[#allocation19 + $0x98] sm:$0xff] }
 0x586   : > { %3018 = vmatprep.subr.mxu1 %v2233_v59  ;;  %3089 = vmatprep.subr.mxu0 %v2235_v16  ;;  %v1784_v59 = vld [vmem:[#allocation19 + $0x80] sm:$0xff]  ;;  %v1786_v16 = vld [vmem:[#allocation19 + $0x90] sm:$0xff] }
 0x587   : > { %3019 = vmatpush1.msra.mxu1 %v2232_v14  ;;  %3090 = vmatpush1.msra.mxu0 %v2234_v11  ;;  %v2269_v14 = vld [vmem:[#allocation19 + $0xfa8] sm:$0xff]  ;;  %v2271_v11 = vld [vmem:[#allocation19 + $0xfb8] sm:$0xff] }
 0x588   : > { %3020 = vmatprep.subr.mxu1 %v2201_v17  ;;  %3091 = vmatprep.subr.mxu0 %v2203_v18  ;;  %v2268_v17 = vld [vmem:[#allocation19 + $0xfa0] sm:$0xff]  ;;  %v2270_v18 = vld [vmem:[#allocation19 + $0xfb0] sm:$0xff] }
 0x589   : > { %3021 = vmatpush1.msra.mxu1 %v2200_v8  ;;  %3092 = vmatpush1.msra.mxu0 %v2202_v13  ;;  %v2237_v8 = vld [vmem:[#allocation19 + $0xea8] sm:$0xff]  ;;  %v2239_v13 = vld [vmem:[#allocation19 + $0xeb8] sm:$0xff] }
 0x58a   : > { %3022 = vmatprep.subr.mxu1 %v2169_v15  ;;  %3093 = vmatprep.subr.mxu0 %v2171_v20  ;;  %v2236_v15 = vld [vmem:[#allocation19 + $0xea0] sm:$0xff]  ;;  %v2238_v20 = vld [vmem:[#allocation19 + $0xeb0] sm:$0xff] }
 0x58b   : > { %3023 = vmatpush1.msra.mxu1 %v2168_v22  ;;  %3094 = vmatpush1.msra.mxu0 %v2170_v23  ;;  %v2205_v22 = vld [vmem:[#allocation19 + $0xda8] sm:$0xff]  ;;  %v2207_v23 = vld [vmem:[#allocation19 + $0xdb8] sm:$0xff] }
 0x58c   : > { %3024 = vmatprep.subr.mxu1 %v2137_v24  ;;  %3095 = vmatprep.subr.mxu0 %v2139_v26  ;;  %v2204_v24 = vld [vmem:[#allocation19 + $0xda0] sm:$0xff]  ;;  %v2206_v26 = vld [vmem:[#allocation19 + $0xdb0] sm:$0xff] }
 0x58d   : > { %3025 = vmatpush1.msra.mxu1 %v2136_v27  ;;  %3096 = vmatpush1.msra.mxu0 %v2138_v21  ;;  %v2173_v27 = vld [vmem:[#allocation19 + $0xca8] sm:$0xff]  ;;  %v2175_v21 = vld [vmem:[#allocation19 + $0xcb8] sm:$0xff] }
 0x58e   : > { %3026 = vmatprep.subr.mxu1 %v2105_v25  ;;  %3097 = vmatprep.subr.mxu0 %v2107_v28  ;;  %v2172_v25 = vld [vmem:[#allocation19 + $0xca0] sm:$0xff]  ;;  %v2174_v28 = vld [vmem:[#allocation19 + $0xcb0] sm:$0xff] }
 0x58f   : > { %3027 = vmatpush1.msra.mxu1 %v2104_v29  ;;  %3098 = vmatpush1.msra.mxu0 %v2106_v30  ;;  %v2141_v29 = vld [vmem:[#allocation19 + $0xba8] sm:$0xff]  ;;  %v2143_v30 = vld [vmem:[#allocation19 + $0xbb8] sm:$0xff] }
 0x590   : > { %3028 = vmatprep.subr.mxu1 %v2073_v31  ;;  %3099 = vmatprep.subr.mxu0 %v2075_v62  ;;  %v2140_v31 = vld [vmem:[#allocation19 + $0xba0] sm:$0xff]  ;;  %v2142_v62 = vld [vmem:[#allocation19 + $0xbb0] sm:$0xff] }
 0x591   : > { %3029 = vmatpush1.msra.mxu1 %v2072_v32  ;;  %3100 = vmatpush1.msra.mxu0 %v2074_v33  ;;  %v2109_v32 = vld [vmem:[#allocation19 + $0xaa8] sm:$0xff]  ;;  %v2111_v33 = vld [vmem:[#allocation19 + $0xab8] sm:$0xff] }
 0x592   : > { %3030 = vmatprep.subr.mxu1 %v2041_v34  ;;  %3101 = vmatprep.subr.mxu0 %v2043_v35  ;;  %v2108_v34 = vld [vmem:[#allocation19 + $0xaa0] sm:$0xff]  ;;  %v2110_v35 = vld [vmem:[#allocation19 + $0xab0] sm:$0xff] }
 0x593   : > { %3031 = vmatpush1.msra.mxu1 %v2040_v36  ;;  %3102 = vmatpush1.msra.mxu0 %v2042_v37  ;;  %v2077_v36 = vld [vmem:[#allocation19 + $0x9a8] sm:$0xff]  ;;  %v2079_v37 = vld [vmem:[#allocation19 + $0x9b8] sm:$0xff] }
 0x594   : > { %3032 = vmatprep.subr.mxu1 %v2009_v38  ;;  %3103 = vmatprep.subr.mxu0 %v2011_v39  ;;  %v2076_v38 = vld [vmem:[#allocation19 + $0x9a0] sm:$0xff]  ;;  %v2078_v39 = vld [vmem:[#allocation19 + $0x9b0] sm:$0xff] }
 0x595   : > { %3033 = vmatpush1.msra.mxu1 %v2008_v40  ;;  %3104 = vmatpush1.msra.mxu0 %v2010_v41  ;;  %v2045_v40 = vld [vmem:[#allocation19 + $0x8a8] sm:$0xff]  ;;  %v2047_v41 = vld [vmem:[#allocation19 + $0x8b8] sm:$0xff] }
 0x596   : > { %3034 = vmatprep.subr.mxu1 %v1977_v42  ;;  %3105 = vmatprep.subr.mxu0 %v1979_v44  ;;  %v2044_v42 = vld [vmem:[#allocation19 + $0x8a0] sm:$0xff]  ;;  %v2046_v44 = vld [vmem:[#allocation19 + $0x8b0] sm:$0xff] }
 0x597   : > { %3035 = vmatpush1.msra.mxu1 %v1976_v45  ;;  %3106 = vmatpush1.msra.mxu0 %v1978_v46  ;;  %v2013_v45 = vld [vmem:[#allocation19 + $0x7a8] sm:$0xff]  ;;  %v2015_v46 = vld [vmem:[#allocation19 + $0x7b8] sm:$0xff] }
 0x598   : > { %3036 = vmatprep.subr.mxu1 %v1945_v47  ;;  %3107 = vmatprep.subr.mxu0 %v1947_v48  ;;  %v2012_v47 = vld [vmem:[#allocation19 + $0x7a0] sm:$0xff]  ;;  %v2014_v48 = vld [vmem:[#allocation19 + $0x7b0] sm:$0xff] }
 0x599   : > { %3037 = vmatpush1.msra.mxu1 %v1944_v50  ;;  %3108 = vmatpush1.msra.mxu0 %v1946_v51  ;;  %v1981_v50 = vld [vmem:[#allocation19 + $0x6a8] sm:$0xff]  ;;  %v1983_v51 = vld [vmem:[#allocation19 + $0x6b8] sm:$0xff] }
 0x59a   : > { %3038 = vmatprep.subr.mxu1 %v1913_v52  ;;  %3109 = vmatprep.subr.mxu0 %v1915_v53  ;;  %v1980_v52 = vld [vmem:[#allocation19 + $0x6a0] sm:$0xff]  ;;  %v1982_v53 = vld [vmem:[#allocation19 + $0x6b0] sm:$0xff] }
 0x59b   : > { %3039 = vmatpush1.msra.mxu1 %v1912_v54  ;;  %3110 = vmatpush1.msra.mxu0 %v1914_v55  ;;  %v1949_v54 = vld [vmem:[#allocation19 + $0x5a8] sm:$0xff]  ;;  %v1951_v55 = vld [vmem:[#allocation19 + $0x5b8] sm:$0xff] }
 0x59c   : > { %3040 = vmatprep.subr.mxu1 %v1881_v56  ;;  %3111 = vmatprep.subr.mxu0 %v1883_v57  ;;  %v1948_v56 = vld [vmem:[#allocation19 + $0x5a0] sm:$0xff]  ;;  %v1950_v57 = vld [vmem:[#allocation19 + $0x5b0] sm:$0xff] }
 0x59d   : > { %3041 = vmatpush1.msra.mxu1 %v1880_v58  ;;  %3112 = vmatpush1.msra.mxu0 %v1882_v60  ;;  %v1917_v58 = vld [vmem:[#allocation19 + $0x4a8] sm:$0xff]  ;;  %v1919_v60 = vld [vmem:[#allocation19 + $0x4b8] sm:$0xff] }
 0x59e   : > { %3042 = vmatprep.subr.mxu1 %v1849_v61  ;;  %3113 = vmatprep.subr.mxu0 %v1851_v63  ;;  %v1916_v61 = vld [vmem:[#allocation19 + $0x4a0] sm:$0xff]  ;;  %v1918_v63 = vld [vmem:[#allocation19 + $0x4b0] sm:$0xff] }
 0x59f   : > { %3043 = vmatpush1.msra.mxu1 %v1848_v0  ;;  %3114 = vmatpush1.msra.mxu0 %v1850_v12  ;;  %v1885_v0 = vld [vmem:[#allocation19 + $0x3a8] sm:$0xff]  ;;  %v1887_v12 = vld [vmem:[#allocation19 + $0x3b8] sm:$0xff] }
 0x5a0   : > { %3044 = vmatprep.subr.mxu1 %v1817_v1  ;;  %3115 = vmatprep.subr.mxu0 %v1819_v2  ;;  %v1884_v1 = vld [vmem:[#allocation19 + $0x3a0] sm:$0xff]  ;;  %v1886_v2 = vld [vmem:[#allocation19 + $0x3b0] sm:$0xff] }
 0x5a1   : > { %3045 = vmatpush1.msra.mxu1 %v1816_v3  ;;  %3116 = vmatpush1.msra.mxu0 %v1818_v5  ;;  %v1853_v3 = vld [vmem:[#allocation19 + $0x2a8] sm:$0xff]  ;;  %v1855_v5 = vld [vmem:[#allocation19 + $0x2b8] sm:$0xff] }
 0x5a2   : > { %3046 = vmatprep.subr.mxu1 %v1785_v9  ;;  %3117 = vmatprep.subr.mxu0 %v1787_v6  ;;  %v1852_v9 = vld [vmem:[#allocation19 + $0x2a0] sm:$0xff]  ;;  %v1854_v6 = vld [vmem:[#allocation19 + $0x2b0] sm:$0xff] }
 0x5a3   : > { %3047 = vmatpush1.msra.mxu1 %v1784_v59  ;;  %3080 = vmatprep.mubr.f32.mxu1 %v4779_v43  ;;  %v1821_v59 = vld [vmem:[#allocation19 + $0x1a8] sm:$0xff] }
 0x5a4   : > { %3118 = vmatpush1.msra.mxu0 %v1786_v16  ;;  %3151 = vmatprep.mubr.f32.mxu0 %v4779_v43  ;;  %v1823_v16 = vld [vmem:[#allocation19 + $0x1b8] sm:$0xff] }
 0x5a5   : > { %3081 = vmatmul.mubr.f32.vlgmr.msra.gmra.mxu1 %v5137_v49  ;;  %3152 = vmatmul.mubr.f32.vlgmr.msra.gmra.mxu0 %v5137_v49 }
 0x5a6   : > { %3158 = vmatprep.subr.mxu1 %v2269_v14  ;;  %3229 = vmatprep.subr.mxu0 %v2271_v11  ;;  %v1820_v14 = vld [vmem:[#allocation19 + $0x1a0] sm:$0xff]  ;;  %v1822_v11 = vld [vmem:[#allocation19 + $0x1b0] sm:$0xff] }
 0x5a7   : > { %3159 = vmatpush1.msra.mxu1 %v2268_v17  ;;  %3230 = vmatpush1.msra.mxu0 %v2270_v18  ;;  %v1789_v17 = vld [vmem:[#allocation19 + $0xa8] sm:$0xff]  ;;  %v1791_v18 = vld [vmem:[#allocation19 + $0xb8] sm:$0xff] }
 0x5a8   : > { %3160 = vmatprep.subr.mxu1 %v2237_v8  ;;  %3231 = vmatprep.subr.mxu0 %v2239_v13  ;;  %v1788_v8 = vld [vmem:[#allocation19 + $0xa0] sm:$0xff]  ;;  %v1790_v13 = vld [vmem:[#allocation19 + $0xb0] sm:$0xff] }
 0x5a9   : > { %3161 = vmatpush1.msra.mxu1 %v2236_v15  ;;  %3232 = vmatpush1.msra.mxu0 %v2238_v20  ;;  %v2273_v15 = vld [vmem:[#allocation19 + $0xfc8] sm:$0xff]  ;;  %v2275_v20 = vld [vmem:[#allocation19 + $0xfd8] sm:$0xff] }
 0x5aa   : > { %3162 = vmatprep.subr.mxu1 %v2205_v22  ;;  %3233 = vmatprep.subr.mxu0 %v2207_v23  ;;  %v2272_v22 = vld [vmem:[#allocation19 + $0xfc0] sm:$0xff]  ;;  %v2274_v23 = vld [vmem:[#allocation19 + $0xfd0] sm:$0xff] }
 0x5ab   : > { %3163 = vmatpush1.msra.mxu1 %v2204_v24  ;;  %3234 = vmatpush1.msra.mxu0 %v2206_v26  ;;  %v2241_v24 = vld [vmem:[#allocation19 + $0xec8] sm:$0xff]  ;;  %v2243_v26 = vld [vmem:[#allocation19 + $0xed8] sm:$0xff] }
 0x5ac   : > { %3164 = vmatprep.subr.mxu1 %v2173_v27  ;;  %3235 = vmatprep.subr.mxu0 %v2175_v21  ;;  %v2240_v27 = vld [vmem:[#allocation19 + $0xec0] sm:$0xff]  ;;  %v2242_v21 = vld [vmem:[#allocation19 + $0xed0] sm:$0xff] }
 0x5ad   : > { %3165 = vmatpush1.msra.mxu1 %v2172_v25  ;;  %3236 = vmatpush1.msra.mxu0 %v2174_v28  ;;  %v2209_v25 = vld [vmem:[#allocation19 + $0xdc8] sm:$0xff]  ;;  %v2211_v28 = vld [vmem:[#allocation19 + $0xdd8] sm:$0xff] }
 0x5ae   : > { %3166 = vmatprep.subr.mxu1 %v2141_v29  ;;  %3237 = vmatprep.subr.mxu0 %v2143_v30  ;;  %v2208_v29 = vld [vmem:[#allocation19 + $0xdc0] sm:$0xff]  ;;  %v2210_v30 = vld [vmem:[#allocation19 + $0xdd0] sm:$0xff] }
 0x5af   : > { %3167 = vmatpush1.msra.mxu1 %v2140_v31  ;;  %3238 = vmatpush1.msra.mxu0 %v2142_v62  ;;  %v2177_v31 = vld [vmem:[#allocation19 + $0xcc8] sm:$0xff]  ;;  %v2179_v62 = vld [vmem:[#allocation19 + $0xcd8] sm:$0xff] }
 0x5b0   : > { %3168 = vmatprep.subr.mxu1 %v2109_v32  ;;  %3239 = vmatprep.subr.mxu0 %v2111_v33  ;;  %v2176_v32 = vld [vmem:[#allocation19 + $0xcc0] sm:$0xff]  ;;  %v2178_v33 = vld [vmem:[#allocation19 + $0xcd0] sm:$0xff] }
 0x5b1   : > { %3169 = vmatpush1.msra.mxu1 %v2108_v34  ;;  %3240 = vmatpush1.msra.mxu0 %v2110_v35  ;;  %v2145_v34 = vld [vmem:[#allocation19 + $0xbc8] sm:$0xff]  ;;  %v2147_v35 = vld [vmem:[#allocation19 + $0xbd8] sm:$0xff] }
 0x5b2   : > { %3170 = vmatprep.subr.mxu1 %v2077_v36  ;;  %3241 = vmatprep.subr.mxu0 %v2079_v37  ;;  %v2144_v36 = vld [vmem:[#allocation19 + $0xbc0] sm:$0xff]  ;;  %v2146_v37 = vld [vmem:[#allocation19 + $0xbd0] sm:$0xff] }
 0x5b3   : > { %3171 = vmatpush1.msra.mxu1 %v2076_v38  ;;  %3242 = vmatpush1.msra.mxu0 %v2078_v39  ;;  %v2113_v38 = vld [vmem:[#allocation19 + $0xac8] sm:$0xff]  ;;  %v2115_v39 = vld [vmem:[#allocation19 + $0xad8] sm:$0xff] }
 0x5b4   : > { %3172 = vmatprep.subr.mxu1 %v2045_v40  ;;  %3243 = vmatprep.subr.mxu0 %v2047_v41  ;;  %v2112_v40 = vld [vmem:[#allocation19 + $0xac0] sm:$0xff]  ;;  %v2114_v41 = vld [vmem:[#allocation19 + $0xad0] sm:$0xff] }
 0x5b5   : > { %3173 = vmatpush1.msra.mxu1 %v2044_v42  ;;  %3244 = vmatpush1.msra.mxu0 %v2046_v44  ;;  %v2081_v42 = vld [vmem:[#allocation19 + $0x9c8] sm:$0xff]  ;;  %v2083_v44 = vld [vmem:[#allocation19 + $0x9d8] sm:$0xff] }
 0x5b6   : > { %3174 = vmatprep.subr.mxu1 %v2013_v45  ;;  %3245 = vmatprep.subr.mxu0 %v2015_v46  ;;  %v2080_v45 = vld [vmem:[#allocation19 + $0x9c0] sm:$0xff]  ;;  %v2082_v46 = vld [vmem:[#allocation19 + $0x9d0] sm:$0xff] }
 0x5b7   : > { %3175 = vmatpush1.msra.mxu1 %v2012_v47  ;;  %3246 = vmatpush1.msra.mxu0 %v2014_v48  ;;  %v2049_v47 = vld [vmem:[#allocation19 + $0x8c8] sm:$0xff]  ;;  %v2051_v48 = vld [vmem:[#allocation19 + $0x8d8] sm:$0xff] }
 0x5b8   : > { %3176 = vmatprep.subr.mxu1 %v1981_v50  ;;  %3247 = vmatprep.subr.mxu0 %v1983_v51  ;;  %v2048_v50 = vld [vmem:[#allocation19 + $0x8c0] sm:$0xff]  ;;  %v2050_v51 = vld [vmem:[#allocation19 + $0x8d0] sm:$0xff] }
 0x5b9   : > { %3177 = vmatpush1.msra.mxu1 %v1980_v52  ;;  %3248 = vmatpush1.msra.mxu0 %v1982_v53  ;;  %v2017_v52 = vld [vmem:[#allocation19 + $0x7c8] sm:$0xff]  ;;  %v2019_v53 = vld [vmem:[#allocation19 + $0x7d8] sm:$0xff] }
 0x5ba   : > { %3178 = vmatprep.subr.mxu1 %v1949_v54  ;;  %3249 = vmatprep.subr.mxu0 %v1951_v55  ;;  %v2016_v54 = vld [vmem:[#allocation19 + $0x7c0] sm:$0xff]  ;;  %v2018_v55 = vld [vmem:[#allocation19 + $0x7d0] sm:$0xff] }
 0x5bb   : > { %3179 = vmatpush1.msra.mxu1 %v1948_v56  ;;  %3250 = vmatpush1.msra.mxu0 %v1950_v57  ;;  %v1985_v56 = vld [vmem:[#allocation19 + $0x6c8] sm:$0xff]  ;;  %v1987_v57 = vld [vmem:[#allocation19 + $0x6d8] sm:$0xff] }
 0x5bc   : > { %3180 = vmatprep.subr.mxu1 %v1917_v58  ;;  %3251 = vmatprep.subr.mxu0 %v1919_v60  ;;  %v1984_v58 = vld [vmem:[#allocation19 + $0x6c0] sm:$0xff]  ;;  %v1986_v60 = vld [vmem:[#allocation19 + $0x6d0] sm:$0xff] }
 0x5bd   : > { %3181 = vmatpush1.msra.mxu1 %v1916_v61  ;;  %3252 = vmatpush1.msra.mxu0 %v1918_v63  ;;  %v1953_v61 = vld [vmem:[#allocation19 + $0x5c8] sm:$0xff]  ;;  %v1955_v63 = vld [vmem:[#allocation19 + $0x5d8] sm:$0xff] }
 0x5be   : > { %3182 = vmatprep.subr.mxu1 %v1885_v0  ;;  %3253 = vmatprep.subr.mxu0 %v1887_v12  ;;  %v1952_v0 = vld [vmem:[#allocation19 + $0x5c0] sm:$0xff]  ;;  %v1954_v12 = vld [vmem:[#allocation19 + $0x5d0] sm:$0xff] }
 0x5bf   : > { %3183 = vmatpush1.msra.mxu1 %v1884_v1  ;;  %3254 = vmatpush1.msra.mxu0 %v1886_v2  ;;  %v1921_v1 = vld [vmem:[#allocation19 + $0x4c8] sm:$0xff]  ;;  %v1923_v2 = vld [vmem:[#allocation19 + $0x4d8] sm:$0xff] }
 0x5c0   : > { %3184 = vmatprep.subr.mxu1 %v1853_v3  ;;  %3255 = vmatprep.subr.mxu0 %v1855_v5  ;;  %v1920_v3 = vld [vmem:[#allocation19 + $0x4c0] sm:$0xff]  ;;  %v1922_v5 = vld [vmem:[#allocation19 + $0x4d0] sm:$0xff] }
 0x5c1   : > { %3185 = vmatpush1.msra.mxu1 %v1852_v9  ;;  %3256 = vmatpush1.msra.mxu0 %v1854_v6  ;;  %v1889_v9 = vld [vmem:[#allocation19 + $0x3c8] sm:$0xff]  ;;  %v1891_v6 = vld [vmem:[#allocation19 + $0x3d8] sm:$0xff] }
 0x5c2   : > { %3186 = vmatprep.subr.mxu1 %v1821_v59  ;;  %3257 = vmatprep.subr.mxu0 %v1823_v16  ;;  %v1888_v59 = vld [vmem:[#allocation19 + $0x3c0] sm:$0xff]  ;;  %v1890_v16 = vld [vmem:[#allocation19 + $0x3d0] sm:$0xff] }
 0x5c3   : > { %3187 = vmatpush1.msra.mxu1 %v1820_v14  ;;  %3258 = vmatpush1.msra.mxu0 %v1822_v11  ;;  %v1857_v14 = vld [vmem:[#allocation19 + $0x2c8] sm:$0xff]  ;;  %v1859_v11 = vld [vmem:[#allocation19 + $0x2d8] sm:$0xff] }
 0x5c4   : > { %3188 = vmatprep.subr.mxu1 %v1789_v17  ;;  %3259 = vmatprep.subr.mxu0 %v1791_v18  ;;  %v1856_v17 = vld [vmem:[#allocation19 + $0x2c0] sm:$0xff]  ;;  %v1858_v18 = vld [vmem:[#allocation19 + $0x2d0] sm:$0xff] }
 0x5c5   : > { %3189 = vmatpush1.msra.mxu1 %v1788_v8  ;;  %3222 = vmatprep.mubr.f32.mxu1 %v4779_v43  ;;  %v1825_v8 = vld [vmem:[#allocation19 + $0x1c8] sm:$0xff] }
 0x5c6   : > { %3260 = vmatpush1.msra.mxu0 %v1790_v13  ;;  %3293 = vmatprep.mubr.f32.mxu0 %v4779_v43  ;;  %v1827_v13 = vld [vmem:[#allocation19 + $0x1d8] sm:$0xff] }
 0x5c7   : > { %3223 = vmatmul.mubr.f32.vlgmr.msra.gmra.mxu1 %v5137_v49  ;;  %3294 = vmatmul.mubr.f32.vlgmr.msra.gmra.mxu0 %v5137_v49 }
 0x5c8   : > { %3300 = vmatprep.subr.mxu1 %v2273_v15  ;;  %3371 = vmatprep.subr.mxu0 %v2275_v20  ;;  %v1824_v15 = vld [vmem:[#allocation19 + $0x1c0] sm:$0xff]  ;;  %v1826_v20 = vld [vmem:[#allocation19 + $0x1d0] sm:$0xff] }
 0x5c9   : > { %3301 = vmatpush1.msra.mxu1 %v2272_v22  ;;  %3372 = vmatpush1.msra.mxu0 %v2274_v23  ;;  %v1793_v22 = vld [vmem:[#allocation19 + $0xc8] sm:$0xff]  ;;  %v1795_v23 = vld [vmem:[#allocation19 + $0xd8] sm:$0xff] }
 0x5ca   : > { %3302 = vmatprep.subr.mxu1 %v2241_v24  ;;  %3373 = vmatprep.subr.mxu0 %v2243_v26  ;;  %v1792_v24 = vld [vmem:[#allocation19 + $0xc0] sm:$0xff]  ;;  %v1794_v26 = vld [vmem:[#allocation19 + $0xd0] sm:$0xff] }
 0x5cb   : > { %3303 = vmatpush1.msra.mxu1 %v2240_v27  ;;  %3374 = vmatpush1.msra.mxu0 %v2242_v21  ;;  %v2277_v27 = vld [vmem:[#allocation19 + $0xfe8] sm:$0xff]  ;;  %v2279_v21 = vld [vmem:[#allocation19 + $0xff8] sm:$0xff] }
 0x5cc   : > { %3304 = vmatprep.subr.mxu1 %v2209_v25  ;;  %3375 = vmatprep.subr.mxu0 %v2211_v28  ;;  %v2276_v25 = vld [vmem:[#allocation19 + $0xfe0] sm:$0xff]  ;;  %v2278_v28 = vld [vmem:[#allocation19 + $0xff0] sm:$0xff] }
 0x5cd   : > { %3305 = vmatpush1.msra.mxu1 %v2208_v29  ;;  %3376 = vmatpush1.msra.mxu0 %v2210_v30  ;;  %v2245_v29 = vld [vmem:[#allocation19 + $0xee8] sm:$0xff]  ;;  %v2247_v30 = vld [vmem:[#allocation19 + $0xef8] sm:$0xff] }
 0x5ce   : > { %3306 = vmatprep.subr.mxu1 %v2177_v31  ;;  %3377 = vmatprep.subr.mxu0 %v2179_v62  ;;  %v2244_v31 = vld [vmem:[#allocation19 + $0xee0] sm:$0xff]  ;;  %v2246_v62 = vld [vmem:[#allocation19 + $0xef0] sm:$0xff] }
 0x5cf   : > { %3307 = vmatpush1.msra.mxu1 %v2176_v32  ;;  %3378 = vmatpush1.msra.mxu0 %v2178_v33  ;;  %v2213_v32 = vld [vmem:[#allocation19 + $0xde8] sm:$0xff]  ;;  %v2215_v33 = vld [vmem:[#allocation19 + $0xdf8] sm:$0xff] }
 0x5d0   : > { %3308 = vmatprep.subr.mxu1 %v2145_v34  ;;  %3379 = vmatprep.subr.mxu0 %v2147_v35  ;;  %v2212_v34 = vld [vmem:[#allocation19 + $0xde0] sm:$0xff]  ;;  %v2214_v35 = vld [vmem:[#allocation19 + $0xdf0] sm:$0xff] }
 0x5d1   : > { %3309 = vmatpush1.msra.mxu1 %v2144_v36  ;;  %3380 = vmatpush1.msra.mxu0 %v2146_v37  ;;  %v2181_v36 = vld [vmem:[#allocation19 + $0xce8] sm:$0xff]  ;;  %v2183_v37 = vld [vmem:[#allocation19 + $0xcf8] sm:$0xff] }
 0x5d2   : > { %3310 = vmatprep.subr.mxu1 %v2113_v38  ;;  %3381 = vmatprep.subr.mxu0 %v2115_v39  ;;  %v2180_v38 = vld [vmem:[#allocation19 + $0xce0] sm:$0xff]  ;;  %v2182_v39 = vld [vmem:[#allocation19 + $0xcf0] sm:$0xff] }
 0x5d3   : > { %3311 = vmatpush1.msra.mxu1 %v2112_v40  ;;  %3382 = vmatpush1.msra.mxu0 %v2114_v41  ;;  %v2149_v40 = vld [vmem:[#allocation19 + $0xbe8] sm:$0xff]  ;;  %v2151_v41 = vld [vmem:[#allocation19 + $0xbf8] sm:$0xff] }
 0x5d4   : > { %3312 = vmatprep.subr.mxu1 %v2081_v42  ;;  %3383 = vmatprep.subr.mxu0 %v2083_v44  ;;  %v2148_v42 = vld [vmem:[#allocation19 + $0xbe0] sm:$0xff]  ;;  %v2150_v44 = vld [vmem:[#allocation19 + $0xbf0] sm:$0xff] }
 0x5d5   : > { %3313 = vmatpush1.msra.mxu1 %v2080_v45  ;;  %3384 = vmatpush1.msra.mxu0 %v2082_v46  ;;  %v5166_v45 = vsub.s32 3, %v5078_v4  ;;  %v2117_v46 = vld [vmem:[#allocation19 + $0xae8] sm:$0xff] }
 0x5d6   : > { %3314 = vmatprep.subr.mxu1 %v2049_v47  ;;  %3385 = vmatprep.subr.mxu0 %v2051_v48  ;;  %v2119_v47 = vld [vmem:[#allocation19 + $0xaf8] sm:$0xff] }
 0x5d7   : > { %3315 = vmatpush1.msra.mxu1 %v2048_v50  ;;  %3386 = vmatpush1.msra.mxu0 %v2050_v51  ;;  %v2116_v51 = vld [vmem:[#allocation19 + $0xae0] sm:$0xff] }
 0x5d8   : > { %3316 = vmatprep.subr.mxu1 %v2017_v52  ;;  %3387 = vmatprep.subr.mxu0 %v2019_v53  ;;  %v2118_v52 = vld [vmem:[#allocation19 + $0xaf0] sm:$0xff]  ;;  %v5169_v53 = vsub.s32 2, %v5078_v4 }
 0x5d9   : > { %3317 = vmatpush1.msra.mxu1 %v2016_v54  ;;  %3388 = vmatpush1.msra.mxu0 %v2018_v55  ;;  %v2085_v54 = vld [vmem:[#allocation19 + $0x9e8] sm:$0xff]  ;;  %v2087_v55 = vld [vmem:[#allocation19 + $0x9f8] sm:$0xff] }
 0x5da   : > { %3318 = vmatprep.subr.mxu1 %v1985_v56  ;;  %3389 = vmatprep.subr.mxu0 %v1987_v57  ;;  %v5171_v56 = vld [vmem:[#allocation20] sm:$0xff] }
 0x5db   : > { %3319 = vmatpush1.msra.mxu1 %v1984_v58  ;;  %3390 = vmatpush1.msra.mxu0 %v1986_v60  ;;  %v2084_v57 = vld [vmem:[#allocation19 + $0x9e0] sm:$0xff]  ;;  %v2086_v58 = vld [vmem:[#allocation19 + $0x9f0] sm:$0xff]  ;;  %v2295_v60 = vrot.slane %v5171_v56, %v5084_v10 }
 0x5dc   : > { %3320 = vmatprep.subr.mxu1 %v1953_v61  ;;  %3391 = vmatprep.subr.mxu0 %v1955_v63  ;;  %v2303_v61 = vrot.slane %v5171_v56, %v5166_v45  ;;  %v2053_v63 = vld [vmem:[#allocation19 + $0x8e8] sm:$0xff] }
 0x5dd   : > { %3321 = vmatpush1.msra.mxu1 %v1952_v0  ;;  %3392 = vmatpush1.msra.mxu0 %v1954_v12  ;;  %v2055_v0 = vld [vmem:[#allocation19 + $0x8f8] sm:$0xff] }
 0x5de   : > { %3322 = vmatprep.subr.mxu1 %v1921_v1  ;;  %3393 = vmatprep.subr.mxu0 %v1923_v2  ;;  %v2514_v48 = vpop.f32.mrf.mxu1  ;;  %v2585_v50 = vpop.f32.mrf.mxu0  ;;  %v2052_v2 = vld [vmem:[#allocation19 + $0x8e0] sm:$0xff] }
 0x5df   : > { %3323 = vmatpush1.msra.mxu1 %v1920_v3  ;;  %3394 = vmatpush1.msra.mxu0 %v1922_v5  ;;  %v2054_v3 = vld [vmem:[#allocation19 + $0x8f0] sm:$0xff]  ;;  %v2291_v5 = vrot.slane %v5171_v56, %v5081_v7 }
 0x5e0   : > { %3324 = vmatprep.subr.mxu1 %v1889_v9  ;;  %3395 = vmatprep.subr.mxu0 %v1891_v6  ;;  %v2516_v12 = vpop.f32.mrf.mxu1  ;;  %v2587_v1 = vpop.f32.mrf.mxu0  ;;  %v2299_v9 = vrot.slane %v5171_v56, %v5169_v53  ;;  %v2021_v6 = vld [vmem:[#allocation19 + $0x7e8] sm:$0xff] }
 0x5e1   : > { %3325 = vmatpush1.msra.mxu1 %v1888_v59  ;;  %3396 = vmatpush1.msra.mxu0 %v1890_v16  ;;  %v2023_v59 = vld [vmem:[#allocation19 + $0x7f8] sm:$0xff]  ;;  %v2020_v16 = vld [vmem:[#allocation19 + $0x7e0] sm:$0xff] }
 0x5e2   : > { %3326 = vmatprep.subr.mxu1 %v1857_v14  ;;  %3397 = vmatprep.subr.mxu0 %v1859_v11  ;;  %v2022_v14 = vld [vmem:[#allocation19 + $0x7f0] sm:$0xff]  ;;  %v2517_v11 = vadd.f32 %v2516_v12, %v2295_v60 }
 0x5e3   : > { %3327 = vmatpush1.msra.mxu1 %v1856_v17  ;;  %3398 = vmatpush1.msra.mxu0 %v1858_v18  ;;  %v2588_v17 = vadd.f32 %v2587_v1, %v2303_v61  ;;  %v1989_v18 = vld [vmem:[#allocation19 + $0x6e8] sm:$0xff]  ;;  %v1830_v12 = vld [vmem:[#allocation19 + $0x1f0] sm:$0xff] }
 0x5e4   : > { %3328 = vmatprep.subr.mxu1 %v1825_v8  ;;  %3399 = vmatprep.subr.mxu0 %v1827_v13  ;;  %v1991_v8 = vld [vmem:[#allocation19 + $0x6f8] sm:$0xff]  ;;  %v5182_v13 = vsub.s32 4, %v5078_v4  ;;  %v1829_v61 = vld [vmem:[#allocation19 + $0x1e8] sm:$0xff] }
 0x5e5   : > { %3329 = vmatpush1.msra.mxu1 %v1824_v15  ;;  %3400 = vmatpush1.msra.mxu0 %v1826_v20  ;;  %v1988_v15 = vld [vmem:[#allocation19 + $0x6e0] sm:$0xff]  ;;  %v1990_v20 = vld [vmem:[#allocation19 + $0x6f0] sm:$0xff] }
 0x5e6   : > { %3330 = vmatprep.subr.mxu1 %v1793_v22  ;;  %3401 = vmatprep.subr.mxu0 %v1795_v23  ;;  %v5185_v22 = vsub.s32 6, %v5078_v4  ;;  %v5188_v23 = vsub.s32 5, %v5078_v4 }
 0x5e7   : > { %3331 = vmatpush1.msra.mxu1 %v1792_v24  ;;  %3364 = vmatprep.mubr.f32.mxu1 %v4779_v43  ;;  %v5191_v24 = vsub.s32 7, %v5078_v4  ;;  %v2307_v4 = vrot.slane %v5171_v56, %v5182_v13 }
 0x5e8   : > { %3402 = vmatpush1.msra.mxu0 %v1794_v26  ;;  %3435 = vmatprep.mubr.f32.mxu0 %v4779_v43  ;;  %v2515_v26 = vadd.f32 %v2514_v48, %v2291_v5  ;;  %v1861_v48 = vld [vmem:[#allocation19 + $0x2e8] sm:$0xff]  ;;  %v1799_v5 = vld [vmem:[#allocation19 + $0xf8] sm:$0xff] }
 0x5e9   : > { %3365 = vmatmul.mubr.f32.vlgmr.msra.gmra.mxu1 %v5137_v49  ;;  %3436 = vmatmul.mubr.f32.vlgmr.msra.gmra.mxu0 %v5137_v49 }
 0x5ea   : > { %3442 = vmatprep.subr.mxu1 %v2277_v27  ;;  %3513 = vmatprep.subr.mxu0 %v2279_v21  ;;  %v2586_v27 = vadd.f32 %v2585_v50, %v2299_v9  ;;  %v1957_v21 = vld [vmem:[#allocation19 + $0x5e8] sm:$0xff]  ;;  %v1863_v50 = vld [vmem:[#allocation19 + $0x2f8] sm:$0xff] }
 0x5eb   : > { %3443 = vmatpush1.msra.mxu1 %v2276_v25  ;;  %3514 = vmatpush1.msra.mxu0 %v2278_v28  ;;  %v1959_v25 = vld [vmem:[#allocation19 + $0x5f8] sm:$0xff]  ;;  %v1956_v28 = vld [vmem:[#allocation19 + $0x5e0] sm:$0xff] }
 0x5ec   : > { %3444 = vmatprep.subr.mxu1 %v2245_v29  ;;  %3515 = vmatprep.subr.mxu0 %v2247_v30  ;;  %v1958_v29 = vld [vmem:[#allocation19 + $0x5f0] sm:$0xff]  ;;  %v3616_v30 = vcombine.low %v2515_v26, %v2517_v11  ;;  %v2281_v26 = vld [vmem:[#allocation20 + $0x8] sm:$0xff] }
 0x5ed   : > { %3445 = vmatpush1.msra.mxu1 %v2244_v31  ;;  %3516 = vmatpush1.msra.mxu0 %v2246_v62  ;;  %v3617_v31 = vcombine.low %v2586_v27, %v2588_v17  ;;  %v1925_v62 = vld [vmem:[#allocation19 + $0x4e8] sm:$0xff]  ;;  %v2327_v27 = vrot.slane %v2281_v26, %v5084_v10 }
 0x5ee   : > { %3446 = vmatprep.subr.mxu1 %v2213_v32  ;;  %3517 = vmatprep.subr.mxu0 %v2215_v33  ;;  %v1927_v32 = vld [vmem:[#allocation19 + $0x4f8] sm:$0xff]  ;;  %v1924_v33 = vld [vmem:[#allocation19 + $0x4e0] sm:$0xff] }
 0x5ef   : > { %3447 = vmatpush1.msra.mxu1 %v2212_v34  ;;  %3518 = vmatpush1.msra.mxu0 %v2214_v35  ;;  %v1926_v34 = vld [vmem:[#allocation19 + $0x4f0] sm:$0xff]  ;;  %v2315_v35 = vrot.slane %v5171_v56, %v5185_v22 }
 0x5f0   : > { %3448 = vmatprep.subr.mxu1 %v2181_v36  ;;  %3519 = vmatprep.subr.mxu0 %v2183_v37  ;;  %v2311_v36 = vrot.slane %v5171_v56, %v5188_v23  ;;  %v2319_v37 = vrot.slane %v5171_v56, %v5191_v24  ;;  %v1862_v56 = vld [vmem:[#allocation19 + $0x2f0] sm:$0xff] }
 0x5f1   : > { %3449 = vmatpush1.msra.mxu1 %v2180_v38  ;;  %3520 = vmatpush1.msra.mxu0 %v2182_v39  ;;  %v1893_v38 = vld [vmem:[#allocation19 + $0x3e8] sm:$0xff]  ;;  %v1895_v39 = vld [vmem:[#allocation19 + $0x3f8] sm:$0xff] }
 0x5f2   : > { %3450 = vmatprep.subr.mxu1 %v2149_v40  ;;  %3521 = vmatprep.subr.mxu0 %v2151_v41 }
 0x5f3   : > { %3451 = vmatpush1.msra.mxu1 %v2148_v42  ;;  %3522 = vmatpush1.msra.mxu0 %v2150_v44  ;;  %v1892_v42 = vld [vmem:[#allocation19 + $0x3e0] sm:$0xff]  ;;  %v1894_v44 = vld [vmem:[#allocation19 + $0x3f0] sm:$0xff] }
 0x5f4   : > { %3452 = vmatprep.subr.mxu1 %v2117_v46  ;;  %3523 = vmatprep.subr.mxu0 %v2119_v47  ;;  %v3626_v46 = vrot.slane %v3616_v30, %v5125_v19  ;;  %v3633_v47 = vrot.slane %v3617_v31, %v5125_v19 }
 0x5f5   : > { %3453 = vmatpush1.msra.mxu1 %v2116_v51  ;;  %3524 = vmatpush1.msra.mxu0 %v2118_v52 }
 0x5f6   : > { %3454 = vmatprep.subr.mxu1 %v2085_v54  ;;  %3525 = vmatprep.subr.mxu0 %v2087_v55  ;;  %v1860_v55 = vld [vmem:[#allocation19 + $0x2e0] sm:$0xff]  ;;  %v3648_v9 = vcombine.low %v3626_v46, %v3633_v47 }
 0x5f7   : > { %3455 = vmatpush1.msra.mxu1 %v2084_v57  ;;  %3526 = vmatpush1.msra.mxu0 %v2086_v58 }
 0x5f8   : > { %3456 = vmatprep.subr.mxu1 %v2053_v63  ;;  %3527 = vmatprep.subr.mxu0 %v2055_v0  ;;  %v1831_v63 = vld [vmem:[#allocation19 + $0x1f8] sm:$0xff]  ;;  %v1828_v0 = vld [vmem:[#allocation19 + $0x1e0] sm:$0xff]  ;;  %v3656_v17 = vrot.slane %v3648_v9, %v5125_v19 }
 0x5f9   : > { %3457 = vmatpush1.msra.mxu1 %v2052_v2  ;;  %3528 = vmatpush1.msra.mxu0 %v2054_v3  ;;  %v1797_v3 = vld [vmem:[#allocation19 + $0xe8] sm:$0xff] }
 0x5fa   : > { %3458 = vmatprep.subr.mxu1 %v2021_v6  ;;  %3529 = vmatprep.subr.mxu0 %v2023_v59  ;;  %v1796_v6 = vld [vmem:[#allocation19 + $0xe0] sm:$0xff] }
 0x5fb   : > { %3459 = vmatpush1.msra.mxu1 %v2020_v16  ;;  %3530 = vmatpush1.msra.mxu0 %v2022_v14  ;;  %v1798_v14 = vld [vmem:[#allocation19 + $0xf0] sm:$0xff] }
 0x5fc   : > { %3460 = vmatprep.subr.mxu1 %v1989_v18  ;;  %3531 = vmatprep.subr.mxu0 %v1991_v8 }
 0x5fd   : > { %3461 = vmatpush1.msra.mxu1 %v1988_v15  ;;  %3532 = vmatpush1.msra.mxu0 %v1990_v20 }
 0x5fe   : > { %3462 = vmatprep.subr.mxu1 %v1957_v21  ;;  %3533 = vmatprep.subr.mxu0 %v1959_v25 }
 0x5ff   : > { %3463 = vmatpush1.msra.mxu1 %v1956_v28  ;;  %3534 = vmatpush1.msra.mxu0 %v1958_v29  ;;  %v2656_v40 = vpop.f32.mrf.mxu1  ;;  %v2727_v41 = vpop.f32.mrf.mxu0  ;;  %v2323_v28 = vrot.slane %v2281_v26, %v5081_v7 }
 0x600   : > { %3464 = vmatprep.subr.mxu1 %v1925_v62  ;;  %3535 = vmatprep.subr.mxu0 %v1927_v32  ;;  %v2657_v51 = vadd.f32 %v2656_v40, %v2307_v4  ;;  %v2728_v57 = vadd.f32 %v2727_v41, %v2315_v35  ;;  %v2343_v35 = vrot.slane %v2281_v26, %v5188_v23 }
 0x601   : > { %3465 = vmatpush1.msra.mxu1 %v1924_v33  ;;  %3536 = vmatpush1.msra.mxu0 %v1926_v34  ;;  %v2658_v52 = vpop.f32.mrf.mxu1  ;;  %v2729_v54 = vpop.f32.mrf.mxu0  ;;  %v2339_v33 = vrot.slane %v2281_v26, %v5182_v13  ;;  %v2347_v34 = vrot.slane %v2281_v26, %v5185_v22 }
 0x602   : > { %3466 = vmatprep.subr.mxu1 %v1893_v38  ;;  %3537 = vmatprep.subr.mxu0 %v1895_v39  ;;  %v2659_v58 = vadd.f32 %v2658_v52, %v2311_v36  ;;  %v2730_v60 = vadd.f32 %v2729_v54, %v2319_v37  ;;  %v2351_v36 = vrot.slane %v2281_v26, %v5191_v24 }
 0x603   : > { %3467 = vmatpush1.msra.mxu1 %v1892_v42  ;;  %3538 = vmatpush1.msra.mxu0 %v1894_v44 }
 0x604   : > { %3468 = vmatprep.subr.mxu1 %v1861_v48  ;;  %3539 = vmatprep.subr.mxu0 %v1863_v50  ;;  %v3618_v1 = vcombine.low %v2657_v51, %v2659_v58  ;;  %v3619_v2 = vcombine.low %v2728_v57, %v2730_v60 }
 0x605   : > { %3469 = vmatpush1.msra.mxu1 %v1860_v55  ;;  %3540 = vmatpush1.msra.mxu0 %v1862_v56 }
 0x606   : > { %3470 = vmatprep.subr.mxu1 %v1829_v61  ;;  %3541 = vmatprep.subr.mxu0 %v1831_v63  ;;  %v3640_v59 = vrot.slane %v3618_v1, %v5125_v19  ;;  %v3647_v16 = vrot.slane %v3619_v2, %v5125_v19 }
 0x607   : > { %3471 = vmatpush1.msra.mxu1 %v1828_v0  ;;  %3542 = vmatpush1.msra.mxu0 %v1830_v12  ;;  %v2282_v0 = vld [vmem:[#allocation20 + $0x10] sm:$0xff] }
 0x608   : > { %3472 = vmatprep.subr.mxu1 %v1797_v3  ;;  %3543 = vmatprep.subr.mxu0 %v1799_v5  ;;  %v3649_v11 = vcombine.low %v3640_v59, %v3647_v16  ;;  %v2359_v12 = vrot.slane %v2282_v0, %v5084_v10  ;;  %v2367_v1 = vrot.slane %v2282_v0, %v5166_v45 }
 0x609   : > { %3473 = vmatpush1.msra.mxu1 %v1796_v6  ;;  %3506 = vmatprep.mubr.f32.mxu1 %v4779_v43  ;;  %v2355_v5 = vrot.slane %v2282_v0, %v5081_v7  ;;  %v2363_v9 = vrot.slane %v2282_v0, %v5169_v53 }
 0x60a   : > { %3544 = vmatpush1.msra.mxu0 %v1798_v14  ;;  %3577 = vmatprep.mubr.f32.mxu0 %v4779_v43  ;;  %v3663_v18 = vrot.slane %v3649_v11, %v5125_v19  ;;  %v2335_v43 = vrot.slane %v2281_v26, %v5166_v45 }
 0x60b   : > { %3507 = vmatmul.mubr.f32.vlgmr.msra.gmra.mxu1 %v5137_v49  ;;  %3578 = vmatmul.mubr.f32.vlgmr.msra.gmra.mxu0 %v5137_v49  ;;  %v2331_v49 = vrot.slane %v2281_v26, %v5169_v53 }
 0x60c   : > { %v3664_v8 = vcombine.low %v3656_v17, %v3663_v18  ;;  %v2371_v18 = vrot.slane %v2282_v0, %v5182_v13 }
 0x60e   : > { %3816 = vst [vmem:[%s5215_s19] sm:$0xff] %v3664_v8  ;;  %v2379_v8 = vrot.slane %v2282_v0, %v5185_v22 }
 0x621   : > { %v2798_v15 = vpop.f32.mrf.mxu1  ;;  %v2869_v20 = vpop.f32.mrf.mxu0 }
 0x622   : > { %v2799_v31 = vadd.f32 %v2798_v15, %v2323_v28  ;;  %v2870_v62 = vadd.f32 %v2869_v20, %v2331_v49  ;;  %v2375_v15 = vrot.slane %v2282_v0, %v5188_v23  ;;  %v2383_v20 = vrot.slane %v2282_v0, %v5191_v24 }
 0x623   : > { %v2800_v21 = vpop.f32.mrf.mxu1  ;;  %v2871_v25 = vpop.f32.mrf.mxu0 }
 0x624   : > { %v2801_v29 = vadd.f32 %v2800_v21, %v2327_v27  ;;  %v2872_v30 = vadd.f32 %v2871_v25, %v2335_v43 }
 0x626   : > { %v3665_v32 = vcombine.low %v2799_v31, %v2801_v29  ;;  %v3666_v4 = vcombine.low %v2870_v62, %v2872_v30 }
 0x628   : > { %v3675_v39 = vrot.slane %v3665_v32, %v5125_v19  ;;  %v3682_v40 = vrot.slane %v3666_v4, %v5125_v19 }
 0x62a   : > { %v3697_v52 = vcombine.low %v3675_v39, %v3682_v40 }
 0x62c   : > { %v3705_v57 = vrot.slane %v3697_v52, %v5125_v19 }
 0x643   : > { %v2940_v37 = vpop.f32.mrf.mxu1  ;;  %v3011_v38 = vpop.f32.mrf.mxu0 }
 0x644   : > { %v2941_v44 = vadd.f32 %v2940_v37, %v2339_v33  ;;  %v3012_v46 = vadd.f32 %v3011_v38, %v2347_v34 }
 0x645   : > { %v2942_v41 = vpop.f32.mrf.mxu1  ;;  %v3013_v42 = vpop.f32.mrf.mxu0 }
 0x646   : > { %v2943_v47 = vadd.f32 %v2942_v41, %v2343_v35  ;;  %v3014_v48 = vadd.f32 %v3013_v42, %v2351_v36  ;;  %v2283_v41 = vld [vmem:[#allocation20 + $0x18] sm:$0xff] }
 0x647   : > { %v2391_v42 = vrot.slane %v2283_v41, %v5084_v10  ;;  %v2407_v10 = vrot.slane %v2283_v41, %v5188_v23 }
 0x648   : > { %v3667_v50 = vcombine.low %v2941_v44, %v2943_v47  ;;  %v3668_v51 = vcombine.low %v3012_v46, %v3014_v48  ;;  %v2399_v44 = vrot.slane %v2283_v41, %v5166_v45  ;;  %v2387_v48 = vrot.slane %v2283_v41, %v5081_v7 }
 0x649   : > { %v2415_v45 = vrot.slane %v2283_v41, %v5191_v24 }
 0x64a   : > { %v3689_v54 = vrot.slane %v3667_v50, %v5125_v19  ;;  %v3696_v55 = vrot.slane %v3668_v51, %v5125_v19  ;;  %v2395_v50 = vrot.slane %v2283_v41, %v5169_v53 }
 0x64c   : > { %v3698_v56 = vcombine.low %v3689_v54, %v3696_v55 }
 0x64e   : > { %v3712_v58 = vrot.slane %v3698_v56, %v5125_v19 }
 0x650   : > { %v3713_v60 = vcombine.low %v3705_v57, %v3712_v58  ;;  %v2403_v58 = vrot.slane %v2283_v41, %v5182_v13 }
 0x652   : > { %3817 = vst [vmem:[%s5215_s19 + $0x8] sm:$0xff] %v3713_v60  ;;  %v2411_v60 = vrot.slane %v2283_v41, %v5185_v22 }
 0x665   : > { %v3082_v61 = vpop.f32.mrf.mxu1  ;;  %v3153_v63 = vpop.f32.mrf.mxu0 }
 0x666   : > { %v3083_v16 = vadd.f32 %v3082_v61, %v2355_v5  ;;  %v3154_v14 = vadd.f32 %v3153_v63, %v2363_v9 }
 0x667   : > { %v3084_v2 = vpop.f32.mrf.mxu1  ;;  %v3155_v3 = vpop.f32.mrf.mxu0 }
 0x668   : > { %v3085_v6 = vadd.f32 %v3084_v2, %v2359_v12  ;;  %v3156_v59 = vadd.f32 %v3155_v3, %v2367_v1 }
 0x66a   : > { %v3714_v11 = vcombine.low %v3083_v16, %v3085_v6  ;;  %v3715_v17 = vcombine.low %v3154_v14, %v3156_v59 }
 0x66c   : > { %v3724_v43 = vrot.slane %v3714_v11, %v5125_v19  ;;  %v3731_v21 = vrot.slane %v3715_v17, %v5125_v19 }
 0x66e   : > { %v3746_v4 = vcombine.low %v3724_v43, %v3731_v21 }
 0x670   : > { %v3754_v36 = vrot.slane %v3746_v4, %v5125_v19 }
 0x687   : > { %v3224_v26 = vpop.f32.mrf.mxu1  ;;  %v3295_v27 = vpop.f32.mrf.mxu0 }
 0x688   : > { %v3225_v49 = vadd.f32 %v3224_v26, %v2371_v18  ;;  %v3296_v29 = vadd.f32 %v3295_v27, %v2379_v8 }
 0x689   : > { %v3226_v25 = vpop.f32.mrf.mxu1  ;;  %v3297_v28 = vpop.f32.mrf.mxu0 }
 0x68a   : > { %v3227_v30 = vadd.f32 %v3226_v25, %v2375_v15  ;;  %v3298_v31 = vadd.f32 %v3297_v28, %v2383_v20 }
 0x68c   : > { %v3716_v62 = vcombine.low %v3225_v49, %v3227_v30  ;;  %v3717_v32 = vcombine.low %v3296_v29, %v3298_v31 }
 0x68e   : > { %v3738_v33 = vrot.slane %v3716_v62, %v5125_v19  ;;  %v3745_v34 = vrot.slane %v3717_v32, %v5125_v19 }
 0x690   : > { %v3747_v35 = vcombine.low %v3738_v33, %v3745_v34 }
 0x692   : > { %v3761_v37 = vrot.slane %v3747_v35, %v5125_v19 }
 0x694   : > { %v3762_v38 = vcombine.low %v3754_v36, %v3761_v37 }
 0x696   : > { %3818 = vst [vmem:[%s5215_s19 + $0x10] sm:$0xff] %v3762_v38 }
 0x6a9   : > { %v3366_v39 = vpop.f32.mrf.mxu1  ;;  %v3437_v40 = vpop.f32.mrf.mxu0 }
 0x6aa   : > { %v3367_v54 = vadd.f32 %v3366_v39, %v2387_v48  ;;  %v3438_v55 = vadd.f32 %v3437_v40, %v2395_v50 }
 0x6ab   : > { %v3368_v46 = vpop.f32.mrf.mxu1  ;;  %v3439_v47 = vpop.f32.mrf.mxu0 }
 0x6ac   : > { %v3369_v51 = vadd.f32 %v3368_v46, %v2391_v42  ;;  %v3440_v52 = vadd.f32 %v3439_v47, %v2399_v44 }
 0x6ae   : > { %v3763_v56 = vcombine.low %v3367_v54, %v3369_v51  ;;  %v3764_v57 = vcombine.low %v3438_v55, %v3440_v52 }
 0x6b0   : > { %v3773_v7 = vrot.slane %v3763_v56, %v5125_v19  ;;  %v3780_v53 = vrot.slane %v3764_v57, %v5125_v19 }
 0x6b2   : > { %v3795_v22 = vcombine.low %v3773_v7, %v3780_v53 }
 0x6b4   : > { %v3803_v59 = vrot.slane %v3795_v22, %v5125_v19 }
 0x6cb   : > { %v3508_v61 = vpop.f32.mrf.mxu1  ;;  %v3579_v63 = vpop.f32.mrf.mxu0 }
 0x6cc   : > { %v3509_v1 = vadd.f32 %v3508_v61, %v2403_v58  ;;  %v3580_v2 = vadd.f32 %v3579_v63, %v2411_v60 }
 0x6cd   : > { %v3510_v0 = vpop.f32.mrf.mxu1  ;;  %v3581_v12 = vpop.f32.mrf.mxu0 }
 0x6ce   : > { %v3511_v3 = vadd.f32 %v3510_v0, %v2407_v10  ;;  %v3582_v5 = vadd.f32 %v3581_v12, %v2415_v45 }
 0x6d0   : > { %v3765_v13 = vcombine.low %v3509_v1, %v3511_v3  ;;  %v3766_v9 = vcombine.low %v3580_v2, %v3582_v5 }
 0x6d2   : > { %v3787_v23 = vrot.slane %v3765_v13, %v5125_v19  ;;  %v3794_v24 = vrot.slane %v3766_v9, %v5125_v19 }
 0x6d4   : > { %v3796_v6 = vcombine.low %v3787_v23, %v3794_v24 }
 0x6d6   : > { %v3810_v16 = vrot.slane %v3796_v6, %v5125_v19 }
 0x6d8   : > { %v3811_v14 = vcombine.low %v3803_v59, %v3810_v16 }
 0x6da   : > { %3819 = vst [vmem:[%s5215_s19 + $0x18] sm:$0xff] %v3811_v14 }
 0x6db PF: > { %s30_s27 = sadd.s32 1, %s4755_s27   ;;  %s5303_s25 = smov %s4751_s26 }
 0x6dc   : > { %p27_p6 = scmp.ge.s32.totalorder %s30_s27, 4   ;;  %s5304_s26 = smov %s5306_s22 }
 0x6de   :  { %29 = sbr.rel (!%p27_p6) target bundleno = 11 (0xb), region = 159 }
 0x6e3   :  { %3839 = vsyncpa [#allocation4], 1 }
 0x6e4   :  { %3841 = vsyncpa [#allocation4 + $0x1], 1 }
 0x6e5   :  { %3842 = vsyncpa [#allocation6], 1 }
 0x6e6   :  { %3843 = vsyncpa [#allocation9], 1 }
 0x6e7   :  { %3844 = vsyncpa [#allocation12], 1 }
 0x6e8   :  { %3845 = vsyncpa [#allocation15], 1 }
 0x6e9   :  { %3846 = vsyncpa [#allocation18], 1 }
 0x6ea   :  { %3847 = vsyncpa [#allocation21], 1 }

</bundles_post_ra>
